<compile_context>
chip_gen: v6e
topology: v6e:2x2x1
jax: 0.10.0
libtpu: 0.0.40
codegen_flags: <defaults>
</compile_context>

<pallas_src>
import jax
import jax.numpy as jnp
from jax.experimental import pallas as pl
from jax.experimental.pallas import tpu as pltpu


# ----------------------------- Pallas kernel --------------------------------

def lstm_fc_kernel(x_ref,       # (S, B, I)    float32
                   wih0_ref,    # (I, 4*HP)    layer-0 input weights, gate-padded
                   whh0_ref,    # (HP, 4*HP)   layer-0 recurrent weights, padded
                   b0_ref,      # (1, 4*HP)    bias_ih_l0 + bias_hh_l0, padded
                   w1_ref,      # (2*HP, 4*HP) fused [W_ih_l1 ; W_hh_l1], padded
                   b1_ref,      # (1, 4*HP)    bias_ih_l1 + bias_hh_l1, padded
                   wfc_ref,     # (1, HP)      fc weight row, padded
                   bfc_ref,     # (1, 1)       fc bias
                   out_ref,     # (S, B)
                   gx0_ref,     # VMEM scratch (S, B, 4*HP)
                   h_ref):      # VMEM scratch (S, B, HP)
    S, B, I = x_ref.shape
    HP = whh0_ref.shape[0]
    G = 4 * HP

    # ---- prologue: hoisted layer-0 input projection (one batched matmul) ----
    x2 = x_ref[...].reshape(S * B, I)
    gx0 = jnp.dot(x2, wih0_ref[...], preferred_element_type=jnp.float32) + b0_ref[...]
    gx0_ref[...] = gx0.reshape(S, B, G)

    whh0 = whh0_ref[...]
    w1 = w1_ref[...]
    # Hoist bias broadcast out of the (unrolled) loop body.
    b1b = jnp.broadcast_to(b1_ref[...], (B, G))

    def gate_update(gates, c):
        # Each gate lives in its own 128-lane block -> whole-vreg slices.
        i_g = jax.nn.sigmoid(gates[:, 0 * HP:1 * HP])
        f_g = jax.nn.sigmoid(gates[:, 1 * HP:2 * HP])
        g_g = jnp.tanh(gates[:, 2 * HP:3 * HP])
        o_g = jax.nn.sigmoid(gates[:, 3 * HP:4 * HP])
        c_new = f_g * c + i_g * g_g
        h_new = o_g * jnp.tanh(c_new)
        return h_new, c_new

    zeros = jnp.zeros((B, HP), jnp.float32)
    h0, c0, h1, c1 = zeros, zeros, zeros, zeros

    # ---- fully unrolled recurrence (S is small and static) ----
    for t in range(S):
        # Layer 0: input part precomputed; only the recurrent matmul is serial.
        g0 = gx0_ref[t] + jnp.dot(h0, whh0, preferred_element_type=jnp.float32)
        h0, c0 = gate_update(g0, c0)
        # Layer 1: single fused matmul over [h0 | h1].
        lhs1 = jnp.concatenate([h0, h1], axis=-1)          # (B, 2*HP), vreg boundary
        g1 = jnp.dot(lhs1, w1, preferred_element_type=jnp.float32) + b1b
        h1, c1 = gate_update(g1, c1)
        h_ref[t] = h1

    # ---- epilogue: fc(H -> 1) as VPU multiply + lane reduction (no MXU) ----
    h_all = h_ref[...]                                      # (S, B, HP)
    out = jnp.sum(h_all * wfc_ref[...], axis=-1) + bfc_ref[...]
    out_ref[...] = out


# ------------------------------ wrapper --------------------------------------

def rnn_forward(x, kp):
    """x: (batch, seq, input_size) float32 -> (batch, seq) float32."""
    B, S, I = x.shape
    HP = kp["whh0_p"].shape[0]
    G = 4 * HP
    x_sbi = jnp.transpose(x, (1, 0, 2))                     # (S, B, I)

    # TODO(synk): on v7x a second TensorCore could run an independent batch
    # shard (parallel grid axis); at B=2 on a single serial chain it is a
    # no-op / regression on 1-TC chips, so the kernel stays grid-less here.
    out_sb = pl.pallas_call(
        lstm_fc_kernel,
        out_shape=jax.ShapeDtypeStruct((S, B), jnp.float32),
        in_specs=[pl.BlockSpec(memory_space=pltpu.MemorySpace.VMEM)] * 8,
        out_specs=pl.BlockSpec(memory_space=pltpu.MemorySpace.VMEM),
        scratch_shapes=[pltpu.VMEM((S, B, G), jnp.float32),
                        pltpu.VMEM((S, B, HP), jnp.float32)],
    )(x_sbi,
      kp["wih0_p"], kp["whh0_p"], kp["b0_p"],
      kp["w1_p"], kp["b1_p"],
      kp["wfc_p"], kp["bfc_p"])

    return jnp.transpose(out_sb, (1, 0))                    # (B, S)


# ---------------------- deterministic parameter init -------------------------

def init_raw_params(key, input_size, hidden_size):
    """PyTorch-layout LSTM/Linear parameters (uniform +-1/sqrt(H))."""
    H, I = hidden_size, input_size
    k = 1.0 / jnp.sqrt(jnp.float32(H))
    keys = jax.random.split(key, 10)

    def u(kk, shape):
        return jax.random.uniform(kk, shape, jnp.float32, minval=-k, maxval=k)

    return {
        "w_ih_l0": u(keys[0], (4 * H, I)), "w_hh_l0": u(keys[1], (4 * H, H)),
        "b_ih_l0": u(keys[2], (4 * H,)),   "b_hh_l0": u(keys[3], (4 * H,)),
        "w_ih_l1": u(keys[4], (4 * H, H)), "w_hh_l1": u(keys[5], (4 * H, H)),
        "b_ih_l1": u(keys[6], (4 * H,)),   "b_hh_l1": u(keys[7], (4 * H,)),
        "w_fc": u(keys[8], (1, H)),        "b_fc": u(keys[9], (1,)),
    }


def prepare_kernel_params(raw, pad=128):
    """Build the lane-aligned (gate-per-128-lane-block) padded kernel weights."""
    H = raw["w_hh_l0"].shape[1]
    HP = pad
    G = 4 * HP

    def pad_gate_cols(w_t):                       # (K, 4H) -> (K, 4*HP)
        K = w_t.shape[0]
        out = jnp.zeros((K, G), jnp.float32)
        for g in range(4):
            out = out.at[:, g * HP:g * HP + H].set(w_t[:, g * H:(g + 1) * H])
        return out

    def pad_gate_vec(b):                          # (4H,) -> (1, 4*HP)
        out = jnp.zeros((G,), jnp.float32)
        for g in range(4):
            out = out.at[g * HP:g * HP + H].set(b[g * H:(g + 1) * H])
        return out[None, :]

    wih0_p = pad_gate_cols(raw["w_ih_l0"].T)                                  # (I, G)
    whh0_p = jnp.zeros((HP, G), jnp.float32).at[:H].set(
        pad_gate_cols(raw["w_hh_l0"].T))                                      # (HP, G)
    b0_p = pad_gate_vec(raw["b_ih_l0"] + raw["b_hh_l0"])                      # (1, G)

    w1_p = jnp.zeros((2 * HP, G), jnp.float32)
    w1_p = w1_p.at[:H].set(pad_gate_cols(raw["w_ih_l1"].T))                   # h0 rows
    w1_p = w1_p.at[HP:HP + H].set(pad_gate_cols(raw["w_hh_l1"].T))            # h1 rows
    b1_p = pad_gate_vec(raw["b_ih_l1"] + raw["b_hh_l1"])                      # (1, G)

    wfc_p = jnp.zeros((1, HP), jnp.float32).at[:, :H].set(raw["w_fc"])        # (1, HP)
    bfc_p = raw["b_fc"].reshape(1, 1)                                         # (1, 1)

    return {"wih0_p": wih0_p, "whh0_p": whh0_p, "b0_p": b0_p,
            "w1_p": w1_p, "b1_p": b1_p, "wfc_p": wfc_p, "bfc_p": bfc_p}


# ------------------------- pure-JAX reference ---------------------------------

def rnn_forward_ref(x, raw):
    B, S, I = x.shape
    H = raw["w_hh_l0"].shape[1]
    wih0, whh0 = raw["w_ih_l0"].T, raw["w_hh_l0"].T
    b0 = (raw["b_ih_l0"] + raw["b_hh_l0"])[None, :]
    wih1, whh1 = raw["w_ih_l1"].T, raw["w_hh_l1"].T
    b1 = (raw["b_ih_l1"] + raw["b_hh_l1"])[None, :]
    wfc, bfc = raw["w_fc"].T, raw["b_fc"][None, :]

    def cell(x_t, h, c, wih, whh, b):
        gates = x_t @ wih + h @ whh + b
        i_g = jax.nn.sigmoid(gates[:, 0 * H:1 * H])
        f_g = jax.nn.sigmoid(gates[:, 1 * H:2 * H])
        g_g = jnp.tanh(gates[:, 2 * H:3 * H])
        o_g = jax.nn.sigmoid(gates[:, 3 * H:4 * H])
        c_new = f_g * c + i_g * g_g
        return o_g * jnp.tanh(c_new), c_new

    h0 = c0 = h1 = c1 = jnp.zeros((B, H), jnp.float32)
    outs = []
    for t in range(S):
        h0, c0 = cell(x[:, t, :], h0, c0, wih0, whh0, b0)
        h1, c1 = cell(h0, h1, c1, wih1, whh1, b1)
        outs.append((h1 @ wfc + bfc)[:, 0])
    return jnp.stack(outs, axis=1)                          # (B, S)


# --------------------------------- main ---------------------------------------

if __name__ == "__main__":
    input_size = 39
    hidden_size = 30
    batch = 2
    seq = 8

    key = jax.random.PRNGKey(0)
    k_x, k_p = jax.random.split(key)
    x = jax.random.normal(k_x, (batch, seq, input_size), dtype=jnp.float32)

    raw = init_raw_params(k_p, input_size, hidden_size)
    kparams = prepare_kernel_params(raw, pad=128)

    out = rnn_forward(x, kparams)
    out = jax.block_until_ready(out)

    ref = rnn_forward_ref(x, raw)
    assert out.shape == (batch, seq), out.shape
    assert jnp.allclose(out, ref, rtol=1e-4, atol=1e-4), "mismatch vs reference"

    print("KERNEL_OK")
</pallas_src>

<mosaic_0001>
module attributes {stable_mosaic.version = 11 : i64} {
  func.func @lstm_fc_kernel(%arg0: memref<8x2x39xf32, #tpu.memory_space<vmem>>, %arg1: memref<39x512xf32, #tpu.memory_space<vmem>>, %arg2: memref<128x512xf32, #tpu.memory_space<vmem>>, %arg3: memref<1x512xf32, #tpu.memory_space<vmem>>, %arg4: memref<256x512xf32, #tpu.memory_space<vmem>>, %arg5: memref<1x512xf32, #tpu.memory_space<vmem>>, %arg6: memref<1x128xf32, #tpu.memory_space<vmem>>, %arg7: memref<1x1xf32, #tpu.memory_space<vmem>>, %arg8: memref<8x2xf32, #tpu.memory_space<vmem>>, %arg9: memref<8x2x512xf32, #tpu.memory_space<vmem>>, %arg10: memref<8x2x128xf32, #tpu.memory_space<vmem>>) attributes {dimension_semantics = [], scalar_prefetch = 0 : i64, scratch_operands = 2 : i64, tpu.core_type = #tpu.core_type<tc>} {
    %c0 = arith.constant 0 : index
    %c0_0 = arith.constant 0 : index
    %c0_1 = arith.constant 0 : index
    %0 = vector.load %arg0[%c0, %c0_0, %c0_1] : memref<8x2x39xf32, #tpu.memory_space<vmem>>, vector<8x2x39xf32>
    %1 = vector.shape_cast %0 : vector<8x2x39xf32> to vector<16x39xf32>
    %c0_2 = arith.constant 0 : index
    %c0_3 = arith.constant 0 : index
    %2 = vector.load %arg1[%c0_2, %c0_3] : memref<39x512xf32, #tpu.memory_space<vmem>>, vector<39x512xf32>
    %cst = arith.constant dense<0.000000e+00> : vector<16x512xf32>
    %3 = tpu.matmul %1, %2, %cst {dimension_numbers = #tpu.dot_dimension_numbers<[1], [0], [0], [1], [0, 0, 1, 1], [], []>} : vector<16x39xf32>, vector<39x512xf32>, vector<16x512xf32> -> vector<16x512xf32>
    %c0_4 = arith.constant 0 : index
    %c0_5 = arith.constant 0 : index
    %4 = vector.load %arg3[%c0_4, %c0_5] : memref<1x512xf32, #tpu.memory_space<vmem>>, vector<1x512xf32>
    %5 = vector.broadcast %4 : vector<1x512xf32> to vector<16x512xf32>
    %6 = arith.addf %3, %5 : vector<16x512xf32>
    %7 = vector.shape_cast %6 : vector<16x512xf32> to vector<8x2x512xf32>
    %c0_6 = arith.constant 0 : index
    %c0_7 = arith.constant 0 : index
    %c0_8 = arith.constant 0 : index
    %8 = vector.load %arg9[%c0_6, %c0_7, %c0_8] : memref<8x2x512xf32, #tpu.memory_space<vmem>>, vector<8x2x512xf32>
    tpu.vector_store %arg9[%c0_6, %c0_7, %c0_8], %7 {strides = array<i32>} : memref<8x2x512xf32, #tpu.memory_space<vmem>>, vector<8x2x512xf32>,
    %c0_9 = arith.constant 0 : index
    %c0_10 = arith.constant 0 : index
    %9 = vector.load %arg2[%c0_9, %c0_10] : memref<128x512xf32, #tpu.memory_space<vmem>>, vector<128x512xf32>
    %c0_11 = arith.constant 0 : index
    %c0_12 = arith.constant 0 : index
    %10 = vector.load %arg4[%c0_11, %c0_12] : memref<256x512xf32, #tpu.memory_space<vmem>>, vector<256x512xf32>
    %c0_13 = arith.constant 0 : index
    %c0_14 = arith.constant 0 : index
    %11 = vector.load %arg5[%c0_13, %c0_14] : memref<1x512xf32, #tpu.memory_space<vmem>>, vector<1x512xf32>
    %12 = vector.shape_cast %11 : vector<1x512xf32> to vector<1x512xf32>
    %13 = vector.broadcast %12 : vector<1x512xf32> to vector<2x512xf32>
    %cst_15 = arith.constant 0.000000e+00 : f32
    %14 = vector.broadcast %cst_15 : f32 to vector<2x128xf32>
    %c0_16 = arith.constant 0 : index
    %c0_17 = arith.constant 0 : index
    %c0_18 = arith.constant 0 : index
    %15 = vector.load %arg9[%c0_16, %c0_17, %c0_18] : memref<8x2x512xf32, #tpu.memory_space<vmem>>, vector<1x2x512xf32>
    %16 = vector.shape_cast %15 : vector<1x2x512xf32> to vector<2x512xf32>
    %cst_19 = arith.constant dense<0.000000e+00> : vector<2x512xf32>
    %17 = tpu.matmul %14, %9, %cst_19 {dimension_numbers = #tpu.dot_dimension_numbers<[1], [0], [0], [1], [0, 0, 1, 1], [], []>} : vector<2x128xf32>, vector<128x512xf32>, vector<2x512xf32> -> vector<2x512xf32>
    %18 = arith.addf %16, %17 : vector<2x512xf32>
    %19 = vector.extract_strided_slice %18 {offsets = [0, 0], sizes = [2, 128], strides = [1, 1]} : vector<2x512xf32> to vector<2x128xf32>
    %20 = arith.negf %19 : vector<2x128xf32>
    %21 = math.exp %20 : vector<2x128xf32>
    %cst_20 = arith.constant 1.000000e+00 : f32
    %22 = vector.broadcast %cst_20 : f32 to vector<2x128xf32>
    %23 = arith.addf %22, %21 : vector<2x128xf32>
    %24 = arith.divf %22, %23 : vector<2x128xf32>
    %25 = vector.extract_strided_slice %18 {offsets = [0, 128], sizes = [2, 128], strides = [1, 1]} : vector<2x512xf32> to vector<2x128xf32>
    %26 = arith.negf %25 : vector<2x128xf32>
    %27 = math.exp %26 : vector<2x128xf32>
    %cst_21 = arith.constant 1.000000e+00 : f32
    %28 = vector.broadcast %cst_21 : f32 to vector<2x128xf32>
    %29 = arith.addf %28, %27 : vector<2x128xf32>
    %30 = arith.divf %28, %29 : vector<2x128xf32>
    %31 = vector.extract_strided_slice %18 {offsets = [0, 256], sizes = [2, 128], strides = [1, 1]} : vector<2x512xf32> to vector<2x128xf32>
    %32 = math.tanh %31 : vector<2x128xf32>
    %33 = vector.extract_strided_slice %18 {offsets = [0, 384], sizes = [2, 128], strides = [1, 1]} : vector<2x512xf32> to vector<2x128xf32>
    %34 = arith.negf %33 : vector<2x128xf32>
    %35 = math.exp %34 : vector<2x128xf32>
    %cst_22 = arith.constant 1.000000e+00 : f32
    %36 = vector.broadcast %cst_22 : f32 to vector<2x128xf32>
    %37 = arith.addf %36, %35 : vector<2x128xf32>
    %38 = arith.divf %36, %37 : vector<2x128xf32>
    %39 = arith.mulf %30, %14 : vector<2x128xf32>
    %40 = arith.mulf %24, %32 : vector<2x128xf32>
    %41 = arith.addf %39, %40 : vector<2x128xf32>
    %42 = math.tanh %41 : vector<2x128xf32>
    %43 = arith.mulf %38, %42 : vector<2x128xf32>
    %44 = tpu.concatenate %43, %14 in 1 : vector<2x128xf32>, vector<2x128xf32> -> vector<2x256xf32>
    %cst_23 = arith.constant dense<0.000000e+00> : vector<2x512xf32>
    %45 = tpu.matmul %44, %10, %cst_23 {dimension_numbers = #tpu.dot_dimension_numbers<[1], [0], [0], [1], [0, 0, 1, 1], [], []>} : vector<2x256xf32>, vector<256x512xf32>, vector<2x512xf32> -> vector<2x512xf32>
    %46 = arith.addf %45, %13 : vector<2x512xf32>
    %47 = vector.extract_strided_slice %46 {offsets = [0, 0], sizes = [2, 128], strides = [1, 1]} : vector<2x512xf32> to vector<2x128xf32>
    %48 = arith.negf %47 : vector<2x128xf32>
    %49 = math.exp %48 : vector<2x128xf32>
    %cst_24 = arith.constant 1.000000e+00 : f32
    %50 = vector.broadcast %cst_24 : f32 to vector<2x128xf32>
    %51 = arith.addf %50, %49 : vector<2x128xf32>
    %52 = arith.divf %50, %51 : vector<2x128xf32>
    %53 = vector.extract_strided_slice %46 {offsets = [0, 128], sizes = [2, 128], strides = [1, 1]} : vector<2x512xf32> to vector<2x128xf32>
    %54 = arith.negf %53 : vector<2x128xf32>
    %55 = math.exp %54 : vector<2x128xf32>
    %cst_25 = arith.constant 1.000000e+00 : f32
    %56 = vector.broadcast %cst_25 : f32 to vector<2x128xf32>
    %57 = arith.addf %56, %55 : vector<2x128xf32>
    %58 = arith.divf %56, %57 : vector<2x128xf32>
    %59 = vector.extract_strided_slice %46 {offsets = [0, 256], sizes = [2, 128], strides = [1, 1]} : vector<2x512xf32> to vector<2x128xf32>
    %60 = math.tanh %59 : vector<2x128xf32>
    %61 = vector.extract_strided_slice %46 {offsets = [0, 384], sizes = [2, 128], strides = [1, 1]} : vector<2x512xf32> to vector<2x128xf32>
    %62 = arith.negf %61 : vector<2x128xf32>
    %63 = math.exp %62 : vector<2x128xf32>
    %cst_26 = arith.constant 1.000000e+00 : f32
    %64 = vector.broadcast %cst_26 : f32 to vector<2x128xf32>
    %65 = arith.addf %64, %63 : vector<2x128xf32>
    %66 = arith.divf %64, %65 : vector<2x128xf32>
    %67 = arith.mulf %58, %14 : vector<2x128xf32>
    %68 = arith.mulf %52, %60 : vector<2x128xf32>
    %69 = arith.addf %67, %68 : vector<2x128xf32>
    %70 = math.tanh %69 : vector<2x128xf32>
    %71 = arith.mulf %66, %70 : vector<2x128xf32>
    %c0_27 = arith.constant 0 : index
    %c0_28 = arith.constant 0 : index
    %c0_29 = arith.constant 0 : index
    %72 = vector.load %arg10[%c0_27, %c0_28, %c0_29] : memref<8x2x128xf32, #tpu.memory_space<vmem>>, vector<1x2x128xf32>
    %73 = vector.shape_cast %72 : vector<1x2x128xf32> to vector<2x128xf32>
    %74 = vector.shape_cast %71 : vector<2x128xf32> to vector<1x2x128xf32>
    tpu.vector_store %arg10[%c0_27, %c0_28, %c0_29], %74 {strides = array<i32>} : memref<8x2x128xf32, #tpu.memory_space<vmem>>, vector<1x2x128xf32>,
    %c1 = arith.constant 1 : index
    %c0_30 = arith.constant 0 : index
    %c0_31 = arith.constant 0 : index
    %75 = vector.load %arg9[%c1, %c0_30, %c0_31] : memref<8x2x512xf32, #tpu.memory_space<vmem>>, vector<1x2x512xf32>
    %76 = vector.shape_cast %75 : vector<1x2x512xf32> to vector<2x512xf32>
    %cst_32 = arith.constant dense<0.000000e+00> : vector<2x512xf32>
    %77 = tpu.matmul %43, %9, %cst_32 {dimension_numbers = #tpu.dot_dimension_numbers<[1], [0], [0], [1], [0, 0, 1, 1], [], []>} : vector<2x128xf32>, vector<128x512xf32>, vector<2x512xf32> -> vector<2x512xf32>
    %78 = arith.addf %76, %77 : vector<2x512xf32>
    %79 = vector.extract_strided_slice %78 {offsets = [0, 0], sizes = [2, 128], strides = [1, 1]} : vector<2x512xf32> to vector<2x128xf32>
    %80 = arith.negf %79 : vector<2x128xf32>
    %81 = math.exp %80 : vector<2x128xf32>
    %cst_33 = arith.constant 1.000000e+00 : f32
    %82 = vector.broadcast %cst_33 : f32 to vector<2x128xf32>
    %83 = arith.addf %82, %81 : vector<2x128xf32>
    %84 = arith.divf %82, %83 : vector<2x128xf32>
    %85 = vector.extract_strided_slice %78 {offsets = [0, 128], sizes = [2, 128], strides = [1, 1]} : vector<2x512xf32> to vector<2x128xf32>
    %86 = arith.negf %85 : vector<2x128xf32>
    %87 = math.exp %86 : vector<2x128xf32>
    %cst_34 = arith.constant 1.000000e+00 : f32
    %88 = vector.broadcast %cst_34 : f32 to vector<2x128xf32>
    %89 = arith.addf %88, %87 : vector<2x128xf32>
    %90 = arith.divf %88, %89 : vector<2x128xf32>
    %91 = vector.extract_strided_slice %78 {offsets = [0, 256], sizes = [2, 128], strides = [1, 1]} : vector<2x512xf32> to vector<2x128xf32>
    %92 = math.tanh %91 : vector<2x128xf32>
    %93 = vector.extract_strided_slice %78 {offsets = [0, 384], sizes = [2, 128], strides = [1, 1]} : vector<2x512xf32> to vector<2x128xf32>
    %94 = arith.negf %93 : vector<2x128xf32>
    %95 = math.exp %94 : vector<2x128xf32>
    %cst_35 = arith.constant 1.000000e+00 : f32
    %96 = vector.broadcast %cst_35 : f32 to vector<2x128xf32>
    %97 = arith.addf %96, %95 : vector<2x128xf32>
    %98 = arith.divf %96, %97 : vector<2x128xf32>
    %99 = arith.mulf %90, %41 : vector<2x128xf32>
    %100 = arith.mulf %84, %92 : vector<2x128xf32>
    %101 = arith.addf %99, %100 : vector<2x128xf32>
    %102 = math.tanh %101 : vector<2x128xf32>
    %103 = arith.mulf %98, %102 : vector<2x128xf32>
    %104 = tpu.concatenate %103, %71 in 1 : vector<2x128xf32>, vector<2x128xf32> -> vector<2x256xf32>
    %cst_36 = arith.constant dense<0.000000e+00> : vector<2x512xf32>
    %105 = tpu.matmul %104, %10, %cst_36 {dimension_numbers = #tpu.dot_dimension_numbers<[1], [0], [0], [1], [0, 0, 1, 1], [], []>} : vector<2x256xf32>, vector<256x512xf32>, vector<2x512xf32> -> vector<2x512xf32>
    %106 = arith.addf %105, %13 : vector<2x512xf32>
    %107 = vector.extract_strided_slice %106 {offsets = [0, 0], sizes = [2, 128], strides = [1, 1]} : vector<2x512xf32> to vector<2x128xf32>
    %108 = arith.negf %107 : vector<2x128xf32>
    %109 = math.exp %108 : vector<2x128xf32>
    %cst_37 = arith.constant 1.000000e+00 : f32
    %110 = vector.broadcast %cst_37 : f32 to vector<2x128xf32>
    %111 = arith.addf %110, %109 : vector<2x128xf32>
    %112 = arith.divf %110, %111 : vector<2x128xf32>
    %113 = vector.extract_strided_slice %106 {offsets = [0, 128], sizes = [2, 128], strides = [1, 1]} : vector<2x512xf32> to vector<2x128xf32>
    %114 = arith.negf %113 : vector<2x128xf32>
    %115 = math.exp %114 : vector<2x128xf32>
    %cst_38 = arith.constant 1.000000e+00 : f32
    %116 = vector.broadcast %cst_38 : f32 to vector<2x128xf32>
    %117 = arith.addf %116, %115 : vector<2x128xf32>
    %118 = arith.divf %116, %117 : vector<2x128xf32>
    %119 = vector.extract_strided_slice %106 {offsets = [0, 256], sizes = [2, 128], strides = [1, 1]} : vector<2x512xf32> to vector<2x128xf32>
    %120 = math.tanh %119 : vector<2x128xf32>
    %121 = vector.extract_strided_slice %106 {offsets = [0, 384], sizes = [2, 128], strides = [1, 1]} : vector<2x512xf32> to vector<2x128xf32>
    %122 = arith.negf %121 : vector<2x128xf32>
    %123 = math.exp %122 : vector<2x128xf32>
    %cst_39 = arith.constant 1.000000e+00 : f32
    %124 = vector.broadcast %cst_39 : f32 to vector<2x128xf32>
    %125 = arith.addf %124, %123 : vector<2x128xf32>
    %126 = arith.divf %124, %125 : vector<2x128xf32>
    %127 = arith.mulf %118, %69 : vector<2x128xf32>
    %128 = arith.mulf %112, %120 : vector<2x128xf32>
    %129 = arith.addf %127, %128 : vector<2x128xf32>
    %130 = math.tanh %129 : vector<2x128xf32>
    %131 = arith.mulf %126, %130 : vector<2x128xf32>
    %c1_40 = arith.constant 1 : index
    %c0_41 = arith.constant 0 : index
    %c0_42 = arith.constant 0 : index
    %132 = vector.load %arg10[%c1_40, %c0_41, %c0_42] : memref<8x2x128xf32, #tpu.memory_space<vmem>>, vector<1x2x128xf32>
    %133 = vector.shape_cast %132 : vector<1x2x128xf32> to vector<2x128xf32>
    %134 = vector.shape_cast %131 : vector<2x128xf32> to vector<1x2x128xf32>
    tpu.vector_store %arg10[%c1_40, %c0_41, %c0_42], %134 {strides = array<i32>} : memref<8x2x128xf32, #tpu.memory_space<vmem>>, vector<1x2x128xf32>,
    %c2 = arith.constant 2 : index
    %c0_43 = arith.constant 0 : index
    %c0_44 = arith.constant 0 : index
    %135 = vector.load %arg9[%c2, %c0_43, %c0_44] : memref<8x2x512xf32, #tpu.memory_space<vmem>>, vector<1x2x512xf32>
    %136 = vector.shape_cast %135 : vector<1x2x512xf32> to vector<2x512xf32>
    %cst_45 = arith.constant dense<0.000000e+00> : vector<2x512xf32>
    %137 = tpu.matmul %103, %9, %cst_45 {dimension_numbers = #tpu.dot_dimension_numbers<[1], [0], [0], [1], [0, 0, 1, 1], [], []>} : vector<2x128xf32>, vector<128x512xf32>, vector<2x512xf32> -> vector<2x512xf32>
    %138 = arith.addf %136, %137 : vector<2x512xf32>
    %139 = vector.extract_strided_slice %138 {offsets = [0, 0], sizes = [2, 128], strides = [1, 1]} : vector<2x512xf32> to vector<2x128xf32>
    %140 = arith.negf %139 : vector<2x128xf32>
    %141 = math.exp %140 : vector<2x128xf32>
    %cst_46 = arith.constant 1.000000e+00 : f32
    %142 = vector.broadcast %cst_46 : f32 to vector<2x128xf32>
    %143 = arith.addf %142, %141 : vector<2x128xf32>
    %144 = arith.divf %142, %143 : vector<2x128xf32>
    %145 = vector.extract_strided_slice %138 {offsets = [0, 128], sizes = [2, 128], strides = [1, 1]} : vector<2x512xf32> to vector<2x128xf32>
    %146 = arith.negf %145 : vector<2x128xf32>
    %147 = math.exp %146 : vector<2x128xf32>
    %cst_47 = arith.constant 1.000000e+00 : f32
    %148 = vector.broadcast %cst_47 : f32 to vector<2x128xf32>
    %149 = arith.addf %148, %147 : vector<2x128xf32>
    %150 = arith.divf %148, %149 : vector<2x128xf32>
    %151 = vector.extract_strided_slice %138 {offsets = [0, 256], sizes = [2, 128], strides = [1, 1]} : vector<2x512xf32> to vector<2x128xf32>
    %152 = math.tanh %151 : vector<2x128xf32>
    %153 = vector.extract_strided_slice %138 {offsets = [0, 384], sizes = [2, 128], strides = [1, 1]} : vector<2x512xf32> to vector<2x128xf32>
    %154 = arith.negf %153 : vector<2x128xf32>
    %155 = math.exp %154 : vector<2x128xf32>
    %cst_48 = arith.constant 1.000000e+00 : f32
    %156 = vector.broadcast %cst_48 : f32 to vector<2x128xf32>
    %157 = arith.addf %156, %155 : vector<2x128xf32>
    %158 = arith.divf %156, %157 : vector<2x128xf32>
    %159 = arith.mulf %150, %101 : vector<2x128xf32>
    %160 = arith.mulf %144, %152 : vector<2x128xf32>
    %161 = arith.addf %159, %160 : vector<2x128xf32>
    %162 = math.tanh %161 : vector<2x128xf32>
    %163 = arith.mulf %158, %162 : vector<2x128xf32>
    %164 = tpu.concatenate %163, %131 in 1 : vector<2x128xf32>, vector<2x128xf32> -> vector<2x256xf32>
    %cst_49 = arith.constant dense<0.000000e+00> : vector<2x512xf32>
    %165 = tpu.matmul %164, %10, %cst_49 {dimension_numbers = #tpu.dot_dimension_numbers<[1], [0], [0], [1], [0, 0, 1, 1], [], []>} : vector<2x256xf32>, vector<256x512xf32>, vector<2x512xf32> -> vector<2x512xf32>
    %166 = arith.addf %165, %13 : vector<2x512xf32>
    %167 = vector.extract_strided_slice %166 {offsets = [0, 0], sizes = [2, 128], strides = [1, 1]} : vector<2x512xf32> to vector<2x128xf32>
    %168 = arith.negf %167 : vector<2x128xf32>
    %169 = math.exp %168 : vector<2x128xf32>
    %cst_50 = arith.constant 1.000000e+00 : f32
    %170 = vector.broadcast %cst_50 : f32 to vector<2x128xf32>
    %171 = arith.addf %170, %169 : vector<2x128xf32>
    %172 = arith.divf %170, %171 : vector<2x128xf32>
    %173 = vector.extract_strided_slice %166 {offsets = [0, 128], sizes = [2, 128], strides = [1, 1]} : vector<2x512xf32> to vector<2x128xf32>
    %174 = arith.negf %173 : vector<2x128xf32>
    %175 = math.exp %174 : vector<2x128xf32>
    %cst_51 = arith.constant 1.000000e+00 : f32
    %176 = vector.broadcast %cst_51 : f32 to vector<2x128xf32>
    %177 = arith.addf %176, %175 : vector<2x128xf32>
    %178 = arith.divf %176, %177 : vector<2x128xf32>
    %179 = vector.extract_strided_slice %166 {offsets = [0, 256], sizes = [2, 128], strides = [1, 1]} : vector<2x512xf32> to vector<2x128xf32>
    %180 = math.tanh %179 : vector<2x128xf32>
    %181 = vector.extract_strided_slice %166 {offsets = [0, 384], sizes = [2, 128], strides = [1, 1]} : vector<2x512xf32> to vector<2x128xf32>
    %182 = arith.negf %181 : vector<2x128xf32>
    %183 = math.exp %182 : vector<2x128xf32>
    %cst_52 = arith.constant 1.000000e+00 : f32
    %184 = vector.broadcast %cst_52 : f32 to vector<2x128xf32>
    %185 = arith.addf %184, %183 : vector<2x128xf32>
    %186 = arith.divf %184, %185 : vector<2x128xf32>
    %187 = arith.mulf %178, %129 : vector<2x128xf32>
    %188 = arith.mulf %172, %180 : vector<2x128xf32>
    %189 = arith.addf %187, %188 : vector<2x128xf32>
    %190 = math.tanh %189 : vector<2x128xf32>
    %191 = arith.mulf %186, %190 : vector<2x128xf32>
    %c2_53 = arith.constant 2 : index
    %c0_54 = arith.constant 0 : index
    %c0_55 = arith.constant 0 : index
    %192 = vector.load %arg10[%c2_53, %c0_54, %c0_55] : memref<8x2x128xf32, #tpu.memory_space<vmem>>, vector<1x2x128xf32>
    %193 = vector.shape_cast %192 : vector<1x2x128xf32> to vector<2x128xf32>
    %194 = vector.shape_cast %191 : vector<2x128xf32> to vector<1x2x128xf32>
    tpu.vector_store %arg10[%c2_53, %c0_54, %c0_55], %194 {strides = array<i32>} : memref<8x2x128xf32, #tpu.memory_space<vmem>>, vector<1x2x128xf32>,
    %c3 = arith.constant 3 : index
    %c0_56 = arith.constant 0 : index
    %c0_57 = arith.constant 0 : index
    %195 = vector.load %arg9[%c3, %c0_56, %c0_57] : memref<8x2x512xf32, #tpu.memory_space<vmem>>, vector<1x2x512xf32>
    %196 = vector.shape_cast %195 : vector<1x2x512xf32> to vector<2x512xf32>
    %cst_58 = arith.constant dense<0.000000e+00> : vector<2x512xf32>
    %197 = tpu.matmul %163, %9, %cst_58 {dimension_numbers = #tpu.dot_dimension_numbers<[1], [0], [0], [1], [0, 0, 1, 1], [], []>} : vector<2x128xf32>, vector<128x512xf32>, vector<2x512xf32> -> vector<2x512xf32>
    %198 = arith.addf %196, %197 : vector<2x512xf32>
    %199 = vector.extract_strided_slice %198 {offsets = [0, 0], sizes = [2, 128], strides = [1, 1]} : vector<2x512xf32> to vector<2x128xf32>
    %200 = arith.negf %199 : vector<2x128xf32>
    %201 = math.exp %200 : vector<2x128xf32>
    %cst_59 = arith.constant 1.000000e+00 : f32
    %202 = vector.broadcast %cst_59 : f32 to vector<2x128xf32>
    %203 = arith.addf %202, %201 : vector<2x128xf32>
    %204 = arith.divf %202, %203 : vector<2x128xf32>
    %205 = vector.extract_strided_slice %198 {offsets = [0, 128], sizes = [2, 128], strides = [1, 1]} : vector<2x512xf32> to vector<2x128xf32>
    %206 = arith.negf %205 : vector<2x128xf32>
    %207 = math.exp %206 : vector<2x128xf32>
    %cst_60 = arith.constant 1.000000e+00 : f32
    %208 = vector.broadcast %cst_60 : f32 to vector<2x128xf32>
    %209 = arith.addf %208, %207 : vector<2x128xf32>
    %210 = arith.divf %208, %209 : vector<2x128xf32>
    %211 = vector.extract_strided_slice %198 {offsets = [0, 256], sizes = [2, 128], strides = [1, 1]} : vector<2x512xf32> to vector<2x128xf32>
    %212 = math.tanh %211 : vector<2x128xf32>
    %213 = vector.extract_strided_slice %198 {offsets = [0, 384], sizes = [2, 128], strides = [1, 1]} : vector<2x512xf32> to vector<2x128xf32>
    %214 = arith.negf %213 : vector<2x128xf32>
    %215 = math.exp %214 : vector<2x128xf32>
    %cst_61 = arith.constant 1.000000e+00 : f32
    %216 = vector.broadcast %cst_61 : f32 to vector<2x128xf32>
    %217 = arith.addf %216, %215 : vector<2x128xf32>
    %218 = arith.divf %216, %217 : vector<2x128xf32>
    %219 = arith.mulf %210, %161 : vector<2x128xf32>
    %220 = arith.mulf %204, %212 : vector<2x128xf32>
    %221 = arith.addf %219, %220 : vector<2x128xf32>
    %222 = math.tanh %221 : vector<2x128xf32>
    %223 = arith.mulf %218, %222 : vector<2x128xf32>
    %224 = tpu.concatenate %223, %191 in 1 : vector<2x128xf32>, vector<2x128xf32> -> vector<2x256xf32>
    %cst_62 = arith.constant dense<0.000000e+00> : vector<2x512xf32>
    %225 = tpu.matmul %224, %10, %cst_62 {dimension_numbers = #tpu.dot_dimension_numbers<[1], [0], [0], [1], [0, 0, 1, 1], [], []>} : vector<2x256xf32>, vector<256x512xf32>, vector<2x512xf32> -> vector<2x512xf32>
    %226 = arith.addf %225, %13 : vector<2x512xf32>
    %227 = vector.extract_strided_slice %226 {offsets = [0, 0], sizes = [2, 128], strides = [1, 1]} : vector<2x512xf32> to vector<2x128xf32>
    %228 = arith.negf %227 : vector<2x128xf32>
    %229 = math.exp %228 : vector<2x128xf32>
    %cst_63 = arith.constant 1.000000e+00 : f32
    %230 = vector.broadcast %cst_63 : f32 to vector<2x128xf32>
    %231 = arith.addf %230, %229 : vector<2x128xf32>
    %232 = arith.divf %230, %231 : vector<2x128xf32>
    %233 = vector.extract_strided_slice %226 {offsets = [0, 128], sizes = [2, 128], strides = [1, 1]} : vector<2x512xf32> to vector<2x128xf32>
    %234 = arith.negf %233 : vector<2x128xf32>
    %235 = math.exp %234 : vector<2x128xf32>
    %cst_64 = arith.constant 1.000000e+00 : f32
    %236 = vector.broadcast %cst_64 : f32 to vector<2x128xf32>
    %237 = arith.addf %236, %235 : vector<2x128xf32>
    %238 = arith.divf %236, %237 : vector<2x128xf32>
    %239 = vector.extract_strided_slice %226 {offsets = [0, 256], sizes = [2, 128], strides = [1, 1]} : vector<2x512xf32> to vector<2x128xf32>
    %240 = math.tanh %239 : vector<2x128xf32>
    %241 = vector.extract_strided_slice %226 {offsets = [0, 384], sizes = [2, 128], strides = [1, 1]} : vector<2x512xf32> to vector<2x128xf32>
    %242 = arith.negf %241 : vector<2x128xf32>
    %243 = math.exp %242 : vector<2x128xf32>
    %cst_65 = arith.constant 1.000000e+00 : f32
    %244 = vector.broadcast %cst_65 : f32 to vector<2x128xf32>
    %245 = arith.addf %244, %243 : vector<2x128xf32>
    %246 = arith.divf %244, %245 : vector<2x128xf32>
    %247 = arith.mulf %238, %189 : vector<2x128xf32>
    %248 = arith.mulf %232, %240 : vector<2x128xf32>
    %249 = arith.addf %247, %248 : vector<2x128xf32>
    %250 = math.tanh %249 : vector<2x128xf32>
    %251 = arith.mulf %246, %250 : vector<2x128xf32>
    %c3_66 = arith.constant 3 : index
    %c0_67 = arith.constant 0 : index
    %c0_68 = arith.constant 0 : index
    %252 = vector.load %arg10[%c3_66, %c0_67, %c0_68] : memref<8x2x128xf32, #tpu.memory_space<vmem>>, vector<1x2x128xf32>
    %253 = vector.shape_cast %252 : vector<1x2x128xf32> to vector<2x128xf32>
    %254 = vector.shape_cast %251 : vector<2x128xf32> to vector<1x2x128xf32>
    tpu.vector_store %arg10[%c3_66, %c0_67, %c0_68], %254 {strides = array<i32>} : memref<8x2x128xf32, #tpu.memory_space<vmem>>, vector<1x2x128xf32>,
    %c4 = arith.constant 4 : index
    %c0_69 = arith.constant 0 : index
    %c0_70 = arith.constant 0 : index
    %255 = vector.load %arg9[%c4, %c0_69, %c0_70] : memref<8x2x512xf32, #tpu.memory_space<vmem>>, vector<1x2x512xf32>
    %256 = vector.shape_cast %255 : vector<1x2x512xf32> to vector<2x512xf32>
    %cst_71 = arith.constant dense<0.000000e+00> : vector<2x512xf32>
    %257 = tpu.matmul %223, %9, %cst_71 {dimension_numbers = #tpu.dot_dimension_numbers<[1], [0], [0], [1], [0, 0, 1, 1], [], []>} : vector<2x128xf32>, vector<128x512xf32>, vector<2x512xf32> -> vector<2x512xf32>
    %258 = arith.addf %256, %257 : vector<2x512xf32>
    %259 = vector.extract_strided_slice %258 {offsets = [0, 0], sizes = [2, 128], strides = [1, 1]} : vector<2x512xf32> to vector<2x128xf32>
    %260 = arith.negf %259 : vector<2x128xf32>
    %261 = math.exp %260 : vector<2x128xf32>
    %cst_72 = arith.constant 1.000000e+00 : f32
    %262 = vector.broadcast %cst_72 : f32 to vector<2x128xf32>
    %263 = arith.addf %262, %261 : vector<2x128xf32>
    %264 = arith.divf %262, %263 : vector<2x128xf32>
    %265 = vector.extract_strided_slice %258 {offsets = [0, 128], sizes = [2, 128], strides = [1, 1]} : vector<2x512xf32> to vector<2x128xf32>
    %266 = arith.negf %265 : vector<2x128xf32>
    %267 = math.exp %266 : vector<2x128xf32>
    %cst_73 = arith.constant 1.000000e+00 : f32
    %268 = vector.broadcast %cst_73 : f32 to vector<2x128xf32>
    %269 = arith.addf %268, %267 : vector<2x128xf32>
    %270 = arith.divf %268, %269 : vector<2x128xf32>
    %271 = vector.extract_strided_slice %258 {offsets = [0, 256], sizes = [2, 128], strides = [1, 1]} : vector<2x512xf32> to vector<2x128xf32>
    %272 = math.tanh %271 : vector<2x128xf32>
    %273 = vector.extract_strided_slice %258 {offsets = [0, 384], sizes = [2, 128], strides = [1, 1]} : vector<2x512xf32> to vector<2x128xf32>
    %274 = arith.negf %273 : vector<2x128xf32>
    %275 = math.exp %274 : vector<2x128xf32>
    %cst_74 = arith.constant 1.000000e+00 : f32
    %276 = vector.broadcast %cst_74 : f32 to vector<2x128xf32>
    %277 = arith.addf %276, %275 : vector<2x128xf32>
    %278 = arith.divf %276, %277 : vector<2x128xf32>
    %279 = arith.mulf %270, %221 : vector<2x128xf32>
    %280 = arith.mulf %264, %272 : vector<2x128xf32>
    %281 = arith.addf %279, %280 : vector<2x128xf32>
    %282 = math.tanh %281 : vector<2x128xf32>
    %283 = arith.mulf %278, %282 : vector<2x128xf32>
    %284 = tpu.concatenate %283, %251 in 1 : vector<2x128xf32>, vector<2x128xf32> -> vector<2x256xf32>
    %cst_75 = arith.constant dense<0.000000e+00> : vector<2x512xf32>
    %285 = tpu.matmul %284, %10, %cst_75 {dimension_numbers = #tpu.dot_dimension_numbers<[1], [0], [0], [1], [0, 0, 1, 1], [], []>} : vector<2x256xf32>, vector<256x512xf32>, vector<2x512xf32> -> vector<2x512xf32>
    %286 = arith.addf %285, %13 : vector<2x512xf32>
    %287 = vector.extract_strided_slice %286 {offsets = [0, 0], sizes = [2, 128], strides = [1, 1]} : vector<2x512xf32> to vector<2x128xf32>
    %288 = arith.negf %287 : vector<2x128xf32>
    %289 = math.exp %288 : vector<2x128xf32>
    %cst_76 = arith.constant 1.000000e+00 : f32
    %290 = vector.broadcast %cst_76 : f32 to vector<2x128xf32>
    %291 = arith.addf %290, %289 : vector<2x128xf32>
    %292 = arith.divf %290, %291 : vector<2x128xf32>
    %293 = vector.extract_strided_slice %286 {offsets = [0, 128], sizes = [2, 128], strides = [1, 1]} : vector<2x512xf32> to vector<2x128xf32>
    %294 = arith.negf %293 : vector<2x128xf32>
    %295 = math.exp %294 : vector<2x128xf32>
    %cst_77 = arith.constant 1.000000e+00 : f32
    %296 = vector.broadcast %cst_77 : f32 to vector<2x128xf32>
    %297 = arith.addf %296, %295 : vector<2x128xf32>
    %298 = arith.divf %296, %297 : vector<2x128xf32>
    %299 = vector.extract_strided_slice %286 {offsets = [0, 256], sizes = [2, 128], strides = [1, 1]} : vector<2x512xf32> to vector<2x128xf32>
    %300 = math.tanh %299 : vector<2x128xf32>
    %301 = vector.extract_strided_slice %286 {offsets = [0, 384], sizes = [2, 128], strides = [1, 1]} : vector<2x512xf32> to vector<2x128xf32>
    %302 = arith.negf %301 : vector<2x128xf32>
    %303 = math.exp %302 : vector<2x128xf32>
    %cst_78 = arith.constant 1.000000e+00 : f32
    %304 = vector.broadcast %cst_78 : f32 to vector<2x128xf32>
    %305 = arith.addf %304, %303 : vector<2x128xf32>
    %306 = arith.divf %304, %305 : vector<2x128xf32>
    %307 = arith.mulf %298, %249 : vector<2x128xf32>
    %308 = arith.mulf %292, %300 : vector<2x128xf32>
    %309 = arith.addf %307, %308 : vector<2x128xf32>
    %310 = math.tanh %309 : vector<2x128xf32>
    %311 = arith.mulf %306, %310 : vector<2x128xf32>
    %c4_79 = arith.constant 4 : index
    %c0_80 = arith.constant 0 : index
    %c0_81 = arith.constant 0 : index
    %312 = vector.load %arg10[%c4_79, %c0_80, %c0_81] : memref<8x2x128xf32, #tpu.memory_space<vmem>>, vector<1x2x128xf32>
    %313 = vector.shape_cast %312 : vector<1x2x128xf32> to vector<2x128xf32>
    %314 = vector.shape_cast %311 : vector<2x128xf32> to vector<1x2x128xf32>
    tpu.vector_store %arg10[%c4_79, %c0_80, %c0_81], %314 {strides = array<i32>} : memref<8x2x128xf32, #tpu.memory_space<vmem>>, vector<1x2x128xf32>,
    %c5 = arith.constant 5 : index
    %c0_82 = arith.constant 0 : index
    %c0_83 = arith.constant 0 : index
    %315 = vector.load %arg9[%c5, %c0_82, %c0_83] : memref<8x2x512xf32, #tpu.memory_space<vmem>>, vector<1x2x512xf32>
    %316 = vector.shape_cast %315 : vector<1x2x512xf32> to vector<2x512xf32>
    %cst_84 = arith.constant dense<0.000000e+00> : vector<2x512xf32>
    %317 = tpu.matmul %283, %9, %cst_84 {dimension_numbers = #tpu.dot_dimension_numbers<[1], [0], [0], [1], [0, 0, 1, 1], [], []>} : vector<2x128xf32>, vector<128x512xf32>, vector<2x512xf32> -> vector<2x512xf32>
    %318 = arith.addf %316, %317 : vector<2x512xf32>
    %319 = vector.extract_strided_slice %318 {offsets = [0, 0], sizes = [2, 128], strides = [1, 1]} : vector<2x512xf32> to vector<2x128xf32>
    %320 = arith.negf %319 : vector<2x128xf32>
    %321 = math.exp %320 : vector<2x128xf32>
    %cst_85 = arith.constant 1.000000e+00 : f32
    %322 = vector.broadcast %cst_85 : f32 to vector<2x128xf32>
    %323 = arith.addf %322, %321 : vector<2x128xf32>
    %324 = arith.divf %322, %323 : vector<2x128xf32>
    %325 = vector.extract_strided_slice %318 {offsets = [0, 128], sizes = [2, 128], strides = [1, 1]} : vector<2x512xf32> to vector<2x128xf32>
    %326 = arith.negf %325 : vector<2x128xf32>
    %327 = math.exp %326 : vector<2x128xf32>
    %cst_86 = arith.constant 1.000000e+00 : f32
    %328 = vector.broadcast %cst_86 : f32 to vector<2x128xf32>
    %329 = arith.addf %328, %327 : vector<2x128xf32>
    %330 = arith.divf %328, %329 : vector<2x128xf32>
    %331 = vector.extract_strided_slice %318 {offsets = [0, 256], sizes = [2, 128], strides = [1, 1]} : vector<2x512xf32> to vector<2x128xf32>
    %332 = math.tanh %331 : vector<2x128xf32>
    %333 = vector.extract_strided_slice %318 {offsets = [0, 384], sizes = [2, 128], strides = [1, 1]} : vector<2x512xf32> to vector<2x128xf32>
    %334 = arith.negf %333 : vector<2x128xf32>
    %335 = math.exp %334 : vector<2x128xf32>
    %cst_87 = arith.constant 1.000000e+00 : f32
    %336 = vector.broadcast %cst_87 : f32 to vector<2x128xf32>
    %337 = arith.addf %336, %335 : vector<2x128xf32>
    %338 = arith.divf %336, %337 : vector<2x128xf32>
    %339 = arith.mulf %330, %281 : vector<2x128xf32>
    %340 = arith.mulf %324, %332 : vector<2x128xf32>
    %341 = arith.addf %339, %340 : vector<2x128xf32>
    %342 = math.tanh %341 : vector<2x128xf32>
    %343 = arith.mulf %338, %342 : vector<2x128xf32>
    %344 = tpu.concatenate %343, %311 in 1 : vector<2x128xf32>, vector<2x128xf32> -> vector<2x256xf32>
    %cst_88 = arith.constant dense<0.000000e+00> : vector<2x512xf32>
    %345 = tpu.matmul %344, %10, %cst_88 {dimension_numbers = #tpu.dot_dimension_numbers<[1], [0], [0], [1], [0, 0, 1, 1], [], []>} : vector<2x256xf32>, vector<256x512xf32>, vector<2x512xf32> -> vector<2x512xf32>
    %346 = arith.addf %345, %13 : vector<2x512xf32>
    %347 = vector.extract_strided_slice %346 {offsets = [0, 0], sizes = [2, 128], strides = [1, 1]} : vector<2x512xf32> to vector<2x128xf32>
    %348 = arith.negf %347 : vector<2x128xf32>
    %349 = math.exp %348 : vector<2x128xf32>
    %cst_89 = arith.constant 1.000000e+00 : f32
    %350 = vector.broadcast %cst_89 : f32 to vector<2x128xf32>
    %351 = arith.addf %350, %349 : vector<2x128xf32>
    %352 = arith.divf %350, %351 : vector<2x128xf32>
    %353 = vector.extract_strided_slice %346 {offsets = [0, 128], sizes = [2, 128], strides = [1, 1]} : vector<2x512xf32> to vector<2x128xf32>
    %354 = arith.negf %353 : vector<2x128xf32>
    %355 = math.exp %354 : vector<2x128xf32>
    %cst_90 = arith.constant 1.000000e+00 : f32
    %356 = vector.broadcast %cst_90 : f32 to vector<2x128xf32>
    %357 = arith.addf %356, %355 : vector<2x128xf32>
    %358 = arith.divf %356, %357 : vector<2x128xf32>
    %359 = vector.extract_strided_slice %346 {offsets = [0, 256], sizes = [2, 128], strides = [1, 1]} : vector<2x512xf32> to vector<2x128xf32>
    %360 = math.tanh %359 : vector<2x128xf32>
    %361 = vector.extract_strided_slice %346 {offsets = [0, 384], sizes = [2, 128], strides = [1, 1]} : vector<2x512xf32> to vector<2x128xf32>
    %362 = arith.negf %361 : vector<2x128xf32>
    %363 = math.exp %362 : vector<2x128xf32>
    %cst_91 = arith.constant 1.000000e+00 : f32
    %364 = vector.broadcast %cst_91 : f32 to vector<2x128xf32>
    %365 = arith.addf %364, %363 : vector<2x128xf32>
    %366 = arith.divf %364, %365 : vector<2x128xf32>
    %367 = arith.mulf %358, %309 : vector<2x128xf32>
    %368 = arith.mulf %352, %360 : vector<2x128xf32>
    %369 = arith.addf %367, %368 : vector<2x128xf32>
    %370 = math.tanh %369 : vector<2x128xf32>
    %371 = arith.mulf %366, %370 : vector<2x128xf32>
    %c5_92 = arith.constant 5 : index
    %c0_93 = arith.constant 0 : index
    %c0_94 = arith.constant 0 : index
    %372 = vector.load %arg10[%c5_92, %c0_93, %c0_94] : memref<8x2x128xf32, #tpu.memory_space<vmem>>, vector<1x2x128xf32>
    %373 = vector.shape_cast %372 : vector<1x2x128xf32> to vector<2x128xf32>
    %374 = vector.shape_cast %371 : vector<2x128xf32> to vector<1x2x128xf32>
    tpu.vector_store %arg10[%c5_92, %c0_93, %c0_94], %374 {strides = array<i32>} : memref<8x2x128xf32, #tpu.memory_space<vmem>>, vector<1x2x128xf32>,
    %c6 = arith.constant 6 : index
    %c0_95 = arith.constant 0 : index
    %c0_96 = arith.constant 0 : index
    %375 = vector.load %arg9[%c6, %c0_95, %c0_96] : memref<8x2x512xf32, #tpu.memory_space<vmem>>, vector<1x2x512xf32>
    %376 = vector.shape_cast %375 : vector<1x2x512xf32> to vector<2x512xf32>
    %cst_97 = arith.constant dense<0.000000e+00> : vector<2x512xf32>
    %377 = tpu.matmul %343, %9, %cst_97 {dimension_numbers = #tpu.dot_dimension_numbers<[1], [0], [0], [1], [0, 0, 1, 1], [], []>} : vector<2x128xf32>, vector<128x512xf32>, vector<2x512xf32> -> vector<2x512xf32>
    %378 = arith.addf %376, %377 : vector<2x512xf32>
    %379 = vector.extract_strided_slice %378 {offsets = [0, 0], sizes = [2, 128], strides = [1, 1]} : vector<2x512xf32> to vector<2x128xf32>
    %380 = arith.negf %379 : vector<2x128xf32>
    %381 = math.exp %380 : vector<2x128xf32>
    %cst_98 = arith.constant 1.000000e+00 : f32
    %382 = vector.broadcast %cst_98 : f32 to vector<2x128xf32>
    %383 = arith.addf %382, %381 : vector<2x128xf32>
    %384 = arith.divf %382, %383 : vector<2x128xf32>
    %385 = vector.extract_strided_slice %378 {offsets = [0, 128], sizes = [2, 128], strides = [1, 1]} : vector<2x512xf32> to vector<2x128xf32>
    %386 = arith.negf %385 : vector<2x128xf32>
    %387 = math.exp %386 : vector<2x128xf32>
    %cst_99 = arith.constant 1.000000e+00 : f32
    %388 = vector.broadcast %cst_99 : f32 to vector<2x128xf32>
    %389 = arith.addf %388, %387 : vector<2x128xf32>
    %390 = arith.divf %388, %389 : vector<2x128xf32>
    %391 = vector.extract_strided_slice %378 {offsets = [0, 256], sizes = [2, 128], strides = [1, 1]} : vector<2x512xf32> to vector<2x128xf32>
    %392 = math.tanh %391 : vector<2x128xf32>
    %393 = vector.extract_strided_slice %378 {offsets = [0, 384], sizes = [2, 128], strides = [1, 1]} : vector<2x512xf32> to vector<2x128xf32>
    %394 = arith.negf %393 : vector<2x128xf32>
    %395 = math.exp %394 : vector<2x128xf32>
    %cst_100 = arith.constant 1.000000e+00 : f32
    %396 = vector.broadcast %cst_100 : f32 to vector<2x128xf32>
    %397 = arith.addf %396, %395 : vector<2x128xf32>
    %398 = arith.divf %396, %397 : vector<2x128xf32>
    %399 = arith.mulf %390, %341 : vector<2x128xf32>
    %400 = arith.mulf %384, %392 : vector<2x128xf32>
    %401 = arith.addf %399, %400 : vector<2x128xf32>
    %402 = math.tanh %401 : vector<2x128xf32>
    %403 = arith.mulf %398, %402 : vector<2x128xf32>
    %404 = tpu.concatenate %403, %371 in 1 : vector<2x128xf32>, vector<2x128xf32> -> vector<2x256xf32>
    %cst_101 = arith.constant dense<0.000000e+00> : vector<2x512xf32>
    %405 = tpu.matmul %404, %10, %cst_101 {dimension_numbers = #tpu.dot_dimension_numbers<[1], [0], [0], [1], [0, 0, 1, 1], [], []>} : vector<2x256xf32>, vector<256x512xf32>, vector<2x512xf32> -> vector<2x512xf32>
    %406 = arith.addf %405, %13 : vector<2x512xf32>
    %407 = vector.extract_strided_slice %406 {offsets = [0, 0], sizes = [2, 128], strides = [1, 1]} : vector<2x512xf32> to vector<2x128xf32>
    %408 = arith.negf %407 : vector<2x128xf32>
    %409 = math.exp %408 : vector<2x128xf32>
    %cst_102 = arith.constant 1.000000e+00 : f32
    %410 = vector.broadcast %cst_102 : f32 to vector<2x128xf32>
    %411 = arith.addf %410, %409 : vector<2x128xf32>
    %412 = arith.divf %410, %411 : vector<2x128xf32>
    %413 = vector.extract_strided_slice %406 {offsets = [0, 128], sizes = [2, 128], strides = [1, 1]} : vector<2x512xf32> to vector<2x128xf32>
    %414 = arith.negf %413 : vector<2x128xf32>
    %415 = math.exp %414 : vector<2x128xf32>
    %cst_103 = arith.constant 1.000000e+00 : f32
    %416 = vector.broadcast %cst_103 : f32 to vector<2x128xf32>
    %417 = arith.addf %416, %415 : vector<2x128xf32>
    %418 = arith.divf %416, %417 : vector<2x128xf32>
    %419 = vector.extract_strided_slice %406 {offsets = [0, 256], sizes = [2, 128], strides = [1, 1]} : vector<2x512xf32> to vector<2x128xf32>
    %420 = math.tanh %419 : vector<2x128xf32>
    %421 = vector.extract_strided_slice %406 {offsets = [0, 384], sizes = [2, 128], strides = [1, 1]} : vector<2x512xf32> to vector<2x128xf32>
    %422 = arith.negf %421 : vector<2x128xf32>
    %423 = math.exp %422 : vector<2x128xf32>
    %cst_104 = arith.constant 1.000000e+00 : f32
    %424 = vector.broadcast %cst_104 : f32 to vector<2x128xf32>
    %425 = arith.addf %424, %423 : vector<2x128xf32>
    %426 = arith.divf %424, %425 : vector<2x128xf32>
    %427 = arith.mulf %418, %369 : vector<2x128xf32>
    %428 = arith.mulf %412, %420 : vector<2x128xf32>
    %429 = arith.addf %427, %428 : vector<2x128xf32>
    %430 = math.tanh %429 : vector<2x128xf32>
    %431 = arith.mulf %426, %430 : vector<2x128xf32>
    %c6_105 = arith.constant 6 : index
    %c0_106 = arith.constant 0 : index
    %c0_107 = arith.constant 0 : index
    %432 = vector.load %arg10[%c6_105, %c0_106, %c0_107] : memref<8x2x128xf32, #tpu.memory_space<vmem>>, vector<1x2x128xf32>
    %433 = vector.shape_cast %432 : vector<1x2x128xf32> to vector<2x128xf32>
    %434 = vector.shape_cast %431 : vector<2x128xf32> to vector<1x2x128xf32>
    tpu.vector_store %arg10[%c6_105, %c0_106, %c0_107], %434 {strides = array<i32>} : memref<8x2x128xf32, #tpu.memory_space<vmem>>, vector<1x2x128xf32>,
    %c7 = arith.constant 7 : index
    %c0_108 = arith.constant 0 : index
    %c0_109 = arith.constant 0 : index
    %435 = vector.load %arg9[%c7, %c0_108, %c0_109] : memref<8x2x512xf32, #tpu.memory_space<vmem>>, vector<1x2x512xf32>
    %436 = vector.shape_cast %435 : vector<1x2x512xf32> to vector<2x512xf32>
    %cst_110 = arith.constant dense<0.000000e+00> : vector<2x512xf32>
    %437 = tpu.matmul %403, %9, %cst_110 {dimension_numbers = #tpu.dot_dimension_numbers<[1], [0], [0], [1], [0, 0, 1, 1], [], []>} : vector<2x128xf32>, vector<128x512xf32>, vector<2x512xf32> -> vector<2x512xf32>
    %438 = arith.addf %436, %437 : vector<2x512xf32>
    %439 = vector.extract_strided_slice %438 {offsets = [0, 0], sizes = [2, 128], strides = [1, 1]} : vector<2x512xf32> to vector<2x128xf32>
    %440 = arith.negf %439 : vector<2x128xf32>
    %441 = math.exp %440 : vector<2x128xf32>
    %cst_111 = arith.constant 1.000000e+00 : f32
    %442 = vector.broadcast %cst_111 : f32 to vector<2x128xf32>
    %443 = arith.addf %442, %441 : vector<2x128xf32>
    %444 = arith.divf %442, %443 : vector<2x128xf32>
    %445 = vector.extract_strided_slice %438 {offsets = [0, 128], sizes = [2, 128], strides = [1, 1]} : vector<2x512xf32> to vector<2x128xf32>
    %446 = arith.negf %445 : vector<2x128xf32>
    %447 = math.exp %446 : vector<2x128xf32>
    %cst_112 = arith.constant 1.000000e+00 : f32
    %448 = vector.broadcast %cst_112 : f32 to vector<2x128xf32>
    %449 = arith.addf %448, %447 : vector<2x128xf32>
    %450 = arith.divf %448, %449 : vector<2x128xf32>
    %451 = vector.extract_strided_slice %438 {offsets = [0, 256], sizes = [2, 128], strides = [1, 1]} : vector<2x512xf32> to vector<2x128xf32>
    %452 = math.tanh %451 : vector<2x128xf32>
    %453 = vector.extract_strided_slice %438 {offsets = [0, 384], sizes = [2, 128], strides = [1, 1]} : vector<2x512xf32> to vector<2x128xf32>
    %454 = arith.negf %453 : vector<2x128xf32>
    %455 = math.exp %454 : vector<2x128xf32>
    %cst_113 = arith.constant 1.000000e+00 : f32
    %456 = vector.broadcast %cst_113 : f32 to vector<2x128xf32>
    %457 = arith.addf %456, %455 : vector<2x128xf32>
    %458 = arith.divf %456, %457 : vector<2x128xf32>
    %459 = arith.mulf %450, %401 : vector<2x128xf32>
    %460 = arith.mulf %444, %452 : vector<2x128xf32>
    %461 = arith.addf %459, %460 : vector<2x128xf32>
    %462 = math.tanh %461 : vector<2x128xf32>
    %463 = arith.mulf %458, %462 : vector<2x128xf32>
    %464 = tpu.concatenate %463, %431 in 1 : vector<2x128xf32>, vector<2x128xf32> -> vector<2x256xf32>
    %cst_114 = arith.constant dense<0.000000e+00> : vector<2x512xf32>
    %465 = tpu.matmul %464, %10, %cst_114 {dimension_numbers = #tpu.dot_dimension_numbers<[1], [0], [0], [1], [0, 0, 1, 1], [], []>} : vector<2x256xf32>, vector<256x512xf32>, vector<2x512xf32> -> vector<2x512xf32>
    %466 = arith.addf %465, %13 : vector<2x512xf32>
    %467 = vector.extract_strided_slice %466 {offsets = [0, 0], sizes = [2, 128], strides = [1, 1]} : vector<2x512xf32> to vector<2x128xf32>
    %468 = arith.negf %467 : vector<2x128xf32>
    %469 = math.exp %468 : vector<2x128xf32>
    %cst_115 = arith.constant 1.000000e+00 : f32
    %470 = vector.broadcast %cst_115 : f32 to vector<2x128xf32>
    %471 = arith.addf %470, %469 : vector<2x128xf32>
    %472 = arith.divf %470, %471 : vector<2x128xf32>
    %473 = vector.extract_strided_slice %466 {offsets = [0, 128], sizes = [2, 128], strides = [1, 1]} : vector<2x512xf32> to vector<2x128xf32>
    %474 = arith.negf %473 : vector<2x128xf32>
    %475 = math.exp %474 : vector<2x128xf32>
    %cst_116 = arith.constant 1.000000e+00 : f32
    %476 = vector.broadcast %cst_116 : f32 to vector<2x128xf32>
    %477 = arith.addf %476, %475 : vector<2x128xf32>
    %478 = arith.divf %476, %477 : vector<2x128xf32>
    %479 = vector.extract_strided_slice %466 {offsets = [0, 256], sizes = [2, 128], strides = [1, 1]} : vector<2x512xf32> to vector<2x128xf32>
    %480 = math.tanh %479 : vector<2x128xf32>
    %481 = vector.extract_strided_slice %466 {offsets = [0, 384], sizes = [2, 128], strides = [1, 1]} : vector<2x512xf32> to vector<2x128xf32>
    %482 = arith.negf %481 : vector<2x128xf32>
    %483 = math.exp %482 : vector<2x128xf32>
    %cst_117 = arith.constant 1.000000e+00 : f32
    %484 = vector.broadcast %cst_117 : f32 to vector<2x128xf32>
    %485 = arith.addf %484, %483 : vector<2x128xf32>
    %486 = arith.divf %484, %485 : vector<2x128xf32>
    %487 = arith.mulf %478, %429 : vector<2x128xf32>
    %488 = arith.mulf %472, %480 : vector<2x128xf32>
    %489 = arith.addf %487, %488 : vector<2x128xf32>
    %490 = math.tanh %489 : vector<2x128xf32>
    %491 = arith.mulf %486, %490 : vector<2x128xf32>
    %c7_118 = arith.constant 7 : index
    %c0_119 = arith.constant 0 : index
    %c0_120 = arith.constant 0 : index
    %492 = vector.load %arg10[%c7_118, %c0_119, %c0_120] : memref<8x2x128xf32, #tpu.memory_space<vmem>>, vector<1x2x128xf32>
    %493 = vector.shape_cast %492 : vector<1x2x128xf32> to vector<2x128xf32>
    %494 = vector.shape_cast %491 : vector<2x128xf32> to vector<1x2x128xf32>
    tpu.vector_store %arg10[%c7_118, %c0_119, %c0_120], %494 {strides = array<i32>} : memref<8x2x128xf32, #tpu.memory_space<vmem>>, vector<1x2x128xf32>,
    %c0_121 = arith.constant 0 : index
    %c0_122 = arith.constant 0 : index
    %c0_123 = arith.constant 0 : index
    %495 = vector.load %arg10[%c0_121, %c0_122, %c0_123] : memref<8x2x128xf32, #tpu.memory_space<vmem>>, vector<8x2x128xf32>
    %c0_124 = arith.constant 0 : index
    %c0_125 = arith.constant 0 : index
    %496 = vector.load %arg6[%c0_124, %c0_125] : memref<1x128xf32, #tpu.memory_space<vmem>>, vector<1x128xf32>
    %497 = vector.shape_cast %496 : vector<1x128xf32> to vector<1x1x128xf32>
    %498 = vector.broadcast %497 : vector<1x1x128xf32> to vector<8x2x128xf32>
    %499 = arith.mulf %495, %498 : vector<8x2x128xf32>
    %cst_126 = arith.constant dense<0.000000e+00> : vector<8x2xf32>
    %500 = vector.multi_reduction <add>, %499, %cst_126 [2] : vector<8x2x128xf32> to vector<8x2xf32>
    %c0_127 = arith.constant 0 : index
    %c0_128 = arith.constant 0 : index
    %501 = vector.load %arg7[%c0_127, %c0_128] : memref<1x1xf32, #tpu.memory_space<vmem>>, vector<1x1xf32>
    %502 = vector.broadcast %501 : vector<1x1xf32> to vector<8x2xf32>
    %503 = arith.addf %500, %502 : vector<8x2xf32>
    %c0_129 = arith.constant 0 : index
    %c0_130 = arith.constant 0 : index
    %504 = vector.load %arg8[%c0_129, %c0_130] : memref<8x2xf32, #tpu.memory_space<vmem>>, vector<8x2xf32>
    tpu.vector_store %arg8[%c0_129, %c0_130], %503 {strides = array<i32>} : memref<8x2xf32, #tpu.memory_space<vmem>>, vector<8x2xf32>,
    return
  }
}

</mosaic_0001>

<bundles_post_ra>
// kernel: tpu_custom_call.1
= control target key start
LH: loop header
LB: loop body
LE: loop exit
PB: predicated region body
PF: predicated region fallthrough
CT: control target
= control target key end

     0   :  { %s8177_s0 = inlined_call_operand.hbm [shape: f32[8,2,39], index: 0, kind: input, shape index: {}]   ;;  %s8178_s1 = inlined_call_operand.hbm [shape: f32[39,512], index: 1, kind: input, shape index: {}]   ;;  %s8179_s2 = inlined_call_operand.hbm [shape: f32[128,512], index: 2, kind: input, shape index: {}]   ;;  %s8180_s3 = inlined_call_operand.vmem [shape: f32[1,512], index: 3, kind: input, shape index: {}]   ;;  %s8181_s4 = inlined_call_operand.hbm [shape: f32[256,512], index: 4, kind: input, shape index: {}]   ;;  %s8182_s5 = inlined_call_operand.vmem [shape: f32[1,512], index: 5, kind: input, shape index: {}]   ;;  %s8183_s6 = inlined_call_operand.vmem [shape: f32[1,128], index: 6, kind: input, shape index: {}]   ;;  %s8184_s7 = inlined_call_operand.<no memory space> [shape: f32[1,1], index: 7, kind: input, shape index: {}]   ;;  %s8185_s8 = inlined_call_operand.vmem [shape: f32[8,2], index: 8, kind: output, shape index: {}]  }
   0x1   :  { %v13_v0 = vstv %s8184_s7 }
   0x2   :  { %14 = vst [vmem:[#allocation4] sm:$0x1] %v13_v0 }
   0x3   :  { %15 = vsyncpa [#allocation6], 0 }
   0x4   :  { %16 = vsyncpa [#allocation8], 0 }
   0x5   :  { %17 = vsyncpa [#allocation11], 0  ;;  %s4708_s29 = smov [#allocation7]  }
   0x6   :  { %s35_s30 = sshll.u32 %s4708_s29, 4  ;;  %s36_s30 = int_to_ptr.vmem [resolvable:$true] %s35_s30 }
   0x7   :  { %s4630_s9 = scalar_lea.vmem %s36_s30, 2560  ;;  %p4635_p1 = scmp.lt.s32.totalorder %s36_s30, %s36_s30 }
   0x8   :  { %p4631_p0 = scmp.ne.s32.totalorder %s36_s30, %s4630_s9  ;;  %p4636_p2 = scmp.lt.s32.totalorder %s4630_s9, %s4630_s9 }
   0xa   :  { %p4637_p3 = por %p4636_p2, %p4635_p1 }
   0xc   :  { %p4638_p4 = pnand %p4637_p3, %p4631_p0 }
   0xe   :  { %4641 = shalt.err (!%p4638_p4)
}
   0xf   :  { %s4709_s10 = smov 512   ;;  %s4710_s11 = smov 32  }
  0x10   :  { %41 = dma.hbm_to_vmem [thread:$0]  %s8178_s1, 2560, %s36_s30, [#allocation8], %s4709_s10, %s4709_s10, %s4710_s11  }
  0x11   :  { %s4711_s13 = smov [#allocation5]  }
  0x12   :  { %s23_s14 = sshll.u32 %s4711_s13, 4  ;;  %s24_s14 = int_to_ptr.vmem [resolvable:$true] %s23_s14 }
  0x13   :  { %s4650_s15 = scalar_lea.vmem %s24_s14, 256  ;;  %p4655_p6 = scmp.lt.s32.totalorder %s24_s14, %s24_s14 }
  0x14   :  { %p4651_p5 = scmp.ne.s32.totalorder %s24_s14, %s4650_s15  ;;  %p4656_p7 = scmp.lt.s32.totalorder %s4650_s15, %s4650_s15 }
  0x16   :  { %p4657_p8 = por %p4656_p7, %p4655_p6 }
  0x18   :  { %p4658_p9 = pnand %p4657_p8, %p4651_p5 }
  0x1a   :  { %4661 = shalt.err (!%p4658_p9)
}
  0x1b   :  { %s4712_s16 = smov 2   ;;  %s4713_s19 = smov [#allocation9]  }
  0x1c   :  { %29 = dma.hbm_to_vmem [thread:$0]  %s8177_s0, 256, %s24_s14, [#allocation6], %s4710_s11, %s4710_s11, %s4712_s16  }
  0x1d   :  { %s47_s20 = sshll.u32 %s4713_s19, 4  ;;  %s4714_s1 = smov [#allocation10]   ;;  %s48_s20 = int_to_ptr.vmem [resolvable:$true] %s47_s20 }
  0x1e   :  { %s61_s21 = sshll.u32 %s4714_s1, 4  ;;  %s4670_s22 = scalar_lea.vmem %s48_s20, 8192  ;;  %s62_s21 = int_to_ptr.vmem [resolvable:$true] %s61_s21 }
  0x1f   :  { %p4671_p10 = scmp.ne.s32.totalorder %s48_s20, %s4670_s22  ;;  %p4675_p11 = scmp.lt.s32.totalorder %s48_s20, %s48_s20 }
  0x20   :  { %p4676_p12 = scmp.lt.s32.totalorder %s4670_s22, %s4670_s22 }
  0x22   :  { %p4677_p13 = por %p4676_p12, %p4675_p11 }
  0x24   :  { %p4678_p0 = pnand %p4677_p13, %p4671_p10 }
  0x26   :  { %4681 = shalt.err (!%p4678_p0)
}
  0x27   :  { %53 = dma.hbm_to_vmem [thread:$0]  %s8179_s2, 8192, %s48_s20, [#allocation8], %s4709_s10, %s4709_s10, %s4710_s11  }
  0x28   :  { %s4690_s0 = scalar_lea.vmem %s62_s21, 16384  ;;  %p4695_p2 = scmp.lt.s32.totalorder %s62_s21, %s62_s21 }
  0x29   :  { %p4691_p1 = scmp.ne.s32.totalorder %s62_s21, %s4690_s0  ;;  %p4696_p3 = scmp.lt.s32.totalorder %s4690_s0, %s4690_s0 }
  0x2b   :  { %p4697_p4 = por %p4696_p3, %p4695_p2 }
  0x2d   :  { %p4698_p5 = pnand %p4697_p4, %p4691_p1 }
  0x2f   :  { %4701 = shalt.err (!%p4698_p5)
}
  0x30   :  { %67 = dma.hbm_to_vmem [thread:$0]  %s8181_s4, 16384, %s62_s21, [#allocation11], %s4709_s10, %s4709_s10, %s4710_s11  }
  0x31   :  { %4702 = dma.done.wait [#allocation6], 256  }
  0x32   :  { %4703 = vsyncadd [#allocation6], 4294967040 }
  0x33   :  { %4704 = dma.done.wait [#allocation8], 10752  }
  0x34   :  { %4705 = vsyncadd [#allocation8], 4294956544 }
  0x35   :  { %4706 = dma.done.wait [#allocation11], 16384  }
  0x36   :  { %4707 = vsyncadd [#allocation11], 4294950912  ;;  %v8187_v1 = vmov 0.0   ;;  %vm183_vm0 = vcmask 1046528   ;;  %v8186_v2 = vlaneseq  ;;  %v4716_v3 = vmov 1983009808  }
  0x37   :  { %260 = vmatprep.mubr.f32.mxu0 %v8187_v1  ;;  %337 = vmatprep.mubr.f32.mxu1 %v8187_v1  ;;  %v147_v4 = vunpack.c.l.s4 %v4716_v3  ;;  %v111_v5 = vld [vmem:[#allocation7 + $0x88] sm:$0x7f]  ;;  %v113_v6 = vld [vmem:[#allocation7 + $0x98] sm:$0x7f]  ;;  %v110_v7 = vld [vmem:[#allocation7 + $0x80] sm:$0x7f] }
  0x38   :  { %3718 = vmatprep.subr.msk.mxu0 %vm183_vm0, %v111_v5  ;;  %3722 = vmatprep.subr.msk.mxu1 %vm183_vm0, %v113_v6  ;;  %v112_v8 = vld [vmem:[#allocation7 + $0x90] sm:$0x7f]  ;;  %v107_v9 = vld [vmem:[#allocation7 + $0x68] sm:$0xff]  ;;  %v109_v10 = vld [vmem:[#allocation7 + $0x78] sm:$0xff]  ;;  %v4792_v14 = vshrl.u32 %v8186_v2, 7  ;;  %vm178_vm1 = vcmask 318464  }
  0x39   :  { %3719 = vmatpush1.msk.msra.mxu0 %vm183_vm0, %v110_v7  ;;  %3723 = vmatpush1.msk.msra.mxu1 %vm183_vm0, %v112_v8  ;;  %v106_v11 = vld [vmem:[#allocation7 + $0x60] sm:$0xff]  ;;  %v108_v12 = vld [vmem:[#allocation7 + $0x70] sm:$0xff]  ;;  %v103_v13 = vld [vmem:[#allocation7 + $0x48] sm:$0xff]  ;;  %v148_v15 = vunpack.c.0.s8 %v147_v4  ;;  %vm3609_vm2 = vcmask 1041408   ;;  %vm3694_vm3 = vcmask 1041409   ;;  %vm3696_vm4 = vcmask 1042434  }
  0x3a   :  { %8827 = vst [vmem:[#allocation15_spill] sm:$0xff] %v4792_v14  ;;  %220 = vmatprep.subr.mxu0 %v107_v9  ;;  %297 = vmatprep.subr.mxu1 %v109_v10  ;;  %v105_v16 = vld [vmem:[#allocation7 + $0x58] sm:$0xff]  ;;  %v102_v17 = vld [vmem:[#allocation7 + $0x40] sm:$0xff]  ;;  %v104_v18 = vld [vmem:[#allocation7 + $0x50] sm:$0xff]  ;;  %vm3698_vm5 = vcmask 1043459   ;;  %vm3700_vm6 = vcmask 1044484  }
  0x3b   :  { %221 = vmatpush1.msra.mxu0 %v106_v11  ;;  %298 = vmatpush1.msra.mxu1 %v108_v12  ;;  %v99_v19 = vld [vmem:[#allocation7 + $0x28] sm:$0xff]  ;;  %v101_v20 = vld [vmem:[#allocation7 + $0x38] sm:$0xff]  ;;  %v98_v21 = vld [vmem:[#allocation7 + $0x20] sm:$0xff]  ;;  %v4795_v28 = vsub.s32 %v148_v15, %v4792_v14  ;;  %vm3702_vm7 = vcmask 1045509   ;;  %vm3704_vm8 = vcmask 1046534   ;;  %vm3706_vm9 = vcmask 1047559  }
  0x3c   :  { %222 = vmatprep.subr.mxu0 %v103_v13  ;;  %299 = vmatprep.subr.mxu1 %v105_v16  ;;  %v100_v22 = vld [vmem:[#allocation7 + $0x30] sm:$0xff]  ;;  %v95_v23 = vld [vmem:[#allocation7 + $0x8] sm:$0xff]  ;;  %v97_v24 = vld [vmem:[#allocation7 + $0x18] sm:$0xff]  ;;  %vm3709_vm10 = vcmask 15360  }
  0x3d   :  { %223 = vmatpush1.msra.mxu0 %v102_v17  ;;  %300 = vmatpush1.msra.mxu1 %v104_v18  ;;  %v94_v25 = vld [vmem:[#allocation7] sm:$0xff]  ;;  %v96_v26 = vld [vmem:[#allocation7 + $0x10] sm:$0xff]  ;;  %v4797_v34 = vld [vmem:[#allocation9 + $0x1e8] sm:$0xff] }
  0x3e   :  { %v86_v27 = vld [vmem:[#allocation5] sm:$0x3]  ;;  %224 = vmatprep.subr.mxu0 %v99_v19  ;;  %301 = vmatprep.subr.mxu1 %v101_v20  ;;  %v87_v29 = vld [vmem:[#allocation5 + $0x2] sm:$0x3]  ;;  %v88_v30 = vld [vmem:[#allocation5 + $0x4] sm:$0x3] }
  0x3f   :  { %v89_v31 = vld [vmem:[#allocation5 + $0x6] sm:$0x3]  ;;  %225 = vmatpush1.msra.mxu0 %v98_v21  ;;  %302 = vmatpush1.msra.mxu1 %v100_v22  ;;  %v144_v32 = vcombine.low %v86_v27, %v87_v29  ;;  %v4799_v35 = vld [vmem:[#allocation9 + $0x1f8] sm:$0xff]  ;;  %v4805_v39 = vld [vmem:[#allocation9 + $0x1e0] sm:$0xff] }
  0x40   :  { %v145_v33 = vcombine.low %v88_v30, %v89_v31  ;;  %226 = vmatprep.subr.mxu0 %v95_v23  ;;  %303 = vmatprep.subr.mxu1 %v97_v24  ;;  %v4807_v40 = vld [vmem:[#allocation9 + $0x1f0] sm:$0xff]  ;;  %v4809_v41 = vld [vmem:[#allocation9 + $0x1c8] sm:$0xff]  ;;  %v4811_v42 = vld [vmem:[#allocation9 + $0x1d8] sm:$0xff] }
  0x41   :  { %227 = vmatpush1.msra.mxu0 %v94_v25  ;;  %304 = vmatpush1.msra.mxu1 %v96_v26  ;;  %v152_v36 = vrot.slane %v144_v32, %v4795_v28  ;;  %v4815_v43 = vld [vmem:[#allocation9 + $0x1c0] sm:$0xff]  ;;  %v4817_v44 = vld [vmem:[#allocation9 + $0x1d0] sm:$0xff]  ;;  %v4821_v45 = vld [vmem:[#allocation9 + $0x1a8] sm:$0xff] }
  0x42   :  { %v159_v37 = vrot.slane %v145_v33, %v4795_v28  ;;  %661 = vmatprep.subr.mxu0 %v4797_v34  ;;  %732 = vmatprep.subr.mxu1 %v4799_v35  ;;  %v4823_v46 = vld [vmem:[#allocation9 + $0x1b8] sm:$0xff]  ;;  %v4827_v47 = vld [vmem:[#allocation9 + $0x1a0] sm:$0xff]  ;;  %v4829_v48 = vld [vmem:[#allocation9 + $0x1b0] sm:$0xff] }
  0x43   :  { %v4833_v49 = vld [vmem:[#allocation9 + $0x188] sm:$0xff]  ;;  %v4835_v50 = vld [vmem:[#allocation9 + $0x198] sm:$0xff]  ;;  %v4839_v51 = vld [vmem:[#allocation9 + $0x180] sm:$0xff] }
  0x44   :  { %v160_v38 = vcombine.low %v152_v36, %v159_v37  ;;  %v4841_v52 = vld [vmem:[#allocation9 + $0x190] sm:$0xff]  ;;  %v4845_v53 = vld [vmem:[#allocation9 + $0x168] sm:$0xff]  ;;  %v4847_v54 = vld [vmem:[#allocation9 + $0x178] sm:$0xff] }
  0x45   :  { %v4851_v55 = vld [vmem:[#allocation9 + $0x160] sm:$0xff]  ;;  %v4853_v56 = vld [vmem:[#allocation9 + $0x170] sm:$0xff]  ;;  %v4857_v57 = vld [vmem:[#allocation9 + $0x148] sm:$0xff] }
  0x46   :  { %3720 = vmatmul.mubr.msk.f32.vlgmr.msra.gmra.mxu0 %vm178_vm1, %v160_v38  ;;  %3724 = vmatmul.mubr.msk.f32.vlgmr.msra.gmra.mxu1 %vm178_vm1, %v160_v38  ;;  %v4859_v58 = vld [vmem:[#allocation9 + $0x158] sm:$0xff]  ;;  %v4863_v59 = vld [vmem:[#allocation9 + $0x140] sm:$0xff]  ;;  %v4865_v60 = vld [vmem:[#allocation9 + $0x150] sm:$0xff] }
  0x47   :  { %662 = vmatpush1.msra.mxu0 %v4805_v39  ;;  %733 = vmatpush1.msra.mxu1 %v4807_v40  ;;  %v4869_v61 = vld [vmem:[#allocation9 + $0x128] sm:$0xff]  ;;  %v4871_v62 = vld [vmem:[#allocation9 + $0x138] sm:$0xff]  ;;  %v4873_v63 = vld [vmem:[#allocation9 + $0x120] sm:$0xff] }
  0x48   :  { %663 = vmatprep.subr.mxu0 %v4809_v41  ;;  %734 = vmatprep.subr.mxu1 %v4811_v42  ;;  %v4877_v0 = vld [vmem:[#allocation9 + $0x130] sm:$0xff]  ;;  %v4879_v3 = vld [vmem:[#allocation9 + $0x108] sm:$0xff]  ;;  %v4881_v4 = vld [vmem:[#allocation9 + $0x118] sm:$0xff] }
  0x49   :  { %664 = vmatpush1.msra.mxu0 %v4815_v43  ;;  %735 = vmatpush1.msra.mxu1 %v4817_v44  ;;  %v4885_v5 = vld [vmem:[#allocation9 + $0x100] sm:$0xff]  ;;  %v4887_v6 = vld [vmem:[#allocation9 + $0x110] sm:$0xff]  ;;  %v90_v7 = vld [vmem:[#allocation5 + $0x8] sm:$0x3] }
  0x4a   :  { %665 = vmatprep.subr.mxu0 %v4821_v45  ;;  %736 = vmatprep.subr.mxu1 %v4823_v46  ;;  %v91_v8 = vld [vmem:[#allocation5 + $0xa] sm:$0x3]  ;;  %v92_v9 = vld [vmem:[#allocation5 + $0xc] sm:$0x3]  ;;  %v93_v10 = vld [vmem:[#allocation5 + $0xe] sm:$0x3] }
  0x4b   :  { %666 = vmatpush1.msra.mxu0 %v4827_v47  ;;  %737 = vmatpush1.msra.mxu1 %v4829_v48  ;;  %v4893_v11 = vld [vmem:[#allocation9 + $0xe8] sm:$0xff]  ;;  %v4895_v12 = vld [vmem:[#allocation9 + $0xf8] sm:$0xff]  ;;  %v4899_v13 = vld [vmem:[#allocation9 + $0xe0] sm:$0xff]  ;;  %v161_v18 = vcombine.low %v90_v7, %v91_v8  ;;  %v162_v19 = vcombine.low %v92_v9, %v93_v10 }
  0x4c   :  { %667 = vmatprep.subr.mxu0 %v4833_v49  ;;  %738 = vmatprep.subr.mxu1 %v4835_v50  ;;  %v4901_v15 = vld [vmem:[#allocation9 + $0xf0] sm:$0xff]  ;;  %v4905_v16 = vld [vmem:[#allocation9 + $0xc8] sm:$0xff]  ;;  %v4907_v17 = vld [vmem:[#allocation9 + $0xd8] sm:$0xff] }
  0x4d   :  { %668 = vmatpush1.msra.mxu0 %v4839_v51  ;;  %739 = vmatpush1.msra.mxu1 %v4841_v52  ;;  %v4911_v20 = vld [vmem:[#allocation9 + $0xc0] sm:$0xff]  ;;  %v4913_v21 = vld [vmem:[#allocation9 + $0xd0] sm:$0xff]  ;;  %v4917_v22 = vld [vmem:[#allocation9 + $0xa8] sm:$0xff]  ;;  %v169_v29 = vrot.slane %v161_v18, %v4795_v28  ;;  %v176_v30 = vrot.slane %v162_v19, %v4795_v28 }
  0x4e   :  { %669 = vmatprep.subr.mxu0 %v4845_v53  ;;  %740 = vmatprep.subr.mxu1 %v4847_v54  ;;  %v4919_v23 = vld [vmem:[#allocation9 + $0xb8] sm:$0xff]  ;;  %v4923_v24 = vld [vmem:[#allocation9 + $0xa0] sm:$0xff]  ;;  %v4925_v25 = vld [vmem:[#allocation9 + $0xb0] sm:$0xff] }
  0x4f   :  { %670 = vmatpush1.msra.mxu0 %v4851_v55  ;;  %741 = vmatpush1.msra.mxu1 %v4853_v56  ;;  %8828 = vst [vmem:[#allocation16_spill] sm:$0xff] %v4923_v24  ;;  %8829 = vst [vmem:[#allocation17_spill] sm:$0xff] %v4925_v25  ;;  %v4929_v26 = vld [vmem:[#allocation9 + $0x88] sm:$0xff]  ;;  %v4931_v27 = vld [vmem:[#allocation9 + $0x98] sm:$0xff]  ;;  %v177_v7 = vcombine.low %v169_v29, %v176_v30 }
  0x50   :  { %671 = vmatprep.subr.mxu0 %v4857_v57  ;;  %742 = vmatprep.subr.mxu1 %v4859_v58  ;;  %8830 = vst [vmem:[#allocation18_spill] sm:$0xff] %v4929_v26  ;;  %8831 = vst [vmem:[#allocation19_spill] sm:$0xff] %v4931_v27  ;;  %v4937_v31 = vld [vmem:[#allocation9 + $0x80] sm:$0xff]  ;;  %v4939_v32 = vld [vmem:[#allocation9 + $0x90] sm:$0xff] }
  0x51   :  { %672 = vmatpush1.msra.mxu0 %v4863_v59  ;;  %743 = vmatpush1.msra.mxu1 %v4865_v60  ;;  %8832 = vst [vmem:[#allocation20_spill] sm:$0xff] %v4937_v31  ;;  %8833 = vst [vmem:[#allocation21_spill] sm:$0xff] %v4939_v32  ;;  %v4943_v33 = vld [vmem:[#allocation9 + $0x68] sm:$0xff]  ;;  %v4945_v36 = vld [vmem:[#allocation9 + $0x78] sm:$0xff] }
  0x52   :  { %673 = vmatprep.subr.mxu0 %v4869_v61  ;;  %744 = vmatprep.subr.mxu1 %v4871_v62  ;;  %8834 = vst [vmem:[#allocation22_spill] sm:$0xff] %v4943_v33  ;;  %8835 = vst [vmem:[#allocation23_spill] sm:$0xff] %v4945_v36  ;;  %v4951_v37 = vld [vmem:[#allocation9 + $0x60] sm:$0xff]  ;;  %v4953_v38 = vld [vmem:[#allocation9 + $0x70] sm:$0xff] }
  0x53   :  { %674 = vmatpush1.msra.mxu0 %v4873_v63  ;;  %745 = vmatpush1.msra.mxu1 %v4877_v0  ;;  %8836 = vst [vmem:[#allocation24_spill] sm:$0xff] %v4951_v37  ;;  %8837 = vst [vmem:[#allocation25_spill] sm:$0xff] %v4953_v38  ;;  %v4959_v8 = vld [vmem:[#allocation9 + $0x48] sm:$0xff]  ;;  %v4961_v9 = vld [vmem:[#allocation9 + $0x58] sm:$0xff] }
  0x54   :  { %675 = vmatprep.subr.mxu0 %v4879_v3  ;;  %746 = vmatprep.subr.mxu1 %v4881_v4  ;;  %8838 = vst [vmem:[#allocation26_spill] sm:$0xff] %v4959_v8  ;;  %8839 = vst [vmem:[#allocation27_spill] sm:$0xff] %v4961_v9  ;;  %v4965_v10 = vld [vmem:[#allocation9 + $0x40] sm:$0xff]  ;;  %v4967_v18 = vld [vmem:[#allocation9 + $0x50] sm:$0xff] }
  0x55   :  { %676 = vmatpush1.msra.mxu0 %v4885_v5  ;;  %747 = vmatpush1.msra.mxu1 %v4887_v6  ;;  %8840 = vst [vmem:[#allocation28_spill] sm:$0xff] %v4965_v10  ;;  %8841 = vst [vmem:[#allocation29_spill] sm:$0xff] %v4967_v18  ;;  %v4971_v19 = vld [vmem:[#allocation9 + $0x28] sm:$0xff]  ;;  %v4973_v29 = vld [vmem:[#allocation9 + $0x38] sm:$0xff] }
  0x56   :  { %677 = vmatprep.subr.mxu0 %v4893_v11  ;;  %748 = vmatprep.subr.mxu1 %v4895_v12  ;;  %8842 = vst [vmem:[#allocation30_spill] sm:$0xff] %v4971_v19  ;;  %8843 = vst [vmem:[#allocation31_spill] sm:$0xff] %v4973_v29  ;;  %v4977_v30 = vld [vmem:[#allocation9 + $0x20] sm:$0xff]  ;;  %v4979_v2 = vld [vmem:[#allocation9 + $0x30] sm:$0xff] }
  0x57   :  { %678 = vmatpush1.msra.mxu0 %v4899_v13  ;;  %749 = vmatpush1.msra.mxu1 %v4901_v15  ;;  %8844 = vst [vmem:[#allocation32_spill] sm:$0xff] %v4977_v30  ;;  %8845 = vst [vmem:[#allocation33_spill] sm:$0xff] %v4979_v2 }
  0x58   :  { %679 = vmatprep.subr.mxu0 %v4905_v16  ;;  %750 = vmatprep.subr.mxu1 %v4907_v17 }
  0x59   :  { %680 = vmatpush1.msra.mxu0 %v4911_v20  ;;  %751 = vmatpush1.msra.mxu1 %v4913_v21 }
  0x5a   :  { %681 = vmatprep.subr.mxu0 %v4917_v22  ;;  %752 = vmatprep.subr.mxu1 %v4919_v23 }
  0x5b   :  { %682 = vmatpush1.msra.mxu0 %v4923_v24  ;;  %753 = vmatpush1.msra.mxu1 %v4925_v25 }
  0x5c   :  { %683 = vmatprep.subr.mxu0 %v4929_v26  ;;  %754 = vmatprep.subr.mxu1 %v4931_v27 }
  0x5d   :  { %684 = vmatpush1.msra.mxu0 %v4937_v31  ;;  %755 = vmatpush1.msra.mxu1 %v4939_v32 }
  0x5e   :  { %685 = vmatprep.subr.mxu0 %v4943_v33  ;;  %756 = vmatprep.subr.mxu1 %v4945_v36 }
  0x5f   :  { %266 = vmatprep.mubr.f32.mxu0 %v8187_v1  ;;  %343 = vmatprep.mubr.f32.mxu1 %v8187_v1  ;;  %v4983_v1 = vld [vmem:[#allocation9 + $0x8] sm:$0xff] }
  0x60   :  { %686 = vmatpush1.msra.mxu0 %v4951_v37  ;;  %757 = vmatpush1.msra.mxu1 %v4953_v38  ;;  %8846 = vst [vmem:[#allocation34_spill] sm:$0xff] %v4983_v1  ;;  %v4985_v38 = vld [vmem:[#allocation9 + $0x18] sm:$0xff] }
  0x61   :  { %3721 = vmatmul.mubr.msk.f32.gmra.mxu0 %vm178_vm1, %v177_v7  ;;  %3725 = vmatmul.mubr.msk.f32.gmra.mxu1 %vm178_vm1, %v177_v7  ;;  %8847 = vst [vmem:[#allocation35_spill] sm:$0xff] %v4985_v38  ;;  %v4989_v7 = vld [vmem:[#allocation9] sm:$0xff] }
  0x62   :  { %687 = vmatprep.subr.mxu0 %v4959_v8  ;;  %758 = vmatprep.subr.mxu1 %v4961_v9  ;;  %8848 = vst [vmem:[#allocation36_spill] sm:$0xff] %v4989_v7  ;;  %v4993_v9 = vld [vmem:[#allocation9 + $0x10] sm:$0xff]  ;;  %v5319_v8 = vld [vmem:[#allocation10 + $0x2a0] sm:$0xff] }
  0x63   :  { %688 = vmatpush1.msra.mxu0 %v4965_v10  ;;  %759 = vmatpush1.msra.mxu1 %v4967_v18  ;;  %8849 = vst [vmem:[#allocation37_spill] sm:$0xff] %v4993_v9  ;;  %v8850_v18 = vmov 0.0   ;;  %v5303_v10 = vld [vmem:[#allocation10 + $0x2d8] sm:$0xff]  ;;  %8957 = vst [vmem:[#allocation144_spill] sm:$0xff] %v5319_v8 }
  0x64   :  { %689 = vmatprep.subr.mxu0 %v4971_v19  ;;  %760 = vmatprep.subr.mxu1 %v4973_v29  ;;  %v5287_v29 = vld [vmem:[#allocation10 + $0x310] sm:$0xff]  ;;  %v5295_v19 = vld [vmem:[#allocation10 + $0x2e0] sm:$0xff]  ;;  %8952 = vst [vmem:[#allocation139_spill] sm:$0xff] %v5303_v10 }
  0x65   :  { %690 = vmatpush1.msra.mxu0 %v4977_v30  ;;  %761 = vmatpush1.msra.mxu1 %v4979_v2  ;;  %v5005_v2 = vld [vmem:[#allocation10 + $0x1e8] sm:$0xff]  ;;  %v5019_v30 = vld [vmem:[#allocation10 + $0x1d8] sm:$0xff]  ;;  %8946 = vst [vmem:[#allocation133_spill] sm:$0xff] %v5287_v29  ;;  %8949 = vst [vmem:[#allocation136_spill] sm:$0xff] %v5295_v19 }
  0x66   :  { %691 = vmatprep.subr.mxu0 %v4983_v1  ;;  %762 = vmatprep.subr.mxu1 %v4985_v38  ;;  %8851 = vst [vmem:[#allocation38_spill] sm:$0xff] %v5005_v2  ;;  %v5007_v1 = vld [vmem:[#allocation10 + $0x1f8] sm:$0xff]  ;;  %v5017_v38 = vld [vmem:[#allocation10 + $0x1c8] sm:$0xff]  ;;  %8856 = vst [vmem:[#allocation43_spill] sm:$0xff] %v5019_v30 }
  0x67   :  { %692 = vmatpush1.msra.mxu0 %v4989_v7  ;;  %725 = vmatprep.mubr.f32.mxu0 %v8850_v18  ;;  %8852 = vst [vmem:[#allocation39_spill] sm:$0xff] %v5007_v1  ;;  %v5011_v7 = vld [vmem:[#allocation10 + $0x1e0] sm:$0xff]  ;;  %8855 = vst [vmem:[#allocation42_spill] sm:$0xff] %v5017_v38 }
  0x68   :  { %763 = vmatpush1.msra.mxu1 %v4993_v9  ;;  %796 = vmatprep.mubr.f32.mxu1 %v8850_v18  ;;  %8853 = vst [vmem:[#allocation40_spill] sm:$0xff] %v5011_v7  ;;  %v5013_v9 = vld [vmem:[#allocation10 + $0x1f0] sm:$0xff] }
  0x69   :  { %726 = vmatmul.mubr.f32.vlgmr.msra.gmra.mxu0 %v8850_v18  ;;  %797 = vmatmul.mubr.f32.vlgmr.msra.gmra.mxu1 %v8850_v18  ;;  %8854 = vst [vmem:[#allocation41_spill] sm:$0xff] %v5013_v9 }
  0x6a   :  { %921 = vmatprep.mubr.f32.mxu0 %v8850_v18  ;;  %992 = vmatprep.mubr.f32.mxu1 %v8850_v18  ;;  %v5023_v18 = vld [vmem:[#allocation10 + $0x1c0] sm:$0xff] }
  0x6b   :  { %857 = vmatprep.subr.mxu0 %v5005_v2  ;;  %928 = vmatprep.subr.mxu1 %v5007_v1  ;;  %8857 = vst [vmem:[#allocation44_spill] sm:$0xff] %v5023_v18  ;;  %v5025_v2 = vld [vmem:[#allocation10 + $0x1d0] sm:$0xff]  ;;  %v5029_v1 = vld [vmem:[#allocation10 + $0x1a8] sm:$0xff] }
  0x6c   :  { %858 = vmatpush1.msra.mxu0 %v5011_v7  ;;  %929 = vmatpush1.msra.mxu1 %v5013_v9  ;;  %8858 = vst [vmem:[#allocation45_spill] sm:$0xff] %v5025_v2  ;;  %8859 = vst [vmem:[#allocation46_spill] sm:$0xff] %v5029_v1  ;;  %v5031_v7 = vld [vmem:[#allocation10 + $0x1b8] sm:$0xff]  ;;  %v5035_v9 = vld [vmem:[#allocation10 + $0x1a0] sm:$0xff] }
  0x6d   :  { %859 = vmatprep.subr.mxu0 %v5017_v38  ;;  %930 = vmatprep.subr.mxu1 %v5019_v30  ;;  %8860 = vst [vmem:[#allocation47_spill] sm:$0xff] %v5031_v7  ;;  %8861 = vst [vmem:[#allocation48_spill] sm:$0xff] %v5035_v9  ;;  %v5037_v38 = vld [vmem:[#allocation10 + $0x1b0] sm:$0xff]  ;;  %v5041_v30 = vld [vmem:[#allocation10 + $0x188] sm:$0xff] }
  0x6e   :  { %860 = vmatpush1.msra.mxu0 %v5023_v18  ;;  %931 = vmatpush1.msra.mxu1 %v5025_v2  ;;  %8862 = vst [vmem:[#allocation49_spill] sm:$0xff] %v5037_v38  ;;  %8863 = vst [vmem:[#allocation50_spill] sm:$0xff] %v5041_v30  ;;  %v5043_v18 = vld [vmem:[#allocation10 + $0x198] sm:$0xff]  ;;  %v5047_v2 = vld [vmem:[#allocation10 + $0x180] sm:$0xff] }
  0x6f   :  { %861 = vmatprep.subr.mxu0 %v5029_v1  ;;  %932 = vmatprep.subr.mxu1 %v5031_v7  ;;  %8864 = vst [vmem:[#allocation51_spill] sm:$0xff] %v5043_v18  ;;  %8865 = vst [vmem:[#allocation52_spill] sm:$0xff] %v5047_v2  ;;  %v5049_v1 = vld [vmem:[#allocation10 + $0x190] sm:$0xff]  ;;  %v5053_v7 = vld [vmem:[#allocation10 + $0x168] sm:$0xff] }
  0x70   :  { %862 = vmatpush1.msra.mxu0 %v5035_v9  ;;  %933 = vmatpush1.msra.mxu1 %v5037_v38  ;;  %8866 = vst [vmem:[#allocation53_spill] sm:$0xff] %v5049_v1  ;;  %8867 = vst [vmem:[#allocation54_spill] sm:$0xff] %v5053_v7  ;;  %v5055_v9 = vld [vmem:[#allocation10 + $0x178] sm:$0xff]  ;;  %v5059_v38 = vld [vmem:[#allocation10 + $0x160] sm:$0xff] }
  0x71   :  { %863 = vmatprep.subr.mxu0 %v5041_v30  ;;  %934 = vmatprep.subr.mxu1 %v5043_v18  ;;  %8868 = vst [vmem:[#allocation55_spill] sm:$0xff] %v5055_v9  ;;  %8869 = vst [vmem:[#allocation56_spill] sm:$0xff] %v5059_v38  ;;  %v5061_v30 = vld [vmem:[#allocation10 + $0x170] sm:$0xff]  ;;  %v5065_v18 = vld [vmem:[#allocation10 + $0x148] sm:$0xff] }
  0x72   :  { %864 = vmatpush1.msra.mxu0 %v5047_v2  ;;  %935 = vmatpush1.msra.mxu1 %v5049_v1  ;;  %8870 = vst [vmem:[#allocation57_spill] sm:$0xff] %v5061_v30  ;;  %8871 = vst [vmem:[#allocation58_spill] sm:$0xff] %v5065_v18  ;;  %v5067_v2 = vld [vmem:[#allocation10 + $0x158] sm:$0xff]  ;;  %v5071_v1 = vld [vmem:[#allocation10 + $0x140] sm:$0xff] }
  0x73   :  { %865 = vmatprep.subr.mxu0 %v5053_v7  ;;  %936 = vmatprep.subr.mxu1 %v5055_v9  ;;  %8872 = vst [vmem:[#allocation59_spill] sm:$0xff] %v5067_v2  ;;  %8873 = vst [vmem:[#allocation60_spill] sm:$0xff] %v5071_v1  ;;  %v5073_v7 = vld [vmem:[#allocation10 + $0x150] sm:$0xff]  ;;  %v5077_v9 = vld [vmem:[#allocation10 + $0x128] sm:$0xff] }
  0x74   :  { %866 = vmatpush1.msra.mxu0 %v5059_v38  ;;  %937 = vmatpush1.msra.mxu1 %v5061_v30  ;;  %8874 = vst [vmem:[#allocation61_spill] sm:$0xff] %v5073_v7  ;;  %8875 = vst [vmem:[#allocation62_spill] sm:$0xff] %v5077_v9  ;;  %v5079_v38 = vld [vmem:[#allocation10 + $0x138] sm:$0xff]  ;;  %v5083_v30 = vld [vmem:[#allocation10 + $0x120] sm:$0xff] }
  0x75   :  { %867 = vmatprep.subr.mxu0 %v5065_v18  ;;  %938 = vmatprep.subr.mxu1 %v5067_v2  ;;  %8876 = vst [vmem:[#allocation63_spill] sm:$0xff] %v5079_v38  ;;  %8877 = vst [vmem:[#allocation64_spill] sm:$0xff] %v5083_v30  ;;  %v5085_v18 = vld [vmem:[#allocation10 + $0x130] sm:$0xff]  ;;  %v5089_v2 = vld [vmem:[#allocation10 + $0x108] sm:$0xff] }
  0x76   :  { %868 = vmatpush1.msra.mxu0 %v5071_v1  ;;  %939 = vmatpush1.msra.mxu1 %v5073_v7  ;;  %8878 = vst [vmem:[#allocation65_spill] sm:$0xff] %v5085_v18  ;;  %8879 = vst [vmem:[#allocation66_spill] sm:$0xff] %v5089_v2  ;;  %v5091_v1 = vld [vmem:[#allocation10 + $0x118] sm:$0xff]  ;;  %v5095_v7 = vld [vmem:[#allocation10 + $0x100] sm:$0xff] }
  0x77   :  { %869 = vmatprep.subr.mxu0 %v5077_v9  ;;  %940 = vmatprep.subr.mxu1 %v5079_v38  ;;  %8880 = vst [vmem:[#allocation67_spill] sm:$0xff] %v5091_v1  ;;  %8881 = vst [vmem:[#allocation68_spill] sm:$0xff] %v5095_v7  ;;  %v5097_v9 = vld [vmem:[#allocation10 + $0x110] sm:$0xff]  ;;  %v5101_v38 = vld [vmem:[#allocation10 + $0xe8] sm:$0xff] }
  0x78   :  { %870 = vmatpush1.msra.mxu0 %v5083_v30  ;;  %941 = vmatpush1.msra.mxu1 %v5085_v18  ;;  %8882 = vst [vmem:[#allocation69_spill] sm:$0xff] %v5097_v9  ;;  %8883 = vst [vmem:[#allocation70_spill] sm:$0xff] %v5101_v38  ;;  %v5103_v30 = vld [vmem:[#allocation10 + $0xf8] sm:$0xff]  ;;  %v5107_v18 = vld [vmem:[#allocation10 + $0xe0] sm:$0xff] }
  0x79   :  { %871 = vmatprep.subr.mxu0 %v5089_v2  ;;  %942 = vmatprep.subr.mxu1 %v5091_v1  ;;  %8884 = vst [vmem:[#allocation71_spill] sm:$0xff] %v5103_v30  ;;  %8885 = vst [vmem:[#allocation72_spill] sm:$0xff] %v5107_v18  ;;  %v5109_v2 = vld [vmem:[#allocation10 + $0xf0] sm:$0xff]  ;;  %v5113_v1 = vld [vmem:[#allocation10 + $0xc8] sm:$0xff] }
  0x7a   :  { %872 = vmatpush1.msra.mxu0 %v5095_v7  ;;  %943 = vmatpush1.msra.mxu1 %v5097_v9  ;;  %8886 = vst [vmem:[#allocation73_spill] sm:$0xff] %v5109_v2  ;;  %8887 = vst [vmem:[#allocation74_spill] sm:$0xff] %v5113_v1  ;;  %v5115_v7 = vld [vmem:[#allocation10 + $0xd8] sm:$0xff]  ;;  %v5119_v9 = vld [vmem:[#allocation10 + $0xc0] sm:$0xff] }
  0x7b   :  { %873 = vmatprep.subr.mxu0 %v5101_v38  ;;  %944 = vmatprep.subr.mxu1 %v5103_v30  ;;  %8888 = vst [vmem:[#allocation75_spill] sm:$0xff] %v5115_v7  ;;  %8889 = vst [vmem:[#allocation76_spill] sm:$0xff] %v5119_v9  ;;  %v5121_v38 = vld [vmem:[#allocation10 + $0xd0] sm:$0xff]  ;;  %v5125_v30 = vld [vmem:[#allocation10 + $0xa8] sm:$0xff] }
  0x7c   :  { %874 = vmatpush1.msra.mxu0 %v5107_v18  ;;  %945 = vmatpush1.msra.mxu1 %v5109_v2  ;;  %8890 = vst [vmem:[#allocation77_spill] sm:$0xff] %v5121_v38  ;;  %8891 = vst [vmem:[#allocation78_spill] sm:$0xff] %v5125_v30  ;;  %v5127_v18 = vld [vmem:[#allocation10 + $0xb8] sm:$0xff]  ;;  %v5131_v2 = vld [vmem:[#allocation10 + $0xa0] sm:$0xff] }
  0x7d   :  { %875 = vmatprep.subr.mxu0 %v5113_v1  ;;  %946 = vmatprep.subr.mxu1 %v5115_v7  ;;  %8892 = vst [vmem:[#allocation79_spill] sm:$0xff] %v5127_v18  ;;  %8893 = vst [vmem:[#allocation80_spill] sm:$0xff] %v5131_v2  ;;  %v5133_v1 = vld [vmem:[#allocation10 + $0xb0] sm:$0xff]  ;;  %v5137_v7 = vld [vmem:[#allocation10 + $0x88] sm:$0xff] }
  0x7e   :  { %876 = vmatpush1.msra.mxu0 %v5119_v9  ;;  %947 = vmatpush1.msra.mxu1 %v5121_v38  ;;  %8894 = vst [vmem:[#allocation81_spill] sm:$0xff] %v5133_v1  ;;  %8895 = vst [vmem:[#allocation82_spill] sm:$0xff] %v5137_v7  ;;  %v5139_v9 = vld [vmem:[#allocation10 + $0x98] sm:$0xff]  ;;  %v5143_v38 = vld [vmem:[#allocation10 + $0x80] sm:$0xff] }
  0x7f   :  { %877 = vmatprep.subr.mxu0 %v5125_v30  ;;  %948 = vmatprep.subr.mxu1 %v5127_v18  ;;  %8896 = vst [vmem:[#allocation83_spill] sm:$0xff] %v5139_v9  ;;  %8897 = vst [vmem:[#allocation84_spill] sm:$0xff] %v5143_v38  ;;  %v5145_v30 = vld [vmem:[#allocation10 + $0x90] sm:$0xff]  ;;  %v5149_v18 = vld [vmem:[#allocation10 + $0x68] sm:$0xff] }
  0x80   :  { %878 = vmatpush1.msra.mxu0 %v5131_v2  ;;  %949 = vmatpush1.msra.mxu1 %v5133_v1  ;;  %8898 = vst [vmem:[#allocation85_spill] sm:$0xff] %v5145_v30  ;;  %8899 = vst [vmem:[#allocation86_spill] sm:$0xff] %v5149_v18  ;;  %v5151_v2 = vld [vmem:[#allocation10 + $0x78] sm:$0xff]  ;;  %v5155_v1 = vld [vmem:[#allocation10 + $0x60] sm:$0xff] }
  0x81   :  { %879 = vmatprep.subr.mxu0 %v5137_v7  ;;  %950 = vmatprep.subr.mxu1 %v5139_v9  ;;  %8900 = vst [vmem:[#allocation87_spill] sm:$0xff] %v5151_v2  ;;  %8901 = vst [vmem:[#allocation88_spill] sm:$0xff] %v5155_v1  ;;  %v5157_v7 = vld [vmem:[#allocation10 + $0x70] sm:$0xff]  ;;  %v5161_v9 = vld [vmem:[#allocation10 + $0x48] sm:$0xff] }
  0x82   :  { %880 = vmatpush1.msra.mxu0 %v5143_v38  ;;  %951 = vmatpush1.msra.mxu1 %v5145_v30  ;;  %8902 = vst [vmem:[#allocation89_spill] sm:$0xff] %v5157_v7  ;;  %8903 = vst [vmem:[#allocation90_spill] sm:$0xff] %v5161_v9  ;;  %v5163_v38 = vld [vmem:[#allocation10 + $0x58] sm:$0xff]  ;;  %v5167_v30 = vld [vmem:[#allocation10 + $0x40] sm:$0xff] }
  0x83   :  { %881 = vmatprep.subr.mxu0 %v5149_v18  ;;  %952 = vmatprep.subr.mxu1 %v5151_v2  ;;  %8904 = vst [vmem:[#allocation91_spill] sm:$0xff] %v5163_v38  ;;  %8905 = vst [vmem:[#allocation92_spill] sm:$0xff] %v5167_v30  ;;  %v5169_v18 = vld [vmem:[#allocation10 + $0x50] sm:$0xff]  ;;  %v5173_v2 = vld [vmem:[#allocation10 + $0x28] sm:$0xff] }
  0x84   :  { %882 = vmatpush1.msra.mxu0 %v5155_v1  ;;  %953 = vmatpush1.msra.mxu1 %v5157_v7  ;;  %8906 = vst [vmem:[#allocation93_spill] sm:$0xff] %v5169_v18  ;;  %8907 = vst [vmem:[#allocation94_spill] sm:$0xff] %v5173_v2  ;;  %v5175_v1 = vld [vmem:[#allocation10 + $0x38] sm:$0xff]  ;;  %v5179_v7 = vld [vmem:[#allocation10 + $0x20] sm:$0xff] }
  0x85   :  { %883 = vmatprep.subr.mxu0 %v5161_v9  ;;  %954 = vmatprep.subr.mxu1 %v5163_v38  ;;  %8908 = vst [vmem:[#allocation95_spill] sm:$0xff] %v5175_v1  ;;  %8909 = vst [vmem:[#allocation96_spill] sm:$0xff] %v5179_v7  ;;  %v5181_v9 = vld [vmem:[#allocation10 + $0x30] sm:$0xff]  ;;  %v5185_v38 = vld [vmem:[#allocation10 + $0x8] sm:$0xff] }
  0x86   :  { %884 = vmatpush1.msra.mxu0 %v5167_v30  ;;  %955 = vmatpush1.msra.mxu1 %v5169_v18  ;;  %8910 = vst [vmem:[#allocation97_spill] sm:$0xff] %v5181_v9  ;;  %8911 = vst [vmem:[#allocation98_spill] sm:$0xff] %v5185_v38  ;;  %v5187_v30 = vld [vmem:[#allocation10 + $0x18] sm:$0xff]  ;;  %v5191_v18 = vld [vmem:[#allocation10] sm:$0xff] }
  0x87   :  { %885 = vmatprep.subr.mxu0 %v5173_v2  ;;  %956 = vmatprep.subr.mxu1 %v5175_v1  ;;  %8912 = vst [vmem:[#allocation99_spill] sm:$0xff] %v5187_v30  ;;  %8913 = vst [vmem:[#allocation100_spill] sm:$0xff] %v5191_v18  ;;  %v5193_v2 = vld [vmem:[#allocation10 + $0x10] sm:$0xff]  ;;  %v5197_v1 = vld [vmem:[#allocation10 + $0x3e8] sm:$0xff] }
  0x88   :  { %886 = vmatpush1.msra.mxu0 %v5179_v7  ;;  %957 = vmatpush1.msra.mxu1 %v5181_v9  ;;  %8914 = vst [vmem:[#allocation101_spill] sm:$0xff] %v5193_v2  ;;  %8915 = vst [vmem:[#allocation102_spill] sm:$0xff] %v5197_v1  ;;  %v5199_v7 = vld [vmem:[#allocation10 + $0x3f8] sm:$0xff]  ;;  %v5203_v9 = vld [vmem:[#allocation10 + $0x3e0] sm:$0xff] }
  0x89   :  { %887 = vmatprep.subr.mxu0 %v5185_v38  ;;  %958 = vmatprep.subr.mxu1 %v5187_v30  ;;  %8916 = vst [vmem:[#allocation103_spill] sm:$0xff] %v5199_v7  ;;  %8917 = vst [vmem:[#allocation104_spill] sm:$0xff] %v5203_v9  ;;  %v5205_v38 = vld [vmem:[#allocation10 + $0x3f0] sm:$0xff]  ;;  %v5209_v30 = vld [vmem:[#allocation10 + $0x3c8] sm:$0xff] }
  0x8a   :  { %888 = vmatpush1.msra.mxu0 %v5191_v18  ;;  %959 = vmatpush1.msra.mxu1 %v5193_v2  ;;  %8918 = vst [vmem:[#allocation105_spill] sm:$0xff] %v5205_v38  ;;  %8919 = vst [vmem:[#allocation106_spill] sm:$0xff] %v5209_v30  ;;  %v5211_v18 = vld [vmem:[#allocation10 + $0x3d8] sm:$0xff]  ;;  %v5215_v2 = vld [vmem:[#allocation10 + $0x3c0] sm:$0xff] }
  0x8b   :  { %889 = vmatprep.subr.mxu0 %v5197_v1  ;;  %960 = vmatprep.subr.mxu1 %v5199_v7  ;;  %8920 = vst [vmem:[#allocation107_spill] sm:$0xff] %v5211_v18  ;;  %8921 = vst [vmem:[#allocation108_spill] sm:$0xff] %v5215_v2  ;;  %v5217_v1 = vld [vmem:[#allocation10 + $0x3d0] sm:$0xff]  ;;  %v5221_v7 = vld [vmem:[#allocation10 + $0x3a8] sm:$0xff] }
  0x8c   :  { %890 = vmatpush2.msra.mxu0 %v5203_v9  ;;  %961 = vmatpush2.msra.mxu1 %v5205_v38  ;;  %8922 = vst [vmem:[#allocation109_spill] sm:$0xff] %v5217_v1  ;;  %8923 = vst [vmem:[#allocation110_spill] sm:$0xff] %v5221_v7  ;;  %v5223_v9 = vld [vmem:[#allocation10 + $0x3b8] sm:$0xff]  ;;  %v5227_v38 = vld [vmem:[#allocation10 + $0x3a0] sm:$0xff] }
  0x8d   :  { %891 = vmatprep.subr.mxu0 %v5209_v30  ;;  %962 = vmatprep.subr.mxu1 %v5211_v18  ;;  %8924 = vst [vmem:[#allocation111_spill] sm:$0xff] %v5223_v9  ;;  %8925 = vst [vmem:[#allocation112_spill] sm:$0xff] %v5227_v38  ;;  %v5229_v30 = vld [vmem:[#allocation10 + $0x3b0] sm:$0xff]  ;;  %v5233_v18 = vld [vmem:[#allocation10 + $0x388] sm:$0xff] }
  0x8e   :  { %892 = vmatpush2.msra.mxu0 %v5215_v2  ;;  %963 = vmatpush2.msra.mxu1 %v5217_v1  ;;  %8926 = vst [vmem:[#allocation113_spill] sm:$0xff] %v5229_v30  ;;  %8927 = vst [vmem:[#allocation114_spill] sm:$0xff] %v5233_v18  ;;  %v5235_v2 = vld [vmem:[#allocation10 + $0x398] sm:$0xff]  ;;  %v5239_v1 = vld [vmem:[#allocation10 + $0x380] sm:$0xff] }
  0x8f   :  { %893 = vmatprep.subr.mxu0 %v5221_v7  ;;  %964 = vmatprep.subr.mxu1 %v5223_v9  ;;  %8928 = vst [vmem:[#allocation115_spill] sm:$0xff] %v5235_v2  ;;  %8929 = vst [vmem:[#allocation116_spill] sm:$0xff] %v5239_v1  ;;  %v5241_v7 = vld [vmem:[#allocation10 + $0x390] sm:$0xff]  ;;  %v5245_v9 = vld [vmem:[#allocation10 + $0x368] sm:$0xff] }
  0x90   :  { %894 = vmatpush2.msra.mxu0 %v5227_v38  ;;  %965 = vmatpush2.msra.mxu1 %v5229_v30  ;;  %8930 = vst [vmem:[#allocation117_spill] sm:$0xff] %v5241_v7  ;;  %8931 = vst [vmem:[#allocation118_spill] sm:$0xff] %v5245_v9  ;;  %v5247_v38 = vld [vmem:[#allocation10 + $0x378] sm:$0xff]  ;;  %v5251_v30 = vld [vmem:[#allocation10 + $0x360] sm:$0xff] }
  0x91   :  { %895 = vmatprep.subr.mxu0 %v5233_v18  ;;  %966 = vmatprep.subr.mxu1 %v5235_v2  ;;  %8932 = vst [vmem:[#allocation119_spill] sm:$0xff] %v5247_v38  ;;  %8933 = vst [vmem:[#allocation120_spill] sm:$0xff] %v5251_v30  ;;  %v5253_v18 = vld [vmem:[#allocation10 + $0x370] sm:$0xff]  ;;  %v5257_v2 = vld [vmem:[#allocation10 + $0x348] sm:$0xff] }
  0x92   :  { %896 = vmatpush2.msra.mxu0 %v5239_v1  ;;  %967 = vmatpush2.msra.mxu1 %v5241_v7  ;;  %8934 = vst [vmem:[#allocation121_spill] sm:$0xff] %v5253_v18  ;;  %8935 = vst [vmem:[#allocation122_spill] sm:$0xff] %v5257_v2  ;;  %v5259_v1 = vld [vmem:[#allocation10 + $0x358] sm:$0xff]  ;;  %v5263_v7 = vld [vmem:[#allocation10 + $0x340] sm:$0xff] }
  0x93   :  { %897 = vmatprep.subr.mxu0 %v5245_v9  ;;  %968 = vmatprep.subr.mxu1 %v5247_v38  ;;  %8936 = vst [vmem:[#allocation123_spill] sm:$0xff] %v5259_v1  ;;  %8937 = vst [vmem:[#allocation124_spill] sm:$0xff] %v5263_v7  ;;  %v5265_v9 = vld [vmem:[#allocation10 + $0x350] sm:$0xff]  ;;  %v5269_v38 = vld [vmem:[#allocation10 + $0x328] sm:$0xff] }
  0x94   :  { %898 = vmatpush2.msra.mxu0 %v5251_v30  ;;  %969 = vmatpush2.msra.mxu1 %v5253_v18  ;;  %8938 = vst [vmem:[#allocation125_spill] sm:$0xff] %v5265_v9  ;;  %8939 = vst [vmem:[#allocation126_spill] sm:$0xff] %v5269_v38  ;;  %v5271_v30 = vld [vmem:[#allocation10 + $0x338] sm:$0xff]  ;;  %v5275_v18 = vld [vmem:[#allocation10 + $0x320] sm:$0xff] }
  0x95   :  { %899 = vmatprep.subr.mxu0 %v5257_v2  ;;  %970 = vmatprep.subr.mxu1 %v5259_v1  ;;  %8940 = vst [vmem:[#allocation127_spill] sm:$0xff] %v5271_v30  ;;  %8941 = vst [vmem:[#allocation128_spill] sm:$0xff] %v5275_v18  ;;  %v5277_v2 = vld [vmem:[#allocation10 + $0x330] sm:$0xff]  ;;  %v5279_v1 = vld [vmem:[#allocation10 + $0x308] sm:$0xff] }
  0x96   :  { %900 = vmatpush2.msra.mxu0 %v5263_v7  ;;  %971 = vmatpush2.msra.mxu1 %v5265_v9  ;;  %8942 = vst [vmem:[#allocation129_spill] sm:$0xff] %v5277_v2  ;;  %8943 = vst [vmem:[#allocation130_spill] sm:$0xff] %v5279_v1  ;;  %v5283_v7 = vld [vmem:[#allocation10 + $0x318] sm:$0xff]  ;;  %v5285_v9 = vld [vmem:[#allocation10 + $0x300] sm:$0xff] }
  0x97   :  { %901 = vmatprep.subr.mxu0 %v5269_v38  ;;  %972 = vmatprep.subr.mxu1 %v5271_v30  ;;  %8944 = vst [vmem:[#allocation131_spill] sm:$0xff] %v5283_v7  ;;  %8945 = vst [vmem:[#allocation132_spill] sm:$0xff] %v5285_v9  ;;  %v5291_v30 = vld [vmem:[#allocation10 + $0x2e8] sm:$0xff]  ;;  %v5293_v38 = vld [vmem:[#allocation10 + $0x2f8] sm:$0xff] }
  0x98   :  { %902 = vmatpush2.msra.mxu0 %v5275_v18  ;;  %973 = vmatpush2.msra.mxu1 %v5277_v2  ;;  %8947 = vst [vmem:[#allocation134_spill] sm:$0xff] %v5291_v30  ;;  %8948 = vst [vmem:[#allocation135_spill] sm:$0xff] %v5293_v38  ;;  %v5299_v2 = vld [vmem:[#allocation10 + $0x2f0] sm:$0xff]  ;;  %v5301_v18 = vld [vmem:[#allocation10 + $0x2c8] sm:$0xff] }
  0x99   :  { %903 = vmatprep.subr.mxu0 %v5279_v1  ;;  %974 = vmatprep.subr.mxu1 %v5283_v7  ;;  %8950 = vst [vmem:[#allocation137_spill] sm:$0xff] %v5299_v2  ;;  %8951 = vst [vmem:[#allocation138_spill] sm:$0xff] %v5301_v18  ;;  %v5307_v7 = vld [vmem:[#allocation10 + $0x2c0] sm:$0xff]  ;;  %v5309_v1 = vld [vmem:[#allocation10 + $0x2d0] sm:$0xff] }
  0x9a   :  { %904 = vmatpush2.msra.mxu0 %v5285_v9  ;;  %975 = vmatpush2.msra.mxu1 %v5287_v29  ;;  %8953 = vst [vmem:[#allocation140_spill] sm:$0xff] %v5307_v7  ;;  %8954 = vst [vmem:[#allocation141_spill] sm:$0xff] %v5309_v1  ;;  %v5313_v9 = vld [vmem:[#allocation10 + $0x2a8] sm:$0xff]  ;;  %v5315_v29 = vld [vmem:[#allocation10 + $0x2b8] sm:$0xff] }
  0x9b   :  { %905 = vmatprep.subr.mxu0 %v5291_v30  ;;  %976 = vmatprep.subr.mxu1 %v5293_v38  ;;  %8955 = vst [vmem:[#allocation142_spill] sm:$0xff] %v5313_v9  ;;  %8956 = vst [vmem:[#allocation143_spill] sm:$0xff] %v5315_v29  ;;  %v5321_v30 = vld [vmem:[#allocation10 + $0x2b0] sm:$0xff]  ;;  %v5325_v38 = vld [vmem:[#allocation10 + $0x288] sm:$0xff] }
  0x9c   :  { %906 = vmatpush2.msra.mxu0 %v5295_v19  ;;  %977 = vmatpush2.msra.mxu1 %v5299_v2  ;;  %8958 = vst [vmem:[#allocation145_spill] sm:$0xff] %v5321_v30  ;;  %8959 = vst [vmem:[#allocation146_spill] sm:$0xff] %v5325_v38  ;;  %v5327_v19 = vld [vmem:[#allocation10 + $0x298] sm:$0xff]  ;;  %v5331_v2 = vld [vmem:[#allocation10 + $0x280] sm:$0xff] }
  0x9d   :  { %907 = vmatprep.subr.mxu0 %v5301_v18  ;;  %978 = vmatprep.subr.mxu1 %v5303_v10  ;;  %8960 = vst [vmem:[#allocation147_spill] sm:$0xff] %v5327_v19  ;;  %8961 = vst [vmem:[#allocation148_spill] sm:$0xff] %v5331_v2  ;;  %v5333_v18 = vld [vmem:[#allocation10 + $0x290] sm:$0xff]  ;;  %v5337_v10 = vld [vmem:[#allocation10 + $0x268] sm:$0xff] }
  0x9e   :  { %908 = vmatpush2.msra.mxu0 %v5307_v7  ;;  %979 = vmatpush2.msra.mxu1 %v5309_v1  ;;  %8962 = vst [vmem:[#allocation149_spill] sm:$0xff] %v5333_v18  ;;  %8963 = vst [vmem:[#allocation150_spill] sm:$0xff] %v5337_v10  ;;  %v5339_v7 = vld [vmem:[#allocation10 + $0x278] sm:$0xff]  ;;  %v5343_v1 = vld [vmem:[#allocation10 + $0x260] sm:$0xff] }
  0x9f   :  { %909 = vmatprep.subr.mxu0 %v5313_v9  ;;  %980 = vmatprep.subr.mxu1 %v5315_v29  ;;  %8964 = vst [vmem:[#allocation151_spill] sm:$0xff] %v5339_v7  ;;  %8965 = vst [vmem:[#allocation152_spill] sm:$0xff] %v5343_v1  ;;  %v5345_v9 = vld [vmem:[#allocation10 + $0x270] sm:$0xff]  ;;  %v5349_v29 = vld [vmem:[#allocation10 + $0x248] sm:$0xff] }
  0xa0   :  { %910 = vmatpush2.msra.mxu0 %v5319_v8  ;;  %981 = vmatpush2.msra.mxu1 %v5321_v30  ;;  %8966 = vst [vmem:[#allocation153_spill] sm:$0xff] %v5345_v9  ;;  %8967 = vst [vmem:[#allocation154_spill] sm:$0xff] %v5349_v29  ;;  %v5351_v8 = vld [vmem:[#allocation10 + $0x258] sm:$0xff]  ;;  %v5355_v30 = vld [vmem:[#allocation10 + $0x240] sm:$0xff] }
  0xa1   :  { %911 = vmatprep.subr.mxu0 %v5325_v38  ;;  %982 = vmatprep.subr.mxu1 %v5327_v19  ;;  %8968 = vst [vmem:[#allocation155_spill] sm:$0xff] %v5351_v8  ;;  %8969 = vst [vmem:[#allocation156_spill] sm:$0xff] %v5355_v30  ;;  %v5357_v38 = vld [vmem:[#allocation10 + $0x250] sm:$0xff]  ;;  %v5361_v19 = vld [vmem:[#allocation10 + $0x228] sm:$0xff] }
  0xa2   :  { %912 = vmatpush2.msra.mxu0 %v5331_v2  ;;  %983 = vmatpush2.msra.mxu1 %v5333_v18  ;;  %8970 = vst [vmem:[#allocation157_spill] sm:$0xff] %v5357_v38  ;;  %8971 = vst [vmem:[#allocation158_spill] sm:$0xff] %v5361_v19  ;;  %v5363_v2 = vld [vmem:[#allocation10 + $0x238] sm:$0xff]  ;;  %v5367_v18 = vld [vmem:[#allocation10 + $0x220] sm:$0xff] }
  0xa3   :  { %913 = vmatprep.subr.mxu0 %v5337_v10  ;;  %984 = vmatprep.subr.mxu1 %v5339_v7  ;;  %8972 = vst [vmem:[#allocation159_spill] sm:$0xff] %v5363_v2  ;;  %8973 = vst [vmem:[#allocation160_spill] sm:$0xff] %v5367_v18  ;;  %v5369_v10 = vld [vmem:[#allocation10 + $0x230] sm:$0xff]  ;;  %v5373_v7 = vld [vmem:[#allocation10 + $0x208] sm:$0xff] }
  0xa4   :  { %914 = vmatpush2.msra.mxu0 %v5343_v1  ;;  %985 = vmatpush2.msra.mxu1 %v5345_v9  ;;  %8974 = vst [vmem:[#allocation161_spill] sm:$0xff] %v5369_v10  ;;  %8975 = vst [vmem:[#allocation162_spill] sm:$0xff] %v5373_v7  ;;  %v5375_v1 = vld [vmem:[#allocation10 + $0x218] sm:$0xff]  ;;  %v5379_v9 = vld [vmem:[#allocation10 + $0x200] sm:$0xff] }
  0xa5   :  { %915 = vmatprep.subr.mxu0 %v5349_v29  ;;  %986 = vmatprep.subr.mxu1 %v5351_v8  ;;  %8976 = vst [vmem:[#allocation163_spill] sm:$0xff] %v5375_v1  ;;  %8977 = vst [vmem:[#allocation164_spill] sm:$0xff] %v5379_v9  ;;  %v5381_v29 = vld [vmem:[#allocation10 + $0x210] sm:$0xff] }
  0xa6   :  { %916 = vmatpush2.msra.mxu0 %v5355_v30  ;;  %987 = vmatpush2.msra.mxu1 %v5357_v38  ;;  %8978 = vst [vmem:[#allocation165_spill] sm:$0xff] %v5381_v29 }
  0xa7   :  { %917 = vmatprep.subr.mxu0 %v5361_v19  ;;  %988 = vmatprep.subr.mxu1 %v5363_v2  ;;  %v8337_v2 = vsub.s32 0, %v4792_v14  ;;  %v8339_v19 = vsub.s32 2, %v4792_v14 }
  0xa8   :  { %918 = vmatpush2.msra.mxu0 %v5367_v18  ;;  %989 = vmatpush2.msra.mxu1 %v5369_v10  ;;  %v114_v10 = vld [vmem:[%s8180_s3] sm:$0xf] }
  0xa9   :  { %919 = vmatprep.subr.mxu0 %v5373_v7  ;;  %990 = vmatprep.subr.mxu1 %v5375_v1  ;;  %v8340_v7 = vsub.s32 1, %v4792_v14  ;;  %v8341_v1 = vsub.s32 3, %v4792_v14 }
  0xaa   :  { %920 = vmatpush2.msra.mxu0 %v5379_v9  ;;  %991 = vmatpush2.msra.mxu1 %v5381_v29  ;;  %v119_v9 = vrot.slane %v114_v10, %v8337_v2 }
  0xab   :  { %1026 = vmatprep.subr.mxu0 %v4797_v34  ;;  %1097 = vmatprep.subr.mxu1 %v4799_v35  ;;  %v127_v34 = vrot.slane %v114_v10, %v8339_v19  ;;  %v123_v35 = vrot.slane %v114_v10, %v8340_v7  ;;  %v131_v29 = vrot.slane %v114_v10, %v8341_v1 }
 0x106   :  { %v262_v18 = vpop.f32.mrf.mxu0  ;;  %v339_v38 = vpop.f32.mrf.mxu1 }
 0x107   :  { %v263_v30 = vadd.f32 %v262_v18, %v119_v9  ;;  %v340_v8 = vadd.f32 %v339_v38, %v127_v34 }
 0x108   :  { %v264_v37 = vpop.f32.mrf.mxu0  ;;  %v341_v36 = vpop.f32.mrf.mxu1 }
 0x109   :  { %v265_v33 = vadd.f32 %v264_v37, %v123_v35  ;;  %v342_v32 = vadd.f32 %v341_v36, %v131_v29 }
 0x10b   :  { %v358_v31 = vcombine.low %v263_v30, %v265_v33  ;;  %v359_v27 = vcombine.high %v263_v30, %v265_v33  ;;  %v360_v2 = vcombine.low %v340_v8, %v342_v32  ;;  %v361_v26 = vcombine.high %v340_v8, %v342_v32 }
 0x10d   :  { %v5407_v19 = vrot.slane %v358_v31, %v4795_v28  ;;  %v5410_v7 = vrot.slane %v359_v27, %v4795_v28  ;;  %v5413_v10 = vrot.slane %v360_v2, %v4795_v28  ;;  %v5416_v18 = vrot.slane %v361_v26, %v4795_v28 }
 0x121   :  { %v268_v31 = vpop.f32.mrf.mxu0  ;;  %v345_v36 = vpop.f32.mrf.mxu1 }
 0x122   :  { %v269_v38 = vadd.f32 %v268_v31, %v119_v9  ;;  %v346_v27 = vadd.f32 %v345_v36, %v127_v34 }
 0x123   :  { %v270_v8 = vpop.f32.mrf.mxu0  ;;  %v347_v30 = vpop.f32.mrf.mxu1 }
 0x124   :  { %v271_v2 = vadd.f32 %v270_v8, %v123_v35  ;;  %v348_v1 = vadd.f32 %v347_v30, %v131_v29  ;;  %v390_v30 = vcombine.low %v5407_v19, %v5413_v10 }
 0x126   :  { %v394_v14 = vcombine.low %v269_v38, %v271_v2  ;;  %v395_v26 = vcombine.high %v269_v38, %v271_v2  ;;  %v396_v25 = vcombine.low %v346_v27, %v348_v1  ;;  %v397_v24 = vcombine.high %v346_v27, %v348_v1 }
 0x128   :  { %v5425_v37 = vrot.slane %v394_v14, %v4795_v28  ;;  %v5428_v33 = vrot.slane %v395_v26, %v4795_v28  ;;  %v5431_v32 = vrot.slane %v396_v25, %v4795_v28  ;;  %v5434_v9 = vrot.slane %v397_v24, %v4795_v28 }
 0x129   :  { %v727_v34 = vpop.f32.mrf.mxu0  ;;  %v798_v31 = vpop.f32.mrf.mxu1 }
 0x12a   :  { %8979 = vst [vmem:[#allocation166_spill] sm:$0xff] %v5425_v37  ;;  %8980 = vst [vmem:[#allocation167_spill] sm:$0xff] %v5428_v33  ;;  %v5848_v37 = vld [vmem:[#allocation9 + $0x70] sm:$0xff] }
 0x12b   :  { %8981 = vst [vmem:[#allocation168_spill] sm:$0xff] %v5431_v32  ;;  %8982 = vst [vmem:[#allocation169_spill] sm:$0xff] %v5434_v9  ;;  %v729_v36 = vpop.f32.mrf.mxu0  ;;  %v800_v25 = vpop.f32.mrf.mxu1 }
 0x12c   :  { %v807_v38 = vcombine.low %v727_v34, %v729_v36  ;;  %v808_v27 = vcombine.low %v798_v31, %v800_v25 }
 0x12e   :  { %v815_v24 = vrot.slane %v807_v38, %v4795_v28  ;;  %v822_v8 = vrot.slane %v808_v27, %v4795_v28 }
 0x130   :  { %v823_v2 = vcombine.low %v815_v24, %v822_v8 }
 0x132   :  { %v825_v26 = vadd.f32 %v823_v2, %v390_v30  ;;  %v9025_v2 = vld [vmem:[#allocation57_spill] sm:$0xff] }
 0x134   :  { %v3726_v1 = vmul.f32 -1.442695, %v825_v26  ;;  %v833_v29 = vrot.slane %v825_v26, 2  ;;  %v844_v32 = vrot.slane %v825_v26, 6  ;;  %v841_v33 = vrot.slane %v825_v26, 4  ;;  %v9026_v26 = vld [vmem:[#allocation58_spill] sm:$0xff] }
 0x136   :  { %3787 = vpow2.f32 %v3726_v1  ;;  %v3727_v14 = vmul.f32 -1.442695, %v833_v29  ;;  %v3728_v35 = vmul.f32 -1.442695, %v844_v32 }
 0x138   :  { %3789 = vpow2.f32 %v3727_v14 }
 0x139   :  { %3791 = vpow2.f32 %v3728_v35  ;;  %v9024_v35 = vld [vmem:[#allocation56_spill] sm:$0xff] }
 0x143   :  { %v3788_v9 = vpop.eup %3787 }
 0x144   :  { %v829_v34 = vadd.f32 1.0, %v3788_v9 }
 0x145   :  { %v3790_v31 = vpop.eup %3789 }
 0x146   :  { %3793 = vrcp.f32 %v829_v34  ;;  %v838_v36 = vadd.f32 1.0, %v3790_v31  ;;  %v3792_v25 = vpop.eup %3791  ;;  %v9027_v34 = vld [vmem:[#allocation59_spill] sm:$0xff]  ;;  %v9028_v31 = vld [vmem:[#allocation60_spill] sm:$0xff] }
 0x147   :  { %3795 = vtanh.f32 %v841_v33  ;;  %v849_v8 = vadd.f32 1.0, %v3792_v25  ;;  %v9023_v33 = vld [vmem:[#allocation55_spill] sm:$0xff]  ;;  %v9030_v25 = vld [vmem:[#allocation62_spill] sm:$0xff] }
 0x148   :  { %3797 = vrcp.f32 %v838_v36  ;;  %v9029_v36 = vld [vmem:[#allocation61_spill] sm:$0xff] }
 0x149   :  { %3799 = vrcp.f32 %v849_v8  ;;  %v9034_v8 = vld [vmem:[#allocation66_spill] sm:$0xff] }
 0x153   :  { %v3794_v38 = vpop.eup %3793 }
 0x154   :  { %v3796_v27 = vpop.eup %3795 }
 0x155   :  { %v3798_v24 = vpop.eup %3797  ;;  %v853_v1 = vmul.f32 %v3796_v27, %v3794_v38  ;;  %v9031_v38 = vld [vmem:[#allocation63_spill] sm:$0xff]  ;;  %v9032_v27 = vld [vmem:[#allocation64_spill] sm:$0xff] }
 0x156   :  { %v852_v30 = vmul.f32 0.0, %v3798_v24  ;;  %v3800_v32 = vpop.eup %3799  ;;  %v9033_v24 = vld [vmem:[#allocation65_spill] sm:$0xff] }
 0x158   :  { %v5448_v29 = vadd.f32 %v853_v1, %v852_v30  ;;  %v9035_v30 = vld [vmem:[#allocation67_spill] sm:$0xff]  ;;  %v9036_v1 = vld [vmem:[#allocation68_spill] sm:$0xff] }
 0x15a   :  { %3801 = vtanh.f32 %v5448_v29 }
 0x167   :  { %v3802_v9 = vpop.eup %3801 }
 0x168   :  { %v5451_v14 = vmul.f32 %v3802_v9, %v3800_v32  ;;  %v9037_v32 = vld [vmem:[#allocation69_spill] sm:$0xff]  ;;  %v9038_v9 = vld [vmem:[#allocation70_spill] sm:$0xff] }
 0x16a   :  { %922 = vmatmul.mubr.f32.vlgmr.msra.gmra.mxu0 %v5451_v14  ;;  %993 = vmatmul.mubr.f32.vlgmr.msra.gmra.mxu1 %v5451_v14 }
 0x16b   :  { %1027 = vmatpush1.msra.mxu0 %v4805_v39  ;;  %1098 = vmatpush1.msra.mxu1 %v4807_v40  ;;  %v8983_v39 = vld [vmem:[#allocation16_spill] sm:$0xff]  ;;  %v8984_v40 = vld [vmem:[#allocation17_spill] sm:$0xff] }
 0x16c   :  { %1028 = vmatprep.subr.mxu0 %v4809_v41  ;;  %1099 = vmatprep.subr.mxu1 %v4811_v42  ;;  %v8985_v41 = vld [vmem:[#allocation18_spill] sm:$0xff]  ;;  %v8986_v42 = vld [vmem:[#allocation19_spill] sm:$0xff] }
 0x16d   :  { %1029 = vmatpush1.msra.mxu0 %v4815_v43  ;;  %1100 = vmatpush1.msra.mxu1 %v4817_v44  ;;  %v8987_v43 = vld [vmem:[#allocation20_spill] sm:$0xff]  ;;  %v8988_v44 = vld [vmem:[#allocation21_spill] sm:$0xff] }
 0x16e   :  { %1030 = vmatprep.subr.mxu0 %v4821_v45  ;;  %1101 = vmatprep.subr.mxu1 %v4823_v46  ;;  %v8989_v45 = vld [vmem:[#allocation22_spill] sm:$0xff]  ;;  %v8990_v46 = vld [vmem:[#allocation23_spill] sm:$0xff] }
 0x16f   :  { %1031 = vmatpush1.msra.mxu0 %v4827_v47  ;;  %1102 = vmatpush1.msra.mxu1 %v4829_v48  ;;  %v8991_v47 = vld [vmem:[#allocation24_spill] sm:$0xff]  ;;  %v8992_v48 = vld [vmem:[#allocation25_spill] sm:$0xff] }
 0x170   :  { %1032 = vmatprep.subr.mxu0 %v4833_v49  ;;  %1103 = vmatprep.subr.mxu1 %v4835_v50  ;;  %v8993_v49 = vld [vmem:[#allocation26_spill] sm:$0xff]  ;;  %v8994_v50 = vld [vmem:[#allocation27_spill] sm:$0xff] }
 0x171   :  { %1033 = vmatpush1.msra.mxu0 %v4839_v51  ;;  %1104 = vmatpush1.msra.mxu1 %v4841_v52  ;;  %v8995_v51 = vld [vmem:[#allocation28_spill] sm:$0xff]  ;;  %v8996_v52 = vld [vmem:[#allocation29_spill] sm:$0xff] }
 0x172   :  { %1034 = vmatprep.subr.mxu0 %v4845_v53  ;;  %1105 = vmatprep.subr.mxu1 %v4847_v54  ;;  %v8997_v53 = vld [vmem:[#allocation30_spill] sm:$0xff]  ;;  %v8998_v54 = vld [vmem:[#allocation31_spill] sm:$0xff] }
 0x173   :  { %1035 = vmatpush1.msra.mxu0 %v4851_v55  ;;  %1106 = vmatpush1.msra.mxu1 %v4853_v56  ;;  %v8999_v55 = vld [vmem:[#allocation32_spill] sm:$0xff]  ;;  %v9000_v56 = vld [vmem:[#allocation33_spill] sm:$0xff]  ;;  %9155 = vst [vmem:[#allocation31_spill] sm:$0xff] %v5848_v37 }
 0x174   :  { %1036 = vmatprep.subr.mxu0 %v4857_v57  ;;  %1107 = vmatprep.subr.mxu1 %v4859_v58  ;;  %v9001_v57 = vld [vmem:[#allocation34_spill] sm:$0xff]  ;;  %v9002_v58 = vld [vmem:[#allocation35_spill] sm:$0xff] }
 0x175   :  { %1037 = vmatpush1.msra.mxu0 %v4863_v59  ;;  %1108 = vmatpush1.msra.mxu1 %v4865_v60  ;;  %v9003_v59 = vld [vmem:[#allocation36_spill] sm:$0xff]  ;;  %v9004_v60 = vmov 0.0  }
 0x176   :  { %1038 = vmatprep.subr.mxu0 %v4869_v61  ;;  %1109 = vmatprep.subr.mxu1 %v4871_v62  ;;  %v9005_v61 = vld [vmem:[#allocation37_spill] sm:$0xff]  ;;  %v9006_v62 = vld [vmem:[#allocation38_spill] sm:$0xff] }
 0x177   :  { %1039 = vmatpush1.msra.mxu0 %v4873_v63  ;;  %1110 = vmatpush1.msra.mxu1 %v4877_v0  ;;  %v9007_v63 = vld [vmem:[#allocation39_spill] sm:$0xff]  ;;  %v9008_v0 = vld [vmem:[#allocation40_spill] sm:$0xff] }
 0x178   :  { %1040 = vmatprep.subr.mxu0 %v4879_v3  ;;  %1111 = vmatprep.subr.mxu1 %v4881_v4  ;;  %v9009_v3 = vld [vmem:[#allocation41_spill] sm:$0xff]  ;;  %v9010_v4 = vld [vmem:[#allocation42_spill] sm:$0xff] }
 0x179   :  { %1041 = vmatpush1.msra.mxu0 %v4885_v5  ;;  %1112 = vmatpush1.msra.mxu1 %v4887_v6  ;;  %v9011_v5 = vld [vmem:[#allocation43_spill] sm:$0xff]  ;;  %v9012_v6 = vld [vmem:[#allocation44_spill] sm:$0xff] }
 0x17a   :  { %1042 = vmatprep.subr.mxu0 %v4893_v11  ;;  %1113 = vmatprep.subr.mxu1 %v4895_v12  ;;  %v9013_v11 = vld [vmem:[#allocation45_spill] sm:$0xff]  ;;  %v9014_v12 = vld [vmem:[#allocation46_spill] sm:$0xff] }
 0x17b   :  { %1043 = vmatpush1.msra.mxu0 %v4899_v13  ;;  %1114 = vmatpush1.msra.mxu1 %v4901_v15  ;;  %v9015_v13 = vld [vmem:[#allocation47_spill] sm:$0xff]  ;;  %v9016_v15 = vld [vmem:[#allocation48_spill] sm:$0xff] }
 0x17c   :  { %1044 = vmatprep.subr.mxu0 %v4905_v16  ;;  %1115 = vmatprep.subr.mxu1 %v4907_v17  ;;  %v9017_v16 = vld [vmem:[#allocation49_spill] sm:$0xff]  ;;  %v9018_v17 = vld [vmem:[#allocation50_spill] sm:$0xff] }
 0x17d   :  { %1045 = vmatpush1.msra.mxu0 %v4911_v20  ;;  %1116 = vmatpush1.msra.mxu1 %v4913_v21  ;;  %v9019_v20 = vld [vmem:[#allocation51_spill] sm:$0xff]  ;;  %v9020_v21 = vld [vmem:[#allocation52_spill] sm:$0xff] }
 0x17e   :  { %1046 = vmatprep.subr.mxu0 %v4917_v22  ;;  %1117 = vmatprep.subr.mxu1 %v4919_v23  ;;  %v9021_v22 = vld [vmem:[#allocation53_spill] sm:$0xff]  ;;  %v9022_v23 = vld [vmem:[#allocation54_spill] sm:$0xff] }
 0x17f   :  { %1047 = vmatpush1.msra.mxu0 %v8983_v39  ;;  %1118 = vmatpush1.msra.mxu1 %v8984_v40  ;;  %v9040_v39 = vld [vmem:[#allocation72_spill] sm:$0xff]  ;;  %v9041_v40 = vld [vmem:[#allocation73_spill] sm:$0xff] }
 0x180   :  { %1048 = vmatprep.subr.mxu0 %v8985_v41  ;;  %1119 = vmatprep.subr.mxu1 %v8986_v42  ;;  %v9042_v41 = vld [vmem:[#allocation74_spill] sm:$0xff]  ;;  %v9043_v42 = vld [vmem:[#allocation75_spill] sm:$0xff] }
 0x181   :  { %1049 = vmatpush1.msra.mxu0 %v8987_v43  ;;  %1120 = vmatpush1.msra.mxu1 %v8988_v44  ;;  %v9044_v43 = vld [vmem:[#allocation76_spill] sm:$0xff]  ;;  %v9045_v44 = vld [vmem:[#allocation77_spill] sm:$0xff] }
 0x182   :  { %1050 = vmatprep.subr.mxu0 %v8989_v45  ;;  %1121 = vmatprep.subr.mxu1 %v8990_v46  ;;  %v9046_v45 = vld [vmem:[#allocation78_spill] sm:$0xff]  ;;  %v9047_v46 = vld [vmem:[#allocation79_spill] sm:$0xff] }
 0x183   :  { %1051 = vmatpush1.msra.mxu0 %v8991_v47  ;;  %1122 = vmatpush1.msra.mxu1 %v8992_v48  ;;  %v9048_v47 = vld [vmem:[#allocation80_spill] sm:$0xff]  ;;  %v9049_v48 = vld [vmem:[#allocation81_spill] sm:$0xff] }
 0x184   :  { %1052 = vmatprep.subr.mxu0 %v8993_v49  ;;  %1123 = vmatprep.subr.mxu1 %v8994_v50  ;;  %v9050_v49 = vld [vmem:[#allocation82_spill] sm:$0xff]  ;;  %v9051_v50 = vld [vmem:[#allocation83_spill] sm:$0xff] }
 0x185   :  { %1053 = vmatpush1.msra.mxu0 %v8995_v51  ;;  %1124 = vmatpush1.msra.mxu1 %v8996_v52  ;;  %v9052_v51 = vld [vmem:[#allocation84_spill] sm:$0xff]  ;;  %v9053_v52 = vld [vmem:[#allocation85_spill] sm:$0xff] }
 0x186   :  { %1054 = vmatprep.subr.mxu0 %v8997_v53  ;;  %1125 = vmatprep.subr.mxu1 %v8998_v54  ;;  %v9054_v53 = vld [vmem:[#allocation86_spill] sm:$0xff]  ;;  %v9055_v54 = vld [vmem:[#allocation87_spill] sm:$0xff] }
 0x187   :  { %1055 = vmatpush1.msra.mxu0 %v8999_v55  ;;  %1126 = vmatpush1.msra.mxu1 %v9000_v56  ;;  %v9056_v55 = vld [vmem:[#allocation88_spill] sm:$0xff]  ;;  %v9057_v56 = vld [vmem:[#allocation89_spill] sm:$0xff] }
 0x188   :  { %1056 = vmatprep.subr.mxu0 %v9001_v57  ;;  %1127 = vmatprep.subr.mxu1 %v9002_v58  ;;  %v9058_v57 = vld [vmem:[#allocation90_spill] sm:$0xff]  ;;  %v9059_v58 = vld [vmem:[#allocation91_spill] sm:$0xff] }
 0x189   :  { %1057 = vmatpush1.msra.mxu0 %v9003_v59  ;;  %1090 = vmatprep.mubr.f32.mxu0 %v9004_v60  ;;  %v9060_v59 = vld [vmem:[#allocation92_spill] sm:$0xff] }
 0x18a   :  { %1128 = vmatpush1.msra.mxu1 %v9005_v61  ;;  %1161 = vmatprep.mubr.f32.mxu1 %v9004_v60  ;;  %v9061_v61 = vld [vmem:[#allocation93_spill] sm:$0xff] }
 0x18b   :  { %1091 = vmatmul.mubr.f32.vlgmr.msra.gmra.mxu0 %v5451_v14  ;;  %1162 = vmatmul.mubr.f32.vlgmr.msra.gmra.mxu1 %v5451_v14  ;;  %v9039_v14 = vld [vmem:[#allocation71_spill] sm:$0xff] }
 0x18c   :  { %1222 = vmatprep.subr.mxu0 %v9006_v62  ;;  %1293 = vmatprep.subr.mxu1 %v9007_v63  ;;  %v9062_v62 = vld [vmem:[#allocation94_spill] sm:$0xff]  ;;  %v9063_v63 = vld [vmem:[#allocation95_spill] sm:$0xff] }
 0x18d   :  { %1223 = vmatpush1.msra.mxu0 %v9008_v0  ;;  %1294 = vmatpush1.msra.mxu1 %v9009_v3  ;;  %v9064_v0 = vld [vmem:[#allocation96_spill] sm:$0xff]  ;;  %v9065_v3 = vld [vmem:[#allocation97_spill] sm:$0xff] }
 0x18e   :  { %1224 = vmatprep.subr.mxu0 %v9010_v4  ;;  %1295 = vmatprep.subr.mxu1 %v9011_v5  ;;  %v9066_v4 = vld [vmem:[#allocation98_spill] sm:$0xff]  ;;  %v9067_v5 = vld [vmem:[#allocation99_spill] sm:$0xff] }
 0x18f   :  { %1225 = vmatpush1.msra.mxu0 %v9012_v6  ;;  %1296 = vmatpush1.msra.mxu1 %v9013_v11  ;;  %v9068_v6 = vld [vmem:[#allocation100_spill] sm:$0xff]  ;;  %v9069_v11 = vld [vmem:[#allocation101_spill] sm:$0xff] }
 0x190   :  { %1226 = vmatprep.subr.mxu0 %v9014_v12  ;;  %1297 = vmatprep.subr.mxu1 %v9015_v13  ;;  %v9070_v12 = vld [vmem:[#allocation102_spill] sm:$0xff]  ;;  %v9071_v13 = vld [vmem:[#allocation103_spill] sm:$0xff] }
 0x191   :  { %1227 = vmatpush1.msra.mxu0 %v9016_v15  ;;  %1298 = vmatpush1.msra.mxu1 %v9017_v16  ;;  %v9072_v15 = vld [vmem:[#allocation104_spill] sm:$0xff]  ;;  %v9073_v16 = vld [vmem:[#allocation105_spill] sm:$0xff] }
 0x192   :  { %1228 = vmatprep.subr.mxu0 %v9018_v17  ;;  %1299 = vmatprep.subr.mxu1 %v9019_v20  ;;  %v9074_v17 = vld [vmem:[#allocation106_spill] sm:$0xff]  ;;  %v9075_v20 = vld [vmem:[#allocation107_spill] sm:$0xff] }
 0x193   :  { %1229 = vmatpush1.msra.mxu0 %v9020_v21  ;;  %1300 = vmatpush1.msra.mxu1 %v9021_v22  ;;  %v9076_v21 = vld [vmem:[#allocation108_spill] sm:$0xff]  ;;  %v9077_v22 = vld [vmem:[#allocation109_spill] sm:$0xff] }
 0x194   :  { %1230 = vmatprep.subr.mxu0 %v9022_v23  ;;  %1301 = vmatprep.subr.mxu1 %v9023_v33  ;;  %v9078_v23 = vld [vmem:[#allocation110_spill] sm:$0xff]  ;;  %v9079_v33 = vld [vmem:[#allocation111_spill] sm:$0xff] }
 0x195   :  { %1231 = vmatpush1.msra.mxu0 %v9024_v35  ;;  %1302 = vmatpush1.msra.mxu1 %v9025_v2  ;;  %v9080_v35 = vld [vmem:[#allocation112_spill] sm:$0xff]  ;;  %v9081_v2 = vld [vmem:[#allocation113_spill] sm:$0xff] }
 0x196   :  { %1232 = vmatprep.subr.mxu0 %v9026_v26  ;;  %1303 = vmatprep.subr.mxu1 %v9027_v34  ;;  %v9082_v26 = vld [vmem:[#allocation114_spill] sm:$0xff]  ;;  %v9083_v34 = vld [vmem:[#allocation115_spill] sm:$0xff] }
 0x197   :  { %1233 = vmatpush1.msra.mxu0 %v9028_v31  ;;  %1304 = vmatpush1.msra.mxu1 %v9029_v36  ;;  %v9084_v31 = vld [vmem:[#allocation116_spill] sm:$0xff]  ;;  %v9085_v36 = vld [vmem:[#allocation117_spill] sm:$0xff] }
 0x198   :  { %1234 = vmatprep.subr.mxu0 %v9030_v25  ;;  %1305 = vmatprep.subr.mxu1 %v9031_v38  ;;  %v9086_v25 = vld [vmem:[#allocation118_spill] sm:$0xff]  ;;  %v9087_v38 = vld [vmem:[#allocation119_spill] sm:$0xff] }
 0x199   :  { %1235 = vmatpush1.msra.mxu0 %v9032_v27  ;;  %1306 = vmatpush1.msra.mxu1 %v9033_v24  ;;  %v9088_v27 = vld [vmem:[#allocation120_spill] sm:$0xff]  ;;  %v9089_v24 = vld [vmem:[#allocation121_spill] sm:$0xff] }
 0x19a   :  { %1236 = vmatprep.subr.mxu0 %v9034_v8  ;;  %1307 = vmatprep.subr.mxu1 %v9035_v30  ;;  %v9090_v8 = vld [vmem:[#allocation122_spill] sm:$0xff]  ;;  %v9091_v30 = vld [vmem:[#allocation123_spill] sm:$0xff] }
 0x19b   :  { %1237 = vmatpush1.msra.mxu0 %v9036_v1  ;;  %1308 = vmatpush1.msra.mxu1 %v9037_v32  ;;  %v9092_v1 = vld [vmem:[#allocation124_spill] sm:$0xff]  ;;  %v9093_v32 = vld [vmem:[#allocation125_spill] sm:$0xff] }
 0x19c   :  { %1238 = vmatprep.subr.mxu0 %v9038_v9  ;;  %1309 = vmatprep.subr.mxu1 %v9039_v14  ;;  %v9094_v9 = vld [vmem:[#allocation126_spill] sm:$0xff]  ;;  %v9095_v14 = vld [vmem:[#allocation127_spill] sm:$0xff] }
 0x19d   :  { %1239 = vmatpush1.msra.mxu0 %v9040_v39  ;;  %1310 = vmatpush1.msra.mxu1 %v9041_v40  ;;  %v9096_v39 = vld [vmem:[#allocation128_spill] sm:$0xff]  ;;  %v9097_v40 = vld [vmem:[#allocation129_spill] sm:$0xff] }
 0x19e   :  { %1240 = vmatprep.subr.mxu0 %v9042_v41  ;;  %1311 = vmatprep.subr.mxu1 %v9043_v42  ;;  %v9098_v41 = vld [vmem:[#allocation130_spill] sm:$0xff]  ;;  %v9099_v42 = vld [vmem:[#allocation131_spill] sm:$0xff] }
 0x19f   :  { %1241 = vmatpush1.msra.mxu0 %v9044_v43  ;;  %1312 = vmatpush1.msra.mxu1 %v9045_v44  ;;  %v9100_v43 = vld [vmem:[#allocation132_spill] sm:$0xff]  ;;  %v9101_v44 = vld [vmem:[#allocation133_spill] sm:$0xff] }
 0x1a0   :  { %1242 = vmatprep.subr.mxu0 %v9046_v45  ;;  %1313 = vmatprep.subr.mxu1 %v9047_v46  ;;  %v9102_v45 = vld [vmem:[#allocation134_spill] sm:$0xff]  ;;  %v9103_v46 = vld [vmem:[#allocation135_spill] sm:$0xff] }
 0x1a1   :  { %1243 = vmatpush1.msra.mxu0 %v9048_v47  ;;  %1314 = vmatpush1.msra.mxu1 %v9049_v48  ;;  %v9104_v47 = vld [vmem:[#allocation136_spill] sm:$0xff]  ;;  %v9105_v48 = vld [vmem:[#allocation137_spill] sm:$0xff] }
 0x1a2   :  { %1244 = vmatprep.subr.mxu0 %v9050_v49  ;;  %1315 = vmatprep.subr.mxu1 %v9051_v50  ;;  %v9106_v49 = vld [vmem:[#allocation138_spill] sm:$0xff]  ;;  %v9107_v50 = vld [vmem:[#allocation139_spill] sm:$0xff] }
 0x1a3   :  { %1245 = vmatpush1.msra.mxu0 %v9052_v51  ;;  %1316 = vmatpush1.msra.mxu1 %v9053_v52  ;;  %v9108_v51 = vld [vmem:[#allocation140_spill] sm:$0xff]  ;;  %v9109_v52 = vld [vmem:[#allocation141_spill] sm:$0xff] }
 0x1a4   :  { %1246 = vmatprep.subr.mxu0 %v9054_v53  ;;  %1317 = vmatprep.subr.mxu1 %v9055_v54  ;;  %v9110_v53 = vld [vmem:[#allocation142_spill] sm:$0xff]  ;;  %v9111_v54 = vld [vmem:[#allocation143_spill] sm:$0xff] }
 0x1a5   :  { %1247 = vmatpush1.msra.mxu0 %v9056_v55  ;;  %1318 = vmatpush1.msra.mxu1 %v9057_v56  ;;  %v9112_v55 = vld [vmem:[#allocation144_spill] sm:$0xff]  ;;  %v9113_v56 = vld [vmem:[#allocation145_spill] sm:$0xff] }
 0x1a6   :  { %1248 = vmatprep.subr.mxu0 %v9058_v57  ;;  %1319 = vmatprep.subr.mxu1 %v9059_v58  ;;  %v9114_v57 = vld [vmem:[#allocation146_spill] sm:$0xff]  ;;  %v9115_v58 = vld [vmem:[#allocation147_spill] sm:$0xff] }
 0x1a7   :  { %1249 = vmatpush1.msra.mxu0 %v9060_v59  ;;  %1320 = vmatpush1.msra.mxu1 %v9061_v61  ;;  %v9116_v59 = vld [vmem:[#allocation148_spill] sm:$0xff]  ;;  %v9117_v61 = vld [vmem:[#allocation149_spill] sm:$0xff] }
 0x1a8   :  { %1250 = vmatprep.subr.mxu0 %v9062_v62  ;;  %1321 = vmatprep.subr.mxu1 %v9063_v63  ;;  %v9118_v62 = vld [vmem:[#allocation150_spill] sm:$0xff]  ;;  %v9119_v63 = vld [vmem:[#allocation151_spill] sm:$0xff] }
 0x1a9   :  { %1251 = vmatpush1.msra.mxu0 %v9064_v0  ;;  %1322 = vmatpush1.msra.mxu1 %v9065_v3  ;;  %v9120_v0 = vld [vmem:[#allocation152_spill] sm:$0xff]  ;;  %v9121_v3 = vld [vmem:[#allocation153_spill] sm:$0xff] }
 0x1aa   :  { %1252 = vmatprep.subr.mxu0 %v9066_v4  ;;  %1323 = vmatprep.subr.mxu1 %v9067_v5  ;;  %v9122_v4 = vld [vmem:[#allocation154_spill] sm:$0xff]  ;;  %v9123_v5 = vld [vmem:[#allocation155_spill] sm:$0xff] }
 0x1ab   :  { %1253 = vmatpush1.msra.mxu0 %v9068_v6  ;;  %1324 = vmatpush1.msra.mxu1 %v9069_v11  ;;  %v9124_v6 = vld [vmem:[#allocation156_spill] sm:$0xff]  ;;  %v9125_v11 = vld [vmem:[#allocation157_spill] sm:$0xff] }
 0x1ac   :  { %1254 = vmatprep.subr.mxu0 %v9070_v12  ;;  %1325 = vmatprep.subr.mxu1 %v9071_v13  ;;  %v9126_v12 = vld [vmem:[#allocation158_spill] sm:$0xff]  ;;  %v9127_v13 = vld [vmem:[#allocation159_spill] sm:$0xff] }
 0x1ad   :  { %1255 = vmatpush2.msra.mxu0 %v9072_v15  ;;  %1326 = vmatpush2.msra.mxu1 %v9073_v16  ;;  %v9128_v15 = vld [vmem:[#allocation160_spill] sm:$0xff]  ;;  %v9129_v16 = vld [vmem:[#allocation161_spill] sm:$0xff] }
 0x1ae   :  { %1256 = vmatprep.subr.mxu0 %v9074_v17  ;;  %1327 = vmatprep.subr.mxu1 %v9075_v20  ;;  %v9130_v17 = vld [vmem:[#allocation162_spill] sm:$0xff]  ;;  %v9131_v20 = vld [vmem:[#allocation163_spill] sm:$0xff] }
 0x1af   :  { %1257 = vmatpush2.msra.mxu0 %v9076_v21  ;;  %1328 = vmatpush2.msra.mxu1 %v9077_v22  ;;  %v9132_v21 = vld [vmem:[#allocation164_spill] sm:$0xff]  ;;  %v9133_v22 = vld [vmem:[#allocation165_spill] sm:$0xff] }
 0x1b0   :  { %1258 = vmatprep.subr.mxu0 %v9078_v23  ;;  %1329 = vmatprep.subr.mxu1 %v9079_v33  ;;  %v5649_v23 = vld [vmem:[#allocation9 + $0x1e8] sm:$0xff]  ;;  %v5652_v33 = vld [vmem:[#allocation9 + $0x1f8] sm:$0xff] }
 0x1b1   :  { %1259 = vmatpush2.msra.mxu0 %v9080_v35  ;;  %1330 = vmatpush2.msra.mxu1 %v9081_v2  ;;  %v638_v35 = vld [vmem:[%s8182_s5] sm:$0xf] }
 0x1b2   :  { %1260 = vmatprep.subr.mxu0 %v9082_v26  ;;  %1331 = vmatprep.subr.mxu1 %v9083_v34  ;;  %v9134_v2 = vld [vmem:[#allocation15_spill] sm:$0xff] }
 0x1b3   :  { %1261 = vmatpush2.msra.mxu0 %v9084_v31  ;;  %1332 = vmatpush2.msra.mxu1 %v9085_v36  ;;  %v9135_v26 = vsub.s32 0, %v9134_v2  ;;  %v9137_v31 = vsub.s32 1, %v9134_v2 }
 0x1b4   :  { %1262 = vmatprep.subr.mxu0 %v9086_v25  ;;  %1333 = vmatprep.subr.mxu1 %v9087_v38 }
 0x1b5   :  { %1263 = vmatpush2.msra.mxu0 %v9088_v27  ;;  %1334 = vmatpush2.msra.mxu1 %v9089_v24  ;;  %v5660_v34 = vrot.slane %v638_v35, %v9135_v26  ;;  %v5664_v36 = vrot.slane %v638_v35, %v9137_v31 }
 0x1b6   :  { %1264 = vmatprep.subr.mxu0 %v9090_v8  ;;  %1335 = vmatprep.subr.mxu1 %v9091_v30 }
 0x1b7   :  { %1265 = vmatpush2.msra.mxu0 %v9092_v1  ;;  %1336 = vmatpush2.msra.mxu1 %v9093_v32  ;;  %9136 = vst [vmem:[#allocation16_spill] sm:$0xff] %v5660_v34  ;;  %9138 = vst [vmem:[#allocation17_spill] sm:$0xff] %v5664_v36  ;;  %v9139_v32 = vsub.s32 3, %v9134_v2 }
 0x1b8   :  { %1266 = vmatprep.subr.mxu0 %v9094_v9  ;;  %1337 = vmatprep.subr.mxu1 %v9095_v14 }
 0x1b9   :  { %1267 = vmatpush2.msra.mxu0 %v9096_v39  ;;  %1338 = vmatpush2.msra.mxu1 %v9097_v40  ;;  %v5670_v9 = vrot.slane %v638_v35, %v9139_v32  ;;  %v9141_v40 = vsub.s32 2, %v9134_v2  ;;  %v5845_v2 = vld [vmem:[#allocation9 + $0x60] sm:$0xff] }
 0x1ba   :  { %1268 = vmatprep.subr.mxu0 %v9098_v41  ;;  %1339 = vmatprep.subr.mxu1 %v9099_v42  ;;  %9154 = vst [vmem:[#allocation30_spill] sm:$0xff] %v5845_v2 }
 0x1bb   :  { %1269 = vmatpush2.msra.mxu0 %v9100_v43  ;;  %1340 = vmatpush2.msra.mxu1 %v9101_v44  ;;  %9140 = vst [vmem:[#allocation18_spill] sm:$0xff] %v5670_v9  ;;  %v5675_v41 = vrot.slane %v638_v35, %v9141_v40 }
 0x1bc   :  { %1270 = vmatprep.subr.mxu0 %v9102_v45  ;;  %1341 = vmatprep.subr.mxu1 %v9103_v46 }
 0x1bd   :  { %1271 = vmatpush2.msra.mxu0 %v9104_v47  ;;  %1342 = vmatpush2.msra.mxu1 %v9105_v48  ;;  %9142 = vst [vmem:[#allocation19_spill] sm:$0xff] %v5675_v41 }
 0x1be   :  { %1272 = vmatprep.subr.mxu0 %v9106_v49  ;;  %1343 = vmatprep.subr.mxu1 %v9107_v50 }
 0x1bf   :  { %1273 = vmatpush2.msra.mxu0 %v9108_v51  ;;  %1344 = vmatpush2.msra.mxu1 %v9109_v52 }
 0x1c0   :  { %1274 = vmatprep.subr.mxu0 %v9110_v53  ;;  %1345 = vmatprep.subr.mxu1 %v9111_v54 }
 0x1c1   :  { %1275 = vmatpush2.msra.mxu0 %v9112_v55  ;;  %1346 = vmatpush2.msra.mxu1 %v9113_v56 }
 0x1c2   :  { %1276 = vmatprep.subr.mxu0 %v9114_v57  ;;  %1347 = vmatprep.subr.mxu1 %v9115_v58 }
 0x1c3   :  { %1277 = vmatpush2.msra.mxu0 %v9116_v59  ;;  %1348 = vmatpush2.msra.mxu1 %v9117_v61 }
 0x1c4   :  { %1278 = vmatprep.subr.mxu0 %v9118_v62  ;;  %1349 = vmatprep.subr.mxu1 %v9119_v63 }
 0x1c5   :  { %1279 = vmatpush2.msra.mxu0 %v9120_v0  ;;  %1350 = vmatpush2.msra.mxu1 %v9121_v3 }
 0x1c6   :  { %1280 = vmatprep.subr.mxu0 %v9122_v4  ;;  %1351 = vmatprep.subr.mxu1 %v9123_v5  ;;  %v9143_v4 = vcombine.high %v5407_v19, %v5413_v10  ;;  %v5689_v10 = vld [vmem:[%s8183_s6] ss:$0 sm:$0xff] }
 0x1c7   :  { %1281 = vmatpush2.msra.mxu0 %v9124_v6  ;;  %1352 = vmatpush2.msra.mxu1 %v9125_v11 }
 0x1c8   :  { %1282 = vmatprep.subr.mxu0 %v9126_v12  ;;  %1353 = vmatprep.subr.mxu1 %v9127_v13 }
 0x1c9   :  { %1283 = vmatpush2.msra.mxu0 %v9128_v15  ;;  %1354 = vmatpush2.msra.mxu1 %v9129_v16 }
 0x1ca   :  { %1284 = vmatprep.subr.mxu0 %v9130_v17  ;;  %1355 = vmatprep.subr.mxu1 %v9131_v20 }
 0x1cb   :  { %1285 = vmatpush2.msra.mxu0 %v9132_v21  ;;  %1356 = vmatpush2.msra.mxu1 %v9133_v22 }
 0x1cc   :  { %1392 = vmatprep.subr.mxu0 %v5649_v23  ;;  %1463 = vmatprep.subr.mxu1 %v5652_v33 }
 0x22a   :  { %v923_v25 = vpop.f32.mrf.mxu0  ;;  %v994_v30 = vpop.f32.mrf.mxu1 }
 0x22b   :  { %v924_v38 = vadd.f32 %v923_v25, %v5660_v34  ;;  %v995_v44 = vadd.f32 %v994_v30, %v5675_v41 }
 0x22c   :  { %v925_v27 = vpop.f32.mrf.mxu0  ;;  %v996_v14 = vpop.f32.mrf.mxu1 }
 0x22d   :  { %v3729_v24 = vmul.f32 -1.442695, %v924_v38  ;;  %v926_v8 = vadd.f32 %v925_v27, %v5664_v36  ;;  %v997_v39 = vadd.f32 %v996_v14, %v5670_v9 }
 0x22f   :  { %3803 = vpow2.f32 %v3729_v24  ;;  %v3730_v1 = vmul.f32 -1.442695, %v926_v8  ;;  %v3731_v42 = vmul.f32 -1.442695, %v997_v39 }
 0x231   :  { %3805 = vpow2.f32 %v3730_v1 }
 0x232   :  { %3807 = vpow2.f32 %v3731_v42 }
 0x23c   :  { %v3804_v43 = vpop.eup %3803 }
 0x23d   :  { %v1002_v45 = vadd.f32 1.0, %v3804_v43 }
 0x23e   :  { %v3806_v46 = vpop.eup %3805 }
 0x23f   :  { %3809 = vrcp.f32 %v1002_v45  ;;  %v1008_v47 = vadd.f32 1.0, %v3806_v46  ;;  %v3808_v48 = vpop.eup %3807  ;;  %v5704_v45 = vld [vmem:[#allocation9 + $0x1f0] sm:$0xff]  ;;  %v5710_v46 = vld [vmem:[#allocation9 + $0x1d8] sm:$0xff] }
 0x240   :  { %3811 = vtanh.f32 %v995_v44  ;;  %v1015_v56 = vadd.f32 1.0, %v3808_v48  ;;  %v5701_v44 = vld [vmem:[#allocation9 + $0x1e0] sm:$0xff]  ;;  %v5716_v48 = vld [vmem:[#allocation9 + $0x1d0] sm:$0xff] }
 0x241   :  { %3813 = vrcp.f32 %v1008_v47  ;;  %v5713_v47 = vld [vmem:[#allocation9 + $0x1c0] sm:$0xff] }
 0x242   :  { %3815 = vrcp.f32 %v1015_v56  ;;  %v5740_v56 = vld [vmem:[#allocation9 + $0x190] sm:$0xff] }
 0x24b   :  { %v1092_v49 = vpop.f32.mrf.mxu0  ;;  %v1163_v50 = vpop.f32.mrf.mxu1 }
 0x24c   :  { %v3810_v51 = vpop.eup %3809 }
 0x24d   :  { %v3812_v52 = vpop.eup %3811  ;;  %v1094_v53 = vpop.f32.mrf.mxu0 }
 0x24e   :  { %v1165_v54 = vpop.f32.mrf.mxu1  ;;  %v3814_v55 = vpop.eup %3813  ;;  %v1172_v57 = vcombine.low %v1092_v49, %v1094_v53  ;;  %v1019_v61 = vmul.f32 %v3812_v52, %v3810_v51  ;;  %v5719_v49 = vld [vmem:[#allocation9 + $0x1a8] sm:$0xff]  ;;  %v5725_v51 = vld [vmem:[#allocation9 + $0x1a0] sm:$0xff]  ;;  %v5728_v52 = vld [vmem:[#allocation9 + $0x1b0] sm:$0xff] }
 0x24f   :  { %v1173_v58 = vcombine.low %v1163_v50, %v1165_v54  ;;  %v1018_v59 = vmul.f32 0.0, %v3814_v55  ;;  %v3816_v13 = vpop.eup %3815  ;;  %v5722_v50 = vld [vmem:[#allocation9 + $0x1b8] sm:$0xff]  ;;  %v5731_v53 = vld [vmem:[#allocation9 + $0x188] sm:$0xff]  ;;  %v5737_v55 = vld [vmem:[#allocation9 + $0x180] sm:$0xff] }
 0x250   :  { %v1180_v62 = vrot.slane %v1172_v57, %v4795_v28  ;;  %v5734_v54 = vld [vmem:[#allocation9 + $0x198] sm:$0xff]  ;;  %v5743_v57 = vld [vmem:[#allocation9 + $0x168] sm:$0xff] }
 0x251   :  { %v1187_v63 = vrot.slane %v1173_v58, %v4795_v28  ;;  %v5680_v0 = vadd.f32 %v1019_v61, %v1018_v59  ;;  %v5746_v58 = vld [vmem:[#allocation9 + $0x178] sm:$0xff]  ;;  %v5749_v59 = vld [vmem:[#allocation9 + $0x160] sm:$0xff]  ;;  %v5752_v61 = vld [vmem:[#allocation9 + $0x170] sm:$0xff] }
 0x253   :  { %v1188_v3 = vcombine.low %v1180_v62, %v1187_v63  ;;  %3817 = vtanh.f32 %v5680_v0  ;;  %v5755_v62 = vld [vmem:[#allocation9 + $0x148] sm:$0xff]  ;;  %v5758_v63 = vld [vmem:[#allocation9 + $0x158] sm:$0xff] }
 0x255   :  { %v1190_v5 = vadd.f32 %v1188_v3, %v9143_v4  ;;  %v5761_v3 = vld [vmem:[#allocation9 + $0x140] sm:$0xff]  ;;  %v5764_v4 = vld [vmem:[#allocation9 + $0x150] sm:$0xff] }
 0x257   :  { %v3732_v6 = vmul.f32 -1.442695, %v1190_v5  ;;  %v1198_v11 = vrot.slane %v1190_v5, 2  ;;  %v1209_v15 = vrot.slane %v1190_v5, 6  ;;  %v1206_v22 = vrot.slane %v1190_v5, 4  ;;  %v5767_v5 = vld [vmem:[#allocation9 + $0x128] sm:$0xff] }
 0x259   :  { %3819 = vpow2.f32 %v3732_v6  ;;  %v3733_v12 = vmul.f32 -1.442695, %v1198_v11  ;;  %v3734_v20 = vmul.f32 -1.442695, %v1209_v15  ;;  %v5770_v6 = vld [vmem:[#allocation9 + $0x138] sm:$0xff]  ;;  %v5773_v11 = vld [vmem:[#allocation9 + $0x120] sm:$0xff] }
 0x25a   :  { %v5782_v15 = vld [vmem:[#allocation9 + $0x118] sm:$0xff] }
 0x25b   :  { %3821 = vpow2.f32 %v3733_v12  ;;  %v5776_v12 = vld [vmem:[#allocation9 + $0x130] sm:$0xff] }
 0x25c   :  { %3823 = vpow2.f32 %v3734_v20  ;;  %v5791_v20 = vld [vmem:[#allocation9 + $0xe8] sm:$0xff] }
 0x260   :  { %v3818_v16 = vpop.eup %3817 }
 0x261   :  { %v1022_v17 = vmul.f32 %v3818_v16, %v3816_v13  ;;  %v5779_v13 = vld [vmem:[#allocation9 + $0x108] sm:$0xff]  ;;  %v5785_v16 = vld [vmem:[#allocation9 + $0x100] sm:$0xff] }
 0x263   :  { %1023 = vst [vmem:[#allocation3] sm:$0x3] %v1022_v17  ;;  %1286 = vmatprep.mubr.f32.mxu0 %v1022_v17  ;;  %1357 = vmatprep.mubr.f32.mxu1 %v1022_v17  ;;  %v5788_v17 = vld [vmem:[#allocation9 + $0x110] sm:$0xff] }
 0x266   :  { %v3820_v21 = vpop.eup %3819 }
 0x267   :  { %v1194_v35 = vadd.f32 1.0, %v3820_v21  ;;  %v5794_v21 = vld [vmem:[#allocation9 + $0xf8] sm:$0xff] }
 0x268   :  { %v3822_v26 = vpop.eup %3821 }
 0x269   :  { %3825 = vrcp.f32 %v1194_v35  ;;  %v1203_v19 = vadd.f32 1.0, %v3822_v26  ;;  %v3824_v27 = vpop.eup %3823  ;;  %v5800_v35 = vld [vmem:[#allocation9 + $0xf0] sm:$0xff]  ;;  %v5803_v26 = vld [vmem:[#allocation9 + $0xc8] sm:$0xff] }
 0x26a   :  { %3827 = vtanh.f32 %v1206_v22  ;;  %v3586_v31 = vld [vmem:[#allocation3] sm:$0x3]  ;;  %v1214_v1 = vadd.f32 1.0, %v3824_v27 }
 0x26b   :  { %3829 = vrcp.f32 %v1203_v19  ;;  %v3601_v25 = vmul.f32 %v5689_v10, %v3586_v31  ;;  %v5797_v22 = vld [vmem:[#allocation9 + $0xe0] sm:$0xff]  ;;  %v5806_v19 = vld [vmem:[#allocation9 + $0xd8] sm:$0xff] }
 0x26c   :  { %3831 = vrcp.f32 %v1214_v1  ;;  %v5809_v31 = vld [vmem:[#allocation9 + $0xc0] sm:$0xff]  ;;  %v5818_v27 = vld [vmem:[#allocation9 + $0xb8] sm:$0xff] }
 0x26d   :  { %v3610_v38 = vsel %vm3609_vm2, %v3601_v25, 0.0  ;;  %v5812_v25 = vld [vmem:[#allocation9 + $0xd0] sm:$0xff]  ;;  %9145 = vst [vmem:[#allocation21_spill] sm:$0xff] %v5818_v27  ;;  %v5830_v1 = vld [vmem:[#allocation9 + $0x98] sm:$0xff] }
 0x26e   :  { %3611 = vadd.xlane.f32.xlu0 %v3610_v38  ;;  %v5815_v38 = vld [vmem:[#allocation9 + $0xa8] sm:$0xff]  ;;  %9149 = vst [vmem:[#allocation25_spill] sm:$0xff] %v5830_v1 }
 0x26f   :  { %9144 = vst [vmem:[#allocation20_spill] sm:$0xff] %v5815_v38 }
 0x276   :  { %v3826_v24 = vpop.eup %3825 }
 0x277   :  { %v3828_v8 = vpop.eup %3827 }
 0x278   :  { %v3830_v30 = vpop.eup %3829  ;;  %v1218_v14 = vmul.f32 %v3828_v8, %v3826_v24  ;;  %v5821_v24 = vld [vmem:[#allocation9 + $0xa0] sm:$0xff]  ;;  %v5824_v8 = vld [vmem:[#allocation9 + $0xb0] sm:$0xff] }
 0x279   :  { %v1217_v32 = vmul.f32 %v3830_v30, %v5448_v29  ;;  %v3832_v40 = vpop.eup %3831  ;;  %v5707_v29 = vld [vmem:[#allocation9 + $0x1c8] sm:$0xff]  ;;  %9146 = vst [vmem:[#allocation22_spill] sm:$0xff] %v5821_v24  ;;  %9147 = vst [vmem:[#allocation23_spill] sm:$0xff] %v5824_v8 }
 0x27a   :  { %v5827_v30 = vld [vmem:[#allocation9 + $0x88] sm:$0xff] }
 0x27b   :  { %v5694_v39 = vadd.f32 %v1218_v14, %v1217_v32  ;;  %9148 = vst [vmem:[#allocation24_spill] sm:$0xff] %v5827_v30  ;;  %v5833_v32 = vld [vmem:[#allocation9 + $0x80] sm:$0xff]  ;;  %v5836_v14 = vld [vmem:[#allocation9 + $0x90] sm:$0xff] }
 0x27c   :  { %9150 = vst [vmem:[#allocation26_spill] sm:$0xff] %v5833_v32  ;;  %9151 = vst [vmem:[#allocation27_spill] sm:$0xff] %v5836_v14 }
 0x27d   :  { %3833 = vtanh.f32 %v5694_v39 }
 0x28a   :  { %v3834_v42 = vpop.eup %3833 }
 0x28b   :  { %v5697_v43 = vmul.f32 %v3834_v42, %v3832_v40  ;;  %v5839_v40 = vld [vmem:[#allocation9 + $0x68] sm:$0xff]  ;;  %v5842_v42 = vld [vmem:[#allocation9 + $0x78] sm:$0xff] }
 0x28c   :  { %9152 = vst [vmem:[#allocation28_spill] sm:$0xff] %v5839_v40  ;;  %9153 = vst [vmem:[#allocation29_spill] sm:$0xff] %v5842_v42 }
 0x28d   :  { %1287 = vmatmul.mubr.f32.vlgmr.msra.gmra.mxu0 %v5697_v43  ;;  %1358 = vmatmul.mubr.f32.vlgmr.msra.gmra.mxu1 %v5697_v43 }
 0x28e   :  { %1393 = vmatpush1.msra.mxu0 %v5701_v44  ;;  %1464 = vmatpush1.msra.mxu1 %v5704_v45 }
 0x28f   :  { %1394 = vmatprep.subr.mxu0 %v5707_v29  ;;  %1465 = vmatprep.subr.mxu1 %v5710_v46 }
 0x290   :  { %1395 = vmatpush1.msra.mxu0 %v5713_v47  ;;  %1466 = vmatpush1.msra.mxu1 %v5716_v48 }
 0x291   :  { %1396 = vmatprep.subr.mxu0 %v5719_v49  ;;  %1467 = vmatprep.subr.mxu1 %v5722_v50 }
 0x292   :  { %1397 = vmatpush1.msra.mxu0 %v5725_v51  ;;  %1468 = vmatpush1.msra.mxu1 %v5728_v52 }
 0x293   :  { %1398 = vmatprep.subr.mxu0 %v5731_v53  ;;  %1469 = vmatprep.subr.mxu1 %v5734_v54 }
 0x294   :  { %1399 = vmatpush1.msra.mxu0 %v5737_v55  ;;  %1470 = vmatpush1.msra.mxu1 %v5740_v56 }
 0x295   :  { %1400 = vmatprep.subr.mxu0 %v5743_v57  ;;  %1471 = vmatprep.subr.mxu1 %v5746_v58 }
 0x296   :  { %1401 = vmatpush1.msra.mxu0 %v5749_v59  ;;  %1472 = vmatpush1.msra.mxu1 %v5752_v61 }
 0x297   :  { %1402 = vmatprep.subr.mxu0 %v5755_v62  ;;  %1473 = vmatprep.subr.mxu1 %v5758_v63 }
 0x298   :  { %1403 = vmatpush1.msra.mxu0 %v5761_v3  ;;  %1474 = vmatpush1.msra.mxu1 %v5764_v4 }
 0x299   :  { %1404 = vmatprep.subr.mxu0 %v5767_v5  ;;  %1475 = vmatprep.subr.mxu1 %v5770_v6 }
 0x29a   :  { %1405 = vmatpush1.msra.mxu0 %v5773_v11  ;;  %1476 = vmatpush1.msra.mxu1 %v5776_v12 }
 0x29b   :  { %1406 = vmatprep.subr.mxu0 %v5779_v13  ;;  %1477 = vmatprep.subr.mxu1 %v5782_v15 }
 0x29c   :  { %1407 = vmatpush1.msra.mxu0 %v5785_v16  ;;  %1478 = vmatpush1.msra.mxu1 %v5788_v17 }
 0x29d   :  { %1408 = vmatprep.subr.mxu0 %v5791_v20  ;;  %1479 = vmatprep.subr.mxu1 %v5794_v21 }
 0x29e   :  { %1409 = vmatpush1.msra.mxu0 %v5797_v22  ;;  %1480 = vmatpush1.msra.mxu1 %v5800_v35 }
 0x29f   :  { %1410 = vmatprep.subr.mxu0 %v5803_v26  ;;  %1481 = vmatprep.subr.mxu1 %v5806_v19 }
 0x2a0   :  { %1411 = vmatpush1.msra.mxu0 %v5809_v31  ;;  %1482 = vmatpush1.msra.mxu1 %v5812_v25 }
 0x2a1   :  { %1412 = vmatprep.subr.mxu0 %v5815_v38  ;;  %1483 = vmatprep.subr.mxu1 %v5818_v27 }
 0x2a2   :  { %1413 = vmatpush1.msra.mxu0 %v5821_v24  ;;  %1484 = vmatpush1.msra.mxu1 %v5824_v8 }
 0x2a3   :  { %1414 = vmatprep.subr.mxu0 %v5827_v30  ;;  %1485 = vmatprep.subr.mxu1 %v5830_v1 }
 0x2a4   :  { %1415 = vmatpush1.msra.mxu0 %v5833_v32  ;;  %1486 = vmatpush1.msra.mxu1 %v5836_v14  ;;  %v5851_v32 = vld [vmem:[#allocation9 + $0x48] sm:$0xff]  ;;  %v5854_v14 = vld [vmem:[#allocation9 + $0x58] sm:$0xff] }
 0x2a5   :  { %1416 = vmatprep.subr.mxu0 %v5839_v40  ;;  %1487 = vmatprep.subr.mxu1 %v5842_v42  ;;  %9156 = vst [vmem:[#allocation32_spill] sm:$0xff] %v5851_v32  ;;  %9157 = vst [vmem:[#allocation33_spill] sm:$0xff] %v5854_v14  ;;  %v5857_v40 = vld [vmem:[#allocation9 + $0x40] sm:$0xff]  ;;  %v5860_v42 = vld [vmem:[#allocation9 + $0x50] sm:$0xff] }
 0x2a6   :  { %1417 = vmatpush1.msra.mxu0 %v5845_v2  ;;  %1488 = vmatpush1.msra.mxu1 %v5848_v37  ;;  %9158 = vst [vmem:[#allocation34_spill] sm:$0xff] %v5857_v40  ;;  %9159 = vst [vmem:[#allocation35_spill] sm:$0xff] %v5860_v42  ;;  %v5863_v2 = vld [vmem:[#allocation9 + $0x28] sm:$0xff]  ;;  %v5866_v37 = vld [vmem:[#allocation9 + $0x38] sm:$0xff] }
 0x2a7   :  { %1418 = vmatprep.subr.mxu0 %v5851_v32  ;;  %1489 = vmatprep.subr.mxu1 %v5854_v14  ;;  %9160 = vst [vmem:[#allocation36_spill] sm:$0xff] %v5863_v2  ;;  %9161 = vst [vmem:[#allocation37_spill] sm:$0xff] %v5866_v37  ;;  %v5869_v32 = vld [vmem:[#allocation9 + $0x20] sm:$0xff]  ;;  %v5872_v14 = vld [vmem:[#allocation9 + $0x30] sm:$0xff] }
 0x2a8   :  { %1419 = vmatpush1.msra.mxu0 %v5857_v40  ;;  %1490 = vmatpush1.msra.mxu1 %v5860_v42  ;;  %9162 = vst [vmem:[#allocation38_spill] sm:$0xff] %v5869_v32  ;;  %9163 = vst [vmem:[#allocation39_spill] sm:$0xff] %v5872_v14  ;;  %v5875_v40 = vld [vmem:[#allocation9 + $0x8] sm:$0xff]  ;;  %v5878_v42 = vld [vmem:[#allocation9 + $0x18] sm:$0xff] }
 0x2a9   :  { %1420 = vmatprep.subr.mxu0 %v5863_v2  ;;  %1491 = vmatprep.subr.mxu1 %v5866_v37  ;;  %9164 = vst [vmem:[#allocation40_spill] sm:$0xff] %v5875_v40  ;;  %9165 = vst [vmem:[#allocation41_spill] sm:$0xff] %v5878_v42  ;;  %v5881_v2 = vld [vmem:[#allocation9] sm:$0xff]  ;;  %v5885_v37 = vld [vmem:[#allocation9 + $0x10] sm:$0xff] }
 0x2aa   :  { %1421 = vmatpush1.msra.mxu0 %v5869_v32  ;;  %1492 = vmatpush1.msra.mxu1 %v5872_v14  ;;  %9166 = vst [vmem:[#allocation42_spill] sm:$0xff] %v5881_v2  ;;  %9167 = vst [vmem:[#allocation43_spill] sm:$0xff] %v5885_v37  ;;  %v5900_v14 = vld [vmem:[#allocation10 + $0x1f0] sm:$0xff] }
 0x2ab   :  { %1422 = vmatprep.subr.mxu0 %v5875_v40  ;;  %1493 = vmatprep.subr.mxu1 %v5878_v42  ;;  %v5891_v40 = vld [vmem:[#allocation10 + $0x1e8] sm:$0xff]  ;;  %v5894_v42 = vld [vmem:[#allocation10 + $0x1f8] sm:$0xff]  ;;  %9171 = vst [vmem:[#allocation47_spill] sm:$0xff] %v5900_v14 }
 0x2ac   :  { %1423 = vmatpush1.msra.mxu0 %v5881_v2  ;;  %1456 = vmatprep.mubr.f32.mxu0 %v9004_v60  ;;  %9168 = vst [vmem:[#allocation44_spill] sm:$0xff] %v5891_v40  ;;  %9169 = vst [vmem:[#allocation45_spill] sm:$0xff] %v5894_v42  ;;  %v5897_v2 = vld [vmem:[#allocation10 + $0x1e0] sm:$0xff] }
 0x2ad   :  { %1494 = vmatpush1.msra.mxu1 %v5885_v37  ;;  %1527 = vmatprep.mubr.f32.mxu1 %v9004_v60  ;;  %9170 = vst [vmem:[#allocation46_spill] sm:$0xff] %v5897_v2  ;;  %v5903_v37 = vld [vmem:[#allocation10 + $0x1c8] sm:$0xff] }
 0x2ae   :  { %1457 = vmatmul.mubr.f32.vlgmr.msra.gmra.mxu0 %v5697_v43  ;;  %1528 = vmatmul.mubr.f32.vlgmr.msra.gmra.mxu1 %v5697_v43  ;;  %9172 = vst [vmem:[#allocation48_spill] sm:$0xff] %v5903_v37  ;;  %v5906_v43 = vld [vmem:[#allocation10 + $0x1d8] sm:$0xff] }
 0x2af   :  { %1588 = vmatprep.subr.mxu0 %v5891_v40  ;;  %1659 = vmatprep.subr.mxu1 %v5894_v42  ;;  %9173 = vst [vmem:[#allocation49_spill] sm:$0xff] %v5906_v43  ;;  %v5909_v40 = vld [vmem:[#allocation10 + $0x1c0] sm:$0xff]  ;;  %v5912_v42 = vld [vmem:[#allocation10 + $0x1d0] sm:$0xff] }
 0x2b0   :  { %1589 = vmatpush1.msra.mxu0 %v5897_v2  ;;  %1660 = vmatpush1.msra.mxu1 %v5900_v14  ;;  %9174 = vst [vmem:[#allocation50_spill] sm:$0xff] %v5909_v40  ;;  %9175 = vst [vmem:[#allocation51_spill] sm:$0xff] %v5912_v42  ;;  %v5915_v2 = vld [vmem:[#allocation10 + $0x1a8] sm:$0xff]  ;;  %v5918_v14 = vld [vmem:[#allocation10 + $0x1b8] sm:$0xff] }
 0x2b1   :  { %1590 = vmatprep.subr.mxu0 %v5903_v37  ;;  %1661 = vmatprep.subr.mxu1 %v5906_v43  ;;  %9176 = vst [vmem:[#allocation52_spill] sm:$0xff] %v5915_v2  ;;  %9177 = vst [vmem:[#allocation53_spill] sm:$0xff] %v5918_v14  ;;  %v5921_v37 = vld [vmem:[#allocation10 + $0x1a0] sm:$0xff]  ;;  %v5924_v43 = vld [vmem:[#allocation10 + $0x1b0] sm:$0xff] }
 0x2b2   :  { %1591 = vmatpush1.msra.mxu0 %v5909_v40  ;;  %1662 = vmatpush1.msra.mxu1 %v5912_v42  ;;  %9178 = vst [vmem:[#allocation54_spill] sm:$0xff] %v5921_v37  ;;  %9179 = vst [vmem:[#allocation55_spill] sm:$0xff] %v5924_v43  ;;  %v5927_v40 = vld [vmem:[#allocation10 + $0x188] sm:$0xff]  ;;  %v5930_v42 = vld [vmem:[#allocation10 + $0x198] sm:$0xff] }
 0x2b3   :  { %1592 = vmatprep.subr.mxu0 %v5915_v2  ;;  %1663 = vmatprep.subr.mxu1 %v5918_v14  ;;  %9180 = vst [vmem:[#allocation56_spill] sm:$0xff] %v5927_v40  ;;  %9181 = vst [vmem:[#allocation57_spill] sm:$0xff] %v5930_v42  ;;  %v5933_v2 = vld [vmem:[#allocation10 + $0x180] sm:$0xff]  ;;  %v5936_v14 = vld [vmem:[#allocation10 + $0x190] sm:$0xff] }
 0x2b4   :  { %1593 = vmatpush1.msra.mxu0 %v5921_v37  ;;  %1664 = vmatpush1.msra.mxu1 %v5924_v43  ;;  %9182 = vst [vmem:[#allocation58_spill] sm:$0xff] %v5933_v2  ;;  %9183 = vst [vmem:[#allocation59_spill] sm:$0xff] %v5936_v14  ;;  %v5939_v37 = vld [vmem:[#allocation10 + $0x168] sm:$0xff]  ;;  %v5942_v43 = vld [vmem:[#allocation10 + $0x178] sm:$0xff] }
 0x2b5   :  { %1594 = vmatprep.subr.mxu0 %v5927_v40  ;;  %1665 = vmatprep.subr.mxu1 %v5930_v42  ;;  %9184 = vst [vmem:[#allocation60_spill] sm:$0xff] %v5939_v37  ;;  %9185 = vst [vmem:[#allocation61_spill] sm:$0xff] %v5942_v43  ;;  %v5945_v40 = vld [vmem:[#allocation10 + $0x160] sm:$0xff]  ;;  %v5948_v42 = vld [vmem:[#allocation10 + $0x170] sm:$0xff] }
 0x2b6   :  { %1595 = vmatpush1.msra.mxu0 %v5933_v2  ;;  %1666 = vmatpush1.msra.mxu1 %v5936_v14  ;;  %9186 = vst [vmem:[#allocation62_spill] sm:$0xff] %v5945_v40  ;;  %9187 = vst [vmem:[#allocation63_spill] sm:$0xff] %v5948_v42  ;;  %v5951_v2 = vld [vmem:[#allocation10 + $0x148] sm:$0xff]  ;;  %v5954_v14 = vld [vmem:[#allocation10 + $0x158] sm:$0xff] }
 0x2b7   :  { %1596 = vmatprep.subr.mxu0 %v5939_v37  ;;  %1667 = vmatprep.subr.mxu1 %v5942_v43  ;;  %9188 = vst [vmem:[#allocation64_spill] sm:$0xff] %v5951_v2  ;;  %9189 = vst [vmem:[#allocation65_spill] sm:$0xff] %v5954_v14  ;;  %v5957_v37 = vld [vmem:[#allocation10 + $0x140] sm:$0xff]  ;;  %v5960_v43 = vld [vmem:[#allocation10 + $0x150] sm:$0xff] }
 0x2b8   :  { %1597 = vmatpush1.msra.mxu0 %v5945_v40  ;;  %1668 = vmatpush1.msra.mxu1 %v5948_v42  ;;  %9190 = vst [vmem:[#allocation66_spill] sm:$0xff] %v5957_v37  ;;  %9191 = vst [vmem:[#allocation67_spill] sm:$0xff] %v5960_v43  ;;  %v5963_v40 = vld [vmem:[#allocation10 + $0x128] sm:$0xff]  ;;  %v5966_v42 = vld [vmem:[#allocation10 + $0x138] sm:$0xff] }
 0x2b9   :  { %1598 = vmatprep.subr.mxu0 %v5951_v2  ;;  %1669 = vmatprep.subr.mxu1 %v5954_v14  ;;  %9192 = vst [vmem:[#allocation68_spill] sm:$0xff] %v5963_v40  ;;  %9193 = vst [vmem:[#allocation69_spill] sm:$0xff] %v5966_v42  ;;  %v5969_v2 = vld [vmem:[#allocation10 + $0x120] sm:$0xff]  ;;  %v5972_v14 = vld [vmem:[#allocation10 + $0x130] sm:$0xff] }
 0x2ba   :  { %1599 = vmatpush1.msra.mxu0 %v5957_v37  ;;  %1670 = vmatpush1.msra.mxu1 %v5960_v43  ;;  %9194 = vst [vmem:[#allocation70_spill] sm:$0xff] %v5969_v2  ;;  %9195 = vst [vmem:[#allocation71_spill] sm:$0xff] %v5972_v14  ;;  %v5975_v37 = vld [vmem:[#allocation10 + $0x108] sm:$0xff]  ;;  %v5978_v43 = vld [vmem:[#allocation10 + $0x118] sm:$0xff] }
 0x2bb   :  { %1600 = vmatprep.subr.mxu0 %v5963_v40  ;;  %1671 = vmatprep.subr.mxu1 %v5966_v42  ;;  %9196 = vst [vmem:[#allocation72_spill] sm:$0xff] %v5975_v37  ;;  %9197 = vst [vmem:[#allocation73_spill] sm:$0xff] %v5978_v43  ;;  %v5981_v40 = vld [vmem:[#allocation10 + $0x100] sm:$0xff]  ;;  %v5984_v42 = vld [vmem:[#allocation10 + $0x110] sm:$0xff] }
 0x2bc   :  { %1601 = vmatpush1.msra.mxu0 %v5969_v2  ;;  %1672 = vmatpush1.msra.mxu1 %v5972_v14  ;;  %9198 = vst [vmem:[#allocation74_spill] sm:$0xff] %v5981_v40  ;;  %9199 = vst [vmem:[#allocation75_spill] sm:$0xff] %v5984_v42  ;;  %v5987_v2 = vld [vmem:[#allocation10 + $0xe8] sm:$0xff]  ;;  %v5990_v14 = vld [vmem:[#allocation10 + $0xf8] sm:$0xff] }
 0x2bd   :  { %1602 = vmatprep.subr.mxu0 %v5975_v37  ;;  %1673 = vmatprep.subr.mxu1 %v5978_v43  ;;  %9200 = vst [vmem:[#allocation76_spill] sm:$0xff] %v5987_v2  ;;  %9201 = vst [vmem:[#allocation77_spill] sm:$0xff] %v5990_v14  ;;  %v5993_v37 = vld [vmem:[#allocation10 + $0xe0] sm:$0xff]  ;;  %v5996_v43 = vld [vmem:[#allocation10 + $0xf0] sm:$0xff] }
 0x2be   :  { %1603 = vmatpush1.msra.mxu0 %v5981_v40  ;;  %1674 = vmatpush1.msra.mxu1 %v5984_v42  ;;  %9202 = vst [vmem:[#allocation78_spill] sm:$0xff] %v5993_v37  ;;  %9203 = vst [vmem:[#allocation79_spill] sm:$0xff] %v5996_v43  ;;  %v5999_v40 = vld [vmem:[#allocation10 + $0xc8] sm:$0xff]  ;;  %v6002_v42 = vld [vmem:[#allocation10 + $0xd8] sm:$0xff] }
 0x2bf   :  { %1604 = vmatprep.subr.mxu0 %v5987_v2  ;;  %1675 = vmatprep.subr.mxu1 %v5990_v14  ;;  %9204 = vst [vmem:[#allocation80_spill] sm:$0xff] %v5999_v40  ;;  %9205 = vst [vmem:[#allocation81_spill] sm:$0xff] %v6002_v42  ;;  %v6005_v2 = vld [vmem:[#allocation10 + $0xc0] sm:$0xff]  ;;  %v6008_v14 = vld [vmem:[#allocation10 + $0xd0] sm:$0xff] }
 0x2c0   :  { %1605 = vmatpush1.msra.mxu0 %v5993_v37  ;;  %1676 = vmatpush1.msra.mxu1 %v5996_v43  ;;  %9206 = vst [vmem:[#allocation82_spill] sm:$0xff] %v6005_v2  ;;  %9207 = vst [vmem:[#allocation83_spill] sm:$0xff] %v6008_v14  ;;  %v6011_v37 = vld [vmem:[#allocation10 + $0xa8] sm:$0xff]  ;;  %v6014_v43 = vld [vmem:[#allocation10 + $0xb8] sm:$0xff] }
 0x2c1   :  { %1606 = vmatprep.subr.mxu0 %v5999_v40  ;;  %1677 = vmatprep.subr.mxu1 %v6002_v42  ;;  %9208 = vst [vmem:[#allocation84_spill] sm:$0xff] %v6011_v37  ;;  %9209 = vst [vmem:[#allocation85_spill] sm:$0xff] %v6014_v43  ;;  %v6017_v40 = vld [vmem:[#allocation10 + $0xa0] sm:$0xff]  ;;  %v6020_v42 = vld [vmem:[#allocation10 + $0xb0] sm:$0xff] }
 0x2c2   :  { %1607 = vmatpush1.msra.mxu0 %v6005_v2  ;;  %1678 = vmatpush1.msra.mxu1 %v6008_v14  ;;  %9210 = vst [vmem:[#allocation86_spill] sm:$0xff] %v6017_v40  ;;  %9211 = vst [vmem:[#allocation87_spill] sm:$0xff] %v6020_v42  ;;  %v6023_v2 = vld [vmem:[#allocation10 + $0x88] sm:$0xff]  ;;  %v6026_v14 = vld [vmem:[#allocation10 + $0x98] sm:$0xff] }
 0x2c3   :  { %1608 = vmatprep.subr.mxu0 %v6011_v37  ;;  %1679 = vmatprep.subr.mxu1 %v6014_v43  ;;  %9212 = vst [vmem:[#allocation88_spill] sm:$0xff] %v6023_v2  ;;  %9213 = vst [vmem:[#allocation89_spill] sm:$0xff] %v6026_v14  ;;  %v6029_v37 = vld [vmem:[#allocation10 + $0x80] sm:$0xff]  ;;  %v6032_v43 = vld [vmem:[#allocation10 + $0x90] sm:$0xff] }
 0x2c4   :  { %1609 = vmatpush1.msra.mxu0 %v6017_v40  ;;  %1680 = vmatpush1.msra.mxu1 %v6020_v42  ;;  %9214 = vst [vmem:[#allocation90_spill] sm:$0xff] %v6029_v37  ;;  %9215 = vst [vmem:[#allocation91_spill] sm:$0xff] %v6032_v43  ;;  %v6035_v40 = vld [vmem:[#allocation10 + $0x68] sm:$0xff]  ;;  %v6038_v42 = vld [vmem:[#allocation10 + $0x78] sm:$0xff] }
 0x2c5   :  { %1610 = vmatprep.subr.mxu0 %v6023_v2  ;;  %1681 = vmatprep.subr.mxu1 %v6026_v14  ;;  %9216 = vst [vmem:[#allocation92_spill] sm:$0xff] %v6035_v40  ;;  %9217 = vst [vmem:[#allocation93_spill] sm:$0xff] %v6038_v42  ;;  %v6041_v2 = vld [vmem:[#allocation10 + $0x60] sm:$0xff]  ;;  %v6044_v14 = vld [vmem:[#allocation10 + $0x70] sm:$0xff] }
 0x2c6   :  { %1611 = vmatpush1.msra.mxu0 %v6029_v37  ;;  %1682 = vmatpush1.msra.mxu1 %v6032_v43  ;;  %9218 = vst [vmem:[#allocation94_spill] sm:$0xff] %v6041_v2  ;;  %9219 = vst [vmem:[#allocation95_spill] sm:$0xff] %v6044_v14  ;;  %v6047_v37 = vld [vmem:[#allocation10 + $0x48] sm:$0xff]  ;;  %v6050_v43 = vld [vmem:[#allocation10 + $0x58] sm:$0xff] }
 0x2c7   :  { %1612 = vmatprep.subr.mxu0 %v6035_v40  ;;  %1683 = vmatprep.subr.mxu1 %v6038_v42  ;;  %9220 = vst [vmem:[#allocation96_spill] sm:$0xff] %v6047_v37  ;;  %9221 = vst [vmem:[#allocation97_spill] sm:$0xff] %v6050_v43  ;;  %v6053_v40 = vld [vmem:[#allocation10 + $0x40] sm:$0xff]  ;;  %v6056_v42 = vld [vmem:[#allocation10 + $0x50] sm:$0xff] }
 0x2c8   :  { %1613 = vmatpush1.msra.mxu0 %v6041_v2  ;;  %1684 = vmatpush1.msra.mxu1 %v6044_v14  ;;  %9222 = vst [vmem:[#allocation98_spill] sm:$0xff] %v6053_v40  ;;  %9223 = vst [vmem:[#allocation99_spill] sm:$0xff] %v6056_v42  ;;  %v6059_v2 = vld [vmem:[#allocation10 + $0x28] sm:$0xff]  ;;  %v6062_v14 = vld [vmem:[#allocation10 + $0x38] sm:$0xff] }
 0x2c9   :  { %1614 = vmatprep.subr.mxu0 %v6047_v37  ;;  %1685 = vmatprep.subr.mxu1 %v6050_v43  ;;  %9224 = vst [vmem:[#allocation100_spill] sm:$0xff] %v6059_v2  ;;  %9225 = vst [vmem:[#allocation101_spill] sm:$0xff] %v6062_v14  ;;  %v6065_v37 = vld [vmem:[#allocation10 + $0x20] sm:$0xff]  ;;  %v6068_v43 = vld [vmem:[#allocation10 + $0x30] sm:$0xff] }
 0x2ca   :  { %1615 = vmatpush1.msra.mxu0 %v6053_v40  ;;  %1686 = vmatpush1.msra.mxu1 %v6056_v42  ;;  %9226 = vst [vmem:[#allocation102_spill] sm:$0xff] %v6065_v37  ;;  %9227 = vst [vmem:[#allocation103_spill] sm:$0xff] %v6068_v43  ;;  %v6071_v40 = vld [vmem:[#allocation10 + $0x8] sm:$0xff]  ;;  %v6074_v42 = vld [vmem:[#allocation10 + $0x18] sm:$0xff] }
 0x2cb   :  { %1616 = vmatprep.subr.mxu0 %v6059_v2  ;;  %1687 = vmatprep.subr.mxu1 %v6062_v14  ;;  %9228 = vst [vmem:[#allocation104_spill] sm:$0xff] %v6071_v40  ;;  %9229 = vst [vmem:[#allocation105_spill] sm:$0xff] %v6074_v42  ;;  %v6077_v2 = vld [vmem:[#allocation10] sm:$0xff]  ;;  %v6080_v14 = vld [vmem:[#allocation10 + $0x10] sm:$0xff] }
 0x2cc   :  { %1617 = vmatpush1.msra.mxu0 %v6065_v37  ;;  %1688 = vmatpush1.msra.mxu1 %v6068_v43  ;;  %9230 = vst [vmem:[#allocation106_spill] sm:$0xff] %v6077_v2  ;;  %9231 = vst [vmem:[#allocation107_spill] sm:$0xff] %v6080_v14  ;;  %v6083_v37 = vld [vmem:[#allocation10 + $0x3e8] sm:$0xff]  ;;  %v6086_v43 = vld [vmem:[#allocation10 + $0x3f8] sm:$0xff] }
 0x2cd   :  { %1618 = vmatprep.subr.mxu0 %v6071_v40  ;;  %1689 = vmatprep.subr.mxu1 %v6074_v42  ;;  %9232 = vst [vmem:[#allocation108_spill] sm:$0xff] %v6083_v37  ;;  %9233 = vst [vmem:[#allocation109_spill] sm:$0xff] %v6086_v43  ;;  %v6089_v40 = vld [vmem:[#allocation10 + $0x3e0] sm:$0xff]  ;;  %v6092_v42 = vld [vmem:[#allocation10 + $0x3f0] sm:$0xff] }
 0x2ce   :  { %1619 = vmatpush1.msra.mxu0 %v6077_v2  ;;  %1690 = vmatpush1.msra.mxu1 %v6080_v14  ;;  %9234 = vst [vmem:[#allocation110_spill] sm:$0xff] %v6089_v40  ;;  %9235 = vst [vmem:[#allocation111_spill] sm:$0xff] %v6092_v42  ;;  %v6095_v2 = vld [vmem:[#allocation10 + $0x3c8] sm:$0xff]  ;;  %v6098_v14 = vld [vmem:[#allocation10 + $0x3d8] sm:$0xff] }
 0x2cf   :  { %1620 = vmatprep.subr.mxu0 %v6083_v37  ;;  %1691 = vmatprep.subr.mxu1 %v6086_v43  ;;  %9236 = vst [vmem:[#allocation112_spill] sm:$0xff] %v6095_v2  ;;  %9237 = vst [vmem:[#allocation113_spill] sm:$0xff] %v6098_v14  ;;  %v6101_v37 = vld [vmem:[#allocation10 + $0x3c0] sm:$0xff]  ;;  %v6104_v43 = vld [vmem:[#allocation10 + $0x3d0] sm:$0xff] }
 0x2d0   :  { %1621 = vmatpush2.msra.mxu0 %v6089_v40  ;;  %1692 = vmatpush2.msra.mxu1 %v6092_v42  ;;  %9238 = vst [vmem:[#allocation114_spill] sm:$0xff] %v6101_v37  ;;  %9239 = vst [vmem:[#allocation115_spill] sm:$0xff] %v6104_v43  ;;  %v6107_v40 = vld [vmem:[#allocation10 + $0x3a8] sm:$0xff]  ;;  %v6110_v42 = vld [vmem:[#allocation10 + $0x3b8] sm:$0xff] }
 0x2d1   :  { %1622 = vmatprep.subr.mxu0 %v6095_v2  ;;  %1693 = vmatprep.subr.mxu1 %v6098_v14  ;;  %9240 = vst [vmem:[#allocation116_spill] sm:$0xff] %v6107_v40  ;;  %9241 = vst [vmem:[#allocation117_spill] sm:$0xff] %v6110_v42  ;;  %v6113_v2 = vld [vmem:[#allocation10 + $0x3a0] sm:$0xff]  ;;  %v6116_v14 = vld [vmem:[#allocation10 + $0x3b0] sm:$0xff] }
 0x2d2   :  { %1623 = vmatpush2.msra.mxu0 %v6101_v37  ;;  %1694 = vmatpush2.msra.mxu1 %v6104_v43  ;;  %9242 = vst [vmem:[#allocation118_spill] sm:$0xff] %v6113_v2  ;;  %9243 = vst [vmem:[#allocation119_spill] sm:$0xff] %v6116_v14  ;;  %v6119_v37 = vld [vmem:[#allocation10 + $0x388] sm:$0xff]  ;;  %v6122_v43 = vld [vmem:[#allocation10 + $0x398] sm:$0xff] }
 0x2d3   :  { %1624 = vmatprep.subr.mxu0 %v6107_v40  ;;  %1695 = vmatprep.subr.mxu1 %v6110_v42  ;;  %9244 = vst [vmem:[#allocation120_spill] sm:$0xff] %v6119_v37  ;;  %9245 = vst [vmem:[#allocation121_spill] sm:$0xff] %v6122_v43  ;;  %v6125_v40 = vld [vmem:[#allocation10 + $0x380] sm:$0xff]  ;;  %v6128_v42 = vld [vmem:[#allocation10 + $0x390] sm:$0xff] }
 0x2d4   :  { %1625 = vmatpush2.msra.mxu0 %v6113_v2  ;;  %1696 = vmatpush2.msra.mxu1 %v6116_v14  ;;  %9246 = vst [vmem:[#allocation122_spill] sm:$0xff] %v6125_v40  ;;  %9247 = vst [vmem:[#allocation123_spill] sm:$0xff] %v6128_v42  ;;  %v6131_v2 = vld [vmem:[#allocation10 + $0x368] sm:$0xff]  ;;  %v6134_v14 = vld [vmem:[#allocation10 + $0x378] sm:$0xff] }
 0x2d5   :  { %1626 = vmatprep.subr.mxu0 %v6119_v37  ;;  %1697 = vmatprep.subr.mxu1 %v6122_v43  ;;  %9248 = vst [vmem:[#allocation124_spill] sm:$0xff] %v6131_v2  ;;  %9249 = vst [vmem:[#allocation125_spill] sm:$0xff] %v6134_v14  ;;  %v6137_v37 = vld [vmem:[#allocation10 + $0x360] sm:$0xff]  ;;  %v6140_v43 = vld [vmem:[#allocation10 + $0x370] sm:$0xff] }
 0x2d6   :  { %1627 = vmatpush2.msra.mxu0 %v6125_v40  ;;  %1698 = vmatpush2.msra.mxu1 %v6128_v42  ;;  %9250 = vst [vmem:[#allocation126_spill] sm:$0xff] %v6137_v37  ;;  %9251 = vst [vmem:[#allocation127_spill] sm:$0xff] %v6140_v43  ;;  %v6143_v40 = vld [vmem:[#allocation10 + $0x348] sm:$0xff]  ;;  %v6146_v42 = vld [vmem:[#allocation10 + $0x358] sm:$0xff] }
 0x2d7   :  { %1628 = vmatprep.subr.mxu0 %v6131_v2  ;;  %1699 = vmatprep.subr.mxu1 %v6134_v14  ;;  %9252 = vst [vmem:[#allocation128_spill] sm:$0xff] %v6143_v40  ;;  %9253 = vst [vmem:[#allocation129_spill] sm:$0xff] %v6146_v42  ;;  %v6149_v2 = vld [vmem:[#allocation10 + $0x340] sm:$0xff]  ;;  %v6152_v14 = vld [vmem:[#allocation10 + $0x350] sm:$0xff] }
 0x2d8   :  { %1629 = vmatpush2.msra.mxu0 %v6137_v37  ;;  %1700 = vmatpush2.msra.mxu1 %v6140_v43  ;;  %9254 = vst [vmem:[#allocation130_spill] sm:$0xff] %v6149_v2  ;;  %9255 = vst [vmem:[#allocation131_spill] sm:$0xff] %v6152_v14  ;;  %v6155_v37 = vld [vmem:[#allocation10 + $0x328] sm:$0xff]  ;;  %v6158_v43 = vld [vmem:[#allocation10 + $0x338] sm:$0xff] }
 0x2d9   :  { %1630 = vmatprep.subr.mxu0 %v6143_v40  ;;  %1701 = vmatprep.subr.mxu1 %v6146_v42  ;;  %9256 = vst [vmem:[#allocation132_spill] sm:$0xff] %v6155_v37  ;;  %9257 = vst [vmem:[#allocation133_spill] sm:$0xff] %v6158_v43  ;;  %v6161_v40 = vld [vmem:[#allocation10 + $0x320] sm:$0xff]  ;;  %v6164_v42 = vld [vmem:[#allocation10 + $0x330] sm:$0xff] }
 0x2da   :  { %1631 = vmatpush2.msra.mxu0 %v6149_v2  ;;  %1702 = vmatpush2.msra.mxu1 %v6152_v14  ;;  %9258 = vst [vmem:[#allocation134_spill] sm:$0xff] %v6161_v40  ;;  %9259 = vst [vmem:[#allocation135_spill] sm:$0xff] %v6164_v42  ;;  %v6167_v2 = vld [vmem:[#allocation10 + $0x308] sm:$0xff]  ;;  %v6170_v14 = vld [vmem:[#allocation10 + $0x318] sm:$0xff] }
 0x2db   :  { %1632 = vmatprep.subr.mxu0 %v6155_v37  ;;  %1703 = vmatprep.subr.mxu1 %v6158_v43  ;;  %9260 = vst [vmem:[#allocation136_spill] sm:$0xff] %v6167_v2  ;;  %9261 = vst [vmem:[#allocation137_spill] sm:$0xff] %v6170_v14  ;;  %v6173_v37 = vld [vmem:[#allocation10 + $0x300] sm:$0xff]  ;;  %v6176_v43 = vld [vmem:[#allocation10 + $0x310] sm:$0xff] }
 0x2dc   :  { %1633 = vmatpush2.msra.mxu0 %v6161_v40  ;;  %1704 = vmatpush2.msra.mxu1 %v6164_v42  ;;  %9262 = vst [vmem:[#allocation138_spill] sm:$0xff] %v6173_v37  ;;  %9263 = vst [vmem:[#allocation139_spill] sm:$0xff] %v6176_v43  ;;  %v6179_v40 = vld [vmem:[#allocation10 + $0x2e8] sm:$0xff]  ;;  %v6182_v42 = vld [vmem:[#allocation10 + $0x2f8] sm:$0xff] }
 0x2dd   :  { %1634 = vmatprep.subr.mxu0 %v6167_v2  ;;  %1705 = vmatprep.subr.mxu1 %v6170_v14  ;;  %9264 = vst [vmem:[#allocation140_spill] sm:$0xff] %v6179_v40  ;;  %9265 = vst [vmem:[#allocation141_spill] sm:$0xff] %v6182_v42  ;;  %v6185_v2 = vld [vmem:[#allocation10 + $0x2e0] sm:$0xff]  ;;  %v6188_v14 = vld [vmem:[#allocation10 + $0x2f0] sm:$0xff] }
 0x2de   :  { %1635 = vmatpush2.msra.mxu0 %v6173_v37  ;;  %1706 = vmatpush2.msra.mxu1 %v6176_v43  ;;  %9266 = vst [vmem:[#allocation142_spill] sm:$0xff] %v6185_v2  ;;  %9267 = vst [vmem:[#allocation143_spill] sm:$0xff] %v6188_v14  ;;  %v6191_v37 = vld [vmem:[#allocation10 + $0x2c8] sm:$0xff]  ;;  %v6194_v43 = vld [vmem:[#allocation10 + $0x2d8] sm:$0xff] }
 0x2df   :  { %1636 = vmatprep.subr.mxu0 %v6179_v40  ;;  %1707 = vmatprep.subr.mxu1 %v6182_v42  ;;  %9268 = vst [vmem:[#allocation144_spill] sm:$0xff] %v6191_v37  ;;  %9269 = vst [vmem:[#allocation145_spill] sm:$0xff] %v6194_v43  ;;  %v6197_v40 = vld [vmem:[#allocation10 + $0x2c0] sm:$0xff]  ;;  %v6200_v42 = vld [vmem:[#allocation10 + $0x2d0] sm:$0xff] }
 0x2e0   :  { %1637 = vmatpush2.msra.mxu0 %v6185_v2  ;;  %1708 = vmatpush2.msra.mxu1 %v6188_v14  ;;  %9270 = vst [vmem:[#allocation146_spill] sm:$0xff] %v6197_v40  ;;  %9271 = vst [vmem:[#allocation147_spill] sm:$0xff] %v6200_v42  ;;  %v6203_v2 = vld [vmem:[#allocation10 + $0x2a8] sm:$0xff]  ;;  %v6206_v14 = vld [vmem:[#allocation10 + $0x2b8] sm:$0xff] }
 0x2e1   :  { %1638 = vmatprep.subr.mxu0 %v6191_v37  ;;  %1709 = vmatprep.subr.mxu1 %v6194_v43  ;;  %9272 = vst [vmem:[#allocation148_spill] sm:$0xff] %v6203_v2  ;;  %9273 = vst [vmem:[#allocation149_spill] sm:$0xff] %v6206_v14  ;;  %v6209_v37 = vld [vmem:[#allocation10 + $0x2a0] sm:$0xff]  ;;  %v6212_v43 = vld [vmem:[#allocation10 + $0x2b0] sm:$0xff] }
 0x2e2   :  { %1639 = vmatpush2.msra.mxu0 %v6197_v40  ;;  %1710 = vmatpush2.msra.mxu1 %v6200_v42  ;;  %9274 = vst [vmem:[#allocation150_spill] sm:$0xff] %v6209_v37  ;;  %9275 = vst [vmem:[#allocation151_spill] sm:$0xff] %v6212_v43  ;;  %v6215_v40 = vld [vmem:[#allocation10 + $0x288] sm:$0xff]  ;;  %v6218_v42 = vld [vmem:[#allocation10 + $0x298] sm:$0xff] }
 0x2e3   :  { %1640 = vmatprep.subr.mxu0 %v6203_v2  ;;  %1711 = vmatprep.subr.mxu1 %v6206_v14  ;;  %9276 = vst [vmem:[#allocation152_spill] sm:$0xff] %v6215_v40  ;;  %9277 = vst [vmem:[#allocation153_spill] sm:$0xff] %v6218_v42  ;;  %v6221_v2 = vld [vmem:[#allocation10 + $0x280] sm:$0xff]  ;;  %v6224_v14 = vld [vmem:[#allocation10 + $0x290] sm:$0xff] }
 0x2e4   :  { %1641 = vmatpush2.msra.mxu0 %v6209_v37  ;;  %1712 = vmatpush2.msra.mxu1 %v6212_v43  ;;  %9278 = vst [vmem:[#allocation154_spill] sm:$0xff] %v6221_v2  ;;  %9279 = vst [vmem:[#allocation155_spill] sm:$0xff] %v6224_v14  ;;  %v6227_v37 = vld [vmem:[#allocation10 + $0x268] sm:$0xff]  ;;  %v6230_v43 = vld [vmem:[#allocation10 + $0x278] sm:$0xff] }
 0x2e5   :  { %1642 = vmatprep.subr.mxu0 %v6215_v40  ;;  %1713 = vmatprep.subr.mxu1 %v6218_v42  ;;  %9280 = vst [vmem:[#allocation156_spill] sm:$0xff] %v6227_v37  ;;  %9281 = vst [vmem:[#allocation157_spill] sm:$0xff] %v6230_v43  ;;  %v6233_v40 = vld [vmem:[#allocation10 + $0x260] sm:$0xff]  ;;  %v6236_v42 = vld [vmem:[#allocation10 + $0x270] sm:$0xff] }
 0x2e6   :  { %1643 = vmatpush2.msra.mxu0 %v6221_v2  ;;  %1714 = vmatpush2.msra.mxu1 %v6224_v14  ;;  %9282 = vst [vmem:[#allocation158_spill] sm:$0xff] %v6233_v40  ;;  %9283 = vst [vmem:[#allocation159_spill] sm:$0xff] %v6236_v42  ;;  %v6239_v2 = vld [vmem:[#allocation10 + $0x248] sm:$0xff]  ;;  %v6242_v14 = vld [vmem:[#allocation10 + $0x258] sm:$0xff] }
 0x2e7   :  { %1644 = vmatprep.subr.mxu0 %v6227_v37  ;;  %1715 = vmatprep.subr.mxu1 %v6230_v43  ;;  %9284 = vst [vmem:[#allocation160_spill] sm:$0xff] %v6239_v2  ;;  %9285 = vst [vmem:[#allocation161_spill] sm:$0xff] %v6242_v14  ;;  %v6245_v37 = vld [vmem:[#allocation10 + $0x240] sm:$0xff]  ;;  %v6248_v43 = vld [vmem:[#allocation10 + $0x250] sm:$0xff] }
 0x2e8   :  { %1645 = vmatpush2.msra.mxu0 %v6233_v40  ;;  %1716 = vmatpush2.msra.mxu1 %v6236_v42  ;;  %9286 = vst [vmem:[#allocation162_spill] sm:$0xff] %v6245_v37  ;;  %9287 = vst [vmem:[#allocation163_spill] sm:$0xff] %v6248_v43  ;;  %v6251_v40 = vld [vmem:[#allocation10 + $0x228] sm:$0xff]  ;;  %v6254_v42 = vld [vmem:[#allocation10 + $0x238] sm:$0xff] }
 0x2e9   :  { %1646 = vmatprep.subr.mxu0 %v6239_v2  ;;  %1717 = vmatprep.subr.mxu1 %v6242_v14  ;;  %9288 = vst [vmem:[#allocation164_spill] sm:$0xff] %v6251_v40  ;;  %9289 = vst [vmem:[#allocation165_spill] sm:$0xff] %v6254_v42  ;;  %v6257_v2 = vld [vmem:[#allocation10 + $0x220] sm:$0xff]  ;;  %v6260_v14 = vld [vmem:[#allocation10 + $0x230] sm:$0xff] }
 0x2ea   :  { %1647 = vmatpush2.msra.mxu0 %v6245_v37  ;;  %1718 = vmatpush2.msra.mxu1 %v6248_v43  ;;  %9290 = vst [vmem:[#allocation170_spill] sm:$0xff] %v6257_v2  ;;  %9291 = vst [vmem:[#allocation171_spill] sm:$0xff] %v6260_v14  ;;  %v6263_v37 = vld [vmem:[#allocation10 + $0x208] sm:$0xff]  ;;  %v6266_v43 = vld [vmem:[#allocation10 + $0x218] sm:$0xff] }
 0x2eb   :  { %1648 = vmatprep.subr.mxu0 %v6251_v40  ;;  %1719 = vmatprep.subr.mxu1 %v6254_v42  ;;  %9292 = vst [vmem:[#allocation172_spill] sm:$0xff] %v6263_v37  ;;  %9293 = vst [vmem:[#allocation173_spill] sm:$0xff] %v6266_v43  ;;  %v6269_v40 = vld [vmem:[#allocation10 + $0x200] sm:$0xff]  ;;  %v6272_v42 = vld [vmem:[#allocation10 + $0x210] sm:$0xff] }
 0x2ec   :  { %1649 = vmatpush2.msra.mxu0 %v6257_v2  ;;  %1720 = vmatpush2.msra.mxu1 %v6260_v14  ;;  %9294 = vst [vmem:[#allocation174_spill] sm:$0xff] %v6269_v40  ;;  %9295 = vst [vmem:[#allocation175_spill] sm:$0xff] %v6272_v42 }
 0x2ed   :  { %1650 = vmatprep.subr.mxu0 %v6263_v37  ;;  %1721 = vmatprep.subr.mxu1 %v6266_v43 }
 0x2ee   :  { %1651 = vmatpush2.msra.mxu0 %v6269_v40  ;;  %1722 = vmatpush2.msra.mxu1 %v6272_v42 }
 0x2ef   :  { %1758 = vmatprep.subr.mxu0 %v5649_v23  ;;  %1829 = vmatprep.subr.mxu1 %v5652_v33 }
 0x34d   :  { %v1288_v14 = vpop.f32.mrf.mxu0  ;;  %v1359_v43 = vpop.f32.mrf.mxu1 }
 0x34e   :  { %v1289_v2 = vadd.f32 %v1288_v14, %v5660_v34  ;;  %v1360_v23 = vadd.f32 %v1359_v43, %v5675_v41 }
 0x34f   :  { %v1290_v37 = vpop.f32.mrf.mxu0  ;;  %v1361_v40 = vpop.f32.mrf.mxu1 }
 0x350   :  { %v3735_v60 = vmul.f32 -1.442695, %v1289_v2  ;;  %v1291_v32 = vadd.f32 %v1290_v37, %v5664_v36  ;;  %v1362_v30 = vadd.f32 %v1361_v40, %v5670_v9 }
 0x352   :  { %3835 = vpow2.f32 %v3735_v60  ;;  %v3736_v1 = vmul.f32 -1.442695, %v1291_v32  ;;  %v3737_v8 = vmul.f32 -1.442695, %v1362_v30 }
 0x354   :  { %3837 = vpow2.f32 %v3736_v1 }
 0x355   :  { %3839 = vpow2.f32 %v3737_v8 }
 0x35f   :  { %v3836_v42 = vpop.eup %3835 }
 0x360   :  { %v1367_v24 = vadd.f32 1.0, %v3836_v42 }
 0x361   :  { %v3838_v33 = vpop.eup %3837 }
 0x362   :  { %3841 = vrcp.f32 %v1367_v24  ;;  %v1373_v14 = vadd.f32 1.0, %v3838_v33  ;;  %v3840_v2 = vpop.eup %3839  ;;  %v9296_v33 = vcombine.low %v5410_v7, %v5416_v18 }
 0x363   :  { %3843 = vtanh.f32 %v1360_v23  ;;  %v1380_v40 = vadd.f32 1.0, %v3840_v2 }
 0x364   :  { %3845 = vrcp.f32 %v1373_v14 }
 0x365   :  { %3847 = vrcp.f32 %v1380_v40 }
 0x36e   :  { %v1458_v37 = vpop.f32.mrf.mxu0  ;;  %v1529_v60 = vpop.f32.mrf.mxu1 }
 0x36f   :  { %v3842_v36 = vpop.eup %3841 }
 0x370   :  { %v3844_v32 = vpop.eup %3843  ;;  %v1460_v1 = vpop.f32.mrf.mxu0 }
 0x371   :  { %v1531_v34 = vpop.f32.mrf.mxu1  ;;  %v3846_v27 = vpop.eup %3845  ;;  %v1538_v30 = vcombine.low %v1458_v37, %v1460_v1  ;;  %v1384_v38 = vmul.f32 %v3844_v32, %v3842_v36 }
 0x372   :  { %v1539_v9 = vcombine.low %v1529_v60, %v1531_v34  ;;  %v1383_v42 = vmul.f32 %v3846_v27, %v5680_v0  ;;  %v3848_v36 = vpop.eup %3847 }
 0x373   :  { %v1546_v8 = vrot.slane %v1538_v30, %v4795_v28 }
 0x374   :  { %v1553_v24 = vrot.slane %v1539_v9, %v4795_v28  ;;  %v6284_v43 = vadd.f32 %v1384_v38, %v1383_v42 }
 0x376   :  { %v1554_v23 = vcombine.low %v1546_v8, %v1553_v24  ;;  %3849 = vtanh.f32 %v6284_v43 }
 0x378   :  { %v1556_v14 = vadd.f32 %v1554_v23, %v9296_v33 }
 0x37a   :  { %v3738_v2 = vmul.f32 -1.442695, %v1556_v14  ;;  %v1564_v37 = vrot.slane %v1556_v14, 2  ;;  %v1575_v0 = vrot.slane %v1556_v14, 6  ;;  %v1572_v32 = vrot.slane %v1556_v14, 4 }
 0x37c   :  { %3851 = vpow2.f32 %v3738_v2  ;;  %v3739_v34 = vmul.f32 -1.442695, %v1564_v37  ;;  %v3740_v9 = vmul.f32 -1.442695, %v1575_v0 }
 0x37e   :  { %3853 = vpow2.f32 %v3739_v34 }
 0x37f   :  { %3855 = vpow2.f32 %v3740_v9 }
 0x383   :  { %v3850_v27 = vpop.eup %3849 }
 0x384   :  { %v1387_v60 = vmul.f32 %v3850_v27, %v3848_v36 }
 0x386   :  { %1389 = vst [vmem:[#allocation3 + $0x2] sm:$0x3] %v1387_v60  ;;  %1652 = vmatprep.mubr.f32.mxu0 %v1387_v60  ;;  %1723 = vmatprep.mubr.f32.mxu1 %v1387_v60 }
 0x389   :  { %v3852_v38 = vpop.eup %3851 }
 0x38a   :  { %v1560_v1 = vadd.f32 1.0, %v3852_v38  ;;  %v9337_v38 = vld [vmem:[#allocation59_spill] sm:$0xff] }
 0x38b   :  { %v3854_v40 = vpop.eup %3853 }
 0x38c   :  { %3857 = vrcp.f32 %v1560_v1  ;;  %v1569_v30 = vadd.f32 1.0, %v3854_v40  ;;  %v3856_v23 = vpop.eup %3855  ;;  %v9339_v1 = vld [vmem:[#allocation61_spill] sm:$0xff]  ;;  %v9340_v40 = vld [vmem:[#allocation62_spill] sm:$0xff] }
 0x38d   :  { %3859 = vtanh.f32 %v1572_v32  ;;  %v3587_v42 = vld [vmem:[#allocation3 + $0x2] sm:$0x3]  ;;  %v1580_v34 = vadd.f32 1.0, %v3856_v23  ;;  %v9338_v32 = vld [vmem:[#allocation60_spill] sm:$0xff] }
 0x38e   :  { %3861 = vrcp.f32 %v1569_v30  ;;  %v3602_v8 = vmul.f32 %v5689_v10, %v3587_v42  ;;  %v9297_v10 = vld [vmem:[#allocation20_spill] sm:$0xff]  ;;  %v9341_v30 = vld [vmem:[#allocation63_spill] sm:$0xff] }
 0x38f   :  { %3863 = vrcp.f32 %v1580_v34  ;;  %v9342_v42 = vld [vmem:[#allocation64_spill] sm:$0xff]  ;;  %v9345_v23 = vld [vmem:[#allocation67_spill] sm:$0xff] }
 0x390   :  { %v3613_v24 = vsel %vm3609_vm2, %v3602_v8, 0.0  ;;  %v9343_v8 = vld [vmem:[#allocation65_spill] sm:$0xff]  ;;  %v9349_v34 = vld [vmem:[#allocation71_spill] sm:$0xff] }
 0x391   :  { %3614 = vadd.xlane.f32.xlu0 %v3613_v24  ;;  %v9344_v24 = vld [vmem:[#allocation66_spill] sm:$0xff] }
 0x399   :  { %v3858_v33 = vpop.eup %3857 }
 0x39a   :  { %v3860_v2 = vpop.eup %3859 }
 0x39b   :  { %v3862_v37 = vpop.eup %3861  ;;  %v1584_v36 = vmul.f32 %v3860_v2, %v3858_v33  ;;  %v9346_v33 = vld [vmem:[#allocation68_spill] sm:$0xff]  ;;  %v9347_v2 = vld [vmem:[#allocation69_spill] sm:$0xff] }
 0x39c   :  { %v1583_v14 = vmul.f32 %v3862_v37, %v5694_v39  ;;  %v3864_v27 = vpop.eup %3863  ;;  %v9298_v39 = vld [vmem:[#allocation21_spill] sm:$0xff]  ;;  %v9348_v37 = vld [vmem:[#allocation70_spill] sm:$0xff] }
 0x39e   :  { %v6293_v0 = vadd.f32 %v1584_v36, %v1583_v14  ;;  %v9350_v14 = vld [vmem:[#allocation72_spill] sm:$0xff]  ;;  %v9351_v36 = vld [vmem:[#allocation73_spill] sm:$0xff] }
 0x3a0   :  { %3865 = vtanh.f32 %v6293_v0 }
 0x3ad   :  { %v3866_v60 = vpop.eup %3865 }
 0x3ae   :  { %v6296_v9 = vmul.f32 %v3866_v60, %v3864_v27  ;;  %v9352_v27 = vld [vmem:[#allocation74_spill] sm:$0xff]  ;;  %v9353_v60 = vld [vmem:[#allocation75_spill] sm:$0xff] }
 0x3b0   :  { %1653 = vmatmul.mubr.f32.vlgmr.msra.gmra.mxu0 %v6296_v9  ;;  %1724 = vmatmul.mubr.f32.vlgmr.msra.gmra.mxu1 %v6296_v9 }
 0x3b1   :  { %1759 = vmatpush1.msra.mxu0 %v5701_v44  ;;  %1830 = vmatpush1.msra.mxu1 %v5704_v45  ;;  %v9299_v44 = vld [vmem:[#allocation22_spill] sm:$0xff]  ;;  %v9300_v45 = vld [vmem:[#allocation23_spill] sm:$0xff] }
 0x3b2   :  { %1760 = vmatprep.subr.mxu0 %v5707_v29  ;;  %1831 = vmatprep.subr.mxu1 %v5710_v46  ;;  %v9301_v29 = vld [vmem:[#allocation24_spill] sm:$0xff]  ;;  %v9302_v46 = vld [vmem:[#allocation25_spill] sm:$0xff] }
 0x3b3   :  { %1761 = vmatpush1.msra.mxu0 %v5713_v47  ;;  %1832 = vmatpush1.msra.mxu1 %v5716_v48  ;;  %v9303_v47 = vld [vmem:[#allocation26_spill] sm:$0xff]  ;;  %v9304_v48 = vld [vmem:[#allocation27_spill] sm:$0xff] }
 0x3b4   :  { %1762 = vmatprep.subr.mxu0 %v5719_v49  ;;  %1833 = vmatprep.subr.mxu1 %v5722_v50  ;;  %v9305_v49 = vld [vmem:[#allocation28_spill] sm:$0xff]  ;;  %v9306_v50 = vld [vmem:[#allocation29_spill] sm:$0xff] }
 0x3b5   :  { %1763 = vmatpush1.msra.mxu0 %v5725_v51  ;;  %1834 = vmatpush1.msra.mxu1 %v5728_v52  ;;  %v9307_v51 = vld [vmem:[#allocation30_spill] sm:$0xff]  ;;  %v9308_v52 = vld [vmem:[#allocation31_spill] sm:$0xff] }
 0x3b6   :  { %1764 = vmatprep.subr.mxu0 %v5731_v53  ;;  %1835 = vmatprep.subr.mxu1 %v5734_v54  ;;  %v9309_v53 = vld [vmem:[#allocation32_spill] sm:$0xff]  ;;  %v9310_v54 = vld [vmem:[#allocation33_spill] sm:$0xff] }
 0x3b7   :  { %1765 = vmatpush1.msra.mxu0 %v5737_v55  ;;  %1836 = vmatpush1.msra.mxu1 %v5740_v56  ;;  %v9311_v55 = vld [vmem:[#allocation34_spill] sm:$0xff]  ;;  %v9312_v56 = vld [vmem:[#allocation35_spill] sm:$0xff] }
 0x3b8   :  { %1766 = vmatprep.subr.mxu0 %v5743_v57  ;;  %1837 = vmatprep.subr.mxu1 %v5746_v58  ;;  %v9313_v57 = vld [vmem:[#allocation36_spill] sm:$0xff]  ;;  %v9314_v58 = vld [vmem:[#allocation37_spill] sm:$0xff] }
 0x3b9   :  { %1767 = vmatpush1.msra.mxu0 %v5749_v59  ;;  %1838 = vmatpush1.msra.mxu1 %v5752_v61  ;;  %v9315_v59 = vld [vmem:[#allocation38_spill] sm:$0xff]  ;;  %v9316_v61 = vld [vmem:[#allocation39_spill] sm:$0xff] }
 0x3ba   :  { %1768 = vmatprep.subr.mxu0 %v5755_v62  ;;  %1839 = vmatprep.subr.mxu1 %v5758_v63  ;;  %v9317_v62 = vld [vmem:[#allocation40_spill] sm:$0xff]  ;;  %v9318_v63 = vld [vmem:[#allocation41_spill] sm:$0xff] }
 0x3bb   :  { %1769 = vmatpush1.msra.mxu0 %v5761_v3  ;;  %1840 = vmatpush1.msra.mxu1 %v5764_v4  ;;  %v9319_v3 = vld [vmem:[#allocation42_spill] sm:$0xff]  ;;  %v9320_v4 = vmov 0.0  }
 0x3bc   :  { %1770 = vmatprep.subr.mxu0 %v5767_v5  ;;  %1841 = vmatprep.subr.mxu1 %v5770_v6  ;;  %v9321_v5 = vld [vmem:[#allocation43_spill] sm:$0xff]  ;;  %v9322_v6 = vld [vmem:[#allocation44_spill] sm:$0xff] }
 0x3bd   :  { %1771 = vmatpush1.msra.mxu0 %v5773_v11  ;;  %1842 = vmatpush1.msra.mxu1 %v5776_v12  ;;  %v9323_v11 = vld [vmem:[#allocation45_spill] sm:$0xff]  ;;  %v9324_v12 = vld [vmem:[#allocation46_spill] sm:$0xff] }
 0x3be   :  { %1772 = vmatprep.subr.mxu0 %v5779_v13  ;;  %1843 = vmatprep.subr.mxu1 %v5782_v15  ;;  %v9325_v13 = vld [vmem:[#allocation47_spill] sm:$0xff]  ;;  %v9326_v15 = vld [vmem:[#allocation48_spill] sm:$0xff] }
 0x3bf   :  { %1773 = vmatpush1.msra.mxu0 %v5785_v16  ;;  %1844 = vmatpush1.msra.mxu1 %v5788_v17  ;;  %v9327_v16 = vld [vmem:[#allocation49_spill] sm:$0xff]  ;;  %v9328_v17 = vld [vmem:[#allocation50_spill] sm:$0xff] }
 0x3c0   :  { %1774 = vmatprep.subr.mxu0 %v5791_v20  ;;  %1845 = vmatprep.subr.mxu1 %v5794_v21  ;;  %v9329_v20 = vld [vmem:[#allocation51_spill] sm:$0xff]  ;;  %v9330_v21 = vld [vmem:[#allocation52_spill] sm:$0xff] }
 0x3c1   :  { %1775 = vmatpush1.msra.mxu0 %v5797_v22  ;;  %1846 = vmatpush1.msra.mxu1 %v5800_v35  ;;  %v9331_v22 = vld [vmem:[#allocation53_spill] sm:$0xff]  ;;  %v9332_v35 = vld [vmem:[#allocation54_spill] sm:$0xff] }
 0x3c2   :  { %1776 = vmatprep.subr.mxu0 %v5803_v26  ;;  %1847 = vmatprep.subr.mxu1 %v5806_v19  ;;  %v9333_v26 = vld [vmem:[#allocation55_spill] sm:$0xff]  ;;  %v9334_v19 = vld [vmem:[#allocation56_spill] sm:$0xff] }
 0x3c3   :  { %1777 = vmatpush1.msra.mxu0 %v5809_v31  ;;  %1848 = vmatpush1.msra.mxu1 %v5812_v25  ;;  %v9335_v31 = vld [vmem:[#allocation57_spill] sm:$0xff]  ;;  %v9336_v25 = vld [vmem:[#allocation58_spill] sm:$0xff] }
 0x3c4   :  { %1778 = vmatprep.subr.mxu0 %v9297_v10  ;;  %1849 = vmatprep.subr.mxu1 %v9298_v39  ;;  %v9355_v10 = vld [vmem:[#allocation77_spill] sm:$0xff]  ;;  %v9356_v39 = vld [vmem:[#allocation78_spill] sm:$0xff] }
 0x3c5   :  { %1779 = vmatpush1.msra.mxu0 %v9299_v44  ;;  %1850 = vmatpush1.msra.mxu1 %v9300_v45  ;;  %v9357_v44 = vld [vmem:[#allocation79_spill] sm:$0xff]  ;;  %v9358_v45 = vld [vmem:[#allocation80_spill] sm:$0xff] }
 0x3c6   :  { %1780 = vmatprep.subr.mxu0 %v9301_v29  ;;  %1851 = vmatprep.subr.mxu1 %v9302_v46  ;;  %v9359_v29 = vld [vmem:[#allocation81_spill] sm:$0xff]  ;;  %v9360_v46 = vld [vmem:[#allocation82_spill] sm:$0xff] }
 0x3c7   :  { %1781 = vmatpush1.msra.mxu0 %v9303_v47  ;;  %1852 = vmatpush1.msra.mxu1 %v9304_v48  ;;  %v9361_v47 = vld [vmem:[#allocation83_spill] sm:$0xff]  ;;  %v9362_v48 = vld [vmem:[#allocation84_spill] sm:$0xff] }
 0x3c8   :  { %1782 = vmatprep.subr.mxu0 %v9305_v49  ;;  %1853 = vmatprep.subr.mxu1 %v9306_v50  ;;  %v9363_v49 = vld [vmem:[#allocation85_spill] sm:$0xff]  ;;  %v9364_v50 = vld [vmem:[#allocation86_spill] sm:$0xff] }
 0x3c9   :  { %1783 = vmatpush1.msra.mxu0 %v9307_v51  ;;  %1854 = vmatpush1.msra.mxu1 %v9308_v52  ;;  %v9365_v51 = vld [vmem:[#allocation87_spill] sm:$0xff]  ;;  %v9366_v52 = vld [vmem:[#allocation88_spill] sm:$0xff] }
 0x3ca   :  { %1784 = vmatprep.subr.mxu0 %v9309_v53  ;;  %1855 = vmatprep.subr.mxu1 %v9310_v54  ;;  %v9367_v53 = vld [vmem:[#allocation89_spill] sm:$0xff]  ;;  %v9368_v54 = vld [vmem:[#allocation90_spill] sm:$0xff] }
 0x3cb   :  { %1785 = vmatpush1.msra.mxu0 %v9311_v55  ;;  %1856 = vmatpush1.msra.mxu1 %v9312_v56  ;;  %v9369_v55 = vld [vmem:[#allocation91_spill] sm:$0xff]  ;;  %v9370_v56 = vld [vmem:[#allocation92_spill] sm:$0xff] }
 0x3cc   :  { %1786 = vmatprep.subr.mxu0 %v9313_v57  ;;  %1857 = vmatprep.subr.mxu1 %v9314_v58  ;;  %v9371_v57 = vld [vmem:[#allocation93_spill] sm:$0xff]  ;;  %v9372_v58 = vld [vmem:[#allocation94_spill] sm:$0xff] }
 0x3cd   :  { %1787 = vmatpush1.msra.mxu0 %v9315_v59  ;;  %1858 = vmatpush1.msra.mxu1 %v9316_v61  ;;  %v9373_v59 = vld [vmem:[#allocation95_spill] sm:$0xff]  ;;  %v9374_v61 = vld [vmem:[#allocation96_spill] sm:$0xff] }
 0x3ce   :  { %1788 = vmatprep.subr.mxu0 %v9317_v62  ;;  %1859 = vmatprep.subr.mxu1 %v9318_v63  ;;  %v9375_v62 = vld [vmem:[#allocation97_spill] sm:$0xff]  ;;  %v9376_v63 = vld [vmem:[#allocation98_spill] sm:$0xff] }
 0x3cf   :  { %1789 = vmatpush1.msra.mxu0 %v9319_v3  ;;  %1822 = vmatprep.mubr.f32.mxu0 %v9320_v4  ;;  %v9377_v3 = vld [vmem:[#allocation99_spill] sm:$0xff] }
 0x3d0   :  { %1860 = vmatpush1.msra.mxu1 %v9321_v5  ;;  %1893 = vmatprep.mubr.f32.mxu1 %v9320_v4  ;;  %v9378_v5 = vld [vmem:[#allocation100_spill] sm:$0xff] }
 0x3d1   :  { %1823 = vmatmul.mubr.f32.vlgmr.msra.gmra.mxu0 %v6296_v9  ;;  %1894 = vmatmul.mubr.f32.vlgmr.msra.gmra.mxu1 %v6296_v9  ;;  %v9354_v9 = vld [vmem:[#allocation76_spill] sm:$0xff] }
 0x3d2   :  { %1954 = vmatprep.subr.mxu0 %v9322_v6  ;;  %2025 = vmatprep.subr.mxu1 %v9323_v11  ;;  %v9379_v6 = vld [vmem:[#allocation101_spill] sm:$0xff]  ;;  %v9380_v11 = vld [vmem:[#allocation102_spill] sm:$0xff] }
 0x3d3   :  { %1955 = vmatpush1.msra.mxu0 %v9324_v12  ;;  %2026 = vmatpush1.msra.mxu1 %v9325_v13  ;;  %v9381_v12 = vld [vmem:[#allocation103_spill] sm:$0xff]  ;;  %v9382_v13 = vld [vmem:[#allocation104_spill] sm:$0xff] }
 0x3d4   :  { %1956 = vmatprep.subr.mxu0 %v9326_v15  ;;  %2027 = vmatprep.subr.mxu1 %v9327_v16  ;;  %v9383_v15 = vld [vmem:[#allocation105_spill] sm:$0xff]  ;;  %v9384_v16 = vld [vmem:[#allocation106_spill] sm:$0xff] }
 0x3d5   :  { %1957 = vmatpush1.msra.mxu0 %v9328_v17  ;;  %2028 = vmatpush1.msra.mxu1 %v9329_v20  ;;  %v9385_v17 = vld [vmem:[#allocation107_spill] sm:$0xff]  ;;  %v9386_v20 = vld [vmem:[#allocation108_spill] sm:$0xff] }
 0x3d6   :  { %1958 = vmatprep.subr.mxu0 %v9330_v21  ;;  %2029 = vmatprep.subr.mxu1 %v9331_v22  ;;  %v9387_v21 = vld [vmem:[#allocation109_spill] sm:$0xff]  ;;  %v9388_v22 = vld [vmem:[#allocation110_spill] sm:$0xff] }
 0x3d7   :  { %1959 = vmatpush1.msra.mxu0 %v9332_v35  ;;  %2030 = vmatpush1.msra.mxu1 %v9333_v26  ;;  %v9389_v35 = vld [vmem:[#allocation111_spill] sm:$0xff]  ;;  %v9390_v26 = vld [vmem:[#allocation112_spill] sm:$0xff] }
 0x3d8   :  { %1960 = vmatprep.subr.mxu0 %v9334_v19  ;;  %2031 = vmatprep.subr.mxu1 %v9335_v31  ;;  %v9391_v19 = vld [vmem:[#allocation113_spill] sm:$0xff]  ;;  %v9392_v31 = vld [vmem:[#allocation114_spill] sm:$0xff] }
 0x3d9   :  { %1961 = vmatpush1.msra.mxu0 %v9336_v25  ;;  %2032 = vmatpush1.msra.mxu1 %v9337_v38  ;;  %v9393_v25 = vld [vmem:[#allocation115_spill] sm:$0xff]  ;;  %v9394_v38 = vld [vmem:[#allocation116_spill] sm:$0xff] }
 0x3da   :  { %1962 = vmatprep.subr.mxu0 %v9338_v32  ;;  %2033 = vmatprep.subr.mxu1 %v9339_v1  ;;  %v9395_v32 = vld [vmem:[#allocation117_spill] sm:$0xff]  ;;  %v9396_v1 = vld [vmem:[#allocation118_spill] sm:$0xff] }
 0x3db   :  { %1963 = vmatpush1.msra.mxu0 %v9340_v40  ;;  %2034 = vmatpush1.msra.mxu1 %v9341_v30  ;;  %v9397_v40 = vld [vmem:[#allocation119_spill] sm:$0xff]  ;;  %v9398_v30 = vld [vmem:[#allocation120_spill] sm:$0xff] }
 0x3dc   :  { %1964 = vmatprep.subr.mxu0 %v9342_v42  ;;  %2035 = vmatprep.subr.mxu1 %v9343_v8  ;;  %v9399_v42 = vld [vmem:[#allocation121_spill] sm:$0xff]  ;;  %v9400_v8 = vld [vmem:[#allocation122_spill] sm:$0xff] }
 0x3dd   :  { %1965 = vmatpush1.msra.mxu0 %v9344_v24  ;;  %2036 = vmatpush1.msra.mxu1 %v9345_v23  ;;  %v9401_v24 = vld [vmem:[#allocation123_spill] sm:$0xff]  ;;  %v9402_v23 = vld [vmem:[#allocation124_spill] sm:$0xff] }
 0x3de   :  { %1966 = vmatprep.subr.mxu0 %v9346_v33  ;;  %2037 = vmatprep.subr.mxu1 %v9347_v2  ;;  %v9403_v33 = vld [vmem:[#allocation125_spill] sm:$0xff]  ;;  %v9404_v2 = vld [vmem:[#allocation126_spill] sm:$0xff] }
 0x3df   :  { %1967 = vmatpush1.msra.mxu0 %v9348_v37  ;;  %2038 = vmatpush1.msra.mxu1 %v9349_v34  ;;  %v9405_v37 = vld [vmem:[#allocation127_spill] sm:$0xff]  ;;  %v9406_v34 = vld [vmem:[#allocation128_spill] sm:$0xff] }
 0x3e0   :  { %1968 = vmatprep.subr.mxu0 %v9350_v14  ;;  %2039 = vmatprep.subr.mxu1 %v9351_v36  ;;  %v9407_v14 = vld [vmem:[#allocation129_spill] sm:$0xff]  ;;  %v9408_v36 = vld [vmem:[#allocation130_spill] sm:$0xff] }
 0x3e1   :  { %1969 = vmatpush1.msra.mxu0 %v9352_v27  ;;  %2040 = vmatpush1.msra.mxu1 %v9353_v60  ;;  %v9409_v27 = vld [vmem:[#allocation131_spill] sm:$0xff]  ;;  %v9410_v60 = vld [vmem:[#allocation132_spill] sm:$0xff] }
 0x3e2   :  { %1970 = vmatprep.subr.mxu0 %v9354_v9  ;;  %2041 = vmatprep.subr.mxu1 %v9355_v10  ;;  %v9411_v9 = vld [vmem:[#allocation133_spill] sm:$0xff]  ;;  %v9412_v10 = vld [vmem:[#allocation134_spill] sm:$0xff] }
 0x3e3   :  { %1971 = vmatpush1.msra.mxu0 %v9356_v39  ;;  %2042 = vmatpush1.msra.mxu1 %v9357_v44  ;;  %v9413_v39 = vld [vmem:[#allocation135_spill] sm:$0xff]  ;;  %v9414_v44 = vld [vmem:[#allocation136_spill] sm:$0xff] }
 0x3e4   :  { %1972 = vmatprep.subr.mxu0 %v9358_v45  ;;  %2043 = vmatprep.subr.mxu1 %v9359_v29  ;;  %v9415_v45 = vld [vmem:[#allocation137_spill] sm:$0xff]  ;;  %v9416_v29 = vld [vmem:[#allocation138_spill] sm:$0xff] }
 0x3e5   :  { %1973 = vmatpush1.msra.mxu0 %v9360_v46  ;;  %2044 = vmatpush1.msra.mxu1 %v9361_v47  ;;  %v9417_v46 = vld [vmem:[#allocation139_spill] sm:$0xff]  ;;  %v9418_v47 = vld [vmem:[#allocation140_spill] sm:$0xff] }
 0x3e6   :  { %1974 = vmatprep.subr.mxu0 %v9362_v48  ;;  %2045 = vmatprep.subr.mxu1 %v9363_v49  ;;  %v9419_v48 = vld [vmem:[#allocation141_spill] sm:$0xff]  ;;  %v9420_v49 = vld [vmem:[#allocation142_spill] sm:$0xff] }
 0x3e7   :  { %1975 = vmatpush1.msra.mxu0 %v9364_v50  ;;  %2046 = vmatpush1.msra.mxu1 %v9365_v51  ;;  %v9421_v50 = vld [vmem:[#allocation143_spill] sm:$0xff]  ;;  %v9422_v51 = vld [vmem:[#allocation144_spill] sm:$0xff] }
 0x3e8   :  { %1976 = vmatprep.subr.mxu0 %v9366_v52  ;;  %2047 = vmatprep.subr.mxu1 %v9367_v53  ;;  %v9423_v52 = vld [vmem:[#allocation145_spill] sm:$0xff]  ;;  %v9424_v53 = vld [vmem:[#allocation146_spill] sm:$0xff] }
 0x3e9   :  { %1977 = vmatpush1.msra.mxu0 %v9368_v54  ;;  %2048 = vmatpush1.msra.mxu1 %v9369_v55  ;;  %v9425_v54 = vld [vmem:[#allocation147_spill] sm:$0xff]  ;;  %v9426_v55 = vld [vmem:[#allocation148_spill] sm:$0xff] }
 0x3ea   :  { %1978 = vmatprep.subr.mxu0 %v9370_v56  ;;  %2049 = vmatprep.subr.mxu1 %v9371_v57  ;;  %v9427_v56 = vld [vmem:[#allocation149_spill] sm:$0xff]  ;;  %v9428_v57 = vld [vmem:[#allocation150_spill] sm:$0xff] }
 0x3eb   :  { %1979 = vmatpush1.msra.mxu0 %v9372_v58  ;;  %2050 = vmatpush1.msra.mxu1 %v9373_v59  ;;  %v9429_v58 = vld [vmem:[#allocation151_spill] sm:$0xff]  ;;  %v9430_v59 = vld [vmem:[#allocation152_spill] sm:$0xff] }
 0x3ec   :  { %1980 = vmatprep.subr.mxu0 %v9374_v61  ;;  %2051 = vmatprep.subr.mxu1 %v9375_v62  ;;  %v9431_v61 = vld [vmem:[#allocation153_spill] sm:$0xff]  ;;  %v9432_v62 = vld [vmem:[#allocation154_spill] sm:$0xff] }
 0x3ed   :  { %1981 = vmatpush1.msra.mxu0 %v9376_v63  ;;  %2052 = vmatpush1.msra.mxu1 %v9377_v3  ;;  %v9433_v63 = vld [vmem:[#allocation155_spill] sm:$0xff]  ;;  %v9434_v3 = vld [vmem:[#allocation156_spill] sm:$0xff] }
 0x3ee   :  { %1982 = vmatprep.subr.mxu0 %v9378_v5  ;;  %2053 = vmatprep.subr.mxu1 %v9379_v6  ;;  %v9435_v5 = vld [vmem:[#allocation157_spill] sm:$0xff]  ;;  %v9436_v6 = vld [vmem:[#allocation158_spill] sm:$0xff] }
 0x3ef   :  { %1983 = vmatpush1.msra.mxu0 %v9380_v11  ;;  %2054 = vmatpush1.msra.mxu1 %v9381_v12  ;;  %v9437_v11 = vld [vmem:[#allocation159_spill] sm:$0xff]  ;;  %v9438_v12 = vld [vmem:[#allocation160_spill] sm:$0xff] }
 0x3f0   :  { %1984 = vmatprep.subr.mxu0 %v9382_v13  ;;  %2055 = vmatprep.subr.mxu1 %v9383_v15  ;;  %v9439_v13 = vld [vmem:[#allocation161_spill] sm:$0xff]  ;;  %v9440_v15 = vld [vmem:[#allocation162_spill] sm:$0xff] }
 0x3f1   :  { %1985 = vmatpush1.msra.mxu0 %v9384_v16  ;;  %2056 = vmatpush1.msra.mxu1 %v9385_v17  ;;  %v9441_v16 = vld [vmem:[#allocation163_spill] sm:$0xff]  ;;  %v9442_v17 = vld [vmem:[#allocation164_spill] sm:$0xff] }
 0x3f2   :  { %1986 = vmatprep.subr.mxu0 %v9386_v20  ;;  %2057 = vmatprep.subr.mxu1 %v9387_v21  ;;  %v9443_v20 = vld [vmem:[#allocation165_spill] sm:$0xff]  ;;  %v9444_v21 = vld [vmem:[#allocation170_spill] sm:$0xff] }
 0x3f3   :  { %1987 = vmatpush2.msra.mxu0 %v9388_v22  ;;  %2058 = vmatpush2.msra.mxu1 %v9389_v35  ;;  %v9445_v22 = vld [vmem:[#allocation171_spill] sm:$0xff]  ;;  %v9446_v35 = vld [vmem:[#allocation172_spill] sm:$0xff] }
 0x3f4   :  { %1988 = vmatprep.subr.mxu0 %v9390_v26  ;;  %2059 = vmatprep.subr.mxu1 %v9391_v19  ;;  %v9447_v26 = vld [vmem:[#allocation173_spill] sm:$0xff]  ;;  %v9448_v19 = vld [vmem:[#allocation174_spill] sm:$0xff] }
 0x3f5   :  { %1989 = vmatpush2.msra.mxu0 %v9392_v31  ;;  %2060 = vmatpush2.msra.mxu1 %v9393_v25  ;;  %v9449_v31 = vld [vmem:[#allocation175_spill] sm:$0xff]  ;;  %v6494_v25 = vld [vmem:[#allocation9 + $0x1e8] sm:$0xff] }
 0x3f6   :  { %1990 = vmatprep.subr.mxu0 %v9394_v38  ;;  %2061 = vmatprep.subr.mxu1 %v9395_v32  ;;  %v6497_v38 = vld [vmem:[#allocation9 + $0x1f8] sm:$0xff] }
 0x3f7   :  { %1991 = vmatpush2.msra.mxu0 %v9396_v1  ;;  %2062 = vmatpush2.msra.mxu1 %v9397_v40  ;;  %v9450_v1 = vld [vmem:[#allocation16_spill] sm:$0xff] }
 0x3f8   :  { %1992 = vmatprep.subr.mxu0 %v9398_v30  ;;  %2063 = vmatprep.subr.mxu1 %v9399_v42 }
 0x3f9   :  { %1993 = vmatpush2.msra.mxu0 %v9400_v8  ;;  %2064 = vmatpush2.msra.mxu1 %v9401_v24  ;;  %v9451_v8 = vld [vmem:[#allocation17_spill] sm:$0xff] }
 0x3fa   :  { %1994 = vmatprep.subr.mxu0 %v9402_v23  ;;  %2065 = vmatprep.subr.mxu1 %v9403_v33 }
 0x3fb   :  { %1995 = vmatpush2.msra.mxu0 %v9404_v2  ;;  %2066 = vmatpush2.msra.mxu1 %v9405_v37  ;;  %v9452_v37 = vld [vmem:[#allocation18_spill] sm:$0xff] }
 0x3fc   :  { %1996 = vmatprep.subr.mxu0 %v9406_v34  ;;  %2067 = vmatprep.subr.mxu1 %v9407_v14 }
 0x3fd   :  { %1997 = vmatpush2.msra.mxu0 %v9408_v36  ;;  %2068 = vmatpush2.msra.mxu1 %v9409_v27 }
 0x3fe   :  { %1998 = vmatprep.subr.mxu0 %v9410_v60  ;;  %2069 = vmatprep.subr.mxu1 %v9411_v9 }
 0x3ff   :  { %1999 = vmatpush2.msra.mxu0 %v9412_v10  ;;  %2070 = vmatpush2.msra.mxu1 %v9413_v39 }
 0x400   :  { %2000 = vmatprep.subr.mxu0 %v9414_v44  ;;  %2071 = vmatprep.subr.mxu1 %v9415_v45 }
 0x401   :  { %2001 = vmatpush2.msra.mxu0 %v9416_v29  ;;  %2072 = vmatpush2.msra.mxu1 %v9417_v46 }
 0x402   :  { %2002 = vmatprep.subr.mxu0 %v9418_v47  ;;  %2073 = vmatprep.subr.mxu1 %v9419_v48 }
 0x403   :  { %2003 = vmatpush2.msra.mxu0 %v9420_v49  ;;  %2074 = vmatpush2.msra.mxu1 %v9421_v50 }
 0x404   :  { %2004 = vmatprep.subr.mxu0 %v9422_v51  ;;  %2075 = vmatprep.subr.mxu1 %v9423_v52 }
 0x405   :  { %2005 = vmatpush2.msra.mxu0 %v9424_v53  ;;  %2076 = vmatpush2.msra.mxu1 %v9425_v54 }
 0x406   :  { %2006 = vmatprep.subr.mxu0 %v9426_v55  ;;  %2077 = vmatprep.subr.mxu1 %v9427_v56 }
 0x407   :  { %2007 = vmatpush2.msra.mxu0 %v9428_v57  ;;  %2078 = vmatpush2.msra.mxu1 %v9429_v58 }
 0x408   :  { %2008 = vmatprep.subr.mxu0 %v9430_v59  ;;  %2079 = vmatprep.subr.mxu1 %v9431_v61  ;;  %v9453_v59 = vcombine.high %v5410_v7, %v5416_v18 }
 0x409   :  { %2009 = vmatpush2.msra.mxu0 %v9432_v62  ;;  %2080 = vmatpush2.msra.mxu1 %v9433_v63 }
 0x40a   :  { %2010 = vmatprep.subr.mxu0 %v9434_v3  ;;  %2081 = vmatprep.subr.mxu1 %v9435_v5 }
 0x40b   :  { %2011 = vmatpush2.msra.mxu0 %v9436_v6  ;;  %2082 = vmatpush2.msra.mxu1 %v9437_v11 }
 0x40c   :  { %2012 = vmatprep.subr.mxu0 %v9438_v12  ;;  %2083 = vmatprep.subr.mxu1 %v9439_v13 }
 0x40d   :  { %2013 = vmatpush2.msra.mxu0 %v9440_v15  ;;  %2084 = vmatpush2.msra.mxu1 %v9441_v16 }
 0x40e   :  { %2014 = vmatprep.subr.mxu0 %v9442_v17  ;;  %2085 = vmatprep.subr.mxu1 %v9443_v20  ;;  %v6516_v20 = vld [vmem:[%s8183_s6] ss:$0 sm:$0xff] }
 0x40f   :  { %2015 = vmatpush2.msra.mxu0 %v9444_v21  ;;  %2086 = vmatpush2.msra.mxu1 %v9445_v22 }
 0x410   :  { %2016 = vmatprep.subr.mxu0 %v9446_v35  ;;  %2087 = vmatprep.subr.mxu1 %v9447_v26 }
 0x411   :  { %2017 = vmatpush2.msra.mxu0 %v9448_v19  ;;  %2088 = vmatpush2.msra.mxu1 %v9449_v31 }
 0x412   :  { %2124 = vmatprep.subr.mxu0 %v6494_v25  ;;  %2195 = vmatprep.subr.mxu1 %v6497_v38 }
 0x470   :  { %v1654_v32 = vpop.f32.mrf.mxu0  ;;  %v1725_v23 = vpop.f32.mrf.mxu1 }
 0x471   :  { %v1655_v40 = vadd.f32 %v1654_v32, %v9450_v1  ;;  %v1726_v27 = vadd.f32 %v1725_v23, %v5675_v41 }
 0x472   :  { %v1656_v30 = vpop.f32.mrf.mxu0  ;;  %v1727_v2 = vpop.f32.mrf.mxu1 }
 0x473   :  { %v3741_v42 = vmul.f32 -1.442695, %v1655_v40  ;;  %v1657_v24 = vadd.f32 %v1656_v30, %v9451_v8  ;;  %v1728_v34 = vadd.f32 %v1727_v2, %v9452_v37  ;;  %v6528_v2 = vld [vmem:[#allocation9 + $0x1e0] sm:$0xff] }
 0x475   :  { %3867 = vpow2.f32 %v3741_v42  ;;  %v3742_v33 = vmul.f32 -1.442695, %v1657_v24  ;;  %v3743_v14 = vmul.f32 -1.442695, %v1728_v34  ;;  %v6531_v34 = vld [vmem:[#allocation9 + $0x1f0] sm:$0xff] }
 0x477   :  { %3869 = vpow2.f32 %v3742_v33 }
 0x478   :  { %3871 = vpow2.f32 %v3743_v14  ;;  %v6537_v14 = vld [vmem:[#allocation9 + $0x1d8] sm:$0xff] }
 0x482   :  { %v3868_v36 = vpop.eup %3867 }
 0x483   :  { %v1733_v60 = vadd.f32 1.0, %v3868_v36  ;;  %v6540_v36 = vld [vmem:[#allocation9 + $0x1c0] sm:$0xff] }
 0x484   :  { %v3870_v9 = vpop.eup %3869 }
 0x485   :  { %3873 = vrcp.f32 %v1733_v60  ;;  %v1739_v10 = vadd.f32 1.0, %v3870_v9  ;;  %v3872_v39 = vpop.eup %3871  ;;  %v6546_v60 = vld [vmem:[#allocation9 + $0x1a8] sm:$0xff]  ;;  %v6549_v9 = vld [vmem:[#allocation9 + $0x1b8] sm:$0xff] }
 0x486   :  { %3875 = vtanh.f32 %v1726_v27  ;;  %v1746_v50 = vadd.f32 1.0, %v3872_v39  ;;  %v6543_v27 = vld [vmem:[#allocation9 + $0x1d0] sm:$0xff] }
 0x487   :  { %3877 = vrcp.f32 %v1739_v10  ;;  %v6552_v10 = vld [vmem:[#allocation9 + $0x1a0] sm:$0xff]  ;;  %v6555_v39 = vld [vmem:[#allocation9 + $0x1b0] sm:$0xff] }
 0x488   :  { %3879 = vrcp.f32 %v1746_v50  ;;  %v6579_v50 = vld [vmem:[#allocation9 + $0x170] sm:$0xff] }
 0x491   :  { %v1824_v44 = vpop.f32.mrf.mxu0  ;;  %v1895_v45 = vpop.f32.mrf.mxu1 }
 0x492   :  { %v3874_v29 = vpop.eup %3873 }
 0x493   :  { %v3876_v46 = vpop.eup %3875  ;;  %v1826_v47 = vpop.f32.mrf.mxu0 }
 0x494   :  { %v1897_v48 = vpop.f32.mrf.mxu1  ;;  %v3878_v49 = vpop.eup %3877  ;;  %v1904_v51 = vcombine.low %v1824_v44, %v1826_v47  ;;  %v1750_v53 = vmul.f32 %v3876_v46, %v3874_v29  ;;  %v6558_v44 = vld [vmem:[#allocation9 + $0x188] sm:$0xff]  ;;  %v6564_v29 = vld [vmem:[#allocation9 + $0x180] sm:$0xff]  ;;  %v6567_v46 = vld [vmem:[#allocation9 + $0x190] sm:$0xff] }
 0x495   :  { %v1905_v52 = vcombine.low %v1895_v45, %v1897_v48  ;;  %v1749_v54 = vmul.f32 %v3878_v49, %v6284_v43  ;;  %v3880_v43 = vpop.eup %3879  ;;  %v6561_v45 = vld [vmem:[#allocation9 + $0x198] sm:$0xff]  ;;  %v6570_v47 = vld [vmem:[#allocation9 + $0x168] sm:$0xff]  ;;  %v6576_v49 = vld [vmem:[#allocation9 + $0x160] sm:$0xff] }
 0x496   :  { %v1912_v55 = vrot.slane %v1904_v51, %v4795_v28  ;;  %v6573_v48 = vld [vmem:[#allocation9 + $0x178] sm:$0xff]  ;;  %v6582_v51 = vld [vmem:[#allocation9 + $0x148] sm:$0xff] }
 0x497   :  { %v1919_v56 = vrot.slane %v1905_v52, %v4795_v28  ;;  %v6507_v57 = vadd.f32 %v1750_v53, %v1749_v54  ;;  %v6585_v52 = vld [vmem:[#allocation9 + $0x158] sm:$0xff]  ;;  %v6588_v53 = vld [vmem:[#allocation9 + $0x140] sm:$0xff]  ;;  %v6591_v54 = vld [vmem:[#allocation9 + $0x150] sm:$0xff] }
 0x499   :  { %v1920_v58 = vcombine.low %v1912_v55, %v1919_v56  ;;  %3881 = vtanh.f32 %v6507_v57  ;;  %v6594_v55 = vld [vmem:[#allocation9 + $0x128] sm:$0xff]  ;;  %v6597_v56 = vld [vmem:[#allocation9 + $0x138] sm:$0xff] }
 0x49b   :  { %v1922_v61 = vadd.f32 %v1920_v58, %v9453_v59  ;;  %v6600_v58 = vld [vmem:[#allocation9 + $0x120] sm:$0xff]  ;;  %v6603_v59 = vld [vmem:[#allocation9 + $0x130] sm:$0xff] }
 0x49d   :  { %v3744_v62 = vmul.f32 -1.442695, %v1922_v61  ;;  %v1930_v63 = vrot.slane %v1922_v61, 2  ;;  %v1941_v5 = vrot.slane %v1922_v61, 6  ;;  %v1938_v15 = vrot.slane %v1922_v61, 4  ;;  %v6606_v61 = vld [vmem:[#allocation9 + $0x108] sm:$0xff] }
 0x49f   :  { %3883 = vpow2.f32 %v3744_v62  ;;  %v3745_v3 = vmul.f32 -1.442695, %v1930_v63  ;;  %v3746_v12 = vmul.f32 -1.442695, %v1941_v5  ;;  %v6609_v62 = vld [vmem:[#allocation9 + $0x118] sm:$0xff]  ;;  %v6612_v63 = vld [vmem:[#allocation9 + $0x100] sm:$0xff] }
 0x4a0   :  { %v6621_v5 = vld [vmem:[#allocation9 + $0xf8] sm:$0xff] }
 0x4a1   :  { %3885 = vpow2.f32 %v3745_v3  ;;  %v6615_v3 = vld [vmem:[#allocation9 + $0x110] sm:$0xff] }
 0x4a2   :  { %3887 = vpow2.f32 %v3746_v12  ;;  %v6630_v12 = vld [vmem:[#allocation9 + $0xc8] sm:$0xff] }
 0x4a6   :  { %v3882_v6 = vpop.eup %3881 }
 0x4a7   :  { %v1753_v11 = vmul.f32 %v3882_v6, %v3880_v43  ;;  %v6618_v43 = vld [vmem:[#allocation9 + $0xe8] sm:$0xff]  ;;  %v6624_v6 = vld [vmem:[#allocation9 + $0xe0] sm:$0xff] }
 0x4a9   :  { %1755 = vst [vmem:[#allocation3 + $0x4] sm:$0x3] %v1753_v11  ;;  %2018 = vmatprep.mubr.f32.mxu0 %v1753_v11  ;;  %2089 = vmatprep.mubr.f32.mxu1 %v1753_v11  ;;  %v6627_v11 = vld [vmem:[#allocation9 + $0xf0] sm:$0xff] }
 0x4ac   :  { %v3884_v13 = vpop.eup %3883 }
 0x4ad   :  { %v1926_v16 = vadd.f32 1.0, %v3884_v13  ;;  %v6633_v13 = vld [vmem:[#allocation9 + $0xd8] sm:$0xff] }
 0x4ae   :  { %v3886_v17 = vpop.eup %3885 }
 0x4af   :  { %3889 = vrcp.f32 %v1926_v16  ;;  %v1935_v7 = vadd.f32 1.0, %v3886_v17  ;;  %v3888_v35 = vpop.eup %3887  ;;  %v6639_v16 = vld [vmem:[#allocation9 + $0xd0] sm:$0xff]  ;;  %v6642_v17 = vld [vmem:[#allocation9 + $0xa8] sm:$0xff] }
 0x4b0   :  { %3891 = vtanh.f32 %v1938_v15  ;;  %v3588_v18 = vld [vmem:[#allocation3 + $0x4] sm:$0x3]  ;;  %v1946_v32 = vadd.f32 1.0, %v3888_v35  ;;  %v6657_v35 = vld [vmem:[#allocation9 + $0x98] sm:$0xff] }
 0x4b1   :  { %3893 = vrcp.f32 %v1935_v7  ;;  %v3603_v21 = vmul.f32 %v6516_v20, %v3588_v18  ;;  %v6636_v15 = vld [vmem:[#allocation9 + $0xc0] sm:$0xff]  ;;  %v6645_v7 = vld [vmem:[#allocation9 + $0xb8] sm:$0xff]  ;;  %9458 = vst [vmem:[#allocation24_spill] sm:$0xff] %v6657_v35 }
 0x4b2   :  { %3895 = vrcp.f32 %v1946_v32  ;;  %9454 = vst [vmem:[#allocation20_spill] sm:$0xff] %v6645_v7  ;;  %v6648_v18 = vld [vmem:[#allocation9 + $0xa0] sm:$0xff]  ;;  %v6669_v32 = vld [vmem:[#allocation9 + $0x78] sm:$0xff] }
 0x4b3   :  { %v3616_v22 = vsel %vm3609_vm2, %v3603_v21, 0.0  ;;  %9455 = vst [vmem:[#allocation21_spill] sm:$0xff] %v6648_v18  ;;  %v6651_v21 = vld [vmem:[#allocation9 + $0xb0] sm:$0xff]  ;;  %9462 = vst [vmem:[#allocation28_spill] sm:$0xff] %v6669_v32 }
 0x4b4   :  { %3617 = vadd.xlane.f32.xlu1 %v3616_v22  ;;  %9456 = vst [vmem:[#allocation22_spill] sm:$0xff] %v6651_v21  ;;  %v6654_v22 = vld [vmem:[#allocation9 + $0x88] sm:$0xff] }
 0x4b5   :  { %9457 = vst [vmem:[#allocation23_spill] sm:$0xff] %v6654_v22 }
 0x4bc   :  { %v3890_v26 = vpop.eup %3889 }
 0x4bd   :  { %v3892_v19 = vpop.eup %3891 }
 0x4be   :  { %v3894_v31 = vpop.eup %3893  ;;  %v1950_v30 = vmul.f32 %v3892_v19, %v3890_v26  ;;  %v6660_v26 = vld [vmem:[#allocation9 + $0x80] sm:$0xff]  ;;  %v6663_v19 = vld [vmem:[#allocation9 + $0x90] sm:$0xff] }
 0x4bf   :  { %v1949_v40 = vmul.f32 %v3894_v31, %v6293_v0  ;;  %v3896_v24 = vpop.eup %3895  ;;  %v6534_v0 = vld [vmem:[#allocation9 + $0x1c8] sm:$0xff]  ;;  %9459 = vst [vmem:[#allocation25_spill] sm:$0xff] %v6660_v26  ;;  %9460 = vst [vmem:[#allocation26_spill] sm:$0xff] %v6663_v19 }
 0x4c0   :  { %v6666_v31 = vld [vmem:[#allocation9 + $0x68] sm:$0xff] }
 0x4c1   :  { %v6521_v42 = vadd.f32 %v1950_v30, %v1949_v40  ;;  %9461 = vst [vmem:[#allocation27_spill] sm:$0xff] %v6666_v31  ;;  %v6672_v40 = vld [vmem:[#allocation9 + $0x60] sm:$0xff]  ;;  %v6675_v30 = vld [vmem:[#allocation9 + $0x70] sm:$0xff] }
 0x4c2   :  { %9463 = vst [vmem:[#allocation29_spill] sm:$0xff] %v6672_v40  ;;  %9464 = vst [vmem:[#allocation30_spill] sm:$0xff] %v6675_v30 }
 0x4c3   :  { %3897 = vtanh.f32 %v6521_v42 }
 0x4d0   :  { %v3898_v23 = vpop.eup %3897 }
 0x4d1   :  { %v6524_v33 = vmul.f32 %v3898_v23, %v3896_v24  ;;  %v6678_v24 = vld [vmem:[#allocation9 + $0x48] sm:$0xff]  ;;  %v6681_v23 = vld [vmem:[#allocation9 + $0x58] sm:$0xff] }
 0x4d2   :  { %9465 = vst [vmem:[#allocation31_spill] sm:$0xff] %v6678_v24  ;;  %9466 = vst [vmem:[#allocation32_spill] sm:$0xff] %v6681_v23 }
 0x4d3   :  { %2019 = vmatmul.mubr.f32.vlgmr.msra.gmra.mxu0 %v6524_v33  ;;  %2090 = vmatmul.mubr.f32.vlgmr.msra.gmra.mxu1 %v6524_v33 }
 0x4d4   :  { %2125 = vmatpush1.msra.mxu0 %v6528_v2  ;;  %2196 = vmatpush1.msra.mxu1 %v6531_v34 }
 0x4d5   :  { %2126 = vmatprep.subr.mxu0 %v6534_v0  ;;  %2197 = vmatprep.subr.mxu1 %v6537_v14 }
 0x4d6   :  { %2127 = vmatpush1.msra.mxu0 %v6540_v36  ;;  %2198 = vmatpush1.msra.mxu1 %v6543_v27 }
 0x4d7   :  { %2128 = vmatprep.subr.mxu0 %v6546_v60  ;;  %2199 = vmatprep.subr.mxu1 %v6549_v9 }
 0x4d8   :  { %2129 = vmatpush1.msra.mxu0 %v6552_v10  ;;  %2200 = vmatpush1.msra.mxu1 %v6555_v39 }
 0x4d9   :  { %2130 = vmatprep.subr.mxu0 %v6558_v44  ;;  %2201 = vmatprep.subr.mxu1 %v6561_v45 }
 0x4da   :  { %2131 = vmatpush1.msra.mxu0 %v6564_v29  ;;  %2202 = vmatpush1.msra.mxu1 %v6567_v46 }
 0x4db   :  { %2132 = vmatprep.subr.mxu0 %v6570_v47  ;;  %2203 = vmatprep.subr.mxu1 %v6573_v48 }
 0x4dc   :  { %2133 = vmatpush1.msra.mxu0 %v6576_v49  ;;  %2204 = vmatpush1.msra.mxu1 %v6579_v50 }
 0x4dd   :  { %2134 = vmatprep.subr.mxu0 %v6582_v51  ;;  %2205 = vmatprep.subr.mxu1 %v6585_v52 }
 0x4de   :  { %2135 = vmatpush1.msra.mxu0 %v6588_v53  ;;  %2206 = vmatpush1.msra.mxu1 %v6591_v54 }
 0x4df   :  { %2136 = vmatprep.subr.mxu0 %v6594_v55  ;;  %2207 = vmatprep.subr.mxu1 %v6597_v56 }
 0x4e0   :  { %2137 = vmatpush1.msra.mxu0 %v6600_v58  ;;  %2208 = vmatpush1.msra.mxu1 %v6603_v59 }
 0x4e1   :  { %2138 = vmatprep.subr.mxu0 %v6606_v61  ;;  %2209 = vmatprep.subr.mxu1 %v6609_v62 }
 0x4e2   :  { %2139 = vmatpush1.msra.mxu0 %v6612_v63  ;;  %2210 = vmatpush1.msra.mxu1 %v6615_v3 }
 0x4e3   :  { %2140 = vmatprep.subr.mxu0 %v6618_v43  ;;  %2211 = vmatprep.subr.mxu1 %v6621_v5 }
 0x4e4   :  { %2141 = vmatpush1.msra.mxu0 %v6624_v6  ;;  %2212 = vmatpush1.msra.mxu1 %v6627_v11 }
 0x4e5   :  { %2142 = vmatprep.subr.mxu0 %v6630_v12  ;;  %2213 = vmatprep.subr.mxu1 %v6633_v13 }
 0x4e6   :  { %2143 = vmatpush1.msra.mxu0 %v6636_v15  ;;  %2214 = vmatpush1.msra.mxu1 %v6639_v16 }
 0x4e7   :  { %2144 = vmatprep.subr.mxu0 %v6642_v17  ;;  %2215 = vmatprep.subr.mxu1 %v6645_v7 }
 0x4e8   :  { %2145 = vmatpush1.msra.mxu0 %v6648_v18  ;;  %2216 = vmatpush1.msra.mxu1 %v6651_v21 }
 0x4e9   :  { %2146 = vmatprep.subr.mxu0 %v6654_v22  ;;  %2217 = vmatprep.subr.mxu1 %v6657_v35 }
 0x4ea   :  { %2147 = vmatpush1.msra.mxu0 %v6660_v26  ;;  %2218 = vmatpush1.msra.mxu1 %v6663_v19 }
 0x4eb   :  { %2148 = vmatprep.subr.mxu0 %v6666_v31  ;;  %2219 = vmatprep.subr.mxu1 %v6669_v32  ;;  %v6684_v31 = vld [vmem:[#allocation9 + $0x40] sm:$0xff]  ;;  %v6687_v32 = vld [vmem:[#allocation9 + $0x50] sm:$0xff] }
 0x4ec   :  { %2149 = vmatpush1.msra.mxu0 %v6672_v40  ;;  %2220 = vmatpush1.msra.mxu1 %v6675_v30  ;;  %9467 = vst [vmem:[#allocation33_spill] sm:$0xff] %v6684_v31  ;;  %9468 = vst [vmem:[#allocation34_spill] sm:$0xff] %v6687_v32  ;;  %v6690_v40 = vld [vmem:[#allocation9 + $0x28] sm:$0xff]  ;;  %v6693_v30 = vld [vmem:[#allocation9 + $0x38] sm:$0xff] }
 0x4ed   :  { %2150 = vmatprep.subr.mxu0 %v6678_v24  ;;  %2221 = vmatprep.subr.mxu1 %v6681_v23  ;;  %9469 = vst [vmem:[#allocation35_spill] sm:$0xff] %v6690_v40  ;;  %9470 = vst [vmem:[#allocation36_spill] sm:$0xff] %v6693_v30  ;;  %v6696_v24 = vld [vmem:[#allocation9 + $0x20] sm:$0xff]  ;;  %v6699_v23 = vld [vmem:[#allocation9 + $0x30] sm:$0xff] }
 0x4ee   :  { %2151 = vmatpush1.msra.mxu0 %v6684_v31  ;;  %2222 = vmatpush1.msra.mxu1 %v6687_v32  ;;  %9471 = vst [vmem:[#allocation37_spill] sm:$0xff] %v6696_v24  ;;  %9472 = vst [vmem:[#allocation38_spill] sm:$0xff] %v6699_v23  ;;  %v6702_v31 = vld [vmem:[#allocation9 + $0x8] sm:$0xff]  ;;  %v6705_v32 = vld [vmem:[#allocation9 + $0x18] sm:$0xff] }
 0x4ef   :  { %2152 = vmatprep.subr.mxu0 %v6690_v40  ;;  %2223 = vmatprep.subr.mxu1 %v6693_v30  ;;  %9473 = vst [vmem:[#allocation39_spill] sm:$0xff] %v6702_v31  ;;  %9474 = vst [vmem:[#allocation40_spill] sm:$0xff] %v6705_v32  ;;  %v6708_v40 = vld [vmem:[#allocation9] sm:$0xff]  ;;  %v6712_v30 = vld [vmem:[#allocation9 + $0x10] sm:$0xff] }
 0x4f0   :  { %2153 = vmatpush1.msra.mxu0 %v6696_v24  ;;  %2224 = vmatpush1.msra.mxu1 %v6699_v23  ;;  %9475 = vst [vmem:[#allocation41_spill] sm:$0xff] %v6708_v40  ;;  %9476 = vst [vmem:[#allocation42_spill] sm:$0xff] %v6712_v30  ;;  %v6727_v23 = vld [vmem:[#allocation10 + $0x1f0] sm:$0xff] }
 0x4f1   :  { %2154 = vmatprep.subr.mxu0 %v6702_v31  ;;  %2225 = vmatprep.subr.mxu1 %v6705_v32  ;;  %v6718_v31 = vld [vmem:[#allocation10 + $0x1e8] sm:$0xff]  ;;  %v6721_v32 = vld [vmem:[#allocation10 + $0x1f8] sm:$0xff]  ;;  %9480 = vst [vmem:[#allocation46_spill] sm:$0xff] %v6727_v23 }
 0x4f2   :  { %2155 = vmatpush1.msra.mxu0 %v6708_v40  ;;  %2188 = vmatprep.mubr.f32.mxu0 %v9320_v4  ;;  %9477 = vst [vmem:[#allocation43_spill] sm:$0xff] %v6718_v31  ;;  %9478 = vst [vmem:[#allocation44_spill] sm:$0xff] %v6721_v32  ;;  %v6724_v40 = vld [vmem:[#allocation10 + $0x1e0] sm:$0xff] }
 0x4f3   :  { %2226 = vmatpush1.msra.mxu1 %v6712_v30  ;;  %2259 = vmatprep.mubr.f32.mxu1 %v9320_v4  ;;  %9479 = vst [vmem:[#allocation45_spill] sm:$0xff] %v6724_v40  ;;  %v6730_v30 = vld [vmem:[#allocation10 + $0x1c8] sm:$0xff] }
 0x4f4   :  { %2189 = vmatmul.mubr.f32.vlgmr.msra.gmra.mxu0 %v6524_v33  ;;  %2260 = vmatmul.mubr.f32.vlgmr.msra.gmra.mxu1 %v6524_v33  ;;  %9481 = vst [vmem:[#allocation47_spill] sm:$0xff] %v6730_v30  ;;  %v6733_v33 = vld [vmem:[#allocation10 + $0x1d8] sm:$0xff] }
 0x4f5   :  { %2320 = vmatprep.subr.mxu0 %v6718_v31  ;;  %2391 = vmatprep.subr.mxu1 %v6721_v32  ;;  %9482 = vst [vmem:[#allocation48_spill] sm:$0xff] %v6733_v33  ;;  %v6736_v31 = vld [vmem:[#allocation10 + $0x1c0] sm:$0xff]  ;;  %v6739_v32 = vld [vmem:[#allocation10 + $0x1d0] sm:$0xff] }
 0x4f6   :  { %2321 = vmatpush1.msra.mxu0 %v6724_v40  ;;  %2392 = vmatpush1.msra.mxu1 %v6727_v23  ;;  %9483 = vst [vmem:[#allocation49_spill] sm:$0xff] %v6736_v31  ;;  %9484 = vst [vmem:[#allocation50_spill] sm:$0xff] %v6739_v32  ;;  %v6742_v40 = vld [vmem:[#allocation10 + $0x1a8] sm:$0xff]  ;;  %v6745_v23 = vld [vmem:[#allocation10 + $0x1b8] sm:$0xff] }
 0x4f7   :  { %2322 = vmatprep.subr.mxu0 %v6730_v30  ;;  %2393 = vmatprep.subr.mxu1 %v6733_v33  ;;  %9485 = vst [vmem:[#allocation51_spill] sm:$0xff] %v6742_v40  ;;  %9486 = vst [vmem:[#allocation52_spill] sm:$0xff] %v6745_v23  ;;  %v6748_v30 = vld [vmem:[#allocation10 + $0x1a0] sm:$0xff]  ;;  %v6751_v33 = vld [vmem:[#allocation10 + $0x1b0] sm:$0xff] }
 0x4f8   :  { %2323 = vmatpush1.msra.mxu0 %v6736_v31  ;;  %2394 = vmatpush1.msra.mxu1 %v6739_v32  ;;  %9487 = vst [vmem:[#allocation53_spill] sm:$0xff] %v6748_v30  ;;  %9488 = vst [vmem:[#allocation54_spill] sm:$0xff] %v6751_v33  ;;  %v6754_v31 = vld [vmem:[#allocation10 + $0x188] sm:$0xff]  ;;  %v6757_v32 = vld [vmem:[#allocation10 + $0x198] sm:$0xff] }
 0x4f9   :  { %2324 = vmatprep.subr.mxu0 %v6742_v40  ;;  %2395 = vmatprep.subr.mxu1 %v6745_v23  ;;  %9489 = vst [vmem:[#allocation55_spill] sm:$0xff] %v6754_v31  ;;  %9490 = vst [vmem:[#allocation56_spill] sm:$0xff] %v6757_v32  ;;  %v6760_v40 = vld [vmem:[#allocation10 + $0x180] sm:$0xff]  ;;  %v6763_v23 = vld [vmem:[#allocation10 + $0x190] sm:$0xff] }
 0x4fa   :  { %2325 = vmatpush1.msra.mxu0 %v6748_v30  ;;  %2396 = vmatpush1.msra.mxu1 %v6751_v33  ;;  %9491 = vst [vmem:[#allocation57_spill] sm:$0xff] %v6760_v40  ;;  %9492 = vst [vmem:[#allocation58_spill] sm:$0xff] %v6763_v23  ;;  %v6766_v30 = vld [vmem:[#allocation10 + $0x168] sm:$0xff]  ;;  %v6769_v33 = vld [vmem:[#allocation10 + $0x178] sm:$0xff] }
 0x4fb   :  { %2326 = vmatprep.subr.mxu0 %v6754_v31  ;;  %2397 = vmatprep.subr.mxu1 %v6757_v32  ;;  %9493 = vst [vmem:[#allocation59_spill] sm:$0xff] %v6766_v30  ;;  %9494 = vst [vmem:[#allocation60_spill] sm:$0xff] %v6769_v33  ;;  %v6772_v31 = vld [vmem:[#allocation10 + $0x160] sm:$0xff]  ;;  %v6775_v32 = vld [vmem:[#allocation10 + $0x170] sm:$0xff] }
 0x4fc   :  { %2327 = vmatpush1.msra.mxu0 %v6760_v40  ;;  %2398 = vmatpush1.msra.mxu1 %v6763_v23  ;;  %9495 = vst [vmem:[#allocation61_spill] sm:$0xff] %v6772_v31  ;;  %9496 = vst [vmem:[#allocation62_spill] sm:$0xff] %v6775_v32  ;;  %v6778_v40 = vld [vmem:[#allocation10 + $0x148] sm:$0xff]  ;;  %v6781_v23 = vld [vmem:[#allocation10 + $0x158] sm:$0xff] }
 0x4fd   :  { %2328 = vmatprep.subr.mxu0 %v6766_v30  ;;  %2399 = vmatprep.subr.mxu1 %v6769_v33  ;;  %9497 = vst [vmem:[#allocation63_spill] sm:$0xff] %v6778_v40  ;;  %9498 = vst [vmem:[#allocation64_spill] sm:$0xff] %v6781_v23  ;;  %v6784_v30 = vld [vmem:[#allocation10 + $0x140] sm:$0xff]  ;;  %v6787_v33 = vld [vmem:[#allocation10 + $0x150] sm:$0xff] }
 0x4fe   :  { %2329 = vmatpush1.msra.mxu0 %v6772_v31  ;;  %2400 = vmatpush1.msra.mxu1 %v6775_v32  ;;  %9499 = vst [vmem:[#allocation65_spill] sm:$0xff] %v6784_v30  ;;  %9500 = vst [vmem:[#allocation66_spill] sm:$0xff] %v6787_v33  ;;  %v6790_v31 = vld [vmem:[#allocation10 + $0x128] sm:$0xff]  ;;  %v6793_v32 = vld [vmem:[#allocation10 + $0x138] sm:$0xff] }
 0x4ff   :  { %2330 = vmatprep.subr.mxu0 %v6778_v40  ;;  %2401 = vmatprep.subr.mxu1 %v6781_v23  ;;  %9501 = vst [vmem:[#allocation67_spill] sm:$0xff] %v6790_v31  ;;  %9502 = vst [vmem:[#allocation68_spill] sm:$0xff] %v6793_v32  ;;  %v6796_v40 = vld [vmem:[#allocation10 + $0x120] sm:$0xff]  ;;  %v6799_v23 = vld [vmem:[#allocation10 + $0x130] sm:$0xff] }
 0x500   :  { %2331 = vmatpush1.msra.mxu0 %v6784_v30  ;;  %2402 = vmatpush1.msra.mxu1 %v6787_v33  ;;  %9503 = vst [vmem:[#allocation69_spill] sm:$0xff] %v6796_v40  ;;  %9504 = vst [vmem:[#allocation70_spill] sm:$0xff] %v6799_v23  ;;  %v6802_v30 = vld [vmem:[#allocation10 + $0x108] sm:$0xff]  ;;  %v6805_v33 = vld [vmem:[#allocation10 + $0x118] sm:$0xff] }
 0x501   :  { %2332 = vmatprep.subr.mxu0 %v6790_v31  ;;  %2403 = vmatprep.subr.mxu1 %v6793_v32  ;;  %9505 = vst [vmem:[#allocation71_spill] sm:$0xff] %v6802_v30  ;;  %9506 = vst [vmem:[#allocation72_spill] sm:$0xff] %v6805_v33  ;;  %v6808_v31 = vld [vmem:[#allocation10 + $0x100] sm:$0xff]  ;;  %v6811_v32 = vld [vmem:[#allocation10 + $0x110] sm:$0xff] }
 0x502   :  { %2333 = vmatpush1.msra.mxu0 %v6796_v40  ;;  %2404 = vmatpush1.msra.mxu1 %v6799_v23  ;;  %9507 = vst [vmem:[#allocation73_spill] sm:$0xff] %v6808_v31  ;;  %9508 = vst [vmem:[#allocation74_spill] sm:$0xff] %v6811_v32  ;;  %v6814_v40 = vld [vmem:[#allocation10 + $0xe8] sm:$0xff]  ;;  %v6817_v23 = vld [vmem:[#allocation10 + $0xf8] sm:$0xff] }
 0x503   :  { %2334 = vmatprep.subr.mxu0 %v6802_v30  ;;  %2405 = vmatprep.subr.mxu1 %v6805_v33  ;;  %9509 = vst [vmem:[#allocation75_spill] sm:$0xff] %v6814_v40  ;;  %9510 = vst [vmem:[#allocation76_spill] sm:$0xff] %v6817_v23  ;;  %v6820_v30 = vld [vmem:[#allocation10 + $0xe0] sm:$0xff]  ;;  %v6823_v33 = vld [vmem:[#allocation10 + $0xf0] sm:$0xff] }
 0x504   :  { %2335 = vmatpush1.msra.mxu0 %v6808_v31  ;;  %2406 = vmatpush1.msra.mxu1 %v6811_v32  ;;  %9511 = vst [vmem:[#allocation77_spill] sm:$0xff] %v6820_v30  ;;  %9512 = vst [vmem:[#allocation78_spill] sm:$0xff] %v6823_v33  ;;  %v6826_v31 = vld [vmem:[#allocation10 + $0xc8] sm:$0xff]  ;;  %v6829_v32 = vld [vmem:[#allocation10 + $0xd8] sm:$0xff] }
 0x505   :  { %2336 = vmatprep.subr.mxu0 %v6814_v40  ;;  %2407 = vmatprep.subr.mxu1 %v6817_v23  ;;  %9513 = vst [vmem:[#allocation79_spill] sm:$0xff] %v6826_v31  ;;  %9514 = vst [vmem:[#allocation80_spill] sm:$0xff] %v6829_v32  ;;  %v6832_v40 = vld [vmem:[#allocation10 + $0xc0] sm:$0xff]  ;;  %v6835_v23 = vld [vmem:[#allocation10 + $0xd0] sm:$0xff] }
 0x506   :  { %2337 = vmatpush1.msra.mxu0 %v6820_v30  ;;  %2408 = vmatpush1.msra.mxu1 %v6823_v33  ;;  %9515 = vst [vmem:[#allocation81_spill] sm:$0xff] %v6832_v40  ;;  %9516 = vst [vmem:[#allocation82_spill] sm:$0xff] %v6835_v23  ;;  %v6838_v30 = vld [vmem:[#allocation10 + $0xa8] sm:$0xff]  ;;  %v6841_v33 = vld [vmem:[#allocation10 + $0xb8] sm:$0xff] }
 0x507   :  { %2338 = vmatprep.subr.mxu0 %v6826_v31  ;;  %2409 = vmatprep.subr.mxu1 %v6829_v32  ;;  %9517 = vst [vmem:[#allocation83_spill] sm:$0xff] %v6838_v30  ;;  %9518 = vst [vmem:[#allocation84_spill] sm:$0xff] %v6841_v33  ;;  %v6844_v31 = vld [vmem:[#allocation10 + $0xa0] sm:$0xff]  ;;  %v6847_v32 = vld [vmem:[#allocation10 + $0xb0] sm:$0xff] }
 0x508   :  { %2339 = vmatpush1.msra.mxu0 %v6832_v40  ;;  %2410 = vmatpush1.msra.mxu1 %v6835_v23  ;;  %9519 = vst [vmem:[#allocation85_spill] sm:$0xff] %v6844_v31  ;;  %9520 = vst [vmem:[#allocation86_spill] sm:$0xff] %v6847_v32  ;;  %v6850_v40 = vld [vmem:[#allocation10 + $0x88] sm:$0xff]  ;;  %v6853_v23 = vld [vmem:[#allocation10 + $0x98] sm:$0xff] }
 0x509   :  { %2340 = vmatprep.subr.mxu0 %v6838_v30  ;;  %2411 = vmatprep.subr.mxu1 %v6841_v33  ;;  %9521 = vst [vmem:[#allocation87_spill] sm:$0xff] %v6850_v40  ;;  %9522 = vst [vmem:[#allocation88_spill] sm:$0xff] %v6853_v23  ;;  %v6856_v30 = vld [vmem:[#allocation10 + $0x80] sm:$0xff]  ;;  %v6859_v33 = vld [vmem:[#allocation10 + $0x90] sm:$0xff] }
 0x50a   :  { %2341 = vmatpush1.msra.mxu0 %v6844_v31  ;;  %2412 = vmatpush1.msra.mxu1 %v6847_v32  ;;  %9523 = vst [vmem:[#allocation89_spill] sm:$0xff] %v6856_v30  ;;  %9524 = vst [vmem:[#allocation90_spill] sm:$0xff] %v6859_v33  ;;  %v6862_v31 = vld [vmem:[#allocation10 + $0x68] sm:$0xff]  ;;  %v6865_v32 = vld [vmem:[#allocation10 + $0x78] sm:$0xff] }
 0x50b   :  { %2342 = vmatprep.subr.mxu0 %v6850_v40  ;;  %2413 = vmatprep.subr.mxu1 %v6853_v23  ;;  %9525 = vst [vmem:[#allocation91_spill] sm:$0xff] %v6862_v31  ;;  %9526 = vst [vmem:[#allocation92_spill] sm:$0xff] %v6865_v32  ;;  %v6868_v40 = vld [vmem:[#allocation10 + $0x60] sm:$0xff]  ;;  %v6871_v23 = vld [vmem:[#allocation10 + $0x70] sm:$0xff] }
 0x50c   :  { %2343 = vmatpush1.msra.mxu0 %v6856_v30  ;;  %2414 = vmatpush1.msra.mxu1 %v6859_v33  ;;  %9527 = vst [vmem:[#allocation93_spill] sm:$0xff] %v6868_v40  ;;  %9528 = vst [vmem:[#allocation94_spill] sm:$0xff] %v6871_v23  ;;  %v6874_v30 = vld [vmem:[#allocation10 + $0x48] sm:$0xff]  ;;  %v6877_v33 = vld [vmem:[#allocation10 + $0x58] sm:$0xff] }
 0x50d   :  { %2344 = vmatprep.subr.mxu0 %v6862_v31  ;;  %2415 = vmatprep.subr.mxu1 %v6865_v32  ;;  %9529 = vst [vmem:[#allocation95_spill] sm:$0xff] %v6874_v30  ;;  %9530 = vst [vmem:[#allocation96_spill] sm:$0xff] %v6877_v33  ;;  %v6880_v31 = vld [vmem:[#allocation10 + $0x40] sm:$0xff]  ;;  %v6883_v32 = vld [vmem:[#allocation10 + $0x50] sm:$0xff] }
 0x50e   :  { %2345 = vmatpush1.msra.mxu0 %v6868_v40  ;;  %2416 = vmatpush1.msra.mxu1 %v6871_v23  ;;  %9531 = vst [vmem:[#allocation97_spill] sm:$0xff] %v6880_v31  ;;  %9532 = vst [vmem:[#allocation98_spill] sm:$0xff] %v6883_v32  ;;  %v6886_v40 = vld [vmem:[#allocation10 + $0x28] sm:$0xff]  ;;  %v6889_v23 = vld [vmem:[#allocation10 + $0x38] sm:$0xff] }
 0x50f   :  { %2346 = vmatprep.subr.mxu0 %v6874_v30  ;;  %2417 = vmatprep.subr.mxu1 %v6877_v33  ;;  %9533 = vst [vmem:[#allocation99_spill] sm:$0xff] %v6886_v40  ;;  %9534 = vst [vmem:[#allocation100_spill] sm:$0xff] %v6889_v23  ;;  %v6892_v30 = vld [vmem:[#allocation10 + $0x20] sm:$0xff]  ;;  %v6895_v33 = vld [vmem:[#allocation10 + $0x30] sm:$0xff] }
 0x510   :  { %2347 = vmatpush1.msra.mxu0 %v6880_v31  ;;  %2418 = vmatpush1.msra.mxu1 %v6883_v32  ;;  %9535 = vst [vmem:[#allocation101_spill] sm:$0xff] %v6892_v30  ;;  %9536 = vst [vmem:[#allocation102_spill] sm:$0xff] %v6895_v33  ;;  %v6898_v31 = vld [vmem:[#allocation10 + $0x8] sm:$0xff]  ;;  %v6901_v32 = vld [vmem:[#allocation10 + $0x18] sm:$0xff] }
 0x511   :  { %2348 = vmatprep.subr.mxu0 %v6886_v40  ;;  %2419 = vmatprep.subr.mxu1 %v6889_v23  ;;  %9537 = vst [vmem:[#allocation103_spill] sm:$0xff] %v6898_v31  ;;  %9538 = vst [vmem:[#allocation104_spill] sm:$0xff] %v6901_v32  ;;  %v6904_v40 = vld [vmem:[#allocation10] sm:$0xff]  ;;  %v6907_v23 = vld [vmem:[#allocation10 + $0x10] sm:$0xff] }
 0x512   :  { %2349 = vmatpush1.msra.mxu0 %v6892_v30  ;;  %2420 = vmatpush1.msra.mxu1 %v6895_v33  ;;  %9539 = vst [vmem:[#allocation105_spill] sm:$0xff] %v6904_v40  ;;  %9540 = vst [vmem:[#allocation106_spill] sm:$0xff] %v6907_v23  ;;  %v6910_v30 = vld [vmem:[#allocation10 + $0x3e8] sm:$0xff]  ;;  %v6913_v33 = vld [vmem:[#allocation10 + $0x3f8] sm:$0xff] }
 0x513   :  { %2350 = vmatprep.subr.mxu0 %v6898_v31  ;;  %2421 = vmatprep.subr.mxu1 %v6901_v32  ;;  %9541 = vst [vmem:[#allocation107_spill] sm:$0xff] %v6910_v30  ;;  %9542 = vst [vmem:[#allocation108_spill] sm:$0xff] %v6913_v33  ;;  %v6916_v31 = vld [vmem:[#allocation10 + $0x3e0] sm:$0xff]  ;;  %v6919_v32 = vld [vmem:[#allocation10 + $0x3f0] sm:$0xff] }
 0x514   :  { %2351 = vmatpush1.msra.mxu0 %v6904_v40  ;;  %2422 = vmatpush1.msra.mxu1 %v6907_v23  ;;  %9543 = vst [vmem:[#allocation109_spill] sm:$0xff] %v6916_v31  ;;  %9544 = vst [vmem:[#allocation110_spill] sm:$0xff] %v6919_v32  ;;  %v6922_v40 = vld [vmem:[#allocation10 + $0x3c8] sm:$0xff]  ;;  %v6925_v23 = vld [vmem:[#allocation10 + $0x3d8] sm:$0xff] }
 0x515   :  { %2352 = vmatprep.subr.mxu0 %v6910_v30  ;;  %2423 = vmatprep.subr.mxu1 %v6913_v33  ;;  %9545 = vst [vmem:[#allocation111_spill] sm:$0xff] %v6922_v40  ;;  %9546 = vst [vmem:[#allocation112_spill] sm:$0xff] %v6925_v23  ;;  %v6928_v30 = vld [vmem:[#allocation10 + $0x3c0] sm:$0xff]  ;;  %v6931_v33 = vld [vmem:[#allocation10 + $0x3d0] sm:$0xff] }
 0x516   :  { %2353 = vmatpush2.msra.mxu0 %v6916_v31  ;;  %2424 = vmatpush2.msra.mxu1 %v6919_v32  ;;  %9547 = vst [vmem:[#allocation113_spill] sm:$0xff] %v6928_v30  ;;  %9548 = vst [vmem:[#allocation114_spill] sm:$0xff] %v6931_v33  ;;  %v6934_v31 = vld [vmem:[#allocation10 + $0x3a8] sm:$0xff]  ;;  %v6937_v32 = vld [vmem:[#allocation10 + $0x3b8] sm:$0xff] }
 0x517   :  { %2354 = vmatprep.subr.mxu0 %v6922_v40  ;;  %2425 = vmatprep.subr.mxu1 %v6925_v23  ;;  %9549 = vst [vmem:[#allocation115_spill] sm:$0xff] %v6934_v31  ;;  %9550 = vst [vmem:[#allocation116_spill] sm:$0xff] %v6937_v32  ;;  %v6940_v40 = vld [vmem:[#allocation10 + $0x3a0] sm:$0xff]  ;;  %v6943_v23 = vld [vmem:[#allocation10 + $0x3b0] sm:$0xff] }
 0x518   :  { %2355 = vmatpush2.msra.mxu0 %v6928_v30  ;;  %2426 = vmatpush2.msra.mxu1 %v6931_v33  ;;  %9551 = vst [vmem:[#allocation117_spill] sm:$0xff] %v6940_v40  ;;  %9552 = vst [vmem:[#allocation118_spill] sm:$0xff] %v6943_v23  ;;  %v6946_v30 = vld [vmem:[#allocation10 + $0x388] sm:$0xff]  ;;  %v6949_v33 = vld [vmem:[#allocation10 + $0x398] sm:$0xff] }
 0x519   :  { %2356 = vmatprep.subr.mxu0 %v6934_v31  ;;  %2427 = vmatprep.subr.mxu1 %v6937_v32  ;;  %9553 = vst [vmem:[#allocation119_spill] sm:$0xff] %v6946_v30  ;;  %9554 = vst [vmem:[#allocation120_spill] sm:$0xff] %v6949_v33  ;;  %v6952_v31 = vld [vmem:[#allocation10 + $0x380] sm:$0xff]  ;;  %v6955_v32 = vld [vmem:[#allocation10 + $0x390] sm:$0xff] }
 0x51a   :  { %2357 = vmatpush2.msra.mxu0 %v6940_v40  ;;  %2428 = vmatpush2.msra.mxu1 %v6943_v23  ;;  %9555 = vst [vmem:[#allocation121_spill] sm:$0xff] %v6952_v31  ;;  %9556 = vst [vmem:[#allocation122_spill] sm:$0xff] %v6955_v32  ;;  %v6958_v40 = vld [vmem:[#allocation10 + $0x368] sm:$0xff]  ;;  %v6961_v23 = vld [vmem:[#allocation10 + $0x378] sm:$0xff] }
 0x51b   :  { %2358 = vmatprep.subr.mxu0 %v6946_v30  ;;  %2429 = vmatprep.subr.mxu1 %v6949_v33  ;;  %9557 = vst [vmem:[#allocation123_spill] sm:$0xff] %v6958_v40  ;;  %9558 = vst [vmem:[#allocation124_spill] sm:$0xff] %v6961_v23  ;;  %v6964_v30 = vld [vmem:[#allocation10 + $0x360] sm:$0xff]  ;;  %v6967_v33 = vld [vmem:[#allocation10 + $0x370] sm:$0xff] }
 0x51c   :  { %2359 = vmatpush2.msra.mxu0 %v6952_v31  ;;  %2430 = vmatpush2.msra.mxu1 %v6955_v32  ;;  %9559 = vst [vmem:[#allocation125_spill] sm:$0xff] %v6964_v30  ;;  %9560 = vst [vmem:[#allocation126_spill] sm:$0xff] %v6967_v33  ;;  %v6970_v31 = vld [vmem:[#allocation10 + $0x348] sm:$0xff]  ;;  %v6973_v32 = vld [vmem:[#allocation10 + $0x358] sm:$0xff] }
 0x51d   :  { %2360 = vmatprep.subr.mxu0 %v6958_v40  ;;  %2431 = vmatprep.subr.mxu1 %v6961_v23  ;;  %9561 = vst [vmem:[#allocation127_spill] sm:$0xff] %v6970_v31  ;;  %9562 = vst [vmem:[#allocation128_spill] sm:$0xff] %v6973_v32  ;;  %v6976_v40 = vld [vmem:[#allocation10 + $0x340] sm:$0xff]  ;;  %v6979_v23 = vld [vmem:[#allocation10 + $0x350] sm:$0xff] }
 0x51e   :  { %2361 = vmatpush2.msra.mxu0 %v6964_v30  ;;  %2432 = vmatpush2.msra.mxu1 %v6967_v33  ;;  %9563 = vst [vmem:[#allocation129_spill] sm:$0xff] %v6976_v40  ;;  %9564 = vst [vmem:[#allocation130_spill] sm:$0xff] %v6979_v23  ;;  %v6982_v30 = vld [vmem:[#allocation10 + $0x328] sm:$0xff]  ;;  %v6985_v33 = vld [vmem:[#allocation10 + $0x338] sm:$0xff] }
 0x51f   :  { %2362 = vmatprep.subr.mxu0 %v6970_v31  ;;  %2433 = vmatprep.subr.mxu1 %v6973_v32  ;;  %9565 = vst [vmem:[#allocation131_spill] sm:$0xff] %v6982_v30  ;;  %9566 = vst [vmem:[#allocation132_spill] sm:$0xff] %v6985_v33  ;;  %v6988_v31 = vld [vmem:[#allocation10 + $0x320] sm:$0xff]  ;;  %v6991_v32 = vld [vmem:[#allocation10 + $0x330] sm:$0xff] }
 0x520   :  { %2363 = vmatpush2.msra.mxu0 %v6976_v40  ;;  %2434 = vmatpush2.msra.mxu1 %v6979_v23  ;;  %9567 = vst [vmem:[#allocation133_spill] sm:$0xff] %v6988_v31  ;;  %9568 = vst [vmem:[#allocation134_spill] sm:$0xff] %v6991_v32  ;;  %v6994_v40 = vld [vmem:[#allocation10 + $0x308] sm:$0xff]  ;;  %v6997_v23 = vld [vmem:[#allocation10 + $0x318] sm:$0xff] }
 0x521   :  { %2364 = vmatprep.subr.mxu0 %v6982_v30  ;;  %2435 = vmatprep.subr.mxu1 %v6985_v33  ;;  %9569 = vst [vmem:[#allocation135_spill] sm:$0xff] %v6994_v40  ;;  %9570 = vst [vmem:[#allocation136_spill] sm:$0xff] %v6997_v23  ;;  %v7000_v30 = vld [vmem:[#allocation10 + $0x300] sm:$0xff]  ;;  %v7003_v33 = vld [vmem:[#allocation10 + $0x310] sm:$0xff] }
 0x522   :  { %2365 = vmatpush2.msra.mxu0 %v6988_v31  ;;  %2436 = vmatpush2.msra.mxu1 %v6991_v32  ;;  %9571 = vst [vmem:[#allocation137_spill] sm:$0xff] %v7000_v30  ;;  %9572 = vst [vmem:[#allocation138_spill] sm:$0xff] %v7003_v33  ;;  %v7006_v31 = vld [vmem:[#allocation10 + $0x2e8] sm:$0xff]  ;;  %v7009_v32 = vld [vmem:[#allocation10 + $0x2f8] sm:$0xff] }
 0x523   :  { %2366 = vmatprep.subr.mxu0 %v6994_v40  ;;  %2437 = vmatprep.subr.mxu1 %v6997_v23  ;;  %9573 = vst [vmem:[#allocation139_spill] sm:$0xff] %v7006_v31  ;;  %9574 = vst [vmem:[#allocation140_spill] sm:$0xff] %v7009_v32  ;;  %v7012_v40 = vld [vmem:[#allocation10 + $0x2e0] sm:$0xff]  ;;  %v7015_v23 = vld [vmem:[#allocation10 + $0x2f0] sm:$0xff] }
 0x524   :  { %2367 = vmatpush2.msra.mxu0 %v7000_v30  ;;  %2438 = vmatpush2.msra.mxu1 %v7003_v33  ;;  %9575 = vst [vmem:[#allocation141_spill] sm:$0xff] %v7012_v40  ;;  %9576 = vst [vmem:[#allocation142_spill] sm:$0xff] %v7015_v23  ;;  %v7018_v30 = vld [vmem:[#allocation10 + $0x2c8] sm:$0xff]  ;;  %v7021_v33 = vld [vmem:[#allocation10 + $0x2d8] sm:$0xff] }
 0x525   :  { %2368 = vmatprep.subr.mxu0 %v7006_v31  ;;  %2439 = vmatprep.subr.mxu1 %v7009_v32  ;;  %9577 = vst [vmem:[#allocation143_spill] sm:$0xff] %v7018_v30  ;;  %9578 = vst [vmem:[#allocation144_spill] sm:$0xff] %v7021_v33  ;;  %v7024_v31 = vld [vmem:[#allocation10 + $0x2c0] sm:$0xff]  ;;  %v7027_v32 = vld [vmem:[#allocation10 + $0x2d0] sm:$0xff] }
 0x526   :  { %2369 = vmatpush2.msra.mxu0 %v7012_v40  ;;  %2440 = vmatpush2.msra.mxu1 %v7015_v23  ;;  %9579 = vst [vmem:[#allocation145_spill] sm:$0xff] %v7024_v31  ;;  %9580 = vst [vmem:[#allocation146_spill] sm:$0xff] %v7027_v32  ;;  %v7030_v40 = vld [vmem:[#allocation10 + $0x2a8] sm:$0xff]  ;;  %v7033_v23 = vld [vmem:[#allocation10 + $0x2b8] sm:$0xff] }
 0x527   :  { %2370 = vmatprep.subr.mxu0 %v7018_v30  ;;  %2441 = vmatprep.subr.mxu1 %v7021_v33  ;;  %9581 = vst [vmem:[#allocation147_spill] sm:$0xff] %v7030_v40  ;;  %9582 = vst [vmem:[#allocation148_spill] sm:$0xff] %v7033_v23  ;;  %v7036_v30 = vld [vmem:[#allocation10 + $0x2a0] sm:$0xff]  ;;  %v7039_v33 = vld [vmem:[#allocation10 + $0x2b0] sm:$0xff] }
 0x528   :  { %2371 = vmatpush2.msra.mxu0 %v7024_v31  ;;  %2442 = vmatpush2.msra.mxu1 %v7027_v32  ;;  %9583 = vst [vmem:[#allocation149_spill] sm:$0xff] %v7036_v30  ;;  %9584 = vst [vmem:[#allocation150_spill] sm:$0xff] %v7039_v33  ;;  %v7042_v31 = vld [vmem:[#allocation10 + $0x288] sm:$0xff]  ;;  %v7045_v32 = vld [vmem:[#allocation10 + $0x298] sm:$0xff] }
 0x529   :  { %2372 = vmatprep.subr.mxu0 %v7030_v40  ;;  %2443 = vmatprep.subr.mxu1 %v7033_v23  ;;  %9585 = vst [vmem:[#allocation151_spill] sm:$0xff] %v7042_v31  ;;  %9586 = vst [vmem:[#allocation152_spill] sm:$0xff] %v7045_v32  ;;  %v7048_v40 = vld [vmem:[#allocation10 + $0x280] sm:$0xff]  ;;  %v7051_v23 = vld [vmem:[#allocation10 + $0x290] sm:$0xff] }
 0x52a   :  { %2373 = vmatpush2.msra.mxu0 %v7036_v30  ;;  %2444 = vmatpush2.msra.mxu1 %v7039_v33  ;;  %9587 = vst [vmem:[#allocation153_spill] sm:$0xff] %v7048_v40  ;;  %9588 = vst [vmem:[#allocation154_spill] sm:$0xff] %v7051_v23  ;;  %v7054_v30 = vld [vmem:[#allocation10 + $0x268] sm:$0xff]  ;;  %v7057_v33 = vld [vmem:[#allocation10 + $0x278] sm:$0xff] }
 0x52b   :  { %2374 = vmatprep.subr.mxu0 %v7042_v31  ;;  %2445 = vmatprep.subr.mxu1 %v7045_v32  ;;  %9589 = vst [vmem:[#allocation155_spill] sm:$0xff] %v7054_v30  ;;  %9590 = vst [vmem:[#allocation156_spill] sm:$0xff] %v7057_v33  ;;  %v7060_v31 = vld [vmem:[#allocation10 + $0x260] sm:$0xff]  ;;  %v7063_v32 = vld [vmem:[#allocation10 + $0x270] sm:$0xff] }
 0x52c   :  { %2375 = vmatpush2.msra.mxu0 %v7048_v40  ;;  %2446 = vmatpush2.msra.mxu1 %v7051_v23  ;;  %9591 = vst [vmem:[#allocation157_spill] sm:$0xff] %v7060_v31  ;;  %9592 = vst [vmem:[#allocation158_spill] sm:$0xff] %v7063_v32  ;;  %v7066_v40 = vld [vmem:[#allocation10 + $0x248] sm:$0xff]  ;;  %v7069_v23 = vld [vmem:[#allocation10 + $0x258] sm:$0xff] }
 0x52d   :  { %2376 = vmatprep.subr.mxu0 %v7054_v30  ;;  %2447 = vmatprep.subr.mxu1 %v7057_v33  ;;  %9593 = vst [vmem:[#allocation159_spill] sm:$0xff] %v7066_v40  ;;  %9594 = vst [vmem:[#allocation160_spill] sm:$0xff] %v7069_v23  ;;  %v7072_v30 = vld [vmem:[#allocation10 + $0x240] sm:$0xff]  ;;  %v7075_v33 = vld [vmem:[#allocation10 + $0x250] sm:$0xff] }
 0x52e   :  { %2377 = vmatpush2.msra.mxu0 %v7060_v31  ;;  %2448 = vmatpush2.msra.mxu1 %v7063_v32  ;;  %9595 = vst [vmem:[#allocation161_spill] sm:$0xff] %v7072_v30  ;;  %9596 = vst [vmem:[#allocation162_spill] sm:$0xff] %v7075_v33  ;;  %v7078_v31 = vld [vmem:[#allocation10 + $0x228] sm:$0xff]  ;;  %v7081_v32 = vld [vmem:[#allocation10 + $0x238] sm:$0xff] }
 0x52f   :  { %2378 = vmatprep.subr.mxu0 %v7066_v40  ;;  %2449 = vmatprep.subr.mxu1 %v7069_v23  ;;  %9597 = vst [vmem:[#allocation163_spill] sm:$0xff] %v7078_v31  ;;  %9598 = vst [vmem:[#allocation164_spill] sm:$0xff] %v7081_v32  ;;  %v7084_v40 = vld [vmem:[#allocation10 + $0x220] sm:$0xff]  ;;  %v7087_v23 = vld [vmem:[#allocation10 + $0x230] sm:$0xff] }
 0x530   :  { %2379 = vmatpush2.msra.mxu0 %v7072_v30  ;;  %2450 = vmatpush2.msra.mxu1 %v7075_v33  ;;  %9599 = vst [vmem:[#allocation165_spill] sm:$0xff] %v7084_v40  ;;  %9600 = vst [vmem:[#allocation170_spill] sm:$0xff] %v7087_v23  ;;  %v7090_v30 = vld [vmem:[#allocation10 + $0x208] sm:$0xff]  ;;  %v7093_v33 = vld [vmem:[#allocation10 + $0x218] sm:$0xff] }
 0x531   :  { %2380 = vmatprep.subr.mxu0 %v7078_v31  ;;  %2451 = vmatprep.subr.mxu1 %v7081_v32  ;;  %9601 = vst [vmem:[#allocation171_spill] sm:$0xff] %v7090_v30  ;;  %9602 = vst [vmem:[#allocation172_spill] sm:$0xff] %v7093_v33  ;;  %v7096_v31 = vld [vmem:[#allocation10 + $0x200] sm:$0xff]  ;;  %v7099_v32 = vld [vmem:[#allocation10 + $0x210] sm:$0xff] }
 0x532   :  { %2381 = vmatpush2.msra.mxu0 %v7084_v40  ;;  %2452 = vmatpush2.msra.mxu1 %v7087_v23  ;;  %9603 = vst [vmem:[#allocation173_spill] sm:$0xff] %v7096_v31  ;;  %9604 = vst [vmem:[#allocation174_spill] sm:$0xff] %v7099_v32 }
 0x533   :  { %2382 = vmatprep.subr.mxu0 %v7090_v30  ;;  %2453 = vmatprep.subr.mxu1 %v7093_v33 }
 0x534   :  { %2383 = vmatpush2.msra.mxu0 %v7096_v31  ;;  %2454 = vmatpush2.msra.mxu1 %v7099_v32 }
 0x535   :  { %2490 = vmatprep.subr.mxu0 %v6494_v25  ;;  %2561 = vmatprep.subr.mxu1 %v6497_v38 }
 0x593   :  { %v2020_v23 = vpop.f32.mrf.mxu0  ;;  %v2091_v33 = vpop.f32.mrf.mxu1 }
 0x594   :  { %v2021_v40 = vadd.f32 %v2020_v23, %v9450_v1  ;;  %v2092_v25 = vadd.f32 %v2091_v33, %v5675_v41 }
 0x595   :  { %v2022_v30 = vpop.f32.mrf.mxu0  ;;  %v2093_v31 = vpop.f32.mrf.mxu1 }
 0x596   :  { %v3747_v4 = vmul.f32 -1.442695, %v2021_v40  ;;  %v2023_v24 = vadd.f32 %v2022_v30, %v9451_v8  ;;  %v2094_v26 = vadd.f32 %v2093_v31, %v9452_v37 }
 0x598   :  { %3899 = vpow2.f32 %v3747_v4  ;;  %v3748_v19 = vmul.f32 -1.442695, %v2023_v24  ;;  %v3749_v35 = vmul.f32 -1.442695, %v2094_v26 }
 0x59a   :  { %3901 = vpow2.f32 %v3748_v19 }
 0x59b   :  { %3903 = vpow2.f32 %v3749_v35 }
 0x5a5   :  { %v3900_v32 = vpop.eup %3899 }
 0x5a6   :  { %v2099_v22 = vadd.f32 1.0, %v3900_v32 }
 0x5a7   :  { %v3902_v38 = vpop.eup %3901 }
 0x5a8   :  { %3905 = vrcp.f32 %v2099_v22  ;;  %v2105_v23 = vadd.f32 1.0, %v3902_v38  ;;  %v3904_v40 = vpop.eup %3903  ;;  %v9605_v38 = vld [vmem:[#allocation166_spill] sm:$0xff] }
 0x5a9   :  { %3907 = vtanh.f32 %v2092_v25  ;;  %v2112_v31 = vadd.f32 1.0, %v3904_v40 }
 0x5aa   :  { %3909 = vrcp.f32 %v2105_v23  ;;  %v9606_v23 = vld [vmem:[#allocation168_spill] sm:$0xff] }
 0x5ab   :  { %3911 = vrcp.f32 %v2112_v31  ;;  %v9607_v41 = vcombine.low %v9605_v38, %v9606_v23 }
 0x5b4   :  { %v2190_v30 = vpop.f32.mrf.mxu0  ;;  %v2261_v4 = vpop.f32.mrf.mxu1 }
 0x5b5   :  { %v3906_v8 = vpop.eup %3905 }
 0x5b6   :  { %v3908_v24 = vpop.eup %3907  ;;  %v2192_v19 = vpop.f32.mrf.mxu0 }
 0x5b7   :  { %v2263_v1 = vpop.f32.mrf.mxu1  ;;  %v3910_v21 = vpop.eup %3909  ;;  %v2270_v26 = vcombine.low %v2190_v30, %v2192_v19  ;;  %v2116_v18 = vmul.f32 %v3908_v24, %v3906_v8 }
 0x5b8   :  { %v2271_v37 = vcombine.low %v2261_v4, %v2263_v1  ;;  %v2115_v32 = vmul.f32 %v3910_v21, %v6507_v57  ;;  %v3912_v8 = vpop.eup %3911 }
 0x5b9   :  { %v2278_v35 = vrot.slane %v2270_v26, %v4795_v28 }
 0x5ba   :  { %v2285_v22 = vrot.slane %v2271_v37, %v4795_v28  ;;  %v7111_v33 = vadd.f32 %v2116_v18, %v2115_v32 }
 0x5bc   :  { %v2286_v25 = vcombine.low %v2278_v35, %v2285_v22  ;;  %3913 = vtanh.f32 %v7111_v33 }
 0x5be   :  { %v2288_v7 = vadd.f32 %v2286_v25, %v9607_v41 }
 0x5c0   :  { %v3750_v40 = vmul.f32 -1.442695, %v2288_v7  ;;  %v2296_v30 = vrot.slane %v2288_v7, 2  ;;  %v2307_v57 = vrot.slane %v2288_v7, 6  ;;  %v2304_v24 = vrot.slane %v2288_v7, 4 }
 0x5c2   :  { %3915 = vpow2.f32 %v3750_v40  ;;  %v3751_v1 = vmul.f32 -1.442695, %v2296_v30  ;;  %v3752_v37 = vmul.f32 -1.442695, %v2307_v57 }
 0x5c4   :  { %3917 = vpow2.f32 %v3751_v1 }
 0x5c5   :  { %3919 = vpow2.f32 %v3752_v37 }
 0x5c9   :  { %v3914_v21 = vpop.eup %3913 }
 0x5ca   :  { %v2119_v4 = vmul.f32 %v3914_v21, %v3912_v8 }
 0x5cc   :  { %2121 = vst [vmem:[#allocation3 + $0x6] sm:$0x3] %v2119_v4  ;;  %2384 = vmatprep.mubr.f32.mxu0 %v2119_v4  ;;  %2455 = vmatprep.mubr.f32.mxu1 %v2119_v4 }
 0x5cf   :  { %v3916_v18 = vpop.eup %3915 }
 0x5d0   :  { %v2292_v19 = vadd.f32 1.0, %v3916_v18  ;;  %v9649_v18 = vld [vmem:[#allocation60_spill] sm:$0xff] }
 0x5d1   :  { %v3918_v31 = vpop.eup %3917 }
 0x5d2   :  { %3921 = vrcp.f32 %v2292_v19  ;;  %v2301_v41 = vadd.f32 1.0, %v3918_v31  ;;  %v3920_v22 = vpop.eup %3919  ;;  %v9651_v19 = vld [vmem:[#allocation62_spill] sm:$0xff]  ;;  %v9652_v31 = vld [vmem:[#allocation63_spill] sm:$0xff] }
 0x5d3   :  { %3923 = vtanh.f32 %v2304_v24  ;;  %v3589_v26 = vld [vmem:[#allocation3 + $0x6] sm:$0x3]  ;;  %v2312_v1 = vadd.f32 1.0, %v3920_v22  ;;  %v9650_v24 = vld [vmem:[#allocation61_spill] sm:$0xff]  ;;  %v9657_v22 = vld [vmem:[#allocation68_spill] sm:$0xff] }
 0x5d4   :  { %3925 = vrcp.f32 %v2301_v41  ;;  %v3604_v32 = vmul.f32 %v6516_v20, %v3589_v26  ;;  %v9608_v20 = vld [vmem:[#allocation20_spill] sm:$0xff]  ;;  %v9654_v26 = vld [vmem:[#allocation65_spill] sm:$0xff] }
 0x5d5   :  { %3927 = vrcp.f32 %v2312_v1  ;;  %v9653_v41 = vld [vmem:[#allocation64_spill] sm:$0xff] }
 0x5d6   :  { %v3619_v35 = vsel %vm3609_vm2, %v3604_v32, 0.0  ;;  %v9655_v32 = vld [vmem:[#allocation66_spill] sm:$0xff]  ;;  %v9661_v1 = vld [vmem:[#allocation72_spill] sm:$0xff] }
 0x5d7   :  { %3620 = vadd.xlane.f32.xlu1 %v3619_v35  ;;  %v9656_v35 = vld [vmem:[#allocation67_spill] sm:$0xff] }
 0x5df   :  { %v3922_v25 = vpop.eup %3921 }
 0x5e0   :  { %v3924_v40 = vpop.eup %3923 }
 0x5e1   :  { %v3926_v30 = vpop.eup %3925  ;;  %v2316_v8 = vmul.f32 %v3924_v40, %v3922_v25  ;;  %v9658_v25 = vld [vmem:[#allocation69_spill] sm:$0xff]  ;;  %v9659_v40 = vld [vmem:[#allocation70_spill] sm:$0xff] }
 0x5e2   :  { %v2315_v7 = vmul.f32 %v3926_v30, %v6521_v42  ;;  %v3928_v21 = vpop.eup %3927  ;;  %v9609_v42 = vld [vmem:[#allocation21_spill] sm:$0xff]  ;;  %v9660_v30 = vld [vmem:[#allocation71_spill] sm:$0xff] }
 0x5e4   :  { %v7120_v57 = vadd.f32 %v2316_v8, %v2315_v7  ;;  %v9662_v7 = vld [vmem:[#allocation73_spill] sm:$0xff]  ;;  %v9663_v8 = vld [vmem:[#allocation74_spill] sm:$0xff] }
 0x5e6   :  { %3929 = vtanh.f32 %v7120_v57 }
 0x5f3   :  { %v3930_v4 = vpop.eup %3929 }
 0x5f4   :  { %v7123_v37 = vmul.f32 %v3930_v4, %v3928_v21  ;;  %v9664_v21 = vld [vmem:[#allocation75_spill] sm:$0xff]  ;;  %v9665_v4 = vld [vmem:[#allocation76_spill] sm:$0xff] }
 0x5f6   :  { %2385 = vmatmul.mubr.f32.vlgmr.msra.gmra.mxu0 %v7123_v37  ;;  %2456 = vmatmul.mubr.f32.vlgmr.msra.gmra.mxu1 %v7123_v37 }
 0x5f7   :  { %2491 = vmatpush1.msra.mxu0 %v6528_v2  ;;  %2562 = vmatpush1.msra.mxu1 %v6531_v34  ;;  %v9610_v2 = vld [vmem:[#allocation22_spill] sm:$0xff]  ;;  %v9611_v34 = vld [vmem:[#allocation23_spill] sm:$0xff] }
 0x5f8   :  { %2492 = vmatprep.subr.mxu0 %v6534_v0  ;;  %2563 = vmatprep.subr.mxu1 %v6537_v14  ;;  %v9612_v0 = vld [vmem:[#allocation24_spill] sm:$0xff]  ;;  %v9613_v14 = vld [vmem:[#allocation25_spill] sm:$0xff] }
 0x5f9   :  { %2493 = vmatpush1.msra.mxu0 %v6540_v36  ;;  %2564 = vmatpush1.msra.mxu1 %v6543_v27  ;;  %v9614_v36 = vld [vmem:[#allocation26_spill] sm:$0xff]  ;;  %v9615_v27 = vld [vmem:[#allocation27_spill] sm:$0xff] }
 0x5fa   :  { %2494 = vmatprep.subr.mxu0 %v6546_v60  ;;  %2565 = vmatprep.subr.mxu1 %v6549_v9  ;;  %v9616_v60 = vld [vmem:[#allocation28_spill] sm:$0xff]  ;;  %v9617_v9 = vld [vmem:[#allocation29_spill] sm:$0xff] }
 0x5fb   :  { %2495 = vmatpush1.msra.mxu0 %v6552_v10  ;;  %2566 = vmatpush1.msra.mxu1 %v6555_v39  ;;  %v9618_v10 = vld [vmem:[#allocation30_spill] sm:$0xff]  ;;  %v9619_v39 = vld [vmem:[#allocation31_spill] sm:$0xff] }
 0x5fc   :  { %2496 = vmatprep.subr.mxu0 %v6558_v44  ;;  %2567 = vmatprep.subr.mxu1 %v6561_v45  ;;  %v9620_v44 = vld [vmem:[#allocation32_spill] sm:$0xff]  ;;  %v9621_v45 = vld [vmem:[#allocation33_spill] sm:$0xff] }
 0x5fd   :  { %2497 = vmatpush1.msra.mxu0 %v6564_v29  ;;  %2568 = vmatpush1.msra.mxu1 %v6567_v46  ;;  %v9622_v29 = vld [vmem:[#allocation34_spill] sm:$0xff]  ;;  %v9623_v46 = vld [vmem:[#allocation35_spill] sm:$0xff] }
 0x5fe   :  { %2498 = vmatprep.subr.mxu0 %v6570_v47  ;;  %2569 = vmatprep.subr.mxu1 %v6573_v48  ;;  %v9624_v47 = vld [vmem:[#allocation36_spill] sm:$0xff]  ;;  %v9625_v48 = vld [vmem:[#allocation37_spill] sm:$0xff] }
 0x5ff   :  { %2499 = vmatpush1.msra.mxu0 %v6576_v49  ;;  %2570 = vmatpush1.msra.mxu1 %v6579_v50  ;;  %v9626_v49 = vld [vmem:[#allocation38_spill] sm:$0xff]  ;;  %v9627_v50 = vld [vmem:[#allocation39_spill] sm:$0xff] }
 0x600   :  { %2500 = vmatprep.subr.mxu0 %v6582_v51  ;;  %2571 = vmatprep.subr.mxu1 %v6585_v52  ;;  %v9628_v51 = vld [vmem:[#allocation40_spill] sm:$0xff]  ;;  %v9629_v52 = vld [vmem:[#allocation41_spill] sm:$0xff] }
 0x601   :  { %2501 = vmatpush1.msra.mxu0 %v6588_v53  ;;  %2572 = vmatpush1.msra.mxu1 %v6591_v54  ;;  %v9630_v53 = vmov 0.0   ;;  %v9631_v54 = vld [vmem:[#allocation42_spill] sm:$0xff] }
 0x602   :  { %2502 = vmatprep.subr.mxu0 %v6594_v55  ;;  %2573 = vmatprep.subr.mxu1 %v6597_v56  ;;  %v9632_v55 = vld [vmem:[#allocation43_spill] sm:$0xff]  ;;  %v9633_v56 = vld [vmem:[#allocation44_spill] sm:$0xff] }
 0x603   :  { %2503 = vmatpush1.msra.mxu0 %v6600_v58  ;;  %2574 = vmatpush1.msra.mxu1 %v6603_v59  ;;  %v9634_v58 = vld [vmem:[#allocation45_spill] sm:$0xff]  ;;  %v9635_v59 = vld [vmem:[#allocation46_spill] sm:$0xff] }
 0x604   :  { %2504 = vmatprep.subr.mxu0 %v6606_v61  ;;  %2575 = vmatprep.subr.mxu1 %v6609_v62  ;;  %v9636_v61 = vld [vmem:[#allocation47_spill] sm:$0xff]  ;;  %v9637_v62 = vld [vmem:[#allocation48_spill] sm:$0xff] }
 0x605   :  { %2505 = vmatpush1.msra.mxu0 %v6612_v63  ;;  %2576 = vmatpush1.msra.mxu1 %v6615_v3  ;;  %v9638_v63 = vld [vmem:[#allocation49_spill] sm:$0xff]  ;;  %v9639_v3 = vld [vmem:[#allocation50_spill] sm:$0xff] }
 0x606   :  { %2506 = vmatprep.subr.mxu0 %v6618_v43  ;;  %2577 = vmatprep.subr.mxu1 %v6621_v5  ;;  %v9640_v43 = vld [vmem:[#allocation51_spill] sm:$0xff]  ;;  %v9641_v5 = vld [vmem:[#allocation52_spill] sm:$0xff] }
 0x607   :  { %2507 = vmatpush1.msra.mxu0 %v6624_v6  ;;  %2578 = vmatpush1.msra.mxu1 %v6627_v11  ;;  %v9642_v6 = vld [vmem:[#allocation53_spill] sm:$0xff]  ;;  %v9643_v11 = vld [vmem:[#allocation54_spill] sm:$0xff] }
 0x608   :  { %2508 = vmatprep.subr.mxu0 %v6630_v12  ;;  %2579 = vmatprep.subr.mxu1 %v6633_v13  ;;  %v9644_v12 = vld [vmem:[#allocation55_spill] sm:$0xff]  ;;  %v9645_v13 = vld [vmem:[#allocation56_spill] sm:$0xff] }
 0x609   :  { %2509 = vmatpush1.msra.mxu0 %v6636_v15  ;;  %2580 = vmatpush1.msra.mxu1 %v6639_v16  ;;  %v9646_v15 = vld [vmem:[#allocation57_spill] sm:$0xff]  ;;  %v9647_v16 = vld [vmem:[#allocation58_spill] sm:$0xff] }
 0x60a   :  { %2510 = vmatprep.subr.mxu0 %v6642_v17  ;;  %2581 = vmatprep.subr.mxu1 %v9608_v20  ;;  %v9648_v17 = vld [vmem:[#allocation59_spill] sm:$0xff]  ;;  %v9667_v20 = vld [vmem:[#allocation78_spill] sm:$0xff] }
 0x60b   :  { %2511 = vmatpush1.msra.mxu0 %v9609_v42  ;;  %2582 = vmatpush1.msra.mxu1 %v9610_v2  ;;  %v9668_v42 = vld [vmem:[#allocation79_spill] sm:$0xff]  ;;  %v9669_v2 = vld [vmem:[#allocation80_spill] sm:$0xff] }
 0x60c   :  { %2512 = vmatprep.subr.mxu0 %v9611_v34  ;;  %2583 = vmatprep.subr.mxu1 %v9612_v0  ;;  %v9670_v34 = vld [vmem:[#allocation81_spill] sm:$0xff]  ;;  %v9671_v0 = vld [vmem:[#allocation82_spill] sm:$0xff] }
 0x60d   :  { %2513 = vmatpush1.msra.mxu0 %v9613_v14  ;;  %2584 = vmatpush1.msra.mxu1 %v9614_v36  ;;  %v9672_v14 = vld [vmem:[#allocation83_spill] sm:$0xff]  ;;  %v9673_v36 = vld [vmem:[#allocation84_spill] sm:$0xff] }
 0x60e   :  { %2514 = vmatprep.subr.mxu0 %v9615_v27  ;;  %2585 = vmatprep.subr.mxu1 %v9616_v60  ;;  %v9674_v27 = vld [vmem:[#allocation85_spill] sm:$0xff]  ;;  %v9675_v60 = vld [vmem:[#allocation86_spill] sm:$0xff] }
 0x60f   :  { %2515 = vmatpush1.msra.mxu0 %v9617_v9  ;;  %2586 = vmatpush1.msra.mxu1 %v9618_v10  ;;  %v9676_v9 = vld [vmem:[#allocation87_spill] sm:$0xff]  ;;  %v9677_v10 = vld [vmem:[#allocation88_spill] sm:$0xff] }
 0x610   :  { %2516 = vmatprep.subr.mxu0 %v9619_v39  ;;  %2587 = vmatprep.subr.mxu1 %v9620_v44  ;;  %v9678_v39 = vld [vmem:[#allocation89_spill] sm:$0xff]  ;;  %v9679_v44 = vld [vmem:[#allocation90_spill] sm:$0xff] }
 0x611   :  { %2517 = vmatpush1.msra.mxu0 %v9621_v45  ;;  %2588 = vmatpush1.msra.mxu1 %v9622_v29  ;;  %v9680_v45 = vld [vmem:[#allocation91_spill] sm:$0xff]  ;;  %v9681_v29 = vld [vmem:[#allocation92_spill] sm:$0xff] }
 0x612   :  { %2518 = vmatprep.subr.mxu0 %v9623_v46  ;;  %2589 = vmatprep.subr.mxu1 %v9624_v47  ;;  %v9682_v46 = vld [vmem:[#allocation93_spill] sm:$0xff]  ;;  %v9683_v47 = vld [vmem:[#allocation94_spill] sm:$0xff] }
 0x613   :  { %2519 = vmatpush1.msra.mxu0 %v9625_v48  ;;  %2590 = vmatpush1.msra.mxu1 %v9626_v49  ;;  %v9684_v48 = vld [vmem:[#allocation95_spill] sm:$0xff]  ;;  %v9685_v49 = vld [vmem:[#allocation96_spill] sm:$0xff] }
 0x614   :  { %2520 = vmatprep.subr.mxu0 %v9627_v50  ;;  %2591 = vmatprep.subr.mxu1 %v9628_v51  ;;  %v9686_v50 = vld [vmem:[#allocation97_spill] sm:$0xff]  ;;  %v9687_v51 = vld [vmem:[#allocation98_spill] sm:$0xff] }
 0x615   :  { %2521 = vmatpush1.msra.mxu0 %v9629_v52  ;;  %2554 = vmatprep.mubr.f32.mxu0 %v9630_v53  ;;  %v9688_v52 = vld [vmem:[#allocation99_spill] sm:$0xff] }
 0x616   :  { %2592 = vmatpush1.msra.mxu1 %v9631_v54  ;;  %2625 = vmatprep.mubr.f32.mxu1 %v9630_v53  ;;  %v9689_v54 = vld [vmem:[#allocation100_spill] sm:$0xff] }
 0x617   :  { %2555 = vmatmul.mubr.f32.vlgmr.msra.gmra.mxu0 %v7123_v37  ;;  %2626 = vmatmul.mubr.f32.vlgmr.msra.gmra.mxu1 %v7123_v37  ;;  %v9666_v37 = vld [vmem:[#allocation77_spill] sm:$0xff] }
 0x618   :  { %2686 = vmatprep.subr.mxu0 %v9632_v55  ;;  %2757 = vmatprep.subr.mxu1 %v9633_v56  ;;  %v9690_v55 = vld [vmem:[#allocation101_spill] sm:$0xff]  ;;  %v9691_v56 = vld [vmem:[#allocation102_spill] sm:$0xff] }
 0x619   :  { %2687 = vmatpush1.msra.mxu0 %v9634_v58  ;;  %2758 = vmatpush1.msra.mxu1 %v9635_v59  ;;  %v9692_v58 = vld [vmem:[#allocation103_spill] sm:$0xff]  ;;  %v9693_v59 = vld [vmem:[#allocation104_spill] sm:$0xff] }
 0x61a   :  { %2688 = vmatprep.subr.mxu0 %v9636_v61  ;;  %2759 = vmatprep.subr.mxu1 %v9637_v62  ;;  %v9694_v61 = vld [vmem:[#allocation105_spill] sm:$0xff]  ;;  %v9695_v62 = vld [vmem:[#allocation106_spill] sm:$0xff] }
 0x61b   :  { %2689 = vmatpush1.msra.mxu0 %v9638_v63  ;;  %2760 = vmatpush1.msra.mxu1 %v9639_v3  ;;  %v9696_v63 = vld [vmem:[#allocation107_spill] sm:$0xff]  ;;  %v9697_v3 = vld [vmem:[#allocation108_spill] sm:$0xff] }
 0x61c   :  { %2690 = vmatprep.subr.mxu0 %v9640_v43  ;;  %2761 = vmatprep.subr.mxu1 %v9641_v5  ;;  %v9698_v43 = vld [vmem:[#allocation109_spill] sm:$0xff]  ;;  %v9699_v5 = vld [vmem:[#allocation110_spill] sm:$0xff] }
 0x61d   :  { %2691 = vmatpush1.msra.mxu0 %v9642_v6  ;;  %2762 = vmatpush1.msra.mxu1 %v9643_v11  ;;  %v9700_v6 = vld [vmem:[#allocation111_spill] sm:$0xff]  ;;  %v9701_v11 = vld [vmem:[#allocation112_spill] sm:$0xff] }
 0x61e   :  { %2692 = vmatprep.subr.mxu0 %v9644_v12  ;;  %2763 = vmatprep.subr.mxu1 %v9645_v13  ;;  %v9702_v12 = vld [vmem:[#allocation113_spill] sm:$0xff]  ;;  %v9703_v13 = vld [vmem:[#allocation114_spill] sm:$0xff] }
 0x61f   :  { %2693 = vmatpush1.msra.mxu0 %v9646_v15  ;;  %2764 = vmatpush1.msra.mxu1 %v9647_v16  ;;  %v9704_v15 = vld [vmem:[#allocation115_spill] sm:$0xff]  ;;  %v9705_v16 = vld [vmem:[#allocation116_spill] sm:$0xff] }
 0x620   :  { %2694 = vmatprep.subr.mxu0 %v9648_v17  ;;  %2765 = vmatprep.subr.mxu1 %v9649_v18  ;;  %v9706_v17 = vld [vmem:[#allocation117_spill] sm:$0xff]  ;;  %v9707_v18 = vld [vmem:[#allocation118_spill] sm:$0xff] }
 0x621   :  { %2695 = vmatpush1.msra.mxu0 %v9650_v24  ;;  %2766 = vmatpush1.msra.mxu1 %v9651_v19  ;;  %v9708_v24 = vld [vmem:[#allocation119_spill] sm:$0xff]  ;;  %v9709_v19 = vld [vmem:[#allocation120_spill] sm:$0xff] }
 0x622   :  { %2696 = vmatprep.subr.mxu0 %v9652_v31  ;;  %2767 = vmatprep.subr.mxu1 %v9653_v41  ;;  %v9710_v31 = vld [vmem:[#allocation121_spill] sm:$0xff]  ;;  %v9711_v41 = vld [vmem:[#allocation122_spill] sm:$0xff] }
 0x623   :  { %2697 = vmatpush1.msra.mxu0 %v9654_v26  ;;  %2768 = vmatpush1.msra.mxu1 %v9655_v32  ;;  %v9712_v26 = vld [vmem:[#allocation123_spill] sm:$0xff]  ;;  %v9713_v32 = vld [vmem:[#allocation124_spill] sm:$0xff] }
 0x624   :  { %2698 = vmatprep.subr.mxu0 %v9656_v35  ;;  %2769 = vmatprep.subr.mxu1 %v9657_v22  ;;  %v9714_v35 = vld [vmem:[#allocation125_spill] sm:$0xff]  ;;  %v9715_v22 = vld [vmem:[#allocation126_spill] sm:$0xff] }
 0x625   :  { %2699 = vmatpush1.msra.mxu0 %v9658_v25  ;;  %2770 = vmatpush1.msra.mxu1 %v9659_v40  ;;  %v9716_v25 = vld [vmem:[#allocation127_spill] sm:$0xff]  ;;  %v9717_v40 = vld [vmem:[#allocation128_spill] sm:$0xff] }
 0x626   :  { %2700 = vmatprep.subr.mxu0 %v9660_v30  ;;  %2771 = vmatprep.subr.mxu1 %v9661_v1  ;;  %v9718_v30 = vld [vmem:[#allocation129_spill] sm:$0xff]  ;;  %v9719_v1 = vld [vmem:[#allocation130_spill] sm:$0xff] }
 0x627   :  { %2701 = vmatpush1.msra.mxu0 %v9662_v7  ;;  %2772 = vmatpush1.msra.mxu1 %v9663_v8  ;;  %v9720_v7 = vld [vmem:[#allocation131_spill] sm:$0xff]  ;;  %v9721_v8 = vld [vmem:[#allocation132_spill] sm:$0xff] }
 0x628   :  { %2702 = vmatprep.subr.mxu0 %v9664_v21  ;;  %2773 = vmatprep.subr.mxu1 %v9665_v4  ;;  %v9722_v21 = vld [vmem:[#allocation133_spill] sm:$0xff]  ;;  %v9723_v4 = vld [vmem:[#allocation134_spill] sm:$0xff] }
 0x629   :  { %2703 = vmatpush1.msra.mxu0 %v9666_v37  ;;  %2774 = vmatpush1.msra.mxu1 %v9667_v20  ;;  %v9724_v37 = vld [vmem:[#allocation135_spill] sm:$0xff]  ;;  %v9725_v20 = vld [vmem:[#allocation136_spill] sm:$0xff] }
 0x62a   :  { %2704 = vmatprep.subr.mxu0 %v9668_v42  ;;  %2775 = vmatprep.subr.mxu1 %v9669_v2  ;;  %v9726_v42 = vld [vmem:[#allocation137_spill] sm:$0xff]  ;;  %v9727_v2 = vld [vmem:[#allocation138_spill] sm:$0xff] }
 0x62b   :  { %2705 = vmatpush1.msra.mxu0 %v9670_v34  ;;  %2776 = vmatpush1.msra.mxu1 %v9671_v0  ;;  %v9728_v34 = vld [vmem:[#allocation139_spill] sm:$0xff]  ;;  %v9729_v0 = vld [vmem:[#allocation140_spill] sm:$0xff] }
 0x62c   :  { %2706 = vmatprep.subr.mxu0 %v9672_v14  ;;  %2777 = vmatprep.subr.mxu1 %v9673_v36  ;;  %v9730_v14 = vld [vmem:[#allocation141_spill] sm:$0xff]  ;;  %v9731_v36 = vld [vmem:[#allocation142_spill] sm:$0xff] }
 0x62d   :  { %2707 = vmatpush1.msra.mxu0 %v9674_v27  ;;  %2778 = vmatpush1.msra.mxu1 %v9675_v60  ;;  %v9732_v27 = vld [vmem:[#allocation143_spill] sm:$0xff]  ;;  %v9733_v60 = vld [vmem:[#allocation144_spill] sm:$0xff] }
 0x62e   :  { %2708 = vmatprep.subr.mxu0 %v9676_v9  ;;  %2779 = vmatprep.subr.mxu1 %v9677_v10  ;;  %v9734_v9 = vld [vmem:[#allocation145_spill] sm:$0xff]  ;;  %v9735_v10 = vld [vmem:[#allocation146_spill] sm:$0xff] }
 0x62f   :  { %2709 = vmatpush1.msra.mxu0 %v9678_v39  ;;  %2780 = vmatpush1.msra.mxu1 %v9679_v44  ;;  %v9736_v39 = vld [vmem:[#allocation147_spill] sm:$0xff]  ;;  %v9737_v44 = vld [vmem:[#allocation148_spill] sm:$0xff] }
 0x630   :  { %2710 = vmatprep.subr.mxu0 %v9680_v45  ;;  %2781 = vmatprep.subr.mxu1 %v9681_v29  ;;  %v9738_v45 = vld [vmem:[#allocation149_spill] sm:$0xff]  ;;  %v9739_v29 = vld [vmem:[#allocation150_spill] sm:$0xff] }
 0x631   :  { %2711 = vmatpush1.msra.mxu0 %v9682_v46  ;;  %2782 = vmatpush1.msra.mxu1 %v9683_v47  ;;  %v9740_v46 = vld [vmem:[#allocation151_spill] sm:$0xff]  ;;  %v9741_v47 = vld [vmem:[#allocation152_spill] sm:$0xff] }
 0x632   :  { %2712 = vmatprep.subr.mxu0 %v9684_v48  ;;  %2783 = vmatprep.subr.mxu1 %v9685_v49  ;;  %v9742_v48 = vld [vmem:[#allocation153_spill] sm:$0xff]  ;;  %v9743_v49 = vld [vmem:[#allocation154_spill] sm:$0xff] }
 0x633   :  { %2713 = vmatpush1.msra.mxu0 %v9686_v50  ;;  %2784 = vmatpush1.msra.mxu1 %v9687_v51  ;;  %v9744_v50 = vld [vmem:[#allocation155_spill] sm:$0xff]  ;;  %v9745_v51 = vld [vmem:[#allocation156_spill] sm:$0xff] }
 0x634   :  { %2714 = vmatprep.subr.mxu0 %v9688_v52  ;;  %2785 = vmatprep.subr.mxu1 %v9689_v54  ;;  %v9746_v52 = vld [vmem:[#allocation157_spill] sm:$0xff]  ;;  %v9747_v54 = vld [vmem:[#allocation158_spill] sm:$0xff] }
 0x635   :  { %2715 = vmatpush1.msra.mxu0 %v9690_v55  ;;  %2786 = vmatpush1.msra.mxu1 %v9691_v56  ;;  %v9748_v55 = vld [vmem:[#allocation159_spill] sm:$0xff]  ;;  %v9749_v56 = vld [vmem:[#allocation160_spill] sm:$0xff] }
 0x636   :  { %2716 = vmatprep.subr.mxu0 %v9692_v58  ;;  %2787 = vmatprep.subr.mxu1 %v9693_v59  ;;  %v9750_v58 = vld [vmem:[#allocation161_spill] sm:$0xff]  ;;  %v9751_v59 = vld [vmem:[#allocation162_spill] sm:$0xff] }
 0x637   :  { %2717 = vmatpush1.msra.mxu0 %v9694_v61  ;;  %2788 = vmatpush1.msra.mxu1 %v9695_v62  ;;  %v9752_v61 = vld [vmem:[#allocation163_spill] sm:$0xff]  ;;  %v9753_v62 = vld [vmem:[#allocation164_spill] sm:$0xff] }
 0x638   :  { %2718 = vmatprep.subr.mxu0 %v9696_v63  ;;  %2789 = vmatprep.subr.mxu1 %v9697_v3  ;;  %v9754_v63 = vld [vmem:[#allocation165_spill] sm:$0xff]  ;;  %v9755_v3 = vld [vmem:[#allocation170_spill] sm:$0xff] }
 0x639   :  { %2719 = vmatpush2.msra.mxu0 %v9698_v43  ;;  %2790 = vmatpush2.msra.mxu1 %v9699_v5  ;;  %v9756_v43 = vld [vmem:[#allocation171_spill] sm:$0xff]  ;;  %v9757_v5 = vld [vmem:[#allocation172_spill] sm:$0xff] }
 0x63a   :  { %2720 = vmatprep.subr.mxu0 %v9700_v6  ;;  %2791 = vmatprep.subr.mxu1 %v9701_v11  ;;  %v9758_v6 = vld [vmem:[#allocation173_spill] sm:$0xff]  ;;  %v9759_v11 = vld [vmem:[#allocation174_spill] sm:$0xff] }
 0x63b   :  { %2721 = vmatpush2.msra.mxu0 %v9702_v12  ;;  %2792 = vmatpush2.msra.mxu1 %v9703_v13  ;;  %v7321_v12 = vld [vmem:[#allocation9 + $0x1e8] sm:$0xff]  ;;  %v7324_v13 = vld [vmem:[#allocation9 + $0x1f8] sm:$0xff] }
 0x63c   :  { %2722 = vmatprep.subr.mxu0 %v9704_v15  ;;  %2793 = vmatprep.subr.mxu1 %v9705_v16  ;;  %v9760_v16 = vld [vmem:[#allocation16_spill] sm:$0xff] }
 0x63d   :  { %2723 = vmatpush2.msra.mxu0 %v9706_v17  ;;  %2794 = vmatpush2.msra.mxu1 %v9707_v18 }
 0x63e   :  { %2724 = vmatprep.subr.mxu0 %v9708_v24  ;;  %2795 = vmatprep.subr.mxu1 %v9709_v19  ;;  %v9761_v19 = vld [vmem:[#allocation17_spill] sm:$0xff] }
 0x63f   :  { %2725 = vmatpush2.msra.mxu0 %v9710_v31  ;;  %2796 = vmatpush2.msra.mxu1 %v9711_v41 }
 0x640   :  { %2726 = vmatprep.subr.mxu0 %v9712_v26  ;;  %2797 = vmatprep.subr.mxu1 %v9713_v32 }
 0x641   :  { %2727 = vmatpush2.msra.mxu0 %v9714_v35  ;;  %2798 = vmatpush2.msra.mxu1 %v9715_v22  ;;  %v9762_v35 = vld [vmem:[#allocation18_spill] sm:$0xff] }
 0x642   :  { %2728 = vmatprep.subr.mxu0 %v9716_v25  ;;  %2799 = vmatprep.subr.mxu1 %v9717_v40 }
 0x643   :  { %2729 = vmatpush2.msra.mxu0 %v9718_v30  ;;  %2800 = vmatpush2.msra.mxu1 %v9719_v1  ;;  %v9763_v30 = vld [vmem:[#allocation19_spill] sm:$0xff] }
 0x644   :  { %2730 = vmatprep.subr.mxu0 %v9720_v7  ;;  %2801 = vmatprep.subr.mxu1 %v9721_v8 }
 0x645   :  { %2731 = vmatpush2.msra.mxu0 %v9722_v21  ;;  %2802 = vmatpush2.msra.mxu1 %v9723_v4 }
 0x646   :  { %2732 = vmatprep.subr.mxu0 %v9724_v37  ;;  %2803 = vmatprep.subr.mxu1 %v9725_v20 }
 0x647   :  { %2733 = vmatpush2.msra.mxu0 %v9726_v42  ;;  %2804 = vmatpush2.msra.mxu1 %v9727_v2 }
 0x648   :  { %2734 = vmatprep.subr.mxu0 %v9728_v34  ;;  %2805 = vmatprep.subr.mxu1 %v9729_v0 }
 0x649   :  { %2735 = vmatpush2.msra.mxu0 %v9730_v14  ;;  %2806 = vmatpush2.msra.mxu1 %v9731_v36 }
 0x64a   :  { %2736 = vmatprep.subr.mxu0 %v9732_v27  ;;  %2807 = vmatprep.subr.mxu1 %v9733_v60 }
 0x64b   :  { %2737 = vmatpush2.msra.mxu0 %v9734_v9  ;;  %2808 = vmatpush2.msra.mxu1 %v9735_v10 }
 0x64c   :  { %2738 = vmatprep.subr.mxu0 %v9736_v39  ;;  %2809 = vmatprep.subr.mxu1 %v9737_v44 }
 0x64d   :  { %2739 = vmatpush2.msra.mxu0 %v9738_v45  ;;  %2810 = vmatpush2.msra.mxu1 %v9739_v29 }
 0x64e   :  { %2740 = vmatprep.subr.mxu0 %v9740_v46  ;;  %2811 = vmatprep.subr.mxu1 %v9741_v47  ;;  %v9764_v46 = vcombine.high %v9605_v38, %v9606_v23 }
 0x64f   :  { %2741 = vmatpush2.msra.mxu0 %v9742_v48  ;;  %2812 = vmatpush2.msra.mxu1 %v9743_v49 }
 0x650   :  { %2742 = vmatprep.subr.mxu0 %v9744_v50  ;;  %2813 = vmatprep.subr.mxu1 %v9745_v51 }
 0x651   :  { %2743 = vmatpush2.msra.mxu0 %v9746_v52  ;;  %2814 = vmatpush2.msra.mxu1 %v9747_v54 }
 0x652   :  { %2744 = vmatprep.subr.mxu0 %v9748_v55  ;;  %2815 = vmatprep.subr.mxu1 %v9749_v56 }
 0x653   :  { %2745 = vmatpush2.msra.mxu0 %v9750_v58  ;;  %2816 = vmatpush2.msra.mxu1 %v9751_v59 }
 0x654   :  { %2746 = vmatprep.subr.mxu0 %v9752_v61  ;;  %2817 = vmatprep.subr.mxu1 %v9753_v62  ;;  %v7343_v62 = vld [vmem:[%s8183_s6] ss:$0 sm:$0xff] }
 0x655   :  { %2747 = vmatpush2.msra.mxu0 %v9754_v63  ;;  %2818 = vmatpush2.msra.mxu1 %v9755_v3 }
 0x656   :  { %2748 = vmatprep.subr.mxu0 %v9756_v43  ;;  %2819 = vmatprep.subr.mxu1 %v9757_v5 }
 0x657   :  { %2749 = vmatpush2.msra.mxu0 %v9758_v6  ;;  %2820 = vmatpush2.msra.mxu1 %v9759_v11 }
 0x658   :  { %2856 = vmatprep.subr.mxu0 %v7321_v12  ;;  %2927 = vmatprep.subr.mxu1 %v7324_v13 }
 0x6b6   :  { %v2386_v15 = vpop.f32.mrf.mxu0  ;;  %v2457_v41 = vpop.f32.mrf.mxu1 }
 0x6b7   :  { %v2387_v17 = vadd.f32 %v2386_v15, %v9760_v16  ;;  %v2458_v1 = vadd.f32 %v2457_v41, %v9763_v30 }
 0x6b8   :  { %v2388_v18 = vpop.f32.mrf.mxu0  ;;  %v2459_v32 = vpop.f32.mrf.mxu1 }
 0x6b9   :  { %v3753_v24 = vmul.f32 -1.442695, %v2387_v17  ;;  %v2389_v31 = vadd.f32 %v2388_v18, %v9761_v19  ;;  %v2460_v22 = vadd.f32 %v2459_v32, %v9762_v35  ;;  %v7355_v32 = vld [vmem:[#allocation9 + $0x1e0] sm:$0xff] }
 0x6bb   :  { %3931 = vpow2.f32 %v3753_v24  ;;  %v3754_v26 = vmul.f32 -1.442695, %v2389_v31  ;;  %v3755_v25 = vmul.f32 -1.442695, %v2460_v22  ;;  %v7358_v22 = vld [vmem:[#allocation9 + $0x1f0] sm:$0xff] }
 0x6bd   :  { %3933 = vpow2.f32 %v3754_v26 }
 0x6be   :  { %3935 = vpow2.f32 %v3755_v25  ;;  %v7364_v25 = vld [vmem:[#allocation9 + $0x1d8] sm:$0xff] }
 0x6c8   :  { %v3932_v40 = vpop.eup %3931 }
 0x6c9   :  { %v2465_v7 = vadd.f32 1.0, %v3932_v40  ;;  %v7367_v40 = vld [vmem:[#allocation9 + $0x1c0] sm:$0xff] }
 0x6ca   :  { %v3934_v8 = vpop.eup %3933 }
 0x6cb   :  { %3937 = vrcp.f32 %v2465_v7  ;;  %v2471_v21 = vadd.f32 1.0, %v3934_v8  ;;  %v3936_v4 = vpop.eup %3935  ;;  %v7373_v7 = vld [vmem:[#allocation9 + $0x1a8] sm:$0xff]  ;;  %v7376_v8 = vld [vmem:[#allocation9 + $0x1b8] sm:$0xff] }
 0x6cc   :  { %3939 = vtanh.f32 %v2458_v1  ;;  %v2478_v36 = vadd.f32 1.0, %v3936_v4  ;;  %v7370_v1 = vld [vmem:[#allocation9 + $0x1d0] sm:$0xff] }
 0x6cd   :  { %3941 = vrcp.f32 %v2471_v21  ;;  %v7379_v21 = vld [vmem:[#allocation9 + $0x1a0] sm:$0xff]  ;;  %v7382_v4 = vld [vmem:[#allocation9 + $0x1b0] sm:$0xff] }
 0x6ce   :  { %3943 = vrcp.f32 %v2478_v36  ;;  %v7406_v36 = vld [vmem:[#allocation9 + $0x170] sm:$0xff] }
 0x6d7   :  { %v2556_v37 = vpop.f32.mrf.mxu0  ;;  %v2627_v20 = vpop.f32.mrf.mxu1 }
 0x6d8   :  { %v3938_v42 = vpop.eup %3937 }
 0x6d9   :  { %v3940_v2 = vpop.eup %3939  ;;  %v2558_v34 = vpop.f32.mrf.mxu0 }
 0x6da   :  { %v2629_v0 = vpop.f32.mrf.mxu1  ;;  %v3942_v14 = vpop.eup %3941  ;;  %v2636_v27 = vcombine.low %v2556_v37, %v2558_v34  ;;  %v2482_v9 = vmul.f32 %v3940_v2, %v3938_v42  ;;  %v7385_v37 = vld [vmem:[#allocation9 + $0x188] sm:$0xff]  ;;  %v7391_v42 = vld [vmem:[#allocation9 + $0x180] sm:$0xff]  ;;  %v7394_v2 = vld [vmem:[#allocation9 + $0x190] sm:$0xff] }
 0x6db   :  { %v2637_v60 = vcombine.low %v2627_v20, %v2629_v0  ;;  %v2481_v10 = vmul.f32 %v3942_v14, %v7111_v33  ;;  %v3944_v33 = vpop.eup %3943  ;;  %v7388_v20 = vld [vmem:[#allocation9 + $0x198] sm:$0xff]  ;;  %v7397_v34 = vld [vmem:[#allocation9 + $0x168] sm:$0xff]  ;;  %v7403_v14 = vld [vmem:[#allocation9 + $0x160] sm:$0xff] }
 0x6dc   :  { %v2644_v39 = vrot.slane %v2636_v27, %v4795_v28  ;;  %v7400_v0 = vld [vmem:[#allocation9 + $0x178] sm:$0xff]  ;;  %v7409_v27 = vld [vmem:[#allocation9 + $0x148] sm:$0xff] }
 0x6dd   :  { %v2651_v44 = vrot.slane %v2637_v60, %v4795_v28  ;;  %v7334_v45 = vadd.f32 %v2482_v9, %v2481_v10  ;;  %v7412_v60 = vld [vmem:[#allocation9 + $0x158] sm:$0xff]  ;;  %v7415_v9 = vld [vmem:[#allocation9 + $0x140] sm:$0xff]  ;;  %v7418_v10 = vld [vmem:[#allocation9 + $0x150] sm:$0xff] }
 0x6df   :  { %v2652_v29 = vcombine.low %v2644_v39, %v2651_v44  ;;  %3945 = vtanh.f32 %v7334_v45  ;;  %v7421_v39 = vld [vmem:[#allocation9 + $0x128] sm:$0xff]  ;;  %v7424_v44 = vld [vmem:[#allocation9 + $0x138] sm:$0xff] }
 0x6e1   :  { %v2654_v47 = vadd.f32 %v2652_v29, %v9764_v46  ;;  %v7427_v29 = vld [vmem:[#allocation9 + $0x120] sm:$0xff]  ;;  %v7430_v46 = vld [vmem:[#allocation9 + $0x130] sm:$0xff] }
 0x6e3   :  { %v3756_v48 = vmul.f32 -1.442695, %v2654_v47  ;;  %v2662_v49 = vrot.slane %v2654_v47, 2  ;;  %v2673_v51 = vrot.slane %v2654_v47, 6  ;;  %v2670_v58 = vrot.slane %v2654_v47, 4  ;;  %v7433_v47 = vld [vmem:[#allocation9 + $0x108] sm:$0xff] }
 0x6e5   :  { %3947 = vpow2.f32 %v3756_v48  ;;  %v3757_v50 = vmul.f32 -1.442695, %v2662_v49  ;;  %v3758_v55 = vmul.f32 -1.442695, %v2673_v51  ;;  %v7436_v48 = vld [vmem:[#allocation9 + $0x118] sm:$0xff]  ;;  %v7439_v49 = vld [vmem:[#allocation9 + $0x100] sm:$0xff] }
 0x6e6   :  { %v7448_v51 = vld [vmem:[#allocation9 + $0xf8] sm:$0xff] }
 0x6e7   :  { %3949 = vpow2.f32 %v3757_v50  ;;  %v7442_v50 = vld [vmem:[#allocation9 + $0x110] sm:$0xff] }
 0x6e8   :  { %3951 = vpow2.f32 %v3758_v55  ;;  %v7457_v55 = vld [vmem:[#allocation9 + $0xc8] sm:$0xff] }
 0x6ec   :  { %v3946_v52 = vpop.eup %3945 }
 0x6ed   :  { %v2485_v54 = vmul.f32 %v3946_v52, %v3944_v33  ;;  %v7445_v33 = vld [vmem:[#allocation9 + $0xe8] sm:$0xff]  ;;  %v7451_v52 = vld [vmem:[#allocation9 + $0xe0] sm:$0xff] }
 0x6ef   :  { %2487 = vst [vmem:[#allocation3 + $0x8] sm:$0x3] %v2485_v54  ;;  %2750 = vmatprep.mubr.f32.mxu0 %v2485_v54  ;;  %2821 = vmatprep.mubr.f32.mxu1 %v2485_v54  ;;  %v7454_v54 = vld [vmem:[#allocation9 + $0xf0] sm:$0xff] }
 0x6f2   :  { %v3948_v56 = vpop.eup %3947 }
 0x6f3   :  { %v2658_v59 = vadd.f32 1.0, %v3948_v56  ;;  %v7460_v56 = vld [vmem:[#allocation9 + $0xd8] sm:$0xff] }
 0x6f4   :  { %v3950_v61 = vpop.eup %3949 }
 0x6f5   :  { %3953 = vrcp.f32 %v2658_v59  ;;  %v2667_v38 = vadd.f32 1.0, %v3950_v61  ;;  %v3952_v43 = vpop.eup %3951  ;;  %v7466_v59 = vld [vmem:[#allocation9 + $0xd0] sm:$0xff]  ;;  %v7469_v61 = vld [vmem:[#allocation9 + $0xa8] sm:$0xff] }
 0x6f6   :  { %3955 = vtanh.f32 %v2670_v58  ;;  %v3590_v23 = vld [vmem:[#allocation3 + $0x8] sm:$0x3]  ;;  %v2678_v15 = vadd.f32 1.0, %v3952_v43  ;;  %v7484_v43 = vld [vmem:[#allocation9 + $0x98] sm:$0xff] }
 0x6f7   :  { %3957 = vrcp.f32 %v2667_v38  ;;  %v3605_v63 = vmul.f32 %v7343_v62, %v3590_v23  ;;  %v7463_v58 = vld [vmem:[#allocation9 + $0xc0] sm:$0xff]  ;;  %v7472_v38 = vld [vmem:[#allocation9 + $0xb8] sm:$0xff]  ;;  %9769 = vst [vmem:[#allocation21_spill] sm:$0xff] %v7484_v43 }
 0x6f8   :  { %3959 = vrcp.f32 %v2678_v15  ;;  %9765 = vst [vmem:[#allocation175_spill] sm:$0xff] %v7472_v38  ;;  %v7475_v23 = vld [vmem:[#allocation9 + $0xa0] sm:$0xff]  ;;  %v7496_v15 = vld [vmem:[#allocation9 + $0x78] sm:$0xff] }
 0x6f9   :  { %v3622_v3 = vsel %vm3609_vm2, %v3605_v63, 0.0  ;;  %9766 = vst [vmem:[#allocation166_spill] sm:$0xff] %v7475_v23  ;;  %v7478_v63 = vld [vmem:[#allocation9 + $0xb0] sm:$0xff]  ;;  %9773 = vst [vmem:[#allocation25_spill] sm:$0xff] %v7496_v15 }
 0x6fa   :  { %3623 = vadd.xlane.f32.xlu0 %v3622_v3  ;;  %9767 = vst [vmem:[#allocation168_spill] sm:$0xff] %v7478_v63  ;;  %v7481_v3 = vld [vmem:[#allocation9 + $0x88] sm:$0xff] }
 0x6fb   :  { %9768 = vst [vmem:[#allocation20_spill] sm:$0xff] %v7481_v3 }
 0x702   :  { %v3954_v5 = vpop.eup %3953 }
 0x703   :  { %v3956_v6 = vpop.eup %3955 }
 0x704   :  { %v3958_v11 = vpop.eup %3957  ;;  %v2682_v18 = vmul.f32 %v3956_v6, %v3954_v5  ;;  %v7487_v5 = vld [vmem:[#allocation9 + $0x80] sm:$0xff]  ;;  %v7490_v6 = vld [vmem:[#allocation9 + $0x90] sm:$0xff] }
 0x705   :  { %v2681_v17 = vmul.f32 %v3958_v11, %v7120_v57  ;;  %v3960_v31 = vpop.eup %3959  ;;  %v7361_v57 = vld [vmem:[#allocation9 + $0x1c8] sm:$0xff]  ;;  %9770 = vst [vmem:[#allocation22_spill] sm:$0xff] %v7487_v5  ;;  %9771 = vst [vmem:[#allocation23_spill] sm:$0xff] %v7490_v6 }
 0x706   :  { %v7493_v11 = vld [vmem:[#allocation9 + $0x68] sm:$0xff] }
 0x707   :  { %v7348_v24 = vadd.f32 %v2682_v18, %v2681_v17  ;;  %9772 = vst [vmem:[#allocation24_spill] sm:$0xff] %v7493_v11  ;;  %v7499_v17 = vld [vmem:[#allocation9 + $0x60] sm:$0xff]  ;;  %v7502_v18 = vld [vmem:[#allocation9 + $0x70] sm:$0xff] }
 0x708   :  { %9774 = vst [vmem:[#allocation26_spill] sm:$0xff] %v7499_v17  ;;  %9775 = vst [vmem:[#allocation27_spill] sm:$0xff] %v7502_v18 }
 0x709   :  { %3961 = vtanh.f32 %v7348_v24 }
 0x716   :  { %v3962_v41 = vpop.eup %3961 }
 0x717   :  { %v7351_v26 = vmul.f32 %v3962_v41, %v3960_v31  ;;  %v7505_v31 = vld [vmem:[#allocation9 + $0x48] sm:$0xff]  ;;  %v7508_v41 = vld [vmem:[#allocation9 + $0x58] sm:$0xff] }
 0x718   :  { %9776 = vst [vmem:[#allocation28_spill] sm:$0xff] %v7505_v31  ;;  %9777 = vst [vmem:[#allocation29_spill] sm:$0xff] %v7508_v41 }
 0x719   :  { %2751 = vmatmul.mubr.f32.vlgmr.msra.gmra.mxu0 %v7351_v26  ;;  %2822 = vmatmul.mubr.f32.vlgmr.msra.gmra.mxu1 %v7351_v26 }
 0x71a   :  { %2857 = vmatpush1.msra.mxu0 %v7355_v32  ;;  %2928 = vmatpush1.msra.mxu1 %v7358_v22 }
 0x71b   :  { %2858 = vmatprep.subr.mxu0 %v7361_v57  ;;  %2929 = vmatprep.subr.mxu1 %v7364_v25 }
 0x71c   :  { %2859 = vmatpush1.msra.mxu0 %v7367_v40  ;;  %2930 = vmatpush1.msra.mxu1 %v7370_v1 }
 0x71d   :  { %2860 = vmatprep.subr.mxu0 %v7373_v7  ;;  %2931 = vmatprep.subr.mxu1 %v7376_v8 }
 0x71e   :  { %2861 = vmatpush1.msra.mxu0 %v7379_v21  ;;  %2932 = vmatpush1.msra.mxu1 %v7382_v4 }
 0x71f   :  { %2862 = vmatprep.subr.mxu0 %v7385_v37  ;;  %2933 = vmatprep.subr.mxu1 %v7388_v20 }
 0x720   :  { %2863 = vmatpush1.msra.mxu0 %v7391_v42  ;;  %2934 = vmatpush1.msra.mxu1 %v7394_v2 }
 0x721   :  { %2864 = vmatprep.subr.mxu0 %v7397_v34  ;;  %2935 = vmatprep.subr.mxu1 %v7400_v0 }
 0x722   :  { %2865 = vmatpush1.msra.mxu0 %v7403_v14  ;;  %2936 = vmatpush1.msra.mxu1 %v7406_v36 }
 0x723   :  { %2866 = vmatprep.subr.mxu0 %v7409_v27  ;;  %2937 = vmatprep.subr.mxu1 %v7412_v60 }
 0x724   :  { %2867 = vmatpush1.msra.mxu0 %v7415_v9  ;;  %2938 = vmatpush1.msra.mxu1 %v7418_v10 }
 0x725   :  { %2868 = vmatprep.subr.mxu0 %v7421_v39  ;;  %2939 = vmatprep.subr.mxu1 %v7424_v44 }
 0x726   :  { %2869 = vmatpush1.msra.mxu0 %v7427_v29  ;;  %2940 = vmatpush1.msra.mxu1 %v7430_v46 }
 0x727   :  { %2870 = vmatprep.subr.mxu0 %v7433_v47  ;;  %2941 = vmatprep.subr.mxu1 %v7436_v48 }
 0x728   :  { %2871 = vmatpush1.msra.mxu0 %v7439_v49  ;;  %2942 = vmatpush1.msra.mxu1 %v7442_v50 }
 0x729   :  { %2872 = vmatprep.subr.mxu0 %v7445_v33  ;;  %2943 = vmatprep.subr.mxu1 %v7448_v51 }
 0x72a   :  { %2873 = vmatpush1.msra.mxu0 %v7451_v52  ;;  %2944 = vmatpush1.msra.mxu1 %v7454_v54 }
 0x72b   :  { %2874 = vmatprep.subr.mxu0 %v7457_v55  ;;  %2945 = vmatprep.subr.mxu1 %v7460_v56 }
 0x72c   :  { %2875 = vmatpush1.msra.mxu0 %v7463_v58  ;;  %2946 = vmatpush1.msra.mxu1 %v7466_v59 }
 0x72d   :  { %2876 = vmatprep.subr.mxu0 %v7469_v61  ;;  %2947 = vmatprep.subr.mxu1 %v7472_v38 }
 0x72e   :  { %2877 = vmatpush1.msra.mxu0 %v7475_v23  ;;  %2948 = vmatpush1.msra.mxu1 %v7478_v63 }
 0x72f   :  { %2878 = vmatprep.subr.mxu0 %v7481_v3  ;;  %2949 = vmatprep.subr.mxu1 %v7484_v43 }
 0x730   :  { %2879 = vmatpush1.msra.mxu0 %v7487_v5  ;;  %2950 = vmatpush1.msra.mxu1 %v7490_v6 }
 0x731   :  { %2880 = vmatprep.subr.mxu0 %v7493_v11  ;;  %2951 = vmatprep.subr.mxu1 %v7496_v15  ;;  %v7511_v11 = vld [vmem:[#allocation9 + $0x40] sm:$0xff]  ;;  %v7514_v15 = vld [vmem:[#allocation9 + $0x50] sm:$0xff] }
 0x732   :  { %2881 = vmatpush1.msra.mxu0 %v7499_v17  ;;  %2952 = vmatpush1.msra.mxu1 %v7502_v18  ;;  %9778 = vst [vmem:[#allocation30_spill] sm:$0xff] %v7511_v11  ;;  %9779 = vst [vmem:[#allocation31_spill] sm:$0xff] %v7514_v15  ;;  %v7517_v17 = vld [vmem:[#allocation9 + $0x28] sm:$0xff]  ;;  %v7520_v18 = vld [vmem:[#allocation9 + $0x38] sm:$0xff] }
 0x733   :  { %2882 = vmatprep.subr.mxu0 %v7505_v31  ;;  %2953 = vmatprep.subr.mxu1 %v7508_v41  ;;  %9780 = vst [vmem:[#allocation32_spill] sm:$0xff] %v7517_v17  ;;  %9781 = vst [vmem:[#allocation33_spill] sm:$0xff] %v7520_v18  ;;  %v7523_v31 = vld [vmem:[#allocation9 + $0x20] sm:$0xff]  ;;  %v7526_v41 = vld [vmem:[#allocation9 + $0x30] sm:$0xff] }
 0x734   :  { %2883 = vmatpush1.msra.mxu0 %v7511_v11  ;;  %2954 = vmatpush1.msra.mxu1 %v7514_v15  ;;  %9782 = vst [vmem:[#allocation34_spill] sm:$0xff] %v7523_v31  ;;  %9783 = vst [vmem:[#allocation35_spill] sm:$0xff] %v7526_v41  ;;  %v7529_v11 = vld [vmem:[#allocation9 + $0x8] sm:$0xff]  ;;  %v7532_v15 = vld [vmem:[#allocation9 + $0x18] sm:$0xff] }
 0x735   :  { %2884 = vmatprep.subr.mxu0 %v7517_v17  ;;  %2955 = vmatprep.subr.mxu1 %v7520_v18  ;;  %9784 = vst [vmem:[#allocation36_spill] sm:$0xff] %v7529_v11  ;;  %9785 = vst [vmem:[#allocation37_spill] sm:$0xff] %v7532_v15  ;;  %v7535_v17 = vld [vmem:[#allocation9] sm:$0xff]  ;;  %v7539_v18 = vld [vmem:[#allocation9 + $0x10] sm:$0xff] }
 0x736   :  { %2885 = vmatpush1.msra.mxu0 %v7523_v31  ;;  %2956 = vmatpush1.msra.mxu1 %v7526_v41  ;;  %9786 = vst [vmem:[#allocation38_spill] sm:$0xff] %v7535_v17  ;;  %9787 = vst [vmem:[#allocation39_spill] sm:$0xff] %v7539_v18  ;;  %v7554_v41 = vld [vmem:[#allocation10 + $0x1f0] sm:$0xff] }
 0x737   :  { %2886 = vmatprep.subr.mxu0 %v7529_v11  ;;  %2957 = vmatprep.subr.mxu1 %v7532_v15  ;;  %v7545_v11 = vld [vmem:[#allocation10 + $0x1e8] sm:$0xff]  ;;  %v7548_v15 = vld [vmem:[#allocation10 + $0x1f8] sm:$0xff]  ;;  %9791 = vst [vmem:[#allocation43_spill] sm:$0xff] %v7554_v41 }
 0x738   :  { %2887 = vmatpush1.msra.mxu0 %v7535_v17  ;;  %2920 = vmatprep.mubr.f32.mxu0 %v9630_v53  ;;  %9788 = vst [vmem:[#allocation40_spill] sm:$0xff] %v7545_v11  ;;  %9789 = vst [vmem:[#allocation41_spill] sm:$0xff] %v7548_v15  ;;  %v7551_v17 = vld [vmem:[#allocation10 + $0x1e0] sm:$0xff] }
 0x739   :  { %2958 = vmatpush1.msra.mxu1 %v7539_v18  ;;  %2991 = vmatprep.mubr.f32.mxu1 %v9630_v53  ;;  %9790 = vst [vmem:[#allocation42_spill] sm:$0xff] %v7551_v17  ;;  %v7557_v18 = vld [vmem:[#allocation10 + $0x1c8] sm:$0xff] }
 0x73a   :  { %2921 = vmatmul.mubr.f32.vlgmr.msra.gmra.mxu0 %v7351_v26  ;;  %2992 = vmatmul.mubr.f32.vlgmr.msra.gmra.mxu1 %v7351_v26  ;;  %9792 = vst [vmem:[#allocation44_spill] sm:$0xff] %v7557_v18  ;;  %v7560_v26 = vld [vmem:[#allocation10 + $0x1d8] sm:$0xff] }
 0x73b   :  { %3052 = vmatprep.subr.mxu0 %v7545_v11  ;;  %3123 = vmatprep.subr.mxu1 %v7548_v15  ;;  %9793 = vst [vmem:[#allocation45_spill] sm:$0xff] %v7560_v26  ;;  %v7563_v11 = vld [vmem:[#allocation10 + $0x1c0] sm:$0xff]  ;;  %v7566_v15 = vld [vmem:[#allocation10 + $0x1d0] sm:$0xff] }
 0x73c   :  { %3053 = vmatpush1.msra.mxu0 %v7551_v17  ;;  %3124 = vmatpush1.msra.mxu1 %v7554_v41  ;;  %9794 = vst [vmem:[#allocation46_spill] sm:$0xff] %v7563_v11  ;;  %9795 = vst [vmem:[#allocation47_spill] sm:$0xff] %v7566_v15  ;;  %v7569_v17 = vld [vmem:[#allocation10 + $0x1a8] sm:$0xff]  ;;  %v7572_v41 = vld [vmem:[#allocation10 + $0x1b8] sm:$0xff] }
 0x73d   :  { %3054 = vmatprep.subr.mxu0 %v7557_v18  ;;  %3125 = vmatprep.subr.mxu1 %v7560_v26  ;;  %9796 = vst [vmem:[#allocation48_spill] sm:$0xff] %v7569_v17  ;;  %9797 = vst [vmem:[#allocation49_spill] sm:$0xff] %v7572_v41  ;;  %v7575_v18 = vld [vmem:[#allocation10 + $0x1a0] sm:$0xff]  ;;  %v7578_v26 = vld [vmem:[#allocation10 + $0x1b0] sm:$0xff] }
 0x73e   :  { %3055 = vmatpush1.msra.mxu0 %v7563_v11  ;;  %3126 = vmatpush1.msra.mxu1 %v7566_v15  ;;  %9798 = vst [vmem:[#allocation50_spill] sm:$0xff] %v7575_v18  ;;  %9799 = vst [vmem:[#allocation51_spill] sm:$0xff] %v7578_v26  ;;  %v7581_v11 = vld [vmem:[#allocation10 + $0x188] sm:$0xff]  ;;  %v7584_v15 = vld [vmem:[#allocation10 + $0x198] sm:$0xff] }
 0x73f   :  { %3056 = vmatprep.subr.mxu0 %v7569_v17  ;;  %3127 = vmatprep.subr.mxu1 %v7572_v41  ;;  %9800 = vst [vmem:[#allocation52_spill] sm:$0xff] %v7581_v11  ;;  %9801 = vst [vmem:[#allocation53_spill] sm:$0xff] %v7584_v15  ;;  %v7587_v17 = vld [vmem:[#allocation10 + $0x180] sm:$0xff]  ;;  %v7590_v41 = vld [vmem:[#allocation10 + $0x190] sm:$0xff] }
 0x740   :  { %3057 = vmatpush1.msra.mxu0 %v7575_v18  ;;  %3128 = vmatpush1.msra.mxu1 %v7578_v26  ;;  %9802 = vst [vmem:[#allocation54_spill] sm:$0xff] %v7587_v17  ;;  %9803 = vst [vmem:[#allocation55_spill] sm:$0xff] %v7590_v41  ;;  %v7593_v18 = vld [vmem:[#allocation10 + $0x168] sm:$0xff]  ;;  %v7596_v26 = vld [vmem:[#allocation10 + $0x178] sm:$0xff] }
 0x741   :  { %3058 = vmatprep.subr.mxu0 %v7581_v11  ;;  %3129 = vmatprep.subr.mxu1 %v7584_v15  ;;  %9804 = vst [vmem:[#allocation56_spill] sm:$0xff] %v7593_v18  ;;  %9805 = vst [vmem:[#allocation57_spill] sm:$0xff] %v7596_v26  ;;  %v7599_v11 = vld [vmem:[#allocation10 + $0x160] sm:$0xff]  ;;  %v7602_v15 = vld [vmem:[#allocation10 + $0x170] sm:$0xff] }
 0x742   :  { %3059 = vmatpush1.msra.mxu0 %v7587_v17  ;;  %3130 = vmatpush1.msra.mxu1 %v7590_v41  ;;  %9806 = vst [vmem:[#allocation58_spill] sm:$0xff] %v7599_v11  ;;  %9807 = vst [vmem:[#allocation59_spill] sm:$0xff] %v7602_v15  ;;  %v7605_v17 = vld [vmem:[#allocation10 + $0x148] sm:$0xff]  ;;  %v7608_v41 = vld [vmem:[#allocation10 + $0x158] sm:$0xff] }
 0x743   :  { %3060 = vmatprep.subr.mxu0 %v7593_v18  ;;  %3131 = vmatprep.subr.mxu1 %v7596_v26  ;;  %9808 = vst [vmem:[#allocation60_spill] sm:$0xff] %v7605_v17  ;;  %9809 = vst [vmem:[#allocation61_spill] sm:$0xff] %v7608_v41  ;;  %v7611_v18 = vld [vmem:[#allocation10 + $0x140] sm:$0xff]  ;;  %v7614_v26 = vld [vmem:[#allocation10 + $0x150] sm:$0xff] }
 0x744   :  { %3061 = vmatpush1.msra.mxu0 %v7599_v11  ;;  %3132 = vmatpush1.msra.mxu1 %v7602_v15  ;;  %9810 = vst [vmem:[#allocation62_spill] sm:$0xff] %v7611_v18  ;;  %9811 = vst [vmem:[#allocation63_spill] sm:$0xff] %v7614_v26  ;;  %v7617_v11 = vld [vmem:[#allocation10 + $0x128] sm:$0xff]  ;;  %v7620_v15 = vld [vmem:[#allocation10 + $0x138] sm:$0xff] }
 0x745   :  { %3062 = vmatprep.subr.mxu0 %v7605_v17  ;;  %3133 = vmatprep.subr.mxu1 %v7608_v41  ;;  %9812 = vst [vmem:[#allocation64_spill] sm:$0xff] %v7617_v11  ;;  %9813 = vst [vmem:[#allocation65_spill] sm:$0xff] %v7620_v15  ;;  %v7623_v17 = vld [vmem:[#allocation10 + $0x120] sm:$0xff]  ;;  %v7626_v41 = vld [vmem:[#allocation10 + $0x130] sm:$0xff] }
 0x746   :  { %3063 = vmatpush1.msra.mxu0 %v7611_v18  ;;  %3134 = vmatpush1.msra.mxu1 %v7614_v26  ;;  %9814 = vst [vmem:[#allocation66_spill] sm:$0xff] %v7623_v17  ;;  %9815 = vst [vmem:[#allocation67_spill] sm:$0xff] %v7626_v41  ;;  %v7629_v18 = vld [vmem:[#allocation10 + $0x108] sm:$0xff]  ;;  %v7632_v26 = vld [vmem:[#allocation10 + $0x118] sm:$0xff] }
 0x747   :  { %3064 = vmatprep.subr.mxu0 %v7617_v11  ;;  %3135 = vmatprep.subr.mxu1 %v7620_v15  ;;  %9816 = vst [vmem:[#allocation68_spill] sm:$0xff] %v7629_v18  ;;  %9817 = vst [vmem:[#allocation69_spill] sm:$0xff] %v7632_v26  ;;  %v7635_v11 = vld [vmem:[#allocation10 + $0x100] sm:$0xff]  ;;  %v7638_v15 = vld [vmem:[#allocation10 + $0x110] sm:$0xff] }
 0x748   :  { %3065 = vmatpush1.msra.mxu0 %v7623_v17  ;;  %3136 = vmatpush1.msra.mxu1 %v7626_v41  ;;  %9818 = vst [vmem:[#allocation70_spill] sm:$0xff] %v7635_v11  ;;  %9819 = vst [vmem:[#allocation71_spill] sm:$0xff] %v7638_v15  ;;  %v7641_v17 = vld [vmem:[#allocation10 + $0xe8] sm:$0xff]  ;;  %v7644_v41 = vld [vmem:[#allocation10 + $0xf8] sm:$0xff] }
 0x749   :  { %3066 = vmatprep.subr.mxu0 %v7629_v18  ;;  %3137 = vmatprep.subr.mxu1 %v7632_v26  ;;  %9820 = vst [vmem:[#allocation72_spill] sm:$0xff] %v7641_v17  ;;  %9821 = vst [vmem:[#allocation73_spill] sm:$0xff] %v7644_v41  ;;  %v7647_v18 = vld [vmem:[#allocation10 + $0xe0] sm:$0xff]  ;;  %v7650_v26 = vld [vmem:[#allocation10 + $0xf0] sm:$0xff] }
 0x74a   :  { %3067 = vmatpush1.msra.mxu0 %v7635_v11  ;;  %3138 = vmatpush1.msra.mxu1 %v7638_v15  ;;  %9822 = vst [vmem:[#allocation74_spill] sm:$0xff] %v7647_v18  ;;  %9823 = vst [vmem:[#allocation75_spill] sm:$0xff] %v7650_v26  ;;  %v7653_v11 = vld [vmem:[#allocation10 + $0xc8] sm:$0xff]  ;;  %v7656_v15 = vld [vmem:[#allocation10 + $0xd8] sm:$0xff] }
 0x74b   :  { %3068 = vmatprep.subr.mxu0 %v7641_v17  ;;  %3139 = vmatprep.subr.mxu1 %v7644_v41  ;;  %9824 = vst [vmem:[#allocation76_spill] sm:$0xff] %v7653_v11  ;;  %9825 = vst [vmem:[#allocation77_spill] sm:$0xff] %v7656_v15  ;;  %v7659_v17 = vld [vmem:[#allocation10 + $0xc0] sm:$0xff]  ;;  %v7662_v41 = vld [vmem:[#allocation10 + $0xd0] sm:$0xff] }
 0x74c   :  { %3069 = vmatpush1.msra.mxu0 %v7647_v18  ;;  %3140 = vmatpush1.msra.mxu1 %v7650_v26  ;;  %9826 = vst [vmem:[#allocation78_spill] sm:$0xff] %v7659_v17  ;;  %9827 = vst [vmem:[#allocation79_spill] sm:$0xff] %v7662_v41  ;;  %v7665_v18 = vld [vmem:[#allocation10 + $0xa8] sm:$0xff]  ;;  %v7668_v26 = vld [vmem:[#allocation10 + $0xb8] sm:$0xff] }
 0x74d   :  { %3070 = vmatprep.subr.mxu0 %v7653_v11  ;;  %3141 = vmatprep.subr.mxu1 %v7656_v15  ;;  %9828 = vst [vmem:[#allocation80_spill] sm:$0xff] %v7665_v18  ;;  %9829 = vst [vmem:[#allocation81_spill] sm:$0xff] %v7668_v26  ;;  %v7671_v11 = vld [vmem:[#allocation10 + $0xa0] sm:$0xff]  ;;  %v7674_v15 = vld [vmem:[#allocation10 + $0xb0] sm:$0xff] }
 0x74e   :  { %3071 = vmatpush1.msra.mxu0 %v7659_v17  ;;  %3142 = vmatpush1.msra.mxu1 %v7662_v41  ;;  %9830 = vst [vmem:[#allocation82_spill] sm:$0xff] %v7671_v11  ;;  %9831 = vst [vmem:[#allocation83_spill] sm:$0xff] %v7674_v15  ;;  %v7677_v17 = vld [vmem:[#allocation10 + $0x88] sm:$0xff]  ;;  %v7680_v41 = vld [vmem:[#allocation10 + $0x98] sm:$0xff] }
 0x74f   :  { %3072 = vmatprep.subr.mxu0 %v7665_v18  ;;  %3143 = vmatprep.subr.mxu1 %v7668_v26  ;;  %9832 = vst [vmem:[#allocation84_spill] sm:$0xff] %v7677_v17  ;;  %9833 = vst [vmem:[#allocation85_spill] sm:$0xff] %v7680_v41  ;;  %v7683_v18 = vld [vmem:[#allocation10 + $0x80] sm:$0xff]  ;;  %v7686_v26 = vld [vmem:[#allocation10 + $0x90] sm:$0xff] }
 0x750   :  { %3073 = vmatpush1.msra.mxu0 %v7671_v11  ;;  %3144 = vmatpush1.msra.mxu1 %v7674_v15  ;;  %9834 = vst [vmem:[#allocation86_spill] sm:$0xff] %v7683_v18  ;;  %9835 = vst [vmem:[#allocation87_spill] sm:$0xff] %v7686_v26  ;;  %v7689_v11 = vld [vmem:[#allocation10 + $0x68] sm:$0xff]  ;;  %v7692_v15 = vld [vmem:[#allocation10 + $0x78] sm:$0xff] }
 0x751   :  { %3074 = vmatprep.subr.mxu0 %v7677_v17  ;;  %3145 = vmatprep.subr.mxu1 %v7680_v41  ;;  %9836 = vst [vmem:[#allocation88_spill] sm:$0xff] %v7689_v11  ;;  %9837 = vst [vmem:[#allocation89_spill] sm:$0xff] %v7692_v15  ;;  %v7695_v17 = vld [vmem:[#allocation10 + $0x60] sm:$0xff]  ;;  %v7698_v41 = vld [vmem:[#allocation10 + $0x70] sm:$0xff] }
 0x752   :  { %3075 = vmatpush1.msra.mxu0 %v7683_v18  ;;  %3146 = vmatpush1.msra.mxu1 %v7686_v26  ;;  %9838 = vst [vmem:[#allocation90_spill] sm:$0xff] %v7695_v17  ;;  %9839 = vst [vmem:[#allocation91_spill] sm:$0xff] %v7698_v41  ;;  %v7701_v18 = vld [vmem:[#allocation10 + $0x48] sm:$0xff]  ;;  %v7704_v26 = vld [vmem:[#allocation10 + $0x58] sm:$0xff] }
 0x753   :  { %3076 = vmatprep.subr.mxu0 %v7689_v11  ;;  %3147 = vmatprep.subr.mxu1 %v7692_v15  ;;  %9840 = vst [vmem:[#allocation92_spill] sm:$0xff] %v7701_v18  ;;  %9841 = vst [vmem:[#allocation93_spill] sm:$0xff] %v7704_v26  ;;  %v7707_v11 = vld [vmem:[#allocation10 + $0x40] sm:$0xff]  ;;  %v7710_v15 = vld [vmem:[#allocation10 + $0x50] sm:$0xff] }
 0x754   :  { %3077 = vmatpush1.msra.mxu0 %v7695_v17  ;;  %3148 = vmatpush1.msra.mxu1 %v7698_v41  ;;  %9842 = vst [vmem:[#allocation94_spill] sm:$0xff] %v7707_v11  ;;  %9843 = vst [vmem:[#allocation95_spill] sm:$0xff] %v7710_v15  ;;  %v7713_v17 = vld [vmem:[#allocation10 + $0x28] sm:$0xff]  ;;  %v7716_v41 = vld [vmem:[#allocation10 + $0x38] sm:$0xff] }
 0x755   :  { %3078 = vmatprep.subr.mxu0 %v7701_v18  ;;  %3149 = vmatprep.subr.mxu1 %v7704_v26  ;;  %9844 = vst [vmem:[#allocation96_spill] sm:$0xff] %v7713_v17  ;;  %9845 = vst [vmem:[#allocation97_spill] sm:$0xff] %v7716_v41  ;;  %v7719_v18 = vld [vmem:[#allocation10 + $0x20] sm:$0xff]  ;;  %v7722_v26 = vld [vmem:[#allocation10 + $0x30] sm:$0xff] }
 0x756   :  { %3079 = vmatpush1.msra.mxu0 %v7707_v11  ;;  %3150 = vmatpush1.msra.mxu1 %v7710_v15  ;;  %9846 = vst [vmem:[#allocation98_spill] sm:$0xff] %v7719_v18  ;;  %9847 = vst [vmem:[#allocation99_spill] sm:$0xff] %v7722_v26  ;;  %v7725_v11 = vld [vmem:[#allocation10 + $0x8] sm:$0xff]  ;;  %v7728_v15 = vld [vmem:[#allocation10 + $0x18] sm:$0xff] }
 0x757   :  { %3080 = vmatprep.subr.mxu0 %v7713_v17  ;;  %3151 = vmatprep.subr.mxu1 %v7716_v41  ;;  %9848 = vst [vmem:[#allocation100_spill] sm:$0xff] %v7725_v11  ;;  %9849 = vst [vmem:[#allocation101_spill] sm:$0xff] %v7728_v15  ;;  %v7731_v17 = vld [vmem:[#allocation10] sm:$0xff]  ;;  %v7734_v41 = vld [vmem:[#allocation10 + $0x10] sm:$0xff] }
 0x758   :  { %3081 = vmatpush1.msra.mxu0 %v7719_v18  ;;  %3152 = vmatpush1.msra.mxu1 %v7722_v26  ;;  %9850 = vst [vmem:[#allocation102_spill] sm:$0xff] %v7731_v17  ;;  %9851 = vst [vmem:[#allocation103_spill] sm:$0xff] %v7734_v41  ;;  %v7737_v18 = vld [vmem:[#allocation10 + $0x3e8] sm:$0xff]  ;;  %v7740_v26 = vld [vmem:[#allocation10 + $0x3f8] sm:$0xff] }
 0x759   :  { %3082 = vmatprep.subr.mxu0 %v7725_v11  ;;  %3153 = vmatprep.subr.mxu1 %v7728_v15  ;;  %9852 = vst [vmem:[#allocation104_spill] sm:$0xff] %v7737_v18  ;;  %9853 = vst [vmem:[#allocation105_spill] sm:$0xff] %v7740_v26  ;;  %v7743_v11 = vld [vmem:[#allocation10 + $0x3e0] sm:$0xff]  ;;  %v7746_v15 = vld [vmem:[#allocation10 + $0x3f0] sm:$0xff] }
 0x75a   :  { %3083 = vmatpush1.msra.mxu0 %v7731_v17  ;;  %3154 = vmatpush1.msra.mxu1 %v7734_v41  ;;  %9854 = vst [vmem:[#allocation106_spill] sm:$0xff] %v7743_v11  ;;  %9855 = vst [vmem:[#allocation107_spill] sm:$0xff] %v7746_v15  ;;  %v7749_v17 = vld [vmem:[#allocation10 + $0x3c8] sm:$0xff]  ;;  %v7752_v41 = vld [vmem:[#allocation10 + $0x3d8] sm:$0xff] }
 0x75b   :  { %3084 = vmatprep.subr.mxu0 %v7737_v18  ;;  %3155 = vmatprep.subr.mxu1 %v7740_v26  ;;  %9856 = vst [vmem:[#allocation108_spill] sm:$0xff] %v7749_v17  ;;  %9857 = vst [vmem:[#allocation109_spill] sm:$0xff] %v7752_v41  ;;  %v7755_v18 = vld [vmem:[#allocation10 + $0x3c0] sm:$0xff]  ;;  %v7758_v26 = vld [vmem:[#allocation10 + $0x3d0] sm:$0xff] }
 0x75c   :  { %3085 = vmatpush2.msra.mxu0 %v7743_v11  ;;  %3156 = vmatpush2.msra.mxu1 %v7746_v15  ;;  %9858 = vst [vmem:[#allocation110_spill] sm:$0xff] %v7755_v18  ;;  %9859 = vst [vmem:[#allocation111_spill] sm:$0xff] %v7758_v26  ;;  %v7761_v11 = vld [vmem:[#allocation10 + $0x3a8] sm:$0xff]  ;;  %v7764_v15 = vld [vmem:[#allocation10 + $0x3b8] sm:$0xff] }
 0x75d   :  { %3086 = vmatprep.subr.mxu0 %v7749_v17  ;;  %3157 = vmatprep.subr.mxu1 %v7752_v41  ;;  %9860 = vst [vmem:[#allocation112_spill] sm:$0xff] %v7761_v11  ;;  %9861 = vst [vmem:[#allocation113_spill] sm:$0xff] %v7764_v15  ;;  %v7767_v17 = vld [vmem:[#allocation10 + $0x3a0] sm:$0xff]  ;;  %v7770_v41 = vld [vmem:[#allocation10 + $0x3b0] sm:$0xff] }
 0x75e   :  { %3087 = vmatpush2.msra.mxu0 %v7755_v18  ;;  %3158 = vmatpush2.msra.mxu1 %v7758_v26  ;;  %9862 = vst [vmem:[#allocation114_spill] sm:$0xff] %v7767_v17  ;;  %9863 = vst [vmem:[#allocation115_spill] sm:$0xff] %v7770_v41  ;;  %v7773_v18 = vld [vmem:[#allocation10 + $0x388] sm:$0xff]  ;;  %v7776_v26 = vld [vmem:[#allocation10 + $0x398] sm:$0xff] }
 0x75f   :  { %3088 = vmatprep.subr.mxu0 %v7761_v11  ;;  %3159 = vmatprep.subr.mxu1 %v7764_v15  ;;  %9864 = vst [vmem:[#allocation116_spill] sm:$0xff] %v7773_v18  ;;  %9865 = vst [vmem:[#allocation117_spill] sm:$0xff] %v7776_v26  ;;  %v7779_v11 = vld [vmem:[#allocation10 + $0x380] sm:$0xff]  ;;  %v7782_v15 = vld [vmem:[#allocation10 + $0x390] sm:$0xff] }
 0x760   :  { %3089 = vmatpush2.msra.mxu0 %v7767_v17  ;;  %3160 = vmatpush2.msra.mxu1 %v7770_v41  ;;  %9866 = vst [vmem:[#allocation118_spill] sm:$0xff] %v7779_v11  ;;  %9867 = vst [vmem:[#allocation119_spill] sm:$0xff] %v7782_v15  ;;  %v7785_v17 = vld [vmem:[#allocation10 + $0x368] sm:$0xff]  ;;  %v7788_v41 = vld [vmem:[#allocation10 + $0x378] sm:$0xff] }
 0x761   :  { %3090 = vmatprep.subr.mxu0 %v7773_v18  ;;  %3161 = vmatprep.subr.mxu1 %v7776_v26  ;;  %9868 = vst [vmem:[#allocation120_spill] sm:$0xff] %v7785_v17  ;;  %9869 = vst [vmem:[#allocation121_spill] sm:$0xff] %v7788_v41  ;;  %v7791_v18 = vld [vmem:[#allocation10 + $0x360] sm:$0xff]  ;;  %v7794_v26 = vld [vmem:[#allocation10 + $0x370] sm:$0xff] }
 0x762   :  { %3091 = vmatpush2.msra.mxu0 %v7779_v11  ;;  %3162 = vmatpush2.msra.mxu1 %v7782_v15  ;;  %9870 = vst [vmem:[#allocation122_spill] sm:$0xff] %v7791_v18  ;;  %9871 = vst [vmem:[#allocation123_spill] sm:$0xff] %v7794_v26  ;;  %v7797_v11 = vld [vmem:[#allocation10 + $0x348] sm:$0xff]  ;;  %v7800_v15 = vld [vmem:[#allocation10 + $0x358] sm:$0xff] }
 0x763   :  { %3092 = vmatprep.subr.mxu0 %v7785_v17  ;;  %3163 = vmatprep.subr.mxu1 %v7788_v41  ;;  %9872 = vst [vmem:[#allocation124_spill] sm:$0xff] %v7797_v11  ;;  %9873 = vst [vmem:[#allocation125_spill] sm:$0xff] %v7800_v15  ;;  %v7803_v17 = vld [vmem:[#allocation10 + $0x340] sm:$0xff]  ;;  %v7806_v41 = vld [vmem:[#allocation10 + $0x350] sm:$0xff] }
 0x764   :  { %3093 = vmatpush2.msra.mxu0 %v7791_v18  ;;  %3164 = vmatpush2.msra.mxu1 %v7794_v26  ;;  %9874 = vst [vmem:[#allocation126_spill] sm:$0xff] %v7803_v17  ;;  %9875 = vst [vmem:[#allocation127_spill] sm:$0xff] %v7806_v41  ;;  %v7809_v18 = vld [vmem:[#allocation10 + $0x328] sm:$0xff]  ;;  %v7812_v26 = vld [vmem:[#allocation10 + $0x338] sm:$0xff] }
 0x765   :  { %3094 = vmatprep.subr.mxu0 %v7797_v11  ;;  %3165 = vmatprep.subr.mxu1 %v7800_v15  ;;  %9876 = vst [vmem:[#allocation128_spill] sm:$0xff] %v7809_v18  ;;  %9877 = vst [vmem:[#allocation129_spill] sm:$0xff] %v7812_v26  ;;  %v7815_v11 = vld [vmem:[#allocation10 + $0x320] sm:$0xff]  ;;  %v7818_v15 = vld [vmem:[#allocation10 + $0x330] sm:$0xff] }
 0x766   :  { %3095 = vmatpush2.msra.mxu0 %v7803_v17  ;;  %3166 = vmatpush2.msra.mxu1 %v7806_v41  ;;  %9878 = vst [vmem:[#allocation130_spill] sm:$0xff] %v7815_v11  ;;  %9879 = vst [vmem:[#allocation131_spill] sm:$0xff] %v7818_v15  ;;  %v7821_v17 = vld [vmem:[#allocation10 + $0x308] sm:$0xff]  ;;  %v7824_v41 = vld [vmem:[#allocation10 + $0x318] sm:$0xff] }
 0x767   :  { %3096 = vmatprep.subr.mxu0 %v7809_v18  ;;  %3167 = vmatprep.subr.mxu1 %v7812_v26  ;;  %9880 = vst [vmem:[#allocation132_spill] sm:$0xff] %v7821_v17  ;;  %9881 = vst [vmem:[#allocation133_spill] sm:$0xff] %v7824_v41  ;;  %v7827_v18 = vld [vmem:[#allocation10 + $0x300] sm:$0xff]  ;;  %v7830_v26 = vld [vmem:[#allocation10 + $0x310] sm:$0xff] }
 0x768   :  { %3097 = vmatpush2.msra.mxu0 %v7815_v11  ;;  %3168 = vmatpush2.msra.mxu1 %v7818_v15  ;;  %9882 = vst [vmem:[#allocation134_spill] sm:$0xff] %v7827_v18  ;;  %9883 = vst [vmem:[#allocation135_spill] sm:$0xff] %v7830_v26  ;;  %v7833_v11 = vld [vmem:[#allocation10 + $0x2e8] sm:$0xff]  ;;  %v7836_v15 = vld [vmem:[#allocation10 + $0x2f8] sm:$0xff] }
 0x769   :  { %3098 = vmatprep.subr.mxu0 %v7821_v17  ;;  %3169 = vmatprep.subr.mxu1 %v7824_v41  ;;  %9884 = vst [vmem:[#allocation136_spill] sm:$0xff] %v7833_v11  ;;  %9885 = vst [vmem:[#allocation137_spill] sm:$0xff] %v7836_v15  ;;  %v7839_v17 = vld [vmem:[#allocation10 + $0x2e0] sm:$0xff]  ;;  %v7842_v41 = vld [vmem:[#allocation10 + $0x2f0] sm:$0xff] }
 0x76a   :  { %3099 = vmatpush2.msra.mxu0 %v7827_v18  ;;  %3170 = vmatpush2.msra.mxu1 %v7830_v26  ;;  %9886 = vst [vmem:[#allocation138_spill] sm:$0xff] %v7839_v17  ;;  %9887 = vst [vmem:[#allocation139_spill] sm:$0xff] %v7842_v41  ;;  %v7845_v18 = vld [vmem:[#allocation10 + $0x2c8] sm:$0xff]  ;;  %v7848_v26 = vld [vmem:[#allocation10 + $0x2d8] sm:$0xff] }
 0x76b   :  { %3100 = vmatprep.subr.mxu0 %v7833_v11  ;;  %3171 = vmatprep.subr.mxu1 %v7836_v15  ;;  %9888 = vst [vmem:[#allocation140_spill] sm:$0xff] %v7845_v18  ;;  %9889 = vst [vmem:[#allocation141_spill] sm:$0xff] %v7848_v26  ;;  %v7851_v11 = vld [vmem:[#allocation10 + $0x2c0] sm:$0xff]  ;;  %v7854_v15 = vld [vmem:[#allocation10 + $0x2d0] sm:$0xff] }
 0x76c   :  { %3101 = vmatpush2.msra.mxu0 %v7839_v17  ;;  %3172 = vmatpush2.msra.mxu1 %v7842_v41  ;;  %9890 = vst [vmem:[#allocation142_spill] sm:$0xff] %v7851_v11  ;;  %9891 = vst [vmem:[#allocation143_spill] sm:$0xff] %v7854_v15  ;;  %v7857_v17 = vld [vmem:[#allocation10 + $0x2a8] sm:$0xff]  ;;  %v7860_v41 = vld [vmem:[#allocation10 + $0x2b8] sm:$0xff] }
 0x76d   :  { %3102 = vmatprep.subr.mxu0 %v7845_v18  ;;  %3173 = vmatprep.subr.mxu1 %v7848_v26  ;;  %9892 = vst [vmem:[#allocation144_spill] sm:$0xff] %v7857_v17  ;;  %9893 = vst [vmem:[#allocation145_spill] sm:$0xff] %v7860_v41  ;;  %v7863_v18 = vld [vmem:[#allocation10 + $0x2a0] sm:$0xff]  ;;  %v7866_v26 = vld [vmem:[#allocation10 + $0x2b0] sm:$0xff] }
 0x76e   :  { %3103 = vmatpush2.msra.mxu0 %v7851_v11  ;;  %3174 = vmatpush2.msra.mxu1 %v7854_v15  ;;  %9894 = vst [vmem:[#allocation146_spill] sm:$0xff] %v7863_v18  ;;  %9895 = vst [vmem:[#allocation147_spill] sm:$0xff] %v7866_v26  ;;  %v7869_v11 = vld [vmem:[#allocation10 + $0x288] sm:$0xff]  ;;  %v7872_v15 = vld [vmem:[#allocation10 + $0x298] sm:$0xff] }
 0x76f   :  { %3104 = vmatprep.subr.mxu0 %v7857_v17  ;;  %3175 = vmatprep.subr.mxu1 %v7860_v41  ;;  %9896 = vst [vmem:[#allocation148_spill] sm:$0xff] %v7869_v11  ;;  %9897 = vst [vmem:[#allocation149_spill] sm:$0xff] %v7872_v15  ;;  %v7875_v17 = vld [vmem:[#allocation10 + $0x280] sm:$0xff]  ;;  %v7878_v41 = vld [vmem:[#allocation10 + $0x290] sm:$0xff] }
 0x770   :  { %3105 = vmatpush2.msra.mxu0 %v7863_v18  ;;  %3176 = vmatpush2.msra.mxu1 %v7866_v26  ;;  %9898 = vst [vmem:[#allocation150_spill] sm:$0xff] %v7875_v17  ;;  %9899 = vst [vmem:[#allocation151_spill] sm:$0xff] %v7878_v41  ;;  %v7881_v18 = vld [vmem:[#allocation10 + $0x268] sm:$0xff]  ;;  %v7884_v26 = vld [vmem:[#allocation10 + $0x278] sm:$0xff] }
 0x771   :  { %3106 = vmatprep.subr.mxu0 %v7869_v11  ;;  %3177 = vmatprep.subr.mxu1 %v7872_v15  ;;  %9900 = vst [vmem:[#allocation152_spill] sm:$0xff] %v7881_v18  ;;  %9901 = vst [vmem:[#allocation153_spill] sm:$0xff] %v7884_v26  ;;  %v7887_v11 = vld [vmem:[#allocation10 + $0x260] sm:$0xff]  ;;  %v7890_v15 = vld [vmem:[#allocation10 + $0x270] sm:$0xff] }
 0x772   :  { %3107 = vmatpush2.msra.mxu0 %v7875_v17  ;;  %3178 = vmatpush2.msra.mxu1 %v7878_v41  ;;  %9902 = vst [vmem:[#allocation154_spill] sm:$0xff] %v7887_v11  ;;  %9903 = vst [vmem:[#allocation155_spill] sm:$0xff] %v7890_v15  ;;  %v7893_v17 = vld [vmem:[#allocation10 + $0x248] sm:$0xff]  ;;  %v7896_v41 = vld [vmem:[#allocation10 + $0x258] sm:$0xff] }
 0x773   :  { %3108 = vmatprep.subr.mxu0 %v7881_v18  ;;  %3179 = vmatprep.subr.mxu1 %v7884_v26  ;;  %9904 = vst [vmem:[#allocation156_spill] sm:$0xff] %v7893_v17  ;;  %9905 = vst [vmem:[#allocation157_spill] sm:$0xff] %v7896_v41  ;;  %v7899_v18 = vld [vmem:[#allocation10 + $0x240] sm:$0xff]  ;;  %v7902_v26 = vld [vmem:[#allocation10 + $0x250] sm:$0xff] }
 0x774   :  { %3109 = vmatpush2.msra.mxu0 %v7887_v11  ;;  %3180 = vmatpush2.msra.mxu1 %v7890_v15  ;;  %9906 = vst [vmem:[#allocation158_spill] sm:$0xff] %v7899_v18  ;;  %9907 = vst [vmem:[#allocation159_spill] sm:$0xff] %v7902_v26  ;;  %v7905_v11 = vld [vmem:[#allocation10 + $0x228] sm:$0xff]  ;;  %v7908_v15 = vld [vmem:[#allocation10 + $0x238] sm:$0xff] }
 0x775   :  { %3110 = vmatprep.subr.mxu0 %v7893_v17  ;;  %3181 = vmatprep.subr.mxu1 %v7896_v41  ;;  %9908 = vst [vmem:[#allocation160_spill] sm:$0xff] %v7905_v11  ;;  %9909 = vst [vmem:[#allocation161_spill] sm:$0xff] %v7908_v15  ;;  %v7911_v17 = vld [vmem:[#allocation10 + $0x220] sm:$0xff]  ;;  %v7914_v41 = vld [vmem:[#allocation10 + $0x230] sm:$0xff] }
 0x776   :  { %3111 = vmatpush2.msra.mxu0 %v7899_v18  ;;  %3182 = vmatpush2.msra.mxu1 %v7902_v26  ;;  %9910 = vst [vmem:[#allocation162_spill] sm:$0xff] %v7911_v17  ;;  %9911 = vst [vmem:[#allocation163_spill] sm:$0xff] %v7914_v41  ;;  %v7917_v18 = vld [vmem:[#allocation10 + $0x208] sm:$0xff]  ;;  %v7920_v26 = vld [vmem:[#allocation10 + $0x218] sm:$0xff] }
 0x777   :  { %3112 = vmatprep.subr.mxu0 %v7905_v11  ;;  %3183 = vmatprep.subr.mxu1 %v7908_v15  ;;  %9912 = vst [vmem:[#allocation164_spill] sm:$0xff] %v7917_v18  ;;  %9913 = vst [vmem:[#allocation165_spill] sm:$0xff] %v7920_v26  ;;  %v7923_v11 = vld [vmem:[#allocation10 + $0x200] sm:$0xff]  ;;  %v7926_v15 = vld [vmem:[#allocation10 + $0x210] sm:$0xff] }
 0x778   :  { %3113 = vmatpush2.msra.mxu0 %v7911_v17  ;;  %3184 = vmatpush2.msra.mxu1 %v7914_v41  ;;  %9914 = vst [vmem:[#allocation170_spill] sm:$0xff] %v7923_v11  ;;  %9915 = vst [vmem:[#allocation171_spill] sm:$0xff] %v7926_v15 }
 0x779   :  { %3114 = vmatprep.subr.mxu0 %v7917_v18  ;;  %3185 = vmatprep.subr.mxu1 %v7920_v26 }
 0x77a   :  { %3115 = vmatpush2.msra.mxu0 %v7923_v11  ;;  %3186 = vmatpush2.msra.mxu1 %v7926_v15 }
 0x77b   :  { %3222 = vmatprep.subr.mxu0 %v7321_v12  ;;  %3293 = vmatprep.subr.mxu1 %v7324_v13 }
 0x7d9   :  { %v2752_v41 = vpop.f32.mrf.mxu0  ;;  %v2823_v26 = vpop.f32.mrf.mxu1 }
 0x7da   :  { %v2753_v17 = vadd.f32 %v2752_v41, %v9760_v16  ;;  %v2824_v12 = vadd.f32 %v2823_v26, %v9763_v30 }
 0x7db   :  { %v2754_v18 = vpop.f32.mrf.mxu0  ;;  %v2825_v11 = vpop.f32.mrf.mxu1 }
 0x7dc   :  { %v3759_v53 = vmul.f32 -1.442695, %v2753_v17  ;;  %v2755_v31 = vadd.f32 %v2754_v18, %v9761_v19  ;;  %v2826_v5 = vadd.f32 %v2825_v11, %v9762_v35 }
 0x7de   :  { %3963 = vpow2.f32 %v3759_v53  ;;  %v3760_v6 = vmul.f32 -1.442695, %v2755_v31  ;;  %v3761_v43 = vmul.f32 -1.442695, %v2826_v5 }
 0x7e0   :  { %3965 = vpow2.f32 %v3760_v6 }
 0x7e1   :  { %3967 = vpow2.f32 %v3761_v43 }
 0x7eb   :  { %v3964_v15 = vpop.eup %3963 }
 0x7ec   :  { %v2831_v3 = vadd.f32 1.0, %v3964_v15 }
 0x7ed   :  { %v3966_v13 = vpop.eup %3965 }
 0x7ee   :  { %3969 = vrcp.f32 %v2831_v3  ;;  %v2837_v41 = vadd.f32 1.0, %v3966_v13  ;;  %v3968_v17 = vpop.eup %3967  ;;  %v9916_v13 = vld [vmem:[#allocation167_spill] sm:$0xff] }
 0x7ef   :  { %3971 = vtanh.f32 %v2824_v12  ;;  %v2844_v11 = vadd.f32 1.0, %v3968_v17 }
 0x7f0   :  { %3973 = vrcp.f32 %v2837_v41  ;;  %v9917_v41 = vld [vmem:[#allocation169_spill] sm:$0xff] }
 0x7f1   :  { %3975 = vrcp.f32 %v2844_v11  ;;  %v9918_v30 = vcombine.low %v9916_v13, %v9917_v41 }
 0x7fa   :  { %v2922_v18 = vpop.f32.mrf.mxu0  ;;  %v2993_v53 = vpop.f32.mrf.mxu1 }
 0x7fb   :  { %v3970_v19 = vpop.eup %3969 }
 0x7fc   :  { %v3972_v31 = vpop.eup %3971  ;;  %v2924_v6 = vpop.f32.mrf.mxu0 }
 0x7fd   :  { %v2995_v16 = vpop.f32.mrf.mxu1  ;;  %v3974_v63 = vpop.eup %3973  ;;  %v3002_v5 = vcombine.low %v2922_v18, %v2924_v6  ;;  %v2848_v23 = vmul.f32 %v3972_v31, %v3970_v19 }
 0x7fe   :  { %v3003_v35 = vcombine.low %v2993_v53, %v2995_v16  ;;  %v2847_v15 = vmul.f32 %v3974_v63, %v7334_v45  ;;  %v3976_v19 = vpop.eup %3975 }
 0x7ff   :  { %v3010_v43 = vrot.slane %v3002_v5, %v4795_v28 }
 0x800   :  { %v3017_v3 = vrot.slane %v3003_v35, %v4795_v28  ;;  %v7938_v26 = vadd.f32 %v2848_v23, %v2847_v15 }
 0x802   :  { %v3018_v12 = vcombine.low %v3010_v43, %v3017_v3  ;;  %3977 = vtanh.f32 %v7938_v26 }
 0x804   :  { %v3020_v38 = vadd.f32 %v3018_v12, %v9918_v30 }
 0x806   :  { %v3762_v17 = vmul.f32 -1.442695, %v3020_v38  ;;  %v3028_v18 = vrot.slane %v3020_v38, 2  ;;  %v3039_v45 = vrot.slane %v3020_v38, 6  ;;  %v3036_v31 = vrot.slane %v3020_v38, 4 }
 0x808   :  { %3979 = vpow2.f32 %v3762_v17  ;;  %v3763_v16 = vmul.f32 -1.442695, %v3028_v18  ;;  %v3764_v35 = vmul.f32 -1.442695, %v3039_v45 }
 0x80a   :  { %3981 = vpow2.f32 %v3763_v16 }
 0x80b   :  { %3983 = vpow2.f32 %v3764_v35 }
 0x80f   :  { %v3978_v63 = vpop.eup %3977 }
 0x810   :  { %v2851_v53 = vmul.f32 %v3978_v63, %v3976_v19 }
 0x812   :  { %2853 = vst [vmem:[#allocation3 + $0xa] sm:$0x3] %v2851_v53  ;;  %3116 = vmatprep.mubr.f32.mxu0 %v2851_v53  ;;  %3187 = vmatprep.mubr.f32.mxu1 %v2851_v53 }
 0x815   :  { %v3980_v23 = vpop.eup %3979 }
 0x816   :  { %v3024_v6 = vadd.f32 1.0, %v3980_v23  ;;  %v9960_v23 = vld [vmem:[#allocation57_spill] sm:$0xff] }
 0x817   :  { %v3982_v11 = vpop.eup %3981 }
 0x818   :  { %3985 = vrcp.f32 %v3024_v6  ;;  %v3033_v30 = vadd.f32 1.0, %v3982_v11  ;;  %v3984_v3 = vpop.eup %3983  ;;  %v9962_v6 = vld [vmem:[#allocation59_spill] sm:$0xff]  ;;  %v9963_v11 = vld [vmem:[#allocation60_spill] sm:$0xff] }
 0x819   :  { %3987 = vtanh.f32 %v3036_v31  ;;  %v3591_v5 = vld [vmem:[#allocation3 + $0xa] sm:$0x3]  ;;  %v3044_v16 = vadd.f32 1.0, %v3984_v3  ;;  %v9961_v31 = vld [vmem:[#allocation58_spill] sm:$0xff]  ;;  %v9968_v3 = vld [vmem:[#allocation65_spill] sm:$0xff] }
 0x81a   :  { %3989 = vrcp.f32 %v3033_v30  ;;  %v3606_v15 = vmul.f32 %v7343_v62, %v3591_v5  ;;  %v9919_v62 = vld [vmem:[#allocation175_spill] sm:$0xff]  ;;  %v9964_v30 = vld [vmem:[#allocation61_spill] sm:$0xff]  ;;  %v9965_v5 = vld [vmem:[#allocation62_spill] sm:$0xff] }
 0x81b   :  { %3991 = vrcp.f32 %v3044_v16  ;;  %v9972_v16 = vld [vmem:[#allocation69_spill] sm:$0xff] }
 0x81c   :  { %v3625_v43 = vsel %vm3609_vm2, %v3606_v15, 0.0  ;;  %v9966_v15 = vld [vmem:[#allocation63_spill] sm:$0xff] }
 0x81d   :  { %3626 = vadd.xlane.f32.xlu1 %v3625_v43  ;;  %v9967_v43 = vld [vmem:[#allocation64_spill] sm:$0xff] }
 0x825   :  { %v3986_v12 = vpop.eup %3985 }
 0x826   :  { %v3988_v17 = vpop.eup %3987 }
 0x827   :  { %v3990_v18 = vpop.eup %3989  ;;  %v3048_v19 = vmul.f32 %v3988_v17, %v3986_v12  ;;  %v9969_v12 = vld [vmem:[#allocation66_spill] sm:$0xff]  ;;  %v9970_v17 = vld [vmem:[#allocation67_spill] sm:$0xff] }
 0x828   :  { %v3047_v38 = vmul.f32 %v3990_v18, %v7348_v24  ;;  %v3992_v63 = vpop.eup %3991  ;;  %v9920_v24 = vld [vmem:[#allocation166_spill] sm:$0xff]  ;;  %v9971_v18 = vld [vmem:[#allocation68_spill] sm:$0xff] }
 0x82a   :  { %v7947_v45 = vadd.f32 %v3048_v19, %v3047_v38  ;;  %v9973_v38 = vld [vmem:[#allocation70_spill] sm:$0xff]  ;;  %v9974_v19 = vld [vmem:[#allocation71_spill] sm:$0xff] }
 0x82c   :  { %3993 = vtanh.f32 %v7947_v45 }
 0x839   :  { %v3994_v53 = vpop.eup %3993 }
 0x83a   :  { %v7950_v35 = vmul.f32 %v3994_v53, %v3992_v63  ;;  %v9975_v63 = vld [vmem:[#allocation72_spill] sm:$0xff]  ;;  %v9976_v53 = vld [vmem:[#allocation73_spill] sm:$0xff] }
 0x83c   :  { %3117 = vmatmul.mubr.f32.vlgmr.msra.gmra.mxu0 %v7950_v35  ;;  %3188 = vmatmul.mubr.f32.vlgmr.msra.gmra.mxu1 %v7950_v35 }
 0x83d   :  { %3223 = vmatpush1.msra.mxu0 %v7355_v32  ;;  %3294 = vmatpush1.msra.mxu1 %v7358_v22  ;;  %v9921_v32 = vld [vmem:[#allocation168_spill] sm:$0xff] }
 0x83e   :  { %3224 = vmatprep.subr.mxu0 %v7361_v57  ;;  %3295 = vmatprep.subr.mxu1 %v7364_v25  ;;  %v9922_v22 = vld [vmem:[#allocation20_spill] sm:$0xff]  ;;  %v9923_v57 = vld [vmem:[#allocation21_spill] sm:$0xff]  ;;  %v9924_v25 = vld [vmem:[#allocation22_spill] sm:$0xff] }
 0x83f   :  { %3225 = vmatpush1.msra.mxu0 %v7367_v40  ;;  %3296 = vmatpush1.msra.mxu1 %v7370_v1  ;;  %v9925_v40 = vld [vmem:[#allocation23_spill] sm:$0xff]  ;;  %v9926_v1 = vld [vmem:[#allocation24_spill] sm:$0xff] }
 0x840   :  { %3226 = vmatprep.subr.mxu0 %v7373_v7  ;;  %3297 = vmatprep.subr.mxu1 %v7376_v8  ;;  %v9927_v7 = vld [vmem:[#allocation25_spill] sm:$0xff]  ;;  %v9928_v8 = vld [vmem:[#allocation26_spill] sm:$0xff] }
 0x841   :  { %3227 = vmatpush1.msra.mxu0 %v7379_v21  ;;  %3298 = vmatpush1.msra.mxu1 %v7382_v4  ;;  %v9929_v21 = vld [vmem:[#allocation27_spill] sm:$0xff]  ;;  %v9930_v4 = vld [vmem:[#allocation28_spill] sm:$0xff] }
 0x842   :  { %3228 = vmatprep.subr.mxu0 %v7385_v37  ;;  %3299 = vmatprep.subr.mxu1 %v7388_v20  ;;  %v9931_v37 = vld [vmem:[#allocation29_spill] sm:$0xff]  ;;  %v9932_v20 = vld [vmem:[#allocation30_spill] sm:$0xff] }
 0x843   :  { %3229 = vmatpush1.msra.mxu0 %v7391_v42  ;;  %3300 = vmatpush1.msra.mxu1 %v7394_v2  ;;  %v9933_v42 = vld [vmem:[#allocation31_spill] sm:$0xff]  ;;  %v9934_v2 = vld [vmem:[#allocation32_spill] sm:$0xff] }
 0x844   :  { %3230 = vmatprep.subr.mxu0 %v7397_v34  ;;  %3301 = vmatprep.subr.mxu1 %v7400_v0  ;;  %v9935_v34 = vld [vmem:[#allocation33_spill] sm:$0xff]  ;;  %v9936_v0 = vld [vmem:[#allocation34_spill] sm:$0xff] }
 0x845   :  { %3231 = vmatpush1.msra.mxu0 %v7403_v14  ;;  %3302 = vmatpush1.msra.mxu1 %v7406_v36  ;;  %v9937_v14 = vld [vmem:[#allocation35_spill] sm:$0xff]  ;;  %v9938_v36 = vld [vmem:[#allocation36_spill] sm:$0xff] }
 0x846   :  { %3232 = vmatprep.subr.mxu0 %v7409_v27  ;;  %3303 = vmatprep.subr.mxu1 %v7412_v60  ;;  %v9939_v27 = vld [vmem:[#allocation37_spill] sm:$0xff]  ;;  %v9940_v60 = vld [vmem:[#allocation38_spill] sm:$0xff] }
 0x847   :  { %3233 = vmatpush1.msra.mxu0 %v7415_v9  ;;  %3304 = vmatpush1.msra.mxu1 %v7418_v10  ;;  %v9941_v9 = vmov 0.0   ;;  %v9942_v10 = vld [vmem:[#allocation39_spill] sm:$0xff] }
 0x848   :  { %3234 = vmatprep.subr.mxu0 %v7421_v39  ;;  %3305 = vmatprep.subr.mxu1 %v7424_v44  ;;  %v9943_v39 = vld [vmem:[#allocation40_spill] sm:$0xff]  ;;  %v9944_v44 = vld [vmem:[#allocation41_spill] sm:$0xff] }
 0x849   :  { %3235 = vmatpush1.msra.mxu0 %v7427_v29  ;;  %3306 = vmatpush1.msra.mxu1 %v7430_v46  ;;  %v9945_v29 = vld [vmem:[#allocation42_spill] sm:$0xff]  ;;  %v9946_v46 = vld [vmem:[#allocation43_spill] sm:$0xff] }
 0x84a   :  { %3236 = vmatprep.subr.mxu0 %v7433_v47  ;;  %3307 = vmatprep.subr.mxu1 %v7436_v48  ;;  %v9947_v47 = vld [vmem:[#allocation44_spill] sm:$0xff]  ;;  %v9948_v48 = vld [vmem:[#allocation45_spill] sm:$0xff] }
 0x84b   :  { %3237 = vmatpush1.msra.mxu0 %v7439_v49  ;;  %3308 = vmatpush1.msra.mxu1 %v7442_v50  ;;  %v9949_v49 = vld [vmem:[#allocation46_spill] sm:$0xff]  ;;  %v9950_v50 = vld [vmem:[#allocation47_spill] sm:$0xff] }
 0x84c   :  { %3238 = vmatprep.subr.mxu0 %v7445_v33  ;;  %3309 = vmatprep.subr.mxu1 %v7448_v51  ;;  %v9951_v33 = vld [vmem:[#allocation48_spill] sm:$0xff]  ;;  %v9952_v51 = vld [vmem:[#allocation49_spill] sm:$0xff] }
 0x84d   :  { %3239 = vmatpush1.msra.mxu0 %v7451_v52  ;;  %3310 = vmatpush1.msra.mxu1 %v7454_v54  ;;  %v9953_v52 = vld [vmem:[#allocation50_spill] sm:$0xff]  ;;  %v9954_v54 = vld [vmem:[#allocation51_spill] sm:$0xff] }
 0x84e   :  { %3240 = vmatprep.subr.mxu0 %v7457_v55  ;;  %3311 = vmatprep.subr.mxu1 %v7460_v56  ;;  %v9955_v55 = vld [vmem:[#allocation52_spill] sm:$0xff]  ;;  %v9956_v56 = vld [vmem:[#allocation53_spill] sm:$0xff] }
 0x84f   :  { %3241 = vmatpush1.msra.mxu0 %v7463_v58  ;;  %3312 = vmatpush1.msra.mxu1 %v7466_v59  ;;  %v9957_v58 = vld [vmem:[#allocation54_spill] sm:$0xff]  ;;  %v9958_v59 = vld [vmem:[#allocation55_spill] sm:$0xff] }
 0x850   :  { %3242 = vmatprep.subr.mxu0 %v7469_v61  ;;  %3313 = vmatprep.subr.mxu1 %v9919_v62  ;;  %v9959_v61 = vld [vmem:[#allocation56_spill] sm:$0xff]  ;;  %v9978_v62 = vld [vmem:[#allocation75_spill] sm:$0xff] }
 0x851   :  { %3243 = vmatpush1.msra.mxu0 %v9920_v24  ;;  %3314 = vmatpush1.msra.mxu1 %v9921_v32  ;;  %v9979_v24 = vld [vmem:[#allocation76_spill] sm:$0xff]  ;;  %v9980_v32 = vld [vmem:[#allocation77_spill] sm:$0xff] }
 0x852   :  { %3244 = vmatprep.subr.mxu0 %v9922_v22  ;;  %3315 = vmatprep.subr.mxu1 %v9923_v57  ;;  %v9981_v22 = vld [vmem:[#allocation78_spill] sm:$0xff]  ;;  %v9982_v57 = vld [vmem:[#allocation79_spill] sm:$0xff] }
 0x853   :  { %3245 = vmatpush1.msra.mxu0 %v9924_v25  ;;  %3316 = vmatpush1.msra.mxu1 %v9925_v40  ;;  %v9983_v25 = vld [vmem:[#allocation80_spill] sm:$0xff]  ;;  %v9984_v40 = vld [vmem:[#allocation81_spill] sm:$0xff] }
 0x854   :  { %3246 = vmatprep.subr.mxu0 %v9926_v1  ;;  %3317 = vmatprep.subr.mxu1 %v9927_v7  ;;  %v9985_v1 = vld [vmem:[#allocation82_spill] sm:$0xff]  ;;  %v9986_v7 = vld [vmem:[#allocation83_spill] sm:$0xff] }
 0x855   :  { %3247 = vmatpush1.msra.mxu0 %v9928_v8  ;;  %3318 = vmatpush1.msra.mxu1 %v9929_v21  ;;  %v9987_v8 = vld [vmem:[#allocation84_spill] sm:$0xff]  ;;  %v9988_v21 = vld [vmem:[#allocation85_spill] sm:$0xff] }
 0x856   :  { %3248 = vmatprep.subr.mxu0 %v9930_v4  ;;  %3319 = vmatprep.subr.mxu1 %v9931_v37  ;;  %v9989_v4 = vld [vmem:[#allocation86_spill] sm:$0xff]  ;;  %v9990_v37 = vld [vmem:[#allocation87_spill] sm:$0xff] }
 0x857   :  { %3249 = vmatpush1.msra.mxu0 %v9932_v20  ;;  %3320 = vmatpush1.msra.mxu1 %v9933_v42  ;;  %v9991_v20 = vld [vmem:[#allocation88_spill] sm:$0xff]  ;;  %v9992_v42 = vld [vmem:[#allocation89_spill] sm:$0xff] }
 0x858   :  { %3250 = vmatprep.subr.mxu0 %v9934_v2  ;;  %3321 = vmatprep.subr.mxu1 %v9935_v34  ;;  %v9993_v2 = vld [vmem:[#allocation90_spill] sm:$0xff]  ;;  %v9994_v34 = vld [vmem:[#allocation91_spill] sm:$0xff] }
 0x859   :  { %3251 = vmatpush1.msra.mxu0 %v9936_v0  ;;  %3322 = vmatpush1.msra.mxu1 %v9937_v14  ;;  %v9995_v0 = vld [vmem:[#allocation92_spill] sm:$0xff]  ;;  %v9996_v14 = vld [vmem:[#allocation93_spill] sm:$0xff] }
 0x85a   :  { %3252 = vmatprep.subr.mxu0 %v9938_v36  ;;  %3323 = vmatprep.subr.mxu1 %v9939_v27  ;;  %v9997_v36 = vld [vmem:[#allocation94_spill] sm:$0xff]  ;;  %v9998_v27 = vld [vmem:[#allocation95_spill] sm:$0xff] }
 0x85b   :  { %3253 = vmatpush1.msra.mxu0 %v9940_v60  ;;  %3286 = vmatprep.mubr.f32.mxu0 %v9941_v9  ;;  %v9999_v60 = vld [vmem:[#allocation96_spill] sm:$0xff] }
 0x85c   :  { %3324 = vmatpush1.msra.mxu1 %v9942_v10  ;;  %3357 = vmatprep.mubr.f32.mxu1 %v9941_v9  ;;  %v10000_v9 = vld [vmem:[#allocation97_spill] sm:$0xff]  ;;  %v10001_v10 = vld [vmem:[#allocation98_spill] sm:$0xff] }
 0x85d   :  { %3287 = vmatmul.mubr.f32.vlgmr.msra.gmra.mxu0 %v7950_v35  ;;  %3358 = vmatmul.mubr.f32.vlgmr.msra.gmra.mxu1 %v7950_v35  ;;  %v9977_v35 = vld [vmem:[#allocation74_spill] sm:$0xff] }
 0x85e   :  { %3418 = vmatprep.subr.mxu0 %v9943_v39  ;;  %3489 = vmatprep.subr.mxu1 %v9944_v44  ;;  %v10002_v39 = vld [vmem:[#allocation99_spill] sm:$0xff]  ;;  %v10003_v44 = vld [vmem:[#allocation100_spill] sm:$0xff] }
 0x85f   :  { %3419 = vmatpush1.msra.mxu0 %v9945_v29  ;;  %3490 = vmatpush1.msra.mxu1 %v9946_v46  ;;  %v10004_v29 = vld [vmem:[#allocation101_spill] sm:$0xff]  ;;  %v10005_v46 = vld [vmem:[#allocation102_spill] sm:$0xff] }
 0x860   :  { %3420 = vmatprep.subr.mxu0 %v9947_v47  ;;  %3491 = vmatprep.subr.mxu1 %v9948_v48  ;;  %v10006_v47 = vld [vmem:[#allocation103_spill] sm:$0xff]  ;;  %v10007_v48 = vld [vmem:[#allocation104_spill] sm:$0xff] }
 0x861   :  { %3421 = vmatpush1.msra.mxu0 %v9949_v49  ;;  %3492 = vmatpush1.msra.mxu1 %v9950_v50  ;;  %v10008_v49 = vld [vmem:[#allocation105_spill] sm:$0xff]  ;;  %v10009_v50 = vld [vmem:[#allocation106_spill] sm:$0xff] }
 0x862   :  { %3422 = vmatprep.subr.mxu0 %v9951_v33  ;;  %3493 = vmatprep.subr.mxu1 %v9952_v51  ;;  %v10010_v33 = vld [vmem:[#allocation107_spill] sm:$0xff]  ;;  %v10011_v51 = vld [vmem:[#allocation108_spill] sm:$0xff] }
 0x863   :  { %3423 = vmatpush1.msra.mxu0 %v9953_v52  ;;  %3494 = vmatpush1.msra.mxu1 %v9954_v54  ;;  %v10012_v52 = vld [vmem:[#allocation109_spill] sm:$0xff]  ;;  %v10013_v54 = vld [vmem:[#allocation110_spill] sm:$0xff] }
 0x864   :  { %3424 = vmatprep.subr.mxu0 %v9955_v55  ;;  %3495 = vmatprep.subr.mxu1 %v9956_v56  ;;  %v10014_v55 = vld [vmem:[#allocation111_spill] sm:$0xff]  ;;  %v10015_v56 = vld [vmem:[#allocation112_spill] sm:$0xff] }
 0x865   :  { %3425 = vmatpush1.msra.mxu0 %v9957_v58  ;;  %3496 = vmatpush1.msra.mxu1 %v9958_v59  ;;  %v10016_v58 = vld [vmem:[#allocation113_spill] sm:$0xff]  ;;  %v10017_v59 = vld [vmem:[#allocation114_spill] sm:$0xff] }
 0x866   :  { %3426 = vmatprep.subr.mxu0 %v9959_v61  ;;  %3497 = vmatprep.subr.mxu1 %v9960_v23  ;;  %v10018_v61 = vld [vmem:[#allocation115_spill] sm:$0xff]  ;;  %v10019_v23 = vld [vmem:[#allocation116_spill] sm:$0xff] }
 0x867   :  { %3427 = vmatpush1.msra.mxu0 %v9961_v31  ;;  %3498 = vmatpush1.msra.mxu1 %v9962_v6  ;;  %v10020_v31 = vld [vmem:[#allocation117_spill] sm:$0xff]  ;;  %v10021_v6 = vld [vmem:[#allocation118_spill] sm:$0xff] }
 0x868   :  { %3428 = vmatprep.subr.mxu0 %v9963_v11  ;;  %3499 = vmatprep.subr.mxu1 %v9964_v30  ;;  %v10022_v11 = vld [vmem:[#allocation119_spill] sm:$0xff]  ;;  %v10023_v30 = vld [vmem:[#allocation120_spill] sm:$0xff] }
 0x869   :  { %3429 = vmatpush1.msra.mxu0 %v9965_v5  ;;  %3500 = vmatpush1.msra.mxu1 %v9966_v15  ;;  %v10024_v5 = vld [vmem:[#allocation121_spill] sm:$0xff]  ;;  %v10025_v15 = vld [vmem:[#allocation122_spill] sm:$0xff] }
 0x86a   :  { %3430 = vmatprep.subr.mxu0 %v9967_v43  ;;  %3501 = vmatprep.subr.mxu1 %v9968_v3  ;;  %v10026_v43 = vld [vmem:[#allocation123_spill] sm:$0xff]  ;;  %v10027_v3 = vld [vmem:[#allocation124_spill] sm:$0xff] }
 0x86b   :  { %3431 = vmatpush1.msra.mxu0 %v9969_v12  ;;  %3502 = vmatpush1.msra.mxu1 %v9970_v17  ;;  %v10028_v12 = vld [vmem:[#allocation125_spill] sm:$0xff]  ;;  %v10029_v17 = vld [vmem:[#allocation126_spill] sm:$0xff] }
 0x86c   :  { %3432 = vmatprep.subr.mxu0 %v9971_v18  ;;  %3503 = vmatprep.subr.mxu1 %v9972_v16  ;;  %v10030_v18 = vld [vmem:[#allocation127_spill] sm:$0xff]  ;;  %v10031_v16 = vld [vmem:[#allocation128_spill] sm:$0xff] }
 0x86d   :  { %3433 = vmatpush1.msra.mxu0 %v9973_v38  ;;  %3504 = vmatpush1.msra.mxu1 %v9974_v19  ;;  %v10032_v38 = vld [vmem:[#allocation129_spill] sm:$0xff]  ;;  %v10033_v19 = vld [vmem:[#allocation130_spill] sm:$0xff] }
 0x86e   :  { %3434 = vmatprep.subr.mxu0 %v9975_v63  ;;  %3505 = vmatprep.subr.mxu1 %v9976_v53  ;;  %v10034_v63 = vld [vmem:[#allocation131_spill] sm:$0xff]  ;;  %v10035_v53 = vld [vmem:[#allocation132_spill] sm:$0xff] }
 0x86f   :  { %3435 = vmatpush1.msra.mxu0 %v9977_v35  ;;  %3506 = vmatpush1.msra.mxu1 %v9978_v62  ;;  %v10036_v35 = vld [vmem:[#allocation133_spill] sm:$0xff]  ;;  %v10037_v62 = vld [vmem:[#allocation134_spill] sm:$0xff] }
 0x870   :  { %3436 = vmatprep.subr.mxu0 %v9979_v24  ;;  %3507 = vmatprep.subr.mxu1 %v9980_v32  ;;  %v10038_v24 = vld [vmem:[#allocation135_spill] sm:$0xff]  ;;  %v10039_v32 = vld [vmem:[#allocation136_spill] sm:$0xff] }
 0x871   :  { %3437 = vmatpush1.msra.mxu0 %v9981_v22  ;;  %3508 = vmatpush1.msra.mxu1 %v9982_v57  ;;  %v10040_v22 = vld [vmem:[#allocation137_spill] sm:$0xff]  ;;  %v10041_v57 = vld [vmem:[#allocation138_spill] sm:$0xff] }
 0x872   :  { %3438 = vmatprep.subr.mxu0 %v9983_v25  ;;  %3509 = vmatprep.subr.mxu1 %v9984_v40  ;;  %v10042_v25 = vld [vmem:[#allocation139_spill] sm:$0xff]  ;;  %v10043_v40 = vld [vmem:[#allocation140_spill] sm:$0xff] }
 0x873   :  { %3439 = vmatpush1.msra.mxu0 %v9985_v1  ;;  %3510 = vmatpush1.msra.mxu1 %v9986_v7  ;;  %v10044_v1 = vld [vmem:[#allocation141_spill] sm:$0xff]  ;;  %v10045_v7 = vld [vmem:[#allocation142_spill] sm:$0xff] }
 0x874   :  { %3440 = vmatprep.subr.mxu0 %v9987_v8  ;;  %3511 = vmatprep.subr.mxu1 %v9988_v21  ;;  %v10046_v8 = vld [vmem:[#allocation143_spill] sm:$0xff]  ;;  %v10047_v21 = vld [vmem:[#allocation144_spill] sm:$0xff] }
 0x875   :  { %3441 = vmatpush1.msra.mxu0 %v9989_v4  ;;  %3512 = vmatpush1.msra.mxu1 %v9990_v37  ;;  %v10048_v4 = vld [vmem:[#allocation145_spill] sm:$0xff]  ;;  %v10049_v37 = vld [vmem:[#allocation146_spill] sm:$0xff] }
 0x876   :  { %3442 = vmatprep.subr.mxu0 %v9991_v20  ;;  %3513 = vmatprep.subr.mxu1 %v9992_v42  ;;  %v10050_v20 = vld [vmem:[#allocation147_spill] sm:$0xff]  ;;  %v10051_v42 = vld [vmem:[#allocation148_spill] sm:$0xff] }
 0x877   :  { %3443 = vmatpush1.msra.mxu0 %v9993_v2  ;;  %3514 = vmatpush1.msra.mxu1 %v9994_v34  ;;  %v10052_v2 = vld [vmem:[#allocation149_spill] sm:$0xff]  ;;  %v10053_v34 = vld [vmem:[#allocation150_spill] sm:$0xff] }
 0x878   :  { %3444 = vmatprep.subr.mxu0 %v9995_v0  ;;  %3515 = vmatprep.subr.mxu1 %v9996_v14  ;;  %v10054_v0 = vld [vmem:[#allocation151_spill] sm:$0xff]  ;;  %v10055_v14 = vld [vmem:[#allocation152_spill] sm:$0xff] }
 0x879   :  { %3445 = vmatpush1.msra.mxu0 %v9997_v36  ;;  %3516 = vmatpush1.msra.mxu1 %v9998_v27  ;;  %v10056_v36 = vld [vmem:[#allocation153_spill] sm:$0xff]  ;;  %v10057_v27 = vld [vmem:[#allocation154_spill] sm:$0xff] }
 0x87a   :  { %3446 = vmatprep.subr.mxu0 %v9999_v60  ;;  %3517 = vmatprep.subr.mxu1 %v10000_v9  ;;  %v10058_v60 = vld [vmem:[#allocation155_spill] sm:$0xff]  ;;  %v10059_v9 = vld [vmem:[#allocation156_spill] sm:$0xff] }
 0x87b   :  { %3447 = vmatpush1.msra.mxu0 %v10001_v10  ;;  %3518 = vmatpush1.msra.mxu1 %v10002_v39  ;;  %v10060_v10 = vld [vmem:[#allocation157_spill] sm:$0xff]  ;;  %v10061_v39 = vld [vmem:[#allocation158_spill] sm:$0xff] }
 0x87c   :  { %3448 = vmatprep.subr.mxu0 %v10003_v44  ;;  %3519 = vmatprep.subr.mxu1 %v10004_v29  ;;  %v10062_v44 = vld [vmem:[#allocation159_spill] sm:$0xff]  ;;  %v10063_v29 = vld [vmem:[#allocation160_spill] sm:$0xff] }
 0x87d   :  { %3449 = vmatpush1.msra.mxu0 %v10005_v46  ;;  %3520 = vmatpush1.msra.mxu1 %v10006_v47  ;;  %v10064_v46 = vld [vmem:[#allocation161_spill] sm:$0xff]  ;;  %v10065_v47 = vld [vmem:[#allocation162_spill] sm:$0xff] }
 0x87e   :  { %3450 = vmatprep.subr.mxu0 %v10007_v48  ;;  %3521 = vmatprep.subr.mxu1 %v10008_v49  ;;  %v10066_v48 = vld [vmem:[#allocation163_spill] sm:$0xff]  ;;  %v10067_v49 = vld [vmem:[#allocation164_spill] sm:$0xff] }
 0x87f   :  { %3451 = vmatpush2.msra.mxu0 %v10009_v50  ;;  %3522 = vmatpush2.msra.mxu1 %v10010_v33  ;;  %v10068_v50 = vld [vmem:[#allocation165_spill] sm:$0xff]  ;;  %v10069_v33 = vld [vmem:[#allocation170_spill] sm:$0xff] }
 0x880   :  { %3452 = vmatprep.subr.mxu0 %v10011_v51  ;;  %3523 = vmatprep.subr.mxu1 %v10012_v52  ;;  %v10070_v51 = vld [vmem:[#allocation171_spill] sm:$0xff]  ;;  %v4717_v52 = vmov 0  }
 0x881   :  { %3453 = vmatpush2.msra.mxu0 %v10013_v54  ;;  %3524 = vmatpush2.msra.mxu1 %v10014_v55  ;;  %v10071_v55 = vld [vmem:[#allocation16_spill] sm:$0xff] }
 0x882   :  { %3454 = vmatprep.subr.mxu0 %v10015_v56  ;;  %3525 = vmatprep.subr.mxu1 %v10016_v58 }
 0x883   :  { %3455 = vmatpush2.msra.mxu0 %v10017_v59  ;;  %3526 = vmatpush2.msra.mxu1 %v10018_v61  ;;  %v10072_v61 = vld [vmem:[#allocation17_spill] sm:$0xff] }
 0x884   :  { %3456 = vmatprep.subr.mxu0 %v10019_v23  ;;  %3527 = vmatprep.subr.mxu1 %v10020_v31 }
 0x885   :  { %3457 = vmatpush2.msra.mxu0 %v10021_v6  ;;  %3528 = vmatpush2.msra.mxu1 %v10022_v11 }
 0x886   :  { %3458 = vmatprep.subr.mxu0 %v10023_v30  ;;  %3529 = vmatprep.subr.mxu1 %v10024_v5  ;;  %v10073_v30 = vld [vmem:[#allocation18_spill] sm:$0xff] }
 0x887   :  { %3459 = vmatpush2.msra.mxu0 %v10025_v15  ;;  %3530 = vmatpush2.msra.mxu1 %v10026_v43 }
 0x888   :  { %3460 = vmatprep.subr.mxu0 %v10027_v3  ;;  %3531 = vmatprep.subr.mxu1 %v10028_v12  ;;  %v10074_v3 = vld [vmem:[#allocation19_spill] sm:$0xff] }
 0x889   :  { %3461 = vmatpush2.msra.mxu0 %v10029_v17  ;;  %3532 = vmatpush2.msra.mxu1 %v10030_v18 }
 0x88a   :  { %3462 = vmatprep.subr.mxu0 %v10031_v16  ;;  %3533 = vmatprep.subr.mxu1 %v10032_v38 }
 0x88b   :  { %3463 = vmatpush2.msra.mxu0 %v10033_v19  ;;  %3534 = vmatpush2.msra.mxu1 %v10034_v63 }
 0x88c   :  { %3464 = vmatprep.subr.mxu0 %v10035_v53  ;;  %3535 = vmatprep.subr.mxu1 %v10036_v35 }
 0x88d   :  { %3465 = vmatpush2.msra.mxu0 %v10037_v62  ;;  %3536 = vmatpush2.msra.mxu1 %v10038_v24 }
 0x88e   :  { %3466 = vmatprep.subr.mxu0 %v10039_v32  ;;  %3537 = vmatprep.subr.mxu1 %v10040_v22 }
 0x88f   :  { %3467 = vmatpush2.msra.mxu0 %v10041_v57  ;;  %3538 = vmatpush2.msra.mxu1 %v10042_v25 }
 0x890   :  { %3468 = vmatprep.subr.mxu0 %v10043_v40  ;;  %3539 = vmatprep.subr.mxu1 %v10044_v1 }
 0x891   :  { %3469 = vmatpush2.msra.mxu0 %v10045_v7  ;;  %3540 = vmatpush2.msra.mxu1 %v10046_v8 }
 0x892   :  { %3470 = vmatprep.subr.mxu0 %v10047_v21  ;;  %3541 = vmatprep.subr.mxu1 %v10048_v4 }
 0x893   :  { %3471 = vmatpush2.msra.mxu0 %v10049_v37  ;;  %3542 = vmatpush2.msra.mxu1 %v10050_v20  ;;  %v10075_v37 = vcombine.high %v9916_v13, %v9917_v41 }
 0x894   :  { %3472 = vmatprep.subr.mxu0 %v10051_v42  ;;  %3543 = vmatprep.subr.mxu1 %v10052_v2 }
 0x895   :  { %3473 = vmatpush2.msra.mxu0 %v10053_v34  ;;  %3544 = vmatpush2.msra.mxu1 %v10054_v0 }
 0x896   :  { %3474 = vmatprep.subr.mxu0 %v10055_v14  ;;  %3545 = vmatprep.subr.mxu1 %v10056_v36 }
 0x897   :  { %3475 = vmatpush2.msra.mxu0 %v10057_v27  ;;  %3546 = vmatpush2.msra.mxu1 %v10058_v60 }
 0x898   :  { %3476 = vmatprep.subr.mxu0 %v10059_v9  ;;  %3547 = vmatprep.subr.mxu1 %v10060_v10 }
 0x899   :  { %3477 = vmatpush2.msra.mxu0 %v10061_v39  ;;  %3548 = vmatpush2.msra.mxu1 %v10062_v44  ;;  %v4621_v39 = vld [vmem:[%s8183_s6] ss:$0 sm:$0xff] }
 0x89a   :  { %3478 = vmatprep.subr.mxu0 %v10063_v29  ;;  %3549 = vmatprep.subr.mxu1 %v10064_v46 }
 0x89b   :  { %3479 = vmatpush2.msra.mxu0 %v10065_v47  ;;  %3550 = vmatpush2.msra.mxu1 %v10066_v48 }
 0x89c   :  { %3480 = vmatprep.subr.mxu0 %v10067_v49  ;;  %3551 = vmatprep.subr.mxu1 %v10068_v50 }
 0x89d   :  { %3481 = vmatpush2.msra.mxu0 %v10069_v33  ;;  %3552 = vmatpush2.msra.mxu1 %v10070_v51 }
 0x89e   :  { %3786 = vset.pattern.permute.xlu0 %v4717_v52 }
 0x8fc   :  { %v3118_v54 = vpop.f32.mrf.mxu0  ;;  %v3189_v31 = vpop.f32.mrf.mxu1 }
 0x8fd   :  { %v3119_v56 = vadd.f32 %v3118_v54, %v10071_v55  ;;  %v3190_v12 = vadd.f32 %v3189_v31, %v10074_v3  ;;  %v3775_v54 = vld [vmem:[#allocation4] ss:$0 sm:$0xff] }
 0x8fe   :  { %v3120_v58 = vpop.f32.mrf.mxu0  ;;  %v3191_v11 = vpop.f32.mrf.mxu1 }
 0x8ff   :  { %v3765_v59 = vmul.f32 -1.442695, %v3119_v56  ;;  %v3121_v23 = vadd.f32 %v3120_v58, %v10072_v61  ;;  %v3192_v5 = vadd.f32 %v3191_v11, %v10073_v30 }
 0x901   :  { %3995 = vpow2.f32 %v3765_v59  ;;  %v3766_v6 = vmul.f32 -1.442695, %v3121_v23  ;;  %v3767_v15 = vmul.f32 -1.442695, %v3192_v5 }
 0x903   :  { %3997 = vpow2.f32 %v3766_v6 }
 0x904   :  { %3999 = vpow2.f32 %v3767_v15 }
 0x90e   :  { %v3996_v43 = vpop.eup %3995 }
 0x90f   :  { %v3197_v17 = vadd.f32 1.0, %v3996_v43 }
 0x910   :  { %v3998_v18 = vpop.eup %3997 }
 0x911   :  { %4001 = vrcp.f32 %v3197_v17  ;;  %v3203_v16 = vadd.f32 1.0, %v3998_v18  ;;  %v4000_v38 = vpop.eup %3999 }
 0x912   :  { %4003 = vtanh.f32 %v3190_v12  ;;  %v3210_v22 = vadd.f32 1.0, %v4000_v38 }
 0x913   :  { %4005 = vrcp.f32 %v3203_v16 }
 0x914   :  { %4007 = vrcp.f32 %v3210_v22 }
 0x91d   :  { %v3288_v19 = vpop.f32.mrf.mxu0  ;;  %v3359_v63 = vpop.f32.mrf.mxu1 }
 0x91e   :  { %v4002_v53 = vpop.eup %4001 }
 0x91f   :  { %v4004_v35 = vpop.eup %4003  ;;  %v3290_v62 = vpop.f32.mrf.mxu0 }
 0x920   :  { %v3361_v24 = vpop.f32.mrf.mxu1  ;;  %v4006_v32 = vpop.eup %4005  ;;  %v3368_v57 = vcombine.low %v3288_v19, %v3290_v62  ;;  %v3214_v40 = vmul.f32 %v4004_v35, %v4002_v53 }
 0x921   :  { %v3369_v25 = vcombine.low %v3359_v63, %v3361_v24  ;;  %v3213_v1 = vmul.f32 %v4006_v32, %v7938_v26  ;;  %v4008_v26 = vpop.eup %4007 }
 0x922   :  { %v3376_v7 = vrot.slane %v3368_v57, %v4795_v28 }
 0x923   :  { %v3383_v8 = vrot.slane %v3369_v25, %v4795_v28  ;;  %v8155_v21 = vadd.f32 %v3214_v40, %v3213_v1 }
 0x925   :  { %v3384_v4 = vcombine.low %v3376_v7, %v3383_v8  ;;  %4009 = vtanh.f32 %v8155_v21  ;;  %v3612_v7 = vpop.xlane.xlu0 %3611 }
 0x927   :  { %v3386_v20 = vadd.f32 %v3384_v4, %v10075_v37 }
 0x929   :  { %v3768_v42 = vmul.f32 -1.442695, %v3386_v20  ;;  %v3394_v2 = vrot.slane %v3386_v20, 2  ;;  %v3405_v0 = vrot.slane %v3386_v20, 6  ;;  %v3402_v60 = vrot.slane %v3386_v20, 4  ;;  %v3615_v8 = vpop.xlane.xlu0 %3614 }
 0x92a   :  { %v10076_v20 = vlaneseq }
 0x92b   :  { %4011 = vpow2.f32 %v3768_v42  ;;  %v3769_v34 = vmul.f32 -1.442695, %v3394_v2  ;;  %v3770_v28 = vmul.f32 -1.442695, %v3405_v0 }
 0x92c   :  { %v3661_v42 = vand.u32 127, %v10076_v20 }
 0x92d   :  { %4013 = vpow2.f32 %v3769_v34  ;;  %v3624_v4 = vpop.xlane.xlu0 %3623 }
 0x92e   :  { %4015 = vpow2.f32 %v3770_v28 }
 0x932   :  { %v4010_v14 = vpop.eup %4009 }
 0x933   :  { %v3217_v36 = vmul.f32 %v4010_v14, %v4008_v26  ;;  %v3618_v14 = vpop.xlane.xlu1 %3617 }
 0x935   :  { %3219 = vst [vmem:[#allocation3 + $0xc] sm:$0x3] %v3217_v36  ;;  %3482 = vmatprep.mubr.f32.mxu0 %v3217_v36  ;;  %3553 = vmatprep.mubr.f32.mxu1 %v3217_v36 }
 0x938   :  { %v4012_v27 = vpop.eup %4011 }
 0x939   :  { %v3390_v9 = vadd.f32 1.0, %v4012_v27 }
 0x93a   :  { %v4014_v10 = vpop.eup %4013 }
 0x93b   :  { %4017 = vrcp.f32 %v3390_v9  ;;  %v3399_v13 = vadd.f32 1.0, %v4014_v10  ;;  %v4016_v46 = vpop.eup %4015 }
 0x93c   :  { %4019 = vtanh.f32 %v3402_v60  ;;  %v3592_v41 = vld [vmem:[#allocation3 + $0xc] sm:$0x3]  ;;  %v3410_v50 = vadd.f32 1.0, %v4016_v46  ;;  %v3621_v60 = vpop.xlane.xlu1 %3620 }
 0x93d   :  { %4021 = vrcp.f32 %v3399_v13  ;;  %v3607_v44 = vmul.f32 %v4621_v39, %v3592_v41 }
 0x93e   :  { %4023 = vrcp.f32 %v3410_v50 }
 0x93f   :  { %v3628_v29 = vsel %vm3609_vm2, %v3607_v44, 0.0 }
 0x940   :  { %3629 = vadd.xlane.f32.xlu0 %v3628_v29  ;;  %v3627_v29 = vpop.xlane.xlu1 %3626 }
 0x948   :  { %v4018_v47 = vpop.eup %4017 }
 0x949   :  { %v4020_v48 = vpop.eup %4019 }
 0x94a   :  { %v4022_v49 = vpop.eup %4021  ;;  %v3414_v51 = vmul.f32 %v4020_v48, %v4018_v47 }
 0x94b   :  { %v3413_v33 = vmul.f32 %v4022_v49, %v7947_v45  ;;  %v4024_v56 = vpop.eup %4023 }
 0x94d   :  { %v3415_v52 = vadd.f32 %v3414_v51, %v3413_v33 }
 0x94f   :  { %4025 = vtanh.f32 %v3415_v52 }
 0x956   :  { %3641 = vperm.xlu0 %3786, %v3775_v54  }
 0x95c   :  { %v4026_v58 = vpop.eup %4025 }
 0x95d   :  { %v3417_v59 = vmul.f32 %v4026_v58, %v4024_v56 }
 0x95f   :  { %3483 = vmatmul.mubr.f32.vlgmr.msra.gmra.mxu0 %v3417_v59  ;;  %3554 = vmatmul.mubr.f32.vlgmr.msra.gmra.mxu1 %v3417_v59 }
 0x9c9   :  { %v3630_v37 = vpop.xlane.xlu0 %3629 }
 0x9d1   :  { %v3642_v2 = vpop.permute.xlu0 %3641 }
 0x9d2   :  { %v3644_v26 = vadd.f32 %v3642_v2, %v3612_v7  ;;  %v3645_v0 = vadd.f32 %v3642_v2, %v3615_v8  ;;  %v3646_v36 = vadd.f32 %v3642_v2, %v3618_v14  ;;  %v3647_v10 = vadd.f32 %v3642_v2, %v3621_v60 }
 0x9d3   :  { %v3648_v41 = vadd.f32 %v3642_v2, %v3624_v4  ;;  %v3649_v46 = vadd.f32 %v3642_v2, %v3627_v29  ;;  %v3650_v49 = vadd.f32 %v3642_v2, %v3630_v37 }
 0xa1f   :  { %v3484_v23 = vpop.f32.mrf.mxu0  ;;  %v3555_v45 = vpop.f32.mrf.mxu1 }
 0xa20   :  { %v3485_v31 = vadd.f32 %v3484_v23, %v10071_v55  ;;  %v3556_v16 = vadd.f32 %v3555_v45, %v10074_v3 }
 0xa21   :  { %v3486_v6 = vpop.f32.mrf.mxu0  ;;  %v3557_v43 = vpop.f32.mrf.mxu1 }
 0xa22   :  { %v3771_v11 = vmul.f32 -1.442695, %v3485_v31  ;;  %v3487_v5 = vadd.f32 %v3486_v6, %v10072_v61  ;;  %v3558_v12 = vadd.f32 %v3557_v43, %v10073_v30 }
 0xa24   :  { %4027 = vpow2.f32 %v3771_v11  ;;  %v3772_v15 = vmul.f32 -1.442695, %v3487_v5  ;;  %v3773_v17 = vmul.f32 -1.442695, %v3558_v12 }
 0xa26   :  { %4029 = vpow2.f32 %v3772_v15 }
 0xa27   :  { %4031 = vpow2.f32 %v3773_v17 }
 0xa31   :  { %v4028_v18 = vpop.eup %4027 }
 0xa32   :  { %v3563_v38 = vadd.f32 1.0, %v4028_v18 }
 0xa33   :  { %v4030_v19 = vpop.eup %4029 }
 0xa34   :  { %4033 = vrcp.f32 %v3563_v38  ;;  %v3569_v55 = vadd.f32 1.0, %v4030_v19  ;;  %v4032_v63 = vpop.eup %4031 }
 0xa35   :  { %4035 = vtanh.f32 %v3556_v16  ;;  %v3576_v62 = vadd.f32 1.0, %v4032_v63 }
 0xa36   :  { %4037 = vrcp.f32 %v3569_v55 }
 0xa37   :  { %4039 = vrcp.f32 %v3576_v62 }
 0xa41   :  { %v4034_v61 = vpop.eup %4033 }
 0xa42   :  { %v4036_v53 = vpop.eup %4035 }
 0xa43   :  { %v4038_v35 = vpop.eup %4037  ;;  %v3580_v24 = vmul.f32 %v4036_v53, %v4034_v61 }
 0xa44   :  { %v3579_v32 = vmul.f32 %v4038_v35, %v8155_v21  ;;  %v4040_v22 = vpop.eup %4039  ;;  %v10077_v21 = vld [vmem:[#allocation15_spill] sm:$0xff] }
 0xa45   :  { %v3664_v34 = vsub.s32 %v3661_v42, %v10077_v21 }
 0xa46   :  { %v3581_v30 = vadd.f32 %v3580_v24, %v3579_v32 }
 0xa47   :  { %v3665_v28 = vrot.slane %v3644_v26, %v3664_v34  ;;  %v3669_v27 = vrot.slane %v3645_v0, %v3664_v34  ;;  %v3673_v9 = vrot.slane %v3646_v36, %v3664_v34  ;;  %v3677_v44 = vrot.slane %v3647_v10, %v3664_v34 }
 0xa48   :  { %4041 = vtanh.f32 %v3581_v30  ;;  %v3681_v48 = vrot.slane %v3648_v41, %v3664_v34  ;;  %v3685_v33 = vrot.slane %v3649_v46, %v3664_v34  ;;  %v3689_v56 = vrot.slane %v3650_v49, %v3664_v34 }
 0xa49   :  { %v3695_v13 = vsel %vm3694_vm3, %v3669_v27, %v3665_v28 }
 0xa55   :  { %v4042_v3 = vpop.eup %4041 }
 0xa56   :  { %v3583_v57 = vmul.f32 %v4042_v3, %v4040_v22 }
 0xa58   :  { %3585 = vst [vmem:[#allocation3 + $0xe] sm:$0x3] %v3583_v57 }
 0xa5f   :  { %v3593_v25 = vld [vmem:[#allocation3 + $0xe] sm:$0x3] }
 0xa60   :  { %v3608_v40 = vmul.f32 %v4621_v39, %v3593_v25  ;;  %v3697_v39 = vsel %vm3696_vm4, %v3673_v9, %v3695_v13 }
 0xa61   :  { %v3699_v47 = vsel %vm3698_vm5, %v3677_v44, %v3697_v39 }
 0xa62   :  { %v3631_v1 = vsel %vm3609_vm2, %v3608_v40, 0.0  ;;  %v3701_v50 = vsel %vm3700_vm6, %v3681_v48, %v3699_v47 }
 0xa63   :  { %3632 = vadd.xlane.f32.xlu1 %v3631_v1  ;;  %v3703_v54 = vsel %vm3702_vm7, %v3685_v33, %v3701_v50 }
 0xa64   :  { %v3705_v59 = vsel %vm3704_vm8, %v3689_v56, %v3703_v54 }
 0xaec   :  { %v3633_v51 = vpop.xlane.xlu1 %3632 }
 0xaed   :  { %v3651_v52 = vadd.f32 %v3642_v2, %v3633_v51 }
 0xaef   :  { %v3693_v58 = vrot.slane %v3651_v52, %v3664_v34 }
 0xaf1   :  { %v3707_v23 = vsel %vm3706_vm9, %v3693_v58, %v3705_v59 }
 0xaf2   :  { %3710 = vst.msk [vmem:[%s8185_s8] sm:$0xff] %vm3709_vm10, %v3707_v23 }
 0xaf3   :  { %3715 = vsyncpa [#allocation6], 1 }
 0xaf4   :  { %3716 = vsyncpa [#allocation8], 1 }
 0xaf5   :  { %3717 = vsyncpa [#allocation11], 1 }

</bundles_post_ra>
